<compile_context>
chip_gen: v6e
topology: v6e:2x2x1
jax: 0.10.0
libtpu: 0.0.40
codegen_flags: <defaults>
</compile_context>

<pallas_src>
import numpy as np
import jax
import jax.numpy as jnp
from jax import lax
from jax.experimental import pallas as pl
from jax.experimental.pallas import tpu as pltpu


# -----------------------------------------------------------------------------
# Parameter construction (deterministic; shapes follow the PyTorch __init__).
# Conv weights are stored as (Cout, KH*KW*Cin) matrices matching the in-kernel
# im2col tap ordering (kh-major, kw, then input channel).
# -----------------------------------------------------------------------------
def make_sobel_weight(out_ch, in_ch, k=3):
    w = np.zeros((out_ch, in_ch, k, k), np.float32)
    mid = k // 2
    for idx in range(out_ch):
        if idx % 4 == 0:
            w[idx, :, 0, :] = -1; w[idx, :, 0, mid] = -2
            w[idx, :, -1, :] = 1; w[idx, :, -1, mid] = 2
        elif idx % 4 == 1:
            w[idx, :, :, 0] = -1; w[idx, :, mid, 0] = -2
            w[idx, :, :, -1] = 1; w[idx, :, mid, -1] = 2
        elif idx % 4 == 2:
            w[idx, :, 0, 0] = -2
            for i in range(0, mid + 1):
                w[idx, :, mid - i, i] = -1
                w[idx, :, k - 1 - i, mid + i] = 1
            w[idx, :, -1, -1] = 2
        else:
            w[idx, :, -1, 0] = -2
            for i in range(0, mid + 1):
                w[idx, :, mid + i, i] = -1
                w[idx, :, i, mid + i] = 1
            w[idx, :, 0, -1] = 2
    return w


def oihw_to_mat(w):
    """(O, I, KH, KW) -> (O, KH*KW*I) with column = (kh*KW + kw)*I + i."""
    O, I, KH, KW = w.shape
    return jnp.transpose(jnp.asarray(w), (0, 2, 3, 1)).reshape(O, KH * KW * I)


def init_params(key, in_ch, sobel_ch, mid):
    keys = jax.random.split(key, 32)
    ki = iter(keys)

    def wmat(cout, cin, k):
        w = 0.1 * jax.random.normal(next(ki), (cout, cin, k, k), jnp.float32)
        return oihw_to_mat(w)

    def bias(c):
        return 0.05 * jax.random.normal(next(ki), (c, 1), jnp.float32)

    p = {}
    # SobelConv2d: fixed structured weight * sobel_factor (ones), bias zeros.
    sob = make_sobel_weight(sobel_ch, in_ch) * np.ones((sobel_ch, 1, 1, 1), np.float32)
    p['sobel_w'] = oihw_to_mat(sob)
    p['sobel_b'] = jnp.zeros((sobel_ch, 1), jnp.float32)

    cat1 = in_ch + sobel_ch
    cat2 = in_ch + sobel_ch + mid
    p['p1_w'], p['p1_b'] = wmat(mid, cat1, 1), bias(mid)
    p['f1_w'], p['f1_b'] = wmat(mid, cat2, 3), bias(mid)
    p['f2_w'], p['f2_b'] = wmat(mid, cat2, 3), bias(mid)
    p['f3_w'], p['f3_b'] = wmat(mid, cat2, 3), bias(mid)
    p['c1_w'], p['c1_b'] = wmat(mid, mid, 3), bias(mid)
    p['c2_w'], p['c2_b'] = wmat(mid, mid, 3), bias(mid)
    p['c3_w'], p['c3_b'] = wmat(mid, mid, 3), bias(mid)
    p['fus_w'], p['fus_b'] = wmat(in_ch, 4 * mid, 1), bias(in_ch)

    # SRU / GroupBatchnorm2d params (gamma ~ randn, beta zeros).
    p['gn_gamma'] = jax.random.normal(next(ki), (mid, 1), jnp.float32)
    p['gn_beta'] = jnp.zeros((mid, 1), jnp.float32)

    # CRU params.
    up = mid // 2
    low = mid - up
    up_s, low_s = up // 2, low // 2
    groups = 2
    p['sq1_w'] = wmat(up_s, up, 1)
    p['sq2_w'] = wmat(low_s, low, 1)
    # GWC (grouped 3x3, bias) + PWC1 (1x1, no bias) folded into one dense 3x3
    # weight: cross-group entries are zero (exact) and PWC1 goes into the
    # center tap.
    gwc_raw = np.asarray(0.1 * jax.random.normal(
        next(ki), (mid, up_s // groups, 3, 3), jnp.float32))
    dense = np.zeros((mid, up_s, 3, 3), np.float32)
    out_pg, in_pg = mid // groups, up_s // groups
    for o in range(mid):
        grp = o // out_pg
        dense[o, grp * in_pg:(grp + 1) * in_pg] = gwc_raw[o]
    pwc1 = np.asarray(0.1 * jax.random.normal(next(ki), (mid, up_s), jnp.float32))
    dense[:, :, 1, 1] += pwc1
    p['gwc_w'] = oihw_to_mat(dense)
    p['gwc_b'] = bias(mid)
    p['pwc2_w'] = wmat(mid - low_s, low_s, 1)

    # BatchNorm2d params.
    p['bn_gamma'] = jnp.ones((mid, 1), jnp.float32)
    p['bn_beta'] = jnp.zeros((mid, 1), jnp.float32)
    return p


# -----------------------------------------------------------------------------
# Host-side operand packing: bf16 weight packs, bias/affine pack, and the
# constant masks/selectors/group matrix used inside the kernel.
# -----------------------------------------------------------------------------
def _pack_operands(p, in_ch, sobel_ch, mid, H, W, group_num):
    HW = H * W
    bf = jnp.bfloat16
    cat_xs = in_ch + sobel_ch
    cat2 = cat_xs + mid

    def split_f(wmat):
        w3 = wmat.reshape(mid, 9, cat2)
        wxs = w3[:, :, :cat_xs].reshape(mid, 9 * cat_xs)
        wbr = w3[:, :, cat_xs:].reshape(mid, 9 * mid)
        return wxs, wbr

    fsplit = [split_f(p[k]) for k in ('f1_w', 'f2_w', 'f3_w')]
    pack360 = jnp.concatenate([s[0] for s in fsplit], axis=0).astype(bf)     # (3*mid, 9*cat_xs)
    pack288 = jnp.concatenate([s[1] for s in fsplit]
                              + [p['c1_w'], p['c2_w'], p['c3_w']], axis=0).astype(bf)
    fus_stack = jnp.concatenate(
        [p['fus_w'][:, k * mid:(k + 1) * mid] for k in range(4)], axis=0).astype(bf)

    # bias / affine pack: (mid, 16) f32, one column per vector.
    sob_b = jnp.zeros((mid, 1), jnp.float32).at[:sobel_ch].set(p['sobel_b'])
    cols = [p['p1_b'], p['f1_b'], p['f2_b'], p['f3_b'], p['c1_b'], p['c2_b'],
            p['c3_b'], p['fus_b'], p['gwc_b'], p['gn_gamma'], p['gn_beta'], sob_b]
    bias_pack = jnp.concatenate(
        cols + [jnp.zeros((mid, 16 - len(cols)), jnp.float32)], axis=1)

    # constants (computed once on host, DMA'd once, resident across grid steps)
    sidx = np.arange(HW)
    ri, ci = sidx // W, sidx % W
    mrows = []
    for d in (1, 3, 5):
        for kh in range(3):
            for kw in range(3):
                dh, dw = (kh - 1) * d, (kw - 1) * d
                mrows.append(((ri + dh >= 0) & (ri + dh < H) &
                              (ci + dw >= 0) & (ci + dw < W)).astype(np.float32))
    masks = jnp.asarray(np.stack(mrows, 0))                                  # (27, HW)
    row_sel = jnp.asarray((sidx[None, :] // W == np.arange(H)[:, None]).astype(np.float32))
    col_sel = jnp.asarray((sidx[None, :] % W == np.arange(W)[:, None]).astype(np.float32))
    g = np.arange(mid) // (mid // group_num)
    grp_mat = jnp.asarray((g[:, None] == g[None, :]).astype(np.float32))

    return dict(masks=masks, row_sel=row_sel, col_sel=col_sel, grp_mat=grp_mat,
                bias_pack=bias_pack, pack360=pack360, pack288=pack288,
                sobel_w=p['sobel_w'].astype(bf), p1_w=p['p1_w'].astype(bf),
                fus_stack=fus_stack, gwc_w=p['gwc_w'].astype(bf),
                sq1_w=p['sq1_w'].astype(bf), sq2_w=p['sq2_w'].astype(bf),
                pwc2_w=p['pwc2_w'].astype(bf))


# -----------------------------------------------------------------------------
# Fused MAB forward.  NCHW in / NCHW out; in-kernel layout is (C, H*W).
# -----------------------------------------------------------------------------
def mab_forward(x_nchw, p, *, group_num=16, gate=0.5, gn_eps=1e-10,
                bn_eps=1e-5, slope=0.2):
    N, Cin, H, W = x_nchw.shape
    HW = H * W
    mid = p['p1_w'].shape[0]
    sobel_ch = p['sobel_w'].shape[0]
    cat_xs = Cin + sobel_ch
    up_ch = mid // 2
    low_ch = mid - up_ch
    up_sq_ch = up_ch // 2
    low_sq_ch = low_ch // 2
    assert Cin == mid, "MAB requires in_channels == mid_channels"
    assert HW % 128 == 0, "H*W must be a multiple of 128 for lane-dense layout"

    ops = _pack_operands(p, Cin, sobel_ch, mid, H, W, group_num)
    x2 = x_nchw.reshape(N, Cin, HW).astype(jnp.float32)     # NCHW -> (N, C, HW) is free

    DILS = (1, 3, 5)
    bf = jnp.bfloat16
    vmem_limit = 48 * 1024 * 1024

    # -------------------- kernel 1: everything except BN apply ----------------
    def kernel(x_ref, mask_ref, rsel_ref, csel_ref, grp_ref, bias_ref,
               p360_ref, p288_ref, sobel_ref, p1_ref, fus_ref,
               gwc_ref, sq1_ref, sq2_ref, pwc2_ref,
               z_ref, part_ref, xsp, pbuf):

        def lrelu(v):
            return jnp.maximum(v, slope * v)

        def bcol(j, rows=mid):                       # bias / affine column
            return bias_ref[0:rows, j:j + 1]

        def fill_patch(buf, a, cin, d_idx):
            # im2col: write 9 shifted+masked taps of `a` (cin, HW) into scratch.
            # pltpu.roll = XLU lane rotation; boundary taps masked (implicit pad).
            for t in range(9):
                kh, kw = divmod(t, 3)
                dh, dw = (kh - 1) * DILS[d_idx], (kw - 1) * DILS[d_idx]
                off = dh * W + dw
                if off == 0:
                    v = a
                else:
                    m = mask_ref[d_idx * 9 + t:d_idx * 9 + t + 1, :]
                    v = pltpu.roll(a, (-off) % HW, axis=1) * m
                buf[t * cin:(t + 1) * cin, :] = v

        def dotf(w_bf16, a_f32):
            return jnp.dot(w_bf16, a_f32.astype(bf),
                           preferred_element_type=jnp.float32)

        x = x_ref[0]                                             # (Cin, HW)

        # ----- SobelConv2d (3x3, pad 1) ---------------------------------------
        fill_patch(pbuf, x, mid, 0)
        xsob = dotf(sobel_ref[...], pbuf[...]) + bcol(11, sobel_ch)
        xs = jnp.concatenate([x, xsob], axis=0)                  # (cat_xs, HW)

        # ----- conv_p1 (1x1) + LReLU ------------------------------------------
        x0 = lrelu(dotf(p1_ref[...], xs) + bcol(0))

        # xs taps built ONCE, shared by conv_f1/f2/f3
        fill_patch(xsp, xs, cat_xs, 0)

        def f_conv(i, xbranch, bj):
            fill_patch(pbuf, xbranch, mid, 0)
            wxs = p360_ref[i * mid:(i + 1) * mid, :]
            wbr = p288_ref[i * mid:(i + 1) * mid, :]
            return lrelu(dotf(wxs, xsp[...]) + dotf(wbr, pbuf[...]) + bcol(bj))

        def c_conv(i, xin, d_idx, bj):
            fill_patch(pbuf, xin, mid, d_idx)
            w = p288_ref[(3 + i) * mid:(4 + i) * mid, :]
            return lrelu(dotf(w, pbuf[...]) + bcol(bj))

        o1 = f_conv(0, x0, 1)
        x1 = c_conv(0, o1, 0, 4)           # c1: dilation 1
        o2 = f_conv(1, x1, 2)
        xx2 = c_conv(1, o2, 1, 5)          # c2: dilation 3
        o3 = f_conv(2, xx2, 3)
        x3 = c_conv(2, o3, 2, 6)           # c3: dilation 5

        # ----- Attention (no (4*mid,HW) concat) + fusion 1x1 + residual -------
        branches = (x0, x1, xx2, x3)
        ch_sum = jnp.zeros((1, HW), jnp.float32)
        s_hw = []
        for xb in branches:
            s = jax.nn.sigmoid(jnp.mean(xb, axis=1, keepdims=True)) * 2.0
            s_hw.append(s)
            ch_sum = ch_sum + jnp.sum(xb * s, axis=0, keepdims=True)
        cmean = ch_sum * (1.0 / (4.0 * mid))                      # mean over all C
        rsel = rsel_ref[...]
        csel = csel_ref[...]
        r_mean = jnp.sum(rsel * cmean, axis=1, keepdims=True) * (1.0 / W)   # mean over (C,W)
        c_mean = jnp.sum(csel * cmean, axis=1, keepdims=True) * (1.0 / H)   # mean over (C,H)
        s_cw = jnp.sum(rsel * (jax.nn.sigmoid(r_mean) * 2.0), axis=0, keepdims=True)
        s_ch = jnp.sum(csel * (jax.nn.sigmoid(c_mean) * 2.0), axis=0, keepdims=True)
        spatial = 1.0 + s_cw + s_ch                               # (1, HW)

        y = x + bcol(7)                                           # residual + fus bias
        for k, xb in enumerate(branches):
            att_k = (xb * s_hw[k]) * spatial
            wk = fus_ref[k * mid:(k + 1) * mid, :]
            y = y + dotf(wk, att_k)

        # ----- ScConv: SRU (GroupBatchnorm2d + gating + reconstruct) ----------
        gamma = bcol(9)
        beta = bcol(10)
        grp = grp_ref[...]
        Mg = (mid // group_num) * HW
        gsum = jnp.dot(grp, y, preferred_element_type=jnp.float32)
        mean_c = jnp.sum(gsum, axis=1, keepdims=True) * (1.0 / Mg)
        dvy = y - mean_c
        gss = jnp.dot(grp, dvy * dvy, preferred_element_type=jnp.float32)
        std_c = jnp.sqrt(jnp.sum(gss, axis=1, keepdims=True) * (1.0 / (Mg - 1)))
        gn_x = dvy * pl.reciprocal(std_c + gn_eps, approx=True) * gamma + beta
        w_gamma = gamma / jnp.sum(gamma, keepdims=True)
        info = jax.nn.sigmoid(gn_x * w_gamma) >= gate
        x_1 = jnp.where(info, y, 0.0)
        x_2 = y - x_1
        half = mid // 2
        y = x_1 + jnp.concatenate([x_2[half:], x_2[:half]], axis=0)

        # ----- ScConv: CRU ----------------------------------------------------
        up = y[0:up_ch]
        low = y[up_ch:]
        up_s = dotf(sq1_ref[...], up)                            # (up_sq_ch, HW)
        low_s = dotf(sq2_ref[...], low)                          # (low_sq_ch, HW)
        fill_patch(pbuf, up_s, up_sq_ch, 0)
        Y1 = dotf(gwc_ref[...], pbuf[0:9 * up_sq_ch, :]) + bcol(8)   # GWC + PWC1 folded
        Y2 = jnp.concatenate([dotf(pwc2_ref[...], low_s), low_s], axis=0)
        pool1 = jnp.mean(Y1, axis=1, keepdims=True)
        pool2 = jnp.mean(Y2, axis=1, keepdims=True)
        mx = jnp.maximum(jnp.max(pool1, axis=0, keepdims=True),
                         jnp.max(pool2, axis=0, keepdims=True))
        e1 = jnp.exp(pool1 - mx)
        e2 = jnp.exp(pool2 - mx)
        inv = pl.reciprocal(jnp.sum(e1, axis=0, keepdims=True)
                            + jnp.sum(e2, axis=0, keepdims=True), approx=True)
        res = Y1 * (e1 * inv) + Y2 * (e2 * inv)                  # out1 + out2

        # ----- outputs: pre-BN activations + per-sample BN partial sums -------
        z_ref[0] = res
        s1 = jnp.sum(res, axis=1, keepdims=True)
        s2 = jnp.sum(res * res, axis=1, keepdims=True)
        part_ref[0] = jnp.concatenate([s1, s2], axis=0)          # (2*mid, 1)

    w_list = [ops['masks'], ops['row_sel'], ops['col_sel'], ops['grp_mat'],
              ops['bias_pack'], ops['pack360'], ops['pack288'], ops['sobel_w'],
              ops['p1_w'], ops['fus_stack'], ops['gwc_w'], ops['sq1_w'],
              ops['sq2_w'], ops['pwc2_w']]

    x_spec = pl.BlockSpec((1, Cin, HW), lambda n: (n, 0, 0))
    w_specs = [pl.BlockSpec(tuple(w.shape), lambda n: (0, 0)) for w in w_list]

    flops_conv = 2 * HW * (
        9 * mid * sobel_ch + cat_xs * mid
        + 3 * (9 * cat_xs + 9 * mid) * mid + 3 * 9 * mid * mid
        + 4 * mid * mid + 2 * mid * mid
        + up_ch * up_sq_ch + low_ch * low_sq_ch
        + 9 * up_sq_ch * mid + low_sq_ch * (mid - low_sq_ch))
    transc = mid * HW + 4 * mid + H + W + 3 * mid
    bytes_w = sum(int(np.prod(w.shape)) * w.dtype.itemsize for w in w_list)
    cost1 = pl.CostEstimate(
        flops=int(N * flops_conv),
        transcendentals=int(N * transc),
        bytes_accessed=int(N * Cin * HW * 4 + N * mid * HW * 4
                           + N * 2 * mid * 4 + bytes_w))

    z, partial = pl.pallas_call(
        kernel,
        out_shape=(jax.ShapeDtypeStruct((N, mid, HW), jnp.float32),
                   jax.ShapeDtypeStruct((N, 2 * mid, 1), jnp.float32)),
        grid=(N,),
        in_specs=[x_spec] + w_specs,
        out_specs=(pl.BlockSpec((1, mid, HW), lambda n: (n, 0, 0)),
                   pl.BlockSpec((1, 2 * mid, 1), lambda n: (n, 0, 0))),
        scratch_shapes=[pltpu.VMEM((9 * cat_xs, HW), jnp.float32),   # xs taps (shared)
                        pltpu.VMEM((9 * mid, HW), jnp.float32)],     # per-conv patches
        compiler_params=pltpu.CompilerParams(
            dimension_semantics=("parallel",),
            vmem_limit_bytes=vmem_limit),
        cost_estimate=cost1,
    )(x2, *w_list)

    # -------- BatchNorm (training-mode batch stats): tiny reduce + finalize ----
    # TODO(synk): running-mean/var buffer updates (training side effect) and the
    # eval-mode path are not modeled.
    tot = jnp.sum(partial, axis=0)                               # (2*mid, 1)
    count = float(N * HW)
    mean_c = tot[:mid] / count
    var_c = jnp.maximum(tot[mid:] / count - mean_c * mean_c, 0.0)   # biased variance
    scale = p['bn_gamma'] * lax.rsqrt(var_c + bn_eps)
    shift = p['bn_beta'] - mean_c * scale

    # -------------------- kernel 2: BN affine + LeakyReLU, streamed over N ----
    def bn_kernel(z_ref, sc_ref, sh_ref, o_ref):
        v = z_ref[0] * sc_ref[...] + sh_ref[...]
        o_ref[0] = jnp.maximum(v, slope * v)

    cost2 = pl.CostEstimate(flops=int(4 * N * mid * HW), transcendentals=0,
                            bytes_accessed=int(2 * N * mid * HW * 4))
    out = pl.pallas_call(
        bn_kernel,
        out_shape=jax.ShapeDtypeStruct((N, mid, HW), jnp.float32),
        grid=(N,),
        in_specs=[pl.BlockSpec((1, mid, HW), lambda n: (n, 0, 0)),
                  pl.BlockSpec((mid, 1), lambda n: (0, 0)),
                  pl.BlockSpec((mid, 1), lambda n: (0, 0))],
        out_specs=pl.BlockSpec((1, mid, HW), lambda n: (n, 0, 0)),
        compiler_params=pltpu.CompilerParams(
            dimension_semantics=("parallel",),
            vmem_limit_bytes=vmem_limit),
        cost_estimate=cost2,
    )(z, scale, shift)

    return out.reshape(N, mid, H, W)                             # free reshape -> NCHW


if __name__ == "__main__":
    # The module only runs when in_channels == mid_channels (the residual and
    # ScConv(mid) are applied to an in_channels-wide tensor); sobel_ch % 4 == 0.
    N, C_in, H, W = 2, 32, 16, 16
    sobel_ch, mid = 8, 32

    key = jax.random.PRNGKey(0)
    kx, kp = jax.random.split(key)
    x = jax.random.normal(kx, (N, C_in, H, W), jnp.float32)
    params = init_params(kp, C_in, sobel_ch, mid)

    fwd = jax.jit(mab_forward)
    out = fwd(x, params)
    jax.block_until_ready(out)

    assert out.shape == (N, mid, H, W), out.shape
    assert bool(jnp.all(jnp.isfinite(out)))
    print("KERNEL_OK")
</pallas_src>

<mosaic_0001>
module attributes {stable_mosaic.version = 11 : i64} {
  func.func @bn_kernel(%arg0: i32, %arg1: memref<1x32x256xf32, #tpu.memory_space<vmem>>, %arg2: memref<32x1xf32, #tpu.memory_space<vmem>>, %arg3: memref<32x1xf32, #tpu.memory_space<vmem>>, %arg4: memref<1x32x256xf32, #tpu.memory_space<vmem>>) attributes {dimension_semantics = [#tpu.dimension_semantics<parallel>], iteration_bounds = array<i64: 2>, scalar_prefetch = 0 : i64, scratch_operands = 0 : i64, tpu.core_type = #tpu.core_type<tc>, window_params = [{transform_indices = @transform_0, window_bounds = array<i64: 1, 32, 256>}, {pipeline_mode = #tpu.pipeline_mode<synchronous>, transform_indices = @transform_1, window_bounds = array<i64: 32, 1>}, {pipeline_mode = #tpu.pipeline_mode<synchronous>, transform_indices = @transform_2, window_bounds = array<i64: 32, 1>}, {transform_indices = @transform_3, window_bounds = array<i64: 1, 32, 256>}]} {
    %c0 = arith.constant 0 : index
    %c0_0 = arith.constant 0 : index
    %c0_1 = arith.constant 0 : index
    %0 = vector.load %arg1[%c0, %c0_0, %c0_1] : memref<1x32x256xf32, #tpu.memory_space<vmem>>, vector<1x32x256xf32>
    %1 = vector.shape_cast %0 : vector<1x32x256xf32> to vector<32x256xf32>
    %c0_2 = arith.constant 0 : index
    %c0_3 = arith.constant 0 : index
    %2 = vector.load %arg2[%c0_2, %c0_3] : memref<32x1xf32, #tpu.memory_space<vmem>>, vector<32x1xf32>
    %3 = vector.broadcast %2 : vector<32x1xf32> to vector<32x256xf32>
    %4 = arith.mulf %1, %3 : vector<32x256xf32>
    %c0_4 = arith.constant 0 : index
    %c0_5 = arith.constant 0 : index
    %5 = vector.load %arg3[%c0_4, %c0_5] : memref<32x1xf32, #tpu.memory_space<vmem>>, vector<32x1xf32>
    %6 = vector.broadcast %5 : vector<32x1xf32> to vector<32x256xf32>
    %7 = arith.addf %4, %6 : vector<32x256xf32>
    %cst = arith.constant 2.000000e-01 : f32
    %8 = vector.broadcast %cst : f32 to vector<32x256xf32>
    %9 = arith.mulf %8, %7 : vector<32x256xf32>
    %10 = arith.maximumf %7, %9 : vector<32x256xf32>
    %c0_6 = arith.constant 0 : index
    %c0_7 = arith.constant 0 : index
    %c0_8 = arith.constant 0 : index
    %11 = vector.load %arg4[%c0_6, %c0_7, %c0_8] : memref<1x32x256xf32, #tpu.memory_space<vmem>>, vector<1x32x256xf32>
    %12 = vector.shape_cast %11 : vector<1x32x256xf32> to vector<32x256xf32>
    %13 = vector.shape_cast %10 : vector<32x256xf32> to vector<1x32x256xf32>
    tpu.vector_store %arg4[%c0_6, %c0_7, %c0_8], %13 {strides = array<i32>} : memref<1x32x256xf32, #tpu.memory_space<vmem>>, vector<1x32x256xf32>,
    return
  }
  func.func @transform_0(%arg0: i32) -> (i32, i32, i32) {
    %c0_i32 = arith.constant 0 : i32
    %c0_i32_0 = arith.constant 0 : i32
    %c0_i32_1 = arith.constant 0 : i32
    return %arg0, %c0_i32, %c0_i32_0 : i32, i32, i32
  }
  func.func @transform_1(%arg0: i32) -> (i32, i32) {
    %c0_i32 = arith.constant 0 : i32
    %c0_i32_0 = arith.constant 0 : i32
    %c0_i32_1 = arith.constant 0 : i32
    return %c0_i32, %c0_i32_0 : i32, i32
  }
  func.func @transform_2(%arg0: i32) -> (i32, i32) {
    %c0_i32 = arith.constant 0 : i32
    %c0_i32_0 = arith.constant 0 : i32
    %c0_i32_1 = arith.constant 0 : i32
    return %c0_i32, %c0_i32_0 : i32, i32
  }
  func.func @transform_3(%arg0: i32) -> (i32, i32, i32) {
    %c0_i32 = arith.constant 0 : i32
    %c0_i32_0 = arith.constant 0 : i32
    %c0_i32_1 = arith.constant 0 : i32
    return %arg0, %c0_i32, %c0_i32_0 : i32, i32, i32
  }
}

module attributes {stable_mosaic.version = 11 : i64} {
  func.func @kernel(%arg0: i32, %arg1: memref<1x32x256xf32, #tpu.memory_space<vmem>>, %arg2: memref<27x256xf32, #tpu.memory_space<vmem>>, %arg3: memref<16x256xf32, #tpu.memory_space<vmem>>, %arg4: memref<16x256xf32, #tpu.memory_space<vmem>>, %arg5: memref<32x32xf32, #tpu.memory_space<vmem>>, %arg6: memref<32x16xf32, #tpu.memory_space<vmem>>, %arg7: memref<96x360xbf16, #tpu.memory_space<vmem>>, %arg8: memref<192x288xbf16, #tpu.memory_space<vmem>>, %arg9: memref<8x288xbf16, #tpu.memory_space<vmem>>, %arg10: memref<32x40xbf16, #tpu.memory_space<vmem>>, %arg11: memref<128x32xbf16, #tpu.memory_space<vmem>>, %arg12: memref<32x72xbf16, #tpu.memory_space<vmem>>, %arg13: memref<8x16xbf16, #tpu.memory_space<vmem>>, %arg14: memref<8x16xbf16, #tpu.memory_space<vmem>>, %arg15: memref<24x8xbf16, #tpu.memory_space<vmem>>, %arg16: memref<1x32x256xf32, #tpu.memory_space<vmem>>, %arg17: memref<1x64x1xf32, #tpu.memory_space<vmem>>, %arg18: memref<360x256xf32, #tpu.memory_space<vmem>>, %arg19: memref<288x256xf32, #tpu.memory_space<vmem>>) attributes {dimension_semantics = [#tpu.dimension_semantics<parallel>], iteration_bounds = array<i64: 2>, scalar_prefetch = 0 : i64, scratch_operands = 2 : i64, tpu.core_type = #tpu.core_type<tc>, window_params = [{transform_indices = @transform_0, window_bounds = array<i64: 1, 32, 256>}, {pipeline_mode = #tpu.pipeline_mode<synchronous>, transform_indices = @transform_1, window_bounds = array<i64: 27, 256>}, {pipeline_mode = #tpu.pipeline_mode<synchronous>, transform_indices = @transform_2, window_bounds = array<i64: 16, 256>}, {pipeline_mode = #tpu.pipeline_mode<synchronous>, transform_indices = @transform_3, window_bounds = array<i64: 16, 256>}, {pipeline_mode = #tpu.pipeline_mode<synchronous>, transform_indices = @transform_4, window_bounds = array<i64: 32, 32>}, {pipeline_mode = #tpu.pipeline_mode<synchronous>, transform_indices = @transform_5, window_bounds = array<i64: 32, 16>}, {pipeline_mode = #tpu.pipeline_mode<synchronous>, transform_indices = @transform_6, window_bounds = array<i64: 96, 360>}, {pipeline_mode = #tpu.pipeline_mode<synchronous>, transform_indices = @transform_7, window_bounds = array<i64: 192, 288>}, {pipeline_mode = #tpu.pipeline_mode<synchronous>, transform_indices = @transform_8, window_bounds = array<i64: 8, 288>}, {pipeline_mode = #tpu.pipeline_mode<synchronous>, transform_indices = @transform_9, window_bounds = array<i64: 32, 40>}, {pipeline_mode = #tpu.pipeline_mode<synchronous>, transform_indices = @transform_10, window_bounds = array<i64: 128, 32>}, {pipeline_mode = #tpu.pipeline_mode<synchronous>, transform_indices = @transform_11, window_bounds = array<i64: 32, 72>}, {pipeline_mode = #tpu.pipeline_mode<synchronous>, transform_indices = @transform_12, window_bounds = array<i64: 8, 16>}, {pipeline_mode = #tpu.pipeline_mode<synchronous>, transform_indices = @transform_13, window_bounds = array<i64: 8, 16>}, {pipeline_mode = #tpu.pipeline_mode<synchronous>, transform_indices = @transform_14, window_bounds = array<i64: 24, 8>}, {transform_indices = @transform_15, window_bounds = array<i64: 1, 32, 256>}, {transform_indices = @transform_16, window_bounds = array<i64: 1, 64, 1>}]} {
    %c0 = arith.constant 0 : index
    %c0_0 = arith.constant 0 : index
    %c0_1 = arith.constant 0 : index
    %0 = vector.load %arg1[%c0, %c0_0, %c0_1] : memref<1x32x256xf32, #tpu.memory_space<vmem>>, vector<1x32x256xf32>
    %1 = vector.shape_cast %0 : vector<1x32x256xf32> to vector<32x256xf32>
    %c0_2 = arith.constant 0 : index
    %c0_3 = arith.constant 0 : index
    %2 = vector.load %arg2[%c0_2, %c0_3] : memref<27x256xf32, #tpu.memory_space<vmem>>, vector<1x256xf32>
    %c17_i32 = arith.constant 17 : i32
    %3 = tpu.dynamic_rotate %1 by %c17_i32 dim 1 : vector<32x256xf32>, i32 -> vector<32x256xf32>
    %4 = vector.broadcast %2 : vector<1x256xf32> to vector<32x256xf32>
    %5 = arith.mulf %3, %4 : vector<32x256xf32>
    %c0_4 = arith.constant 0 : index
    %c0_5 = arith.constant 0 : index
    %6 = vector.load %arg19[%c0_4, %c0_5] : memref<288x256xf32, #tpu.memory_space<vmem>>, vector<32x256xf32>
    tpu.vector_store %arg19[%c0_4, %c0_5], %5 {strides = array<i32>} : memref<288x256xf32, #tpu.memory_space<vmem>>, vector<32x256xf32>,
    %c1 = arith.constant 1 : index
    %c0_6 = arith.constant 0 : index
    %7 = vector.load %arg2[%c1, %c0_6] : memref<27x256xf32, #tpu.memory_space<vmem>>, vector<1x256xf32>
    %c16_i32 = arith.constant 16 : i32
    %8 = tpu.dynamic_rotate %1 by %c16_i32 dim 1 : vector<32x256xf32>, i32 -> vector<32x256xf32>
    %9 = vector.broadcast %7 : vector<1x256xf32> to vector<32x256xf32>
    %10 = arith.mulf %8, %9 : vector<32x256xf32>
    %c32 = arith.constant 32 : index
    %c0_7 = arith.constant 0 : index
    %11 = vector.load %arg19[%c32, %c0_7] : memref<288x256xf32, #tpu.memory_space<vmem>>, vector<32x256xf32>
    tpu.vector_store %arg19[%c32, %c0_7], %10 {strides = array<i32>} : memref<288x256xf32, #tpu.memory_space<vmem>>, vector<32x256xf32>,
    %c2 = arith.constant 2 : index
    %c0_8 = arith.constant 0 : index
    %12 = vector.load %arg2[%c2, %c0_8] : memref<27x256xf32, #tpu.memory_space<vmem>>, vector<1x256xf32>
    %c15_i32 = arith.constant 15 : i32
    %13 = tpu.dynamic_rotate %1 by %c15_i32 dim 1 : vector<32x256xf32>, i32 -> vector<32x256xf32>
    %14 = vector.broadcast %12 : vector<1x256xf32> to vector<32x256xf32>
    %15 = arith.mulf %13, %14 : vector<32x256xf32>
    %c64 = arith.constant 64 : index
    %c0_9 = arith.constant 0 : index
    %16 = vector.load %arg19[%c64, %c0_9] : memref<288x256xf32, #tpu.memory_space<vmem>>, vector<32x256xf32>
    tpu.vector_store %arg19[%c64, %c0_9], %15 {strides = array<i32>} : memref<288x256xf32, #tpu.memory_space<vmem>>, vector<32x256xf32>,
    %c3 = arith.constant 3 : index
    %c0_10 = arith.constant 0 : index
    %17 = vector.load %arg2[%c3, %c0_10] : memref<27x256xf32, #tpu.memory_space<vmem>>, vector<1x256xf32>
    %c1_i32 = arith.constant 1 : i32
    %18 = tpu.dynamic_rotate %1 by %c1_i32 dim 1 : vector<32x256xf32>, i32 -> vector<32x256xf32>
    %19 = vector.broadcast %17 : vector<1x256xf32> to vector<32x256xf32>
    %20 = arith.mulf %18, %19 : vector<32x256xf32>
    %c96 = arith.constant 96 : index
    %c0_11 = arith.constant 0 : index
    %21 = vector.load %arg19[%c96, %c0_11] : memref<288x256xf32, #tpu.memory_space<vmem>>, vector<32x256xf32>
    tpu.vector_store %arg19[%c96, %c0_11], %20 {strides = array<i32>} : memref<288x256xf32, #tpu.memory_space<vmem>>, vector<32x256xf32>,
    %c128 = arith.constant 128 : index
    %c0_12 = arith.constant 0 : index
    %22 = vector.load %arg19[%c128, %c0_12] : memref<288x256xf32, #tpu.memory_space<vmem>>, vector<32x256xf32>
    tpu.vector_store %arg19[%c128, %c0_12], %1 {strides = array<i32>} : memref<288x256xf32, #tpu.memory_space<vmem>>, vector<32x256xf32>,
    %c5 = arith.constant 5 : index
    %c0_13 = arith.constant 0 : index
    %23 = vector.load %arg2[%c5, %c0_13] : memref<27x256xf32, #tpu.memory_space<vmem>>, vector<1x256xf32>
    %c255_i32 = arith.constant 255 : i32
    %24 = tpu.dynamic_rotate %1 by %c255_i32 dim 1 : vector<32x256xf32>, i32 -> vector<32x256xf32>
    %25 = vector.broadcast %23 : vector<1x256xf32> to vector<32x256xf32>
    %26 = arith.mulf %24, %25 : vector<32x256xf32>
    %c160 = arith.constant 160 : index
    %c0_14 = arith.constant 0 : index
    %27 = vector.load %arg19[%c160, %c0_14] : memref<288x256xf32, #tpu.memory_space<vmem>>, vector<32x256xf32>
    tpu.vector_store %arg19[%c160, %c0_14], %26 {strides = array<i32>} : memref<288x256xf32, #tpu.memory_space<vmem>>, vector<32x256xf32>,
    %c6 = arith.constant 6 : index
    %c0_15 = arith.constant 0 : index
    %28 = vector.load %arg2[%c6, %c0_15] : memref<27x256xf32, #tpu.memory_space<vmem>>, vector<1x256xf32>
    %c241_i32 = arith.constant 241 : i32
    %29 = tpu.dynamic_rotate %1 by %c241_i32 dim 1 : vector<32x256xf32>, i32 -> vector<32x256xf32>
    %30 = vector.broadcast %28 : vector<1x256xf32> to vector<32x256xf32>
    %31 = arith.mulf %29, %30 : vector<32x256xf32>
    %c192 = arith.constant 192 : index
    %c0_16 = arith.constant 0 : index
    %32 = vector.load %arg19[%c192, %c0_16] : memref<288x256xf32, #tpu.memory_space<vmem>>, vector<32x256xf32>
    tpu.vector_store %arg19[%c192, %c0_16], %31 {strides = array<i32>} : memref<288x256xf32, #tpu.memory_space<vmem>>, vector<32x256xf32>,
    %c7 = arith.constant 7 : index
    %c0_17 = arith.constant 0 : index
    %33 = vector.load %arg2[%c7, %c0_17] : memref<27x256xf32, #tpu.memory_space<vmem>>, vector<1x256xf32>
    %c240_i32 = arith.constant 240 : i32
    %34 = tpu.dynamic_rotate %1 by %c240_i32 dim 1 : vector<32x256xf32>, i32 -> vector<32x256xf32>
    %35 = vector.broadcast %33 : vector<1x256xf32> to vector<32x256xf32>
    %36 = arith.mulf %34, %35 : vector<32x256xf32>
    %c224 = arith.constant 224 : index
    %c0_18 = arith.constant 0 : index
    %37 = vector.load %arg19[%c224, %c0_18] : memref<288x256xf32, #tpu.memory_space<vmem>>, vector<32x256xf32>
    tpu.vector_store %arg19[%c224, %c0_18], %36 {strides = array<i32>} : memref<288x256xf32, #tpu.memory_space<vmem>>, vector<32x256xf32>,
    %c8 = arith.constant 8 : index
    %c0_19 = arith.constant 0 : index
    %38 = vector.load %arg2[%c8, %c0_19] : memref<27x256xf32, #tpu.memory_space<vmem>>, vector<1x256xf32>
    %c239_i32 = arith.constant 239 : i32
    %39 = tpu.dynamic_rotate %1 by %c239_i32 dim 1 : vector<32x256xf32>, i32 -> vector<32x256xf32>
    %40 = vector.broadcast %38 : vector<1x256xf32> to vector<32x256xf32>
    %41 = arith.mulf %39, %40 : vector<32x256xf32>
    %c256 = arith.constant 256 : index
    %c0_20 = arith.constant 0 : index
    %42 = vector.load %arg19[%c256, %c0_20] : memref<288x256xf32, #tpu.memory_space<vmem>>, vector<32x256xf32>
    tpu.vector_store %arg19[%c256, %c0_20], %41 {strides = array<i32>} : memref<288x256xf32, #tpu.memory_space<vmem>>, vector<32x256xf32>,
    %c0_21 = arith.constant 0 : index
    %c0_22 = arith.constant 0 : index
    %43 = vector.load %arg9[%c0_21, %c0_22] : memref<8x288xbf16, #tpu.memory_space<vmem>>, vector<8x288xbf16>
    %c0_23 = arith.constant 0 : index
    %c0_24 = arith.constant 0 : index
    %44 = vector.load %arg19[%c0_23, %c0_24] : memref<288x256xf32, #tpu.memory_space<vmem>>, vector<288x256xf32>
    %45 = arith.truncf %44 : vector<288x256xf32> to vector<288x256xbf16>
    %cst = arith.constant dense<0.000000e+00> : vector<8x256xf32>
    %46 = tpu.matmul %43, %45, %cst {dimension_numbers = #tpu.dot_dimension_numbers<[1], [0], [0], [1], [0, 0, 1, 1], [], []>} : vector<8x288xbf16>, vector<288x256xbf16>, vector<8x256xf32> -> vector<8x256xf32>
    %c0_25 = arith.constant 0 : index
    %c11 = arith.constant 11 : index
    %47 = vector.load %arg6[%c0_25, %c11] : memref<32x16xf32, #tpu.memory_space<vmem>>, vector<8x1xf32>
    %48 = vector.broadcast %47 : vector<8x1xf32> to vector<8x256xf32>
    %49 = arith.addf %46, %48 : vector<8x256xf32>
    %50 = tpu.concatenate %1, %49 in 0 : vector<32x256xf32>, vector<8x256xf32> -> vector<40x256xf32>
    %c0_26 = arith.constant 0 : index
    %c0_27 = arith.constant 0 : index
    %51 = vector.load %arg10[%c0_26, %c0_27] : memref<32x40xbf16, #tpu.memory_space<vmem>>, vector<32x40xbf16>
    %52 = arith.truncf %50 : vector<40x256xf32> to vector<40x256xbf16>
    %cst_28 = arith.constant dense<0.000000e+00> : vector<32x256xf32>
    %53 = tpu.matmul %51, %52, %cst_28 {dimension_numbers = #tpu.dot_dimension_numbers<[1], [0], [0], [1], [0, 0, 1, 1], [], []>} : vector<32x40xbf16>, vector<40x256xbf16>, vector<32x256xf32> -> vector<32x256xf32>
    %c0_29 = arith.constant 0 : index
    %c0_30 = arith.constant 0 : index
    %54 = vector.load %arg6[%c0_29, %c0_30] : memref<32x16xf32, #tpu.memory_space<vmem>>, vector<32x1xf32>
    %55 = vector.broadcast %54 : vector<32x1xf32> to vector<32x256xf32>
    %56 = arith.addf %53, %55 : vector<32x256xf32>
    %cst_31 = arith.constant 2.000000e-01 : f32
    %57 = vector.broadcast %cst_31 : f32 to vector<32x256xf32>
    %58 = arith.mulf %57, %56 : vector<32x256xf32>
    %59 = arith.maximumf %56, %58 : vector<32x256xf32>
    %c0_32 = arith.constant 0 : index
    %c0_33 = arith.constant 0 : index
    %60 = vector.load %arg2[%c0_32, %c0_33] : memref<27x256xf32, #tpu.memory_space<vmem>>, vector<1x256xf32>
    %c17_i32_34 = arith.constant 17 : i32
    %61 = tpu.dynamic_rotate %50 by %c17_i32_34 dim 1 : vector<40x256xf32>, i32 -> vector<40x256xf32>
    %62 = vector.broadcast %60 : vector<1x256xf32> to vector<40x256xf32>
    %63 = arith.mulf %61, %62 : vector<40x256xf32>
    %c0_35 = arith.constant 0 : index
    %c0_36 = arith.constant 0 : index
    %64 = vector.load %arg18[%c0_35, %c0_36] : memref<360x256xf32, #tpu.memory_space<vmem>>, vector<40x256xf32>
    tpu.vector_store %arg18[%c0_35, %c0_36], %63 {strides = array<i32>} : memref<360x256xf32, #tpu.memory_space<vmem>>, vector<40x256xf32>,
    %c1_37 = arith.constant 1 : index
    %c0_38 = arith.constant 0 : index
    %65 = vector.load %arg2[%c1_37, %c0_38] : memref<27x256xf32, #tpu.memory_space<vmem>>, vector<1x256xf32>
    %c16_i32_39 = arith.constant 16 : i32
    %66 = tpu.dynamic_rotate %50 by %c16_i32_39 dim 1 : vector<40x256xf32>, i32 -> vector<40x256xf32>
    %67 = vector.broadcast %65 : vector<1x256xf32> to vector<40x256xf32>
    %68 = arith.mulf %66, %67 : vector<40x256xf32>
    %c40 = arith.constant 40 : index
    %c0_40 = arith.constant 0 : index
    %69 = vector.load %arg18[%c40, %c0_40] : memref<360x256xf32, #tpu.memory_space<vmem>>, vector<40x256xf32>
    tpu.vector_store %arg18[%c40, %c0_40], %68 {strides = array<i32>} : memref<360x256xf32, #tpu.memory_space<vmem>>, vector<40x256xf32>,
    %c2_41 = arith.constant 2 : index
    %c0_42 = arith.constant 0 : index
    %70 = vector.load %arg2[%c2_41, %c0_42] : memref<27x256xf32, #tpu.memory_space<vmem>>, vector<1x256xf32>
    %c15_i32_43 = arith.constant 15 : i32
    %71 = tpu.dynamic_rotate %50 by %c15_i32_43 dim 1 : vector<40x256xf32>, i32 -> vector<40x256xf32>
    %72 = vector.broadcast %70 : vector<1x256xf32> to vector<40x256xf32>
    %73 = arith.mulf %71, %72 : vector<40x256xf32>
    %c80 = arith.constant 80 : index
    %c0_44 = arith.constant 0 : index
    %74 = vector.load %arg18[%c80, %c0_44] : memref<360x256xf32, #tpu.memory_space<vmem>>, vector<40x256xf32>
    tpu.vector_store %arg18[%c80, %c0_44], %73 {strides = array<i32>} : memref<360x256xf32, #tpu.memory_space<vmem>>, vector<40x256xf32>,
    %c3_45 = arith.constant 3 : index
    %c0_46 = arith.constant 0 : index
    %75 = vector.load %arg2[%c3_45, %c0_46] : memref<27x256xf32, #tpu.memory_space<vmem>>, vector<1x256xf32>
    %c1_i32_47 = arith.constant 1 : i32
    %76 = tpu.dynamic_rotate %50 by %c1_i32_47 dim 1 : vector<40x256xf32>, i32 -> vector<40x256xf32>
    %77 = vector.broadcast %75 : vector<1x256xf32> to vector<40x256xf32>
    %78 = arith.mulf %76, %77 : vector<40x256xf32>
    %c120 = arith.constant 120 : index
    %c0_48 = arith.constant 0 : index
    %79 = vector.load %arg18[%c120, %c0_48] : memref<360x256xf32, #tpu.memory_space<vmem>>, vector<40x256xf32>
    tpu.vector_store %arg18[%c120, %c0_48], %78 {strides = array<i32>} : memref<360x256xf32, #tpu.memory_space<vmem>>, vector<40x256xf32>,
    %c160_49 = arith.constant 160 : index
    %c0_50 = arith.constant 0 : index
    %80 = vector.load %arg18[%c160_49, %c0_50] : memref<360x256xf32, #tpu.memory_space<vmem>>, vector<40x256xf32>
    tpu.vector_store %arg18[%c160_49, %c0_50], %50 {strides = array<i32>} : memref<360x256xf32, #tpu.memory_space<vmem>>, vector<40x256xf32>,
    %c5_51 = arith.constant 5 : index
    %c0_52 = arith.constant 0 : index
    %81 = vector.load %arg2[%c5_51, %c0_52] : memref<27x256xf32, #tpu.memory_space<vmem>>, vector<1x256xf32>
    %c255_i32_53 = arith.constant 255 : i32
    %82 = tpu.dynamic_rotate %50 by %c255_i32_53 dim 1 : vector<40x256xf32>, i32 -> vector<40x256xf32>
    %83 = vector.broadcast %81 : vector<1x256xf32> to vector<40x256xf32>
    %84 = arith.mulf %82, %83 : vector<40x256xf32>
    %c200 = arith.constant 200 : index
    %c0_54 = arith.constant 0 : index
    %85 = vector.load %arg18[%c200, %c0_54] : memref<360x256xf32, #tpu.memory_space<vmem>>, vector<40x256xf32>
    tpu.vector_store %arg18[%c200, %c0_54], %84 {strides = array<i32>} : memref<360x256xf32, #tpu.memory_space<vmem>>, vector<40x256xf32>,
    %c6_55 = arith.constant 6 : index
    %c0_56 = arith.constant 0 : index
    %86 = vector.load %arg2[%c6_55, %c0_56] : memref<27x256xf32, #tpu.memory_space<vmem>>, vector<1x256xf32>
    %c241_i32_57 = arith.constant 241 : i32
    %87 = tpu.dynamic_rotate %50 by %c241_i32_57 dim 1 : vector<40x256xf32>, i32 -> vector<40x256xf32>
    %88 = vector.broadcast %86 : vector<1x256xf32> to vector<40x256xf32>
    %89 = arith.mulf %87, %88 : vector<40x256xf32>
    %c240 = arith.constant 240 : index
    %c0_58 = arith.constant 0 : index
    %90 = vector.load %arg18[%c240, %c0_58] : memref<360x256xf32, #tpu.memory_space<vmem>>, vector<40x256xf32>
    tpu.vector_store %arg18[%c240, %c0_58], %89 {strides = array<i32>} : memref<360x256xf32, #tpu.memory_space<vmem>>, vector<40x256xf32>,
    %c7_59 = arith.constant 7 : index
    %c0_60 = arith.constant 0 : index
    %91 = vector.load %arg2[%c7_59, %c0_60] : memref<27x256xf32, #tpu.memory_space<vmem>>, vector<1x256xf32>
    %c240_i32_61 = arith.constant 240 : i32
    %92 = tpu.dynamic_rotate %50 by %c240_i32_61 dim 1 : vector<40x256xf32>, i32 -> vector<40x256xf32>
    %93 = vector.broadcast %91 : vector<1x256xf32> to vector<40x256xf32>
    %94 = arith.mulf %92, %93 : vector<40x256xf32>
    %c280 = arith.constant 280 : index
    %c0_62 = arith.constant 0 : index
    %95 = vector.load %arg18[%c280, %c0_62] : memref<360x256xf32, #tpu.memory_space<vmem>>, vector<40x256xf32>
    tpu.vector_store %arg18[%c280, %c0_62], %94 {strides = array<i32>} : memref<360x256xf32, #tpu.memory_space<vmem>>, vector<40x256xf32>,
    %c8_63 = arith.constant 8 : index
    %c0_64 = arith.constant 0 : index
    %96 = vector.load %arg2[%c8_63, %c0_64] : memref<27x256xf32, #tpu.memory_space<vmem>>, vector<1x256xf32>
    %c239_i32_65 = arith.constant 239 : i32
    %97 = tpu.dynamic_rotate %50 by %c239_i32_65 dim 1 : vector<40x256xf32>, i32 -> vector<40x256xf32>
    %98 = vector.broadcast %96 : vector<1x256xf32> to vector<40x256xf32>
    %99 = arith.mulf %97, %98 : vector<40x256xf32>
    %c320 = arith.constant 320 : index
    %c0_66 = arith.constant 0 : index
    %100 = vector.load %arg18[%c320, %c0_66] : memref<360x256xf32, #tpu.memory_space<vmem>>, vector<40x256xf32>
    tpu.vector_store %arg18[%c320, %c0_66], %99 {strides = array<i32>} : memref<360x256xf32, #tpu.memory_space<vmem>>, vector<40x256xf32>,
    %c0_67 = arith.constant 0 : index
    %c0_68 = arith.constant 0 : index
    %101 = vector.load %arg2[%c0_67, %c0_68] : memref<27x256xf32, #tpu.memory_space<vmem>>, vector<1x256xf32>
    %c17_i32_69 = arith.constant 17 : i32
    %102 = tpu.dynamic_rotate %59 by %c17_i32_69 dim 1 : vector<32x256xf32>, i32 -> vector<32x256xf32>
    %103 = vector.broadcast %101 : vector<1x256xf32> to vector<32x256xf32>
    %104 = arith.mulf %102, %103 : vector<32x256xf32>
    %c0_70 = arith.constant 0 : index
    %c0_71 = arith.constant 0 : index
    %105 = vector.load %arg19[%c0_70, %c0_71] : memref<288x256xf32, #tpu.memory_space<vmem>>, vector<32x256xf32>
    tpu.vector_store %arg19[%c0_70, %c0_71], %104 {strides = array<i32>} : memref<288x256xf32, #tpu.memory_space<vmem>>, vector<32x256xf32>,
    %c1_72 = arith.constant 1 : index
    %c0_73 = arith.constant 0 : index
    %106 = vector.load %arg2[%c1_72, %c0_73] : memref<27x256xf32, #tpu.memory_space<vmem>>, vector<1x256xf32>
    %c16_i32_74 = arith.constant 16 : i32
    %107 = tpu.dynamic_rotate %59 by %c16_i32_74 dim 1 : vector<32x256xf32>, i32 -> vector<32x256xf32>
    %108 = vector.broadcast %106 : vector<1x256xf32> to vector<32x256xf32>
    %109 = arith.mulf %107, %108 : vector<32x256xf32>
    %c32_75 = arith.constant 32 : index
    %c0_76 = arith.constant 0 : index
    %110 = vector.load %arg19[%c32_75, %c0_76] : memref<288x256xf32, #tpu.memory_space<vmem>>, vector<32x256xf32>
    tpu.vector_store %arg19[%c32_75, %c0_76], %109 {strides = array<i32>} : memref<288x256xf32, #tpu.memory_space<vmem>>, vector<32x256xf32>,
    %c2_77 = arith.constant 2 : index
    %c0_78 = arith.constant 0 : index
    %111 = vector.load %arg2[%c2_77, %c0_78] : memref<27x256xf32, #tpu.memory_space<vmem>>, vector<1x256xf32>
    %c15_i32_79 = arith.constant 15 : i32
    %112 = tpu.dynamic_rotate %59 by %c15_i32_79 dim 1 : vector<32x256xf32>, i32 -> vector<32x256xf32>
    %113 = vector.broadcast %111 : vector<1x256xf32> to vector<32x256xf32>
    %114 = arith.mulf %112, %113 : vector<32x256xf32>
    %c64_80 = arith.constant 64 : index
    %c0_81 = arith.constant 0 : index
    %115 = vector.load %arg19[%c64_80, %c0_81] : memref<288x256xf32, #tpu.memory_space<vmem>>, vector<32x256xf32>
    tpu.vector_store %arg19[%c64_80, %c0_81], %114 {strides = array<i32>} : memref<288x256xf32, #tpu.memory_space<vmem>>, vector<32x256xf32>,
    %c3_82 = arith.constant 3 : index
    %c0_83 = arith.constant 0 : index
    %116 = vector.load %arg2[%c3_82, %c0_83] : memref<27x256xf32, #tpu.memory_space<vmem>>, vector<1x256xf32>
    %c1_i32_84 = arith.constant 1 : i32
    %117 = tpu.dynamic_rotate %59 by %c1_i32_84 dim 1 : vector<32x256xf32>, i32 -> vector<32x256xf32>
    %118 = vector.broadcast %116 : vector<1x256xf32> to vector<32x256xf32>
    %119 = arith.mulf %117, %118 : vector<32x256xf32>
    %c96_85 = arith.constant 96 : index
    %c0_86 = arith.constant 0 : index
    %120 = vector.load %arg19[%c96_85, %c0_86] : memref<288x256xf32, #tpu.memory_space<vmem>>, vector<32x256xf32>
    tpu.vector_store %arg19[%c96_85, %c0_86], %119 {strides = array<i32>} : memref<288x256xf32, #tpu.memory_space<vmem>>, vector<32x256xf32>,
    %c128_87 = arith.constant 128 : index
    %c0_88 = arith.constant 0 : index
    %121 = vector.load %arg19[%c128_87, %c0_88] : memref<288x256xf32, #tpu.memory_space<vmem>>, vector<32x256xf32>
    tpu.vector_store %arg19[%c128_87, %c0_88], %59 {strides = array<i32>} : memref<288x256xf32, #tpu.memory_space<vmem>>, vector<32x256xf32>,
    %c5_89 = arith.constant 5 : index
    %c0_90 = arith.constant 0 : index
    %122 = vector.load %arg2[%c5_89, %c0_90] : memref<27x256xf32, #tpu.memory_space<vmem>>, vector<1x256xf32>
    %c255_i32_91 = arith.constant 255 : i32
    %123 = tpu.dynamic_rotate %59 by %c255_i32_91 dim 1 : vector<32x256xf32>, i32 -> vector<32x256xf32>
    %124 = vector.broadcast %122 : vector<1x256xf32> to vector<32x256xf32>
    %125 = arith.mulf %123, %124 : vector<32x256xf32>
    %c160_92 = arith.constant 160 : index
    %c0_93 = arith.constant 0 : index
    %126 = vector.load %arg19[%c160_92, %c0_93] : memref<288x256xf32, #tpu.memory_space<vmem>>, vector<32x256xf32>
    tpu.vector_store %arg19[%c160_92, %c0_93], %125 {strides = array<i32>} : memref<288x256xf32, #tpu.memory_space<vmem>>, vector<32x256xf32>,
    %c6_94 = arith.constant 6 : index
    %c0_95 = arith.constant 0 : index
    %127 = vector.load %arg2[%c6_94, %c0_95] : memref<27x256xf32, #tpu.memory_space<vmem>>, vector<1x256xf32>
    %c241_i32_96 = arith.constant 241 : i32
    %128 = tpu.dynamic_rotate %59 by %c241_i32_96 dim 1 : vector<32x256xf32>, i32 -> vector<32x256xf32>
    %129 = vector.broadcast %127 : vector<1x256xf32> to vector<32x256xf32>
    %130 = arith.mulf %128, %129 : vector<32x256xf32>
    %c192_97 = arith.constant 192 : index
    %c0_98 = arith.constant 0 : index
    %131 = vector.load %arg19[%c192_97, %c0_98] : memref<288x256xf32, #tpu.memory_space<vmem>>, vector<32x256xf32>
    tpu.vector_store %arg19[%c192_97, %c0_98], %130 {strides = array<i32>} : memref<288x256xf32, #tpu.memory_space<vmem>>, vector<32x256xf32>,
    %c7_99 = arith.constant 7 : index
    %c0_100 = arith.constant 0 : index
    %132 = vector.load %arg2[%c7_99, %c0_100] : memref<27x256xf32, #tpu.memory_space<vmem>>, vector<1x256xf32>
    %c240_i32_101 = arith.constant 240 : i32
    %133 = tpu.dynamic_rotate %59 by %c240_i32_101 dim 1 : vector<32x256xf32>, i32 -> vector<32x256xf32>
    %134 = vector.broadcast %132 : vector<1x256xf32> to vector<32x256xf32>
    %135 = arith.mulf %133, %134 : vector<32x256xf32>
    %c224_102 = arith.constant 224 : index
    %c0_103 = arith.constant 0 : index
    %136 = vector.load %arg19[%c224_102, %c0_103] : memref<288x256xf32, #tpu.memory_space<vmem>>, vector<32x256xf32>
    tpu.vector_store %arg19[%c224_102, %c0_103], %135 {strides = array<i32>} : memref<288x256xf32, #tpu.memory_space<vmem>>, vector<32x256xf32>,
    %c8_104 = arith.constant 8 : index
    %c0_105 = arith.constant 0 : index
    %137 = vector.load %arg2[%c8_104, %c0_105] : memref<27x256xf32, #tpu.memory_space<vmem>>, vector<1x256xf32>
    %c239_i32_106 = arith.constant 239 : i32
    %138 = tpu.dynamic_rotate %59 by %c239_i32_106 dim 1 : vector<32x256xf32>, i32 -> vector<32x256xf32>
    %139 = vector.broadcast %137 : vector<1x256xf32> to vector<32x256xf32>
    %140 = arith.mulf %138, %139 : vector<32x256xf32>
    %c256_107 = arith.constant 256 : index
    %c0_108 = arith.constant 0 : index
    %141 = vector.load %arg19[%c256_107, %c0_108] : memref<288x256xf32, #tpu.memory_space<vmem>>, vector<32x256xf32>
    tpu.vector_store %arg19[%c256_107, %c0_108], %140 {strides = array<i32>} : memref<288x256xf32, #tpu.memory_space<vmem>>, vector<32x256xf32>,
    %c0_109 = arith.constant 0 : index
    %c0_110 = arith.constant 0 : index
    %142 = vector.load %arg7[%c0_109, %c0_110] : memref<96x360xbf16, #tpu.memory_space<vmem>>, vector<32x360xbf16>
    %c0_111 = arith.constant 0 : index
    %c0_112 = arith.constant 0 : index
    %143 = vector.load %arg8[%c0_111, %c0_112] : memref<192x288xbf16, #tpu.memory_space<vmem>>, vector<32x288xbf16>
    %c0_113 = arith.constant 0 : index
    %c0_114 = arith.constant 0 : index
    %144 = vector.load %arg18[%c0_113, %c0_114] : memref<360x256xf32, #tpu.memory_space<vmem>>, vector<360x256xf32>
    %145 = arith.truncf %144 : vector<360x256xf32> to vector<360x256xbf16>
    %cst_115 = arith.constant dense<0.000000e+00> : vector<32x256xf32>
    %146 = tpu.matmul %142, %145, %cst_115 {dimension_numbers = #tpu.dot_dimension_numbers<[1], [0], [0], [1], [0, 0, 1, 1], [], []>} : vector<32x360xbf16>, vector<360x256xbf16>, vector<32x256xf32> -> vector<32x256xf32>
    %c0_116 = arith.constant 0 : index
    %c0_117 = arith.constant 0 : index
    %147 = vector.load %arg19[%c0_116, %c0_117] : memref<288x256xf32, #tpu.memory_space<vmem>>, vector<288x256xf32>
    %148 = arith.truncf %147 : vector<288x256xf32> to vector<288x256xbf16>
    %cst_118 = arith.constant dense<0.000000e+00> : vector<32x256xf32>
    %149 = tpu.matmul %143, %148, %cst_118 {dimension_numbers = #tpu.dot_dimension_numbers<[1], [0], [0], [1], [0, 0, 1, 1], [], []>} : vector<32x288xbf16>, vector<288x256xbf16>, vector<32x256xf32> -> vector<32x256xf32>
    %150 = arith.addf %146, %149 : vector<32x256xf32>
    %c0_119 = arith.constant 0 : index
    %c1_120 = arith.constant 1 : index
    %151 = vector.load %arg6[%c0_119, %c1_120] : memref<32x16xf32, #tpu.memory_space<vmem>>, vector<32x1xf32>
    %152 = vector.broadcast %151 : vector<32x1xf32> to vector<32x256xf32>
    %153 = arith.addf %150, %152 : vector<32x256xf32>
    %cst_121 = arith.constant 2.000000e-01 : f32
    %154 = vector.broadcast %cst_121 : f32 to vector<32x256xf32>
    %155 = arith.mulf %154, %153 : vector<32x256xf32>
    %156 = arith.maximumf %153, %155 : vector<32x256xf32>
    %c0_122 = arith.constant 0 : index
    %c0_123 = arith.constant 0 : index
    %157 = vector.load %arg2[%c0_122, %c0_123] : memref<27x256xf32, #tpu.memory_space<vmem>>, vector<1x256xf32>
    %c17_i32_124 = arith.constant 17 : i32
    %158 = tpu.dynamic_rotate %156 by %c17_i32_124 dim 1 : vector<32x256xf32>, i32 -> vector<32x256xf32>
    %159 = vector.broadcast %157 : vector<1x256xf32> to vector<32x256xf32>
    %160 = arith.mulf %158, %159 : vector<32x256xf32>
    %c0_125 = arith.constant 0 : index
    %c0_126 = arith.constant 0 : index
    %161 = vector.load %arg19[%c0_125, %c0_126] : memref<288x256xf32, #tpu.memory_space<vmem>>, vector<32x256xf32>
    tpu.vector_store %arg19[%c0_125, %c0_126], %160 {strides = array<i32>} : memref<288x256xf32, #tpu.memory_space<vmem>>, vector<32x256xf32>,
    %c1_127 = arith.constant 1 : index
    %c0_128 = arith.constant 0 : index
    %162 = vector.load %arg2[%c1_127, %c0_128] : memref<27x256xf32, #tpu.memory_space<vmem>>, vector<1x256xf32>
    %c16_i32_129 = arith.constant 16 : i32
    %163 = tpu.dynamic_rotate %156 by %c16_i32_129 dim 1 : vector<32x256xf32>, i32 -> vector<32x256xf32>
    %164 = vector.broadcast %162 : vector<1x256xf32> to vector<32x256xf32>
    %165 = arith.mulf %163, %164 : vector<32x256xf32>
    %c32_130 = arith.constant 32 : index
    %c0_131 = arith.constant 0 : index
    %166 = vector.load %arg19[%c32_130, %c0_131] : memref<288x256xf32, #tpu.memory_space<vmem>>, vector<32x256xf32>
    tpu.vector_store %arg19[%c32_130, %c0_131], %165 {strides = array<i32>} : memref<288x256xf32, #tpu.memory_space<vmem>>, vector<32x256xf32>,
    %c2_132 = arith.constant 2 : index
    %c0_133 = arith.constant 0 : index
    %167 = vector.load %arg2[%c2_132, %c0_133] : memref<27x256xf32, #tpu.memory_space<vmem>>, vector<1x256xf32>
    %c15_i32_134 = arith.constant 15 : i32
    %168 = tpu.dynamic_rotate %156 by %c15_i32_134 dim 1 : vector<32x256xf32>, i32 -> vector<32x256xf32>
    %169 = vector.broadcast %167 : vector<1x256xf32> to vector<32x256xf32>
    %170 = arith.mulf %168, %169 : vector<32x256xf32>
    %c64_135 = arith.constant 64 : index
    %c0_136 = arith.constant 0 : index
    %171 = vector.load %arg19[%c64_135, %c0_136] : memref<288x256xf32, #tpu.memory_space<vmem>>, vector<32x256xf32>
    tpu.vector_store %arg19[%c64_135, %c0_136], %170 {strides = array<i32>} : memref<288x256xf32, #tpu.memory_space<vmem>>, vector<32x256xf32>,
    %c3_137 = arith.constant 3 : index
    %c0_138 = arith.constant 0 : index
    %172 = vector.load %arg2[%c3_137, %c0_138] : memref<27x256xf32, #tpu.memory_space<vmem>>, vector<1x256xf32>
    %c1_i32_139 = arith.constant 1 : i32
    %173 = tpu.dynamic_rotate %156 by %c1_i32_139 dim 1 : vector<32x256xf32>, i32 -> vector<32x256xf32>
    %174 = vector.broadcast %172 : vector<1x256xf32> to vector<32x256xf32>
    %175 = arith.mulf %173, %174 : vector<32x256xf32>
    %c96_140 = arith.constant 96 : index
    %c0_141 = arith.constant 0 : index
    %176 = vector.load %arg19[%c96_140, %c0_141] : memref<288x256xf32, #tpu.memory_space<vmem>>, vector<32x256xf32>
    tpu.vector_store %arg19[%c96_140, %c0_141], %175 {strides = array<i32>} : memref<288x256xf32, #tpu.memory_space<vmem>>, vector<32x256xf32>,
    %c128_142 = arith.constant 128 : index
    %c0_143 = arith.constant 0 : index
    %177 = vector.load %arg19[%c128_142, %c0_143] : memref<288x256xf32, #tpu.memory_space<vmem>>, vector<32x256xf32>
    tpu.vector_store %arg19[%c128_142, %c0_143], %156 {strides = array<i32>} : memref<288x256xf32, #tpu.memory_space<vmem>>, vector<32x256xf32>,
    %c5_144 = arith.constant 5 : index
    %c0_145 = arith.constant 0 : index
    %178 = vector.load %arg2[%c5_144, %c0_145] : memref<27x256xf32, #tpu.memory_space<vmem>>, vector<1x256xf32>
    %c255_i32_146 = arith.constant 255 : i32
    %179 = tpu.dynamic_rotate %156 by %c255_i32_146 dim 1 : vector<32x256xf32>, i32 -> vector<32x256xf32>
    %180 = vector.broadcast %178 : vector<1x256xf32> to vector<32x256xf32>
    %181 = arith.mulf %179, %180 : vector<32x256xf32>
    %c160_147 = arith.constant 160 : index
    %c0_148 = arith.constant 0 : index
    %182 = vector.load %arg19[%c160_147, %c0_148] : memref<288x256xf32, #tpu.memory_space<vmem>>, vector<32x256xf32>
    tpu.vector_store %arg19[%c160_147, %c0_148], %181 {strides = array<i32>} : memref<288x256xf32, #tpu.memory_space<vmem>>, vector<32x256xf32>,
    %c6_149 = arith.constant 6 : index
    %c0_150 = arith.constant 0 : index
    %183 = vector.load %arg2[%c6_149, %c0_150] : memref<27x256xf32, #tpu.memory_space<vmem>>, vector<1x256xf32>
    %c241_i32_151 = arith.constant 241 : i32
    %184 = tpu.dynamic_rotate %156 by %c241_i32_151 dim 1 : vector<32x256xf32>, i32 -> vector<32x256xf32>
    %185 = vector.broadcast %183 : vector<1x256xf32> to vector<32x256xf32>
    %186 = arith.mulf %184, %185 : vector<32x256xf32>
    %c192_152 = arith.constant 192 : index
    %c0_153 = arith.constant 0 : index
    %187 = vector.load %arg19[%c192_152, %c0_153] : memref<288x256xf32, #tpu.memory_space<vmem>>, vector<32x256xf32>
    tpu.vector_store %arg19[%c192_152, %c0_153], %186 {strides = array<i32>} : memref<288x256xf32, #tpu.memory_space<vmem>>, vector<32x256xf32>,
    %c7_154 = arith.constant 7 : index
    %c0_155 = arith.constant 0 : index
    %188 = vector.load %arg2[%c7_154, %c0_155] : memref<27x256xf32, #tpu.memory_space<vmem>>, vector<1x256xf32>
    %c240_i32_156 = arith.constant 240 : i32
    %189 = tpu.dynamic_rotate %156 by %c240_i32_156 dim 1 : vector<32x256xf32>, i32 -> vector<32x256xf32>
    %190 = vector.broadcast %188 : vector<1x256xf32> to vector<32x256xf32>
    %191 = arith.mulf %189, %190 : vector<32x256xf32>
    %c224_157 = arith.constant 224 : index
    %c0_158 = arith.constant 0 : index
    %192 = vector.load %arg19[%c224_157, %c0_158] : memref<288x256xf32, #tpu.memory_space<vmem>>, vector<32x256xf32>
    tpu.vector_store %arg19[%c224_157, %c0_158], %191 {strides = array<i32>} : memref<288x256xf32, #tpu.memory_space<vmem>>, vector<32x256xf32>,
    %c8_159 = arith.constant 8 : index
    %c0_160 = arith.constant 0 : index
    %193 = vector.load %arg2[%c8_159, %c0_160] : memref<27x256xf32, #tpu.memory_space<vmem>>, vector<1x256xf32>
    %c239_i32_161 = arith.constant 239 : i32
    %194 = tpu.dynamic_rotate %156 by %c239_i32_161 dim 1 : vector<32x256xf32>, i32 -> vector<32x256xf32>
    %195 = vector.broadcast %193 : vector<1x256xf32> to vector<32x256xf32>
    %196 = arith.mulf %194, %195 : vector<32x256xf32>
    %c256_162 = arith.constant 256 : index
    %c0_163 = arith.constant 0 : index
    %197 = vector.load %arg19[%c256_162, %c0_163] : memref<288x256xf32, #tpu.memory_space<vmem>>, vector<32x256xf32>
    tpu.vector_store %arg19[%c256_162, %c0_163], %196 {strides = array<i32>} : memref<288x256xf32, #tpu.memory_space<vmem>>, vector<32x256xf32>,
    %c96_164 = arith.constant 96 : index
    %c0_165 = arith.constant 0 : index
    %198 = vector.load %arg8[%c96_164, %c0_165] : memref<192x288xbf16, #tpu.memory_space<vmem>>, vector<32x288xbf16>
    %c0_166 = arith.constant 0 : index
    %c0_167 = arith.constant 0 : index
    %199 = vector.load %arg19[%c0_166, %c0_167] : memref<288x256xf32, #tpu.memory_space<vmem>>, vector<288x256xf32>
    %200 = arith.truncf %199 : vector<288x256xf32> to vector<288x256xbf16>
    %cst_168 = arith.constant dense<0.000000e+00> : vector<32x256xf32>
    %201 = tpu.matmul %198, %200, %cst_168 {dimension_numbers = #tpu.dot_dimension_numbers<[1], [0], [0], [1], [0, 0, 1, 1], [], []>} : vector<32x288xbf16>, vector<288x256xbf16>, vector<32x256xf32> -> vector<32x256xf32>
    %c0_169 = arith.constant 0 : index
    %c4 = arith.constant 4 : index
    %202 = vector.load %arg6[%c0_169, %c4] : memref<32x16xf32, #tpu.memory_space<vmem>>, vector<32x1xf32>
    %203 = vector.broadcast %202 : vector<32x1xf32> to vector<32x256xf32>
    %204 = arith.addf %201, %203 : vector<32x256xf32>
    %cst_170 = arith.constant 2.000000e-01 : f32
    %205 = vector.broadcast %cst_170 : f32 to vector<32x256xf32>
    %206 = arith.mulf %205, %204 : vector<32x256xf32>
    %207 = arith.maximumf %204, %206 : vector<32x256xf32>
    %c0_171 = arith.constant 0 : index
    %c0_172 = arith.constant 0 : index
    %208 = vector.load %arg2[%c0_171, %c0_172] : memref<27x256xf32, #tpu.memory_space<vmem>>, vector<1x256xf32>
    %c17_i32_173 = arith.constant 17 : i32
    %209 = tpu.dynamic_rotate %207 by %c17_i32_173 dim 1 : vector<32x256xf32>, i32 -> vector<32x256xf32>
    %210 = vector.broadcast %208 : vector<1x256xf32> to vector<32x256xf32>
    %211 = arith.mulf %209, %210 : vector<32x256xf32>
    %c0_174 = arith.constant 0 : index
    %c0_175 = arith.constant 0 : index
    %212 = vector.load %arg19[%c0_174, %c0_175] : memref<288x256xf32, #tpu.memory_space<vmem>>, vector<32x256xf32>
    tpu.vector_store %arg19[%c0_174, %c0_175], %211 {strides = array<i32>} : memref<288x256xf32, #tpu.memory_space<vmem>>, vector<32x256xf32>,
    %c1_176 = arith.constant 1 : index
    %c0_177 = arith.constant 0 : index
    %213 = vector.load %arg2[%c1_176, %c0_177] : memref<27x256xf32, #tpu.memory_space<vmem>>, vector<1x256xf32>
    %c16_i32_178 = arith.constant 16 : i32
    %214 = tpu.dynamic_rotate %207 by %c16_i32_178 dim 1 : vector<32x256xf32>, i32 -> vector<32x256xf32>
    %215 = vector.broadcast %213 : vector<1x256xf32> to vector<32x256xf32>
    %216 = arith.mulf %214, %215 : vector<32x256xf32>
    %c32_179 = arith.constant 32 : index
    %c0_180 = arith.constant 0 : index
    %217 = vector.load %arg19[%c32_179, %c0_180] : memref<288x256xf32, #tpu.memory_space<vmem>>, vector<32x256xf32>
    tpu.vector_store %arg19[%c32_179, %c0_180], %216 {strides = array<i32>} : memref<288x256xf32, #tpu.memory_space<vmem>>, vector<32x256xf32>,
    %c2_181 = arith.constant 2 : index
    %c0_182 = arith.constant 0 : index
    %218 = vector.load %arg2[%c2_181, %c0_182] : memref<27x256xf32, #tpu.memory_space<vmem>>, vector<1x256xf32>
    %c15_i32_183 = arith.constant 15 : i32
    %219 = tpu.dynamic_rotate %207 by %c15_i32_183 dim 1 : vector<32x256xf32>, i32 -> vector<32x256xf32>
    %220 = vector.broadcast %218 : vector<1x256xf32> to vector<32x256xf32>
    %221 = arith.mulf %219, %220 : vector<32x256xf32>
    %c64_184 = arith.constant 64 : index
    %c0_185 = arith.constant 0 : index
    %222 = vector.load %arg19[%c64_184, %c0_185] : memref<288x256xf32, #tpu.memory_space<vmem>>, vector<32x256xf32>
    tpu.vector_store %arg19[%c64_184, %c0_185], %221 {strides = array<i32>} : memref<288x256xf32, #tpu.memory_space<vmem>>, vector<32x256xf32>,
    %c3_186 = arith.constant 3 : index
    %c0_187 = arith.constant 0 : index
    %223 = vector.load %arg2[%c3_186, %c0_187] : memref<27x256xf32, #tpu.memory_space<vmem>>, vector<1x256xf32>
    %c1_i32_188 = arith.constant 1 : i32
    %224 = tpu.dynamic_rotate %207 by %c1_i32_188 dim 1 : vector<32x256xf32>, i32 -> vector<32x256xf32>
    %225 = vector.broadcast %223 : vector<1x256xf32> to vector<32x256xf32>
    %226 = arith.mulf %224, %225 : vector<32x256xf32>
    %c96_189 = arith.constant 96 : index
    %c0_190 = arith.constant 0 : index
    %227 = vector.load %arg19[%c96_189, %c0_190] : memref<288x256xf32, #tpu.memory_space<vmem>>, vector<32x256xf32>
    tpu.vector_store %arg19[%c96_189, %c0_190], %226 {strides = array<i32>} : memref<288x256xf32, #tpu.memory_space<vmem>>, vector<32x256xf32>,
    %c128_191 = arith.constant 128 : index
    %c0_192 = arith.constant 0 : index
    %228 = vector.load %arg19[%c128_191, %c0_192] : memref<288x256xf32, #tpu.memory_space<vmem>>, vector<32x256xf32>
    tpu.vector_store %arg19[%c128_191, %c0_192], %207 {strides = array<i32>} : memref<288x256xf32, #tpu.memory_space<vmem>>, vector<32x256xf32>,
    %c5_193 = arith.constant 5 : index
    %c0_194 = arith.constant 0 : index
    %229 = vector.load %arg2[%c5_193, %c0_194] : memref<27x256xf32, #tpu.memory_space<vmem>>, vector<1x256xf32>
    %c255_i32_195 = arith.constant 255 : i32
    %230 = tpu.dynamic_rotate %207 by %c255_i32_195 dim 1 : vector<32x256xf32>, i32 -> vector<32x256xf32>
    %231 = vector.broadcast %229 : vector<1x256xf32> to vector<32x256xf32>
    %232 = arith.mulf %230, %231 : vector<32x256xf32>
    %c160_196 = arith.constant 160 : index
    %c0_197 = arith.constant 0 : index
    %233 = vector.load %arg19[%c160_196, %c0_197] : memref<288x256xf32, #tpu.memory_space<vmem>>, vector<32x256xf32>
    tpu.vector_store %arg19[%c160_196, %c0_197], %232 {strides = array<i32>} : memref<288x256xf32, #tpu.memory_space<vmem>>, vector<32x256xf32>,
    %c6_198 = arith.constant 6 : index
    %c0_199 = arith.constant 0 : index
    %234 = vector.load %arg2[%c6_198, %c0_199] : memref<27x256xf32, #tpu.memory_space<vmem>>, vector<1x256xf32>
    %c241_i32_200 = arith.constant 241 : i32
    %235 = tpu.dynamic_rotate %207 by %c241_i32_200 dim 1 : vector<32x256xf32>, i32 -> vector<32x256xf32>
    %236 = vector.broadcast %234 : vector<1x256xf32> to vector<32x256xf32>
    %237 = arith.mulf %235, %236 : vector<32x256xf32>
    %c192_201 = arith.constant 192 : index
    %c0_202 = arith.constant 0 : index
    %238 = vector.load %arg19[%c192_201, %c0_202] : memref<288x256xf32, #tpu.memory_space<vmem>>, vector<32x256xf32>
    tpu.vector_store %arg19[%c192_201, %c0_202], %237 {strides = array<i32>} : memref<288x256xf32, #tpu.memory_space<vmem>>, vector<32x256xf32>,
    %c7_203 = arith.constant 7 : index
    %c0_204 = arith.constant 0 : index
    %239 = vector.load %arg2[%c7_203, %c0_204] : memref<27x256xf32, #tpu.memory_space<vmem>>, vector<1x256xf32>
    %c240_i32_205 = arith.constant 240 : i32
    %240 = tpu.dynamic_rotate %207 by %c240_i32_205 dim 1 : vector<32x256xf32>, i32 -> vector<32x256xf32>
    %241 = vector.broadcast %239 : vector<1x256xf32> to vector<32x256xf32>
    %242 = arith.mulf %240, %241 : vector<32x256xf32>
    %c224_206 = arith.constant 224 : index
    %c0_207 = arith.constant 0 : index
    %243 = vector.load %arg19[%c224_206, %c0_207] : memref<288x256xf32, #tpu.memory_space<vmem>>, vector<32x256xf32>
    tpu.vector_store %arg19[%c224_206, %c0_207], %242 {strides = array<i32>} : memref<288x256xf32, #tpu.memory_space<vmem>>, vector<32x256xf32>,
    %c8_208 = arith.constant 8 : index
    %c0_209 = arith.constant 0 : index
    %244 = vector.load %arg2[%c8_208, %c0_209] : memref<27x256xf32, #tpu.memory_space<vmem>>, vector<1x256xf32>
    %c239_i32_210 = arith.constant 239 : i32
    %245 = tpu.dynamic_rotate %207 by %c239_i32_210 dim 1 : vector<32x256xf32>, i32 -> vector<32x256xf32>
    %246 = vector.broadcast %244 : vector<1x256xf32> to vector<32x256xf32>
    %247 = arith.mulf %245, %246 : vector<32x256xf32>
    %c256_211 = arith.constant 256 : index
    %c0_212 = arith.constant 0 : index
    %248 = vector.load %arg19[%c256_211, %c0_212] : memref<288x256xf32, #tpu.memory_space<vmem>>, vector<32x256xf32>
    tpu.vector_store %arg19[%c256_211, %c0_212], %247 {strides = array<i32>} : memref<288x256xf32, #tpu.memory_space<vmem>>, vector<32x256xf32>,
    %c32_213 = arith.constant 32 : index
    %c0_214 = arith.constant 0 : index
    %249 = vector.load %arg7[%c32_213, %c0_214] : memref<96x360xbf16, #tpu.memory_space<vmem>>, vector<32x360xbf16>
    %c32_215 = arith.constant 32 : index
    %c0_216 = arith.constant 0 : index
    %250 = vector.load %arg8[%c32_215, %c0_216] : memref<192x288xbf16, #tpu.memory_space<vmem>>, vector<32x288xbf16>
    %c0_217 = arith.constant 0 : index
    %c0_218 = arith.constant 0 : index
    %251 = vector.load %arg18[%c0_217, %c0_218] : memref<360x256xf32, #tpu.memory_space<vmem>>, vector<360x256xf32>
    %252 = arith.truncf %251 : vector<360x256xf32> to vector<360x256xbf16>
    %cst_219 = arith.constant dense<0.000000e+00> : vector<32x256xf32>
    %253 = tpu.matmul %249, %252, %cst_219 {dimension_numbers = #tpu.dot_dimension_numbers<[1], [0], [0], [1], [0, 0, 1, 1], [], []>} : vector<32x360xbf16>, vector<360x256xbf16>, vector<32x256xf32> -> vector<32x256xf32>
    %c0_220 = arith.constant 0 : index
    %c0_221 = arith.constant 0 : index
    %254 = vector.load %arg19[%c0_220, %c0_221] : memref<288x256xf32, #tpu.memory_space<vmem>>, vector<288x256xf32>
    %255 = arith.truncf %254 : vector<288x256xf32> to vector<288x256xbf16>
    %cst_222 = arith.constant dense<0.000000e+00> : vector<32x256xf32>
    %256 = tpu.matmul %250, %255, %cst_222 {dimension_numbers = #tpu.dot_dimension_numbers<[1], [0], [0], [1], [0, 0, 1, 1], [], []>} : vector<32x288xbf16>, vector<288x256xbf16>, vector<32x256xf32> -> vector<32x256xf32>
    %257 = arith.addf %253, %256 : vector<32x256xf32>
    %c0_223 = arith.constant 0 : index
    %c2_224 = arith.constant 2 : index
    %258 = vector.load %arg6[%c0_223, %c2_224] : memref<32x16xf32, #tpu.memory_space<vmem>>, vector<32x1xf32>
    %259 = vector.broadcast %258 : vector<32x1xf32> to vector<32x256xf32>
    %260 = arith.addf %257, %259 : vector<32x256xf32>
    %cst_225 = arith.constant 2.000000e-01 : f32
    %261 = vector.broadcast %cst_225 : f32 to vector<32x256xf32>
    %262 = arith.mulf %261, %260 : vector<32x256xf32>
    %263 = arith.maximumf %260, %262 : vector<32x256xf32>
    %c9 = arith.constant 9 : index
    %c0_226 = arith.constant 0 : index
    %264 = vector.load %arg2[%c9, %c0_226] : memref<27x256xf32, #tpu.memory_space<vmem>>, vector<1x256xf32>
    %c51_i32 = arith.constant 51 : i32
    %265 = tpu.dynamic_rotate %263 by %c51_i32 dim 1 : vector<32x256xf32>, i32 -> vector<32x256xf32>
    %266 = vector.broadcast %264 : vector<1x256xf32> to vector<32x256xf32>
    %267 = arith.mulf %265, %266 : vector<32x256xf32>
    %c0_227 = arith.constant 0 : index
    %c0_228 = arith.constant 0 : index
    %268 = vector.load %arg19[%c0_227, %c0_228] : memref<288x256xf32, #tpu.memory_space<vmem>>, vector<32x256xf32>
    tpu.vector_store %arg19[%c0_227, %c0_228], %267 {strides = array<i32>} : memref<288x256xf32, #tpu.memory_space<vmem>>, vector<32x256xf32>,
    %c10 = arith.constant 10 : index
    %c0_229 = arith.constant 0 : index
    %269 = vector.load %arg2[%c10, %c0_229] : memref<27x256xf32, #tpu.memory_space<vmem>>, vector<1x256xf32>
    %c48_i32 = arith.constant 48 : i32
    %270 = tpu.dynamic_rotate %263 by %c48_i32 dim 1 : vector<32x256xf32>, i32 -> vector<32x256xf32>
    %271 = vector.broadcast %269 : vector<1x256xf32> to vector<32x256xf32>
    %272 = arith.mulf %270, %271 : vector<32x256xf32>
    %c32_230 = arith.constant 32 : index
    %c0_231 = arith.constant 0 : index
    %273 = vector.load %arg19[%c32_230, %c0_231] : memref<288x256xf32, #tpu.memory_space<vmem>>, vector<32x256xf32>
    tpu.vector_store %arg19[%c32_230, %c0_231], %272 {strides = array<i32>} : memref<288x256xf32, #tpu.memory_space<vmem>>, vector<32x256xf32>,
    %c11_232 = arith.constant 11 : index
    %c0_233 = arith.constant 0 : index
    %274 = vector.load %arg2[%c11_232, %c0_233] : memref<27x256xf32, #tpu.memory_space<vmem>>, vector<1x256xf32>
    %c45_i32 = arith.constant 45 : i32
    %275 = tpu.dynamic_rotate %263 by %c45_i32 dim 1 : vector<32x256xf32>, i32 -> vector<32x256xf32>
    %276 = vector.broadcast %274 : vector<1x256xf32> to vector<32x256xf32>
    %277 = arith.mulf %275, %276 : vector<32x256xf32>
    %c64_234 = arith.constant 64 : index
    %c0_235 = arith.constant 0 : index
    %278 = vector.load %arg19[%c64_234, %c0_235] : memref<288x256xf32, #tpu.memory_space<vmem>>, vector<32x256xf32>
    tpu.vector_store %arg19[%c64_234, %c0_235], %277 {strides = array<i32>} : memref<288x256xf32, #tpu.memory_space<vmem>>, vector<32x256xf32>,
    %c12 = arith.constant 12 : index
    %c0_236 = arith.constant 0 : index
    %279 = vector.load %arg2[%c12, %c0_236] : memref<27x256xf32, #tpu.memory_space<vmem>>, vector<1x256xf32>
    %c3_i32 = arith.constant 3 : i32
    %280 = tpu.dynamic_rotate %263 by %c3_i32 dim 1 : vector<32x256xf32>, i32 -> vector<32x256xf32>
    %281 = vector.broadcast %279 : vector<1x256xf32> to vector<32x256xf32>
    %282 = arith.mulf %280, %281 : vector<32x256xf32>
    %c96_237 = arith.constant 96 : index
    %c0_238 = arith.constant 0 : index
    %283 = vector.load %arg19[%c96_237, %c0_238] : memref<288x256xf32, #tpu.memory_space<vmem>>, vector<32x256xf32>
    tpu.vector_store %arg19[%c96_237, %c0_238], %282 {strides = array<i32>} : memref<288x256xf32, #tpu.memory_space<vmem>>, vector<32x256xf32>,
    %c128_239 = arith.constant 128 : index
    %c0_240 = arith.constant 0 : index
    %284 = vector.load %arg19[%c128_239, %c0_240] : memref<288x256xf32, #tpu.memory_space<vmem>>, vector<32x256xf32>
    tpu.vector_store %arg19[%c128_239, %c0_240], %263 {strides = array<i32>} : memref<288x256xf32, #tpu.memory_space<vmem>>, vector<32x256xf32>,
    %c14 = arith.constant 14 : index
    %c0_241 = arith.constant 0 : index
    %285 = vector.load %arg2[%c14, %c0_241] : memref<27x256xf32, #tpu.memory_space<vmem>>, vector<1x256xf32>
    %c253_i32 = arith.constant 253 : i32
    %286 = tpu.dynamic_rotate %263 by %c253_i32 dim 1 : vector<32x256xf32>, i32 -> vector<32x256xf32>
    %287 = vector.broadcast %285 : vector<1x256xf32> to vector<32x256xf32>
    %288 = arith.mulf %286, %287 : vector<32x256xf32>
    %c160_242 = arith.constant 160 : index
    %c0_243 = arith.constant 0 : index
    %289 = vector.load %arg19[%c160_242, %c0_243] : memref<288x256xf32, #tpu.memory_space<vmem>>, vector<32x256xf32>
    tpu.vector_store %arg19[%c160_242, %c0_243], %288 {strides = array<i32>} : memref<288x256xf32, #tpu.memory_space<vmem>>, vector<32x256xf32>,
    %c15 = arith.constant 15 : index
    %c0_244 = arith.constant 0 : index
    %290 = vector.load %arg2[%c15, %c0_244] : memref<27x256xf32, #tpu.memory_space<vmem>>, vector<1x256xf32>
    %c211_i32 = arith.constant 211 : i32
    %291 = tpu.dynamic_rotate %263 by %c211_i32 dim 1 : vector<32x256xf32>, i32 -> vector<32x256xf32>
    %292 = vector.broadcast %290 : vector<1x256xf32> to vector<32x256xf32>
    %293 = arith.mulf %291, %292 : vector<32x256xf32>
    %c192_245 = arith.constant 192 : index
    %c0_246 = arith.constant 0 : index
    %294 = vector.load %arg19[%c192_245, %c0_246] : memref<288x256xf32, #tpu.memory_space<vmem>>, vector<32x256xf32>
    tpu.vector_store %arg19[%c192_245, %c0_246], %293 {strides = array<i32>} : memref<288x256xf32, #tpu.memory_space<vmem>>, vector<32x256xf32>,
    %c16 = arith.constant 16 : index
    %c0_247 = arith.constant 0 : index
    %295 = vector.load %arg2[%c16, %c0_247] : memref<27x256xf32, #tpu.memory_space<vmem>>, vector<1x256xf32>
    %c208_i32 = arith.constant 208 : i32
    %296 = tpu.dynamic_rotate %263 by %c208_i32 dim 1 : vector<32x256xf32>, i32 -> vector<32x256xf32>
    %297 = vector.broadcast %295 : vector<1x256xf32> to vector<32x256xf32>
    %298 = arith.mulf %296, %297 : vector<32x256xf32>
    %c224_248 = arith.constant 224 : index
    %c0_249 = arith.constant 0 : index
    %299 = vector.load %arg19[%c224_248, %c0_249] : memref<288x256xf32, #tpu.memory_space<vmem>>, vector<32x256xf32>
    tpu.vector_store %arg19[%c224_248, %c0_249], %298 {strides = array<i32>} : memref<288x256xf32, #tpu.memory_space<vmem>>, vector<32x256xf32>,
    %c17 = arith.constant 17 : index
    %c0_250 = arith.constant 0 : index
    %300 = vector.load %arg2[%c17, %c0_250] : memref<27x256xf32, #tpu.memory_space<vmem>>, vector<1x256xf32>
    %c205_i32 = arith.constant 205 : i32
    %301 = tpu.dynamic_rotate %263 by %c205_i32 dim 1 : vector<32x256xf32>, i32 -> vector<32x256xf32>
    %302 = vector.broadcast %300 : vector<1x256xf32> to vector<32x256xf32>
    %303 = arith.mulf %301, %302 : vector<32x256xf32>
    %c256_251 = arith.constant 256 : index
    %c0_252 = arith.constant 0 : index
    %304 = vector.load %arg19[%c256_251, %c0_252] : memref<288x256xf32, #tpu.memory_space<vmem>>, vector<32x256xf32>
    tpu.vector_store %arg19[%c256_251, %c0_252], %303 {strides = array<i32>} : memref<288x256xf32, #tpu.memory_space<vmem>>, vector<32x256xf32>,
    %c128_253 = arith.constant 128 : index
    %c0_254 = arith.constant 0 : index
    %305 = vector.load %arg8[%c128_253, %c0_254] : memref<192x288xbf16, #tpu.memory_space<vmem>>, vector<32x288xbf16>
    %c0_255 = arith.constant 0 : index
    %c0_256 = arith.constant 0 : index
    %306 = vector.load %arg19[%c0_255, %c0_256] : memref<288x256xf32, #tpu.memory_space<vmem>>, vector<288x256xf32>
    %307 = arith.truncf %306 : vector<288x256xf32> to vector<288x256xbf16>
    %cst_257 = arith.constant dense<0.000000e+00> : vector<32x256xf32>
    %308 = tpu.matmul %305, %307, %cst_257 {dimension_numbers = #tpu.dot_dimension_numbers<[1], [0], [0], [1], [0, 0, 1, 1], [], []>} : vector<32x288xbf16>, vector<288x256xbf16>, vector<32x256xf32> -> vector<32x256xf32>
    %c0_258 = arith.constant 0 : index
    %c5_259 = arith.constant 5 : index
    %309 = vector.load %arg6[%c0_258, %c5_259] : memref<32x16xf32, #tpu.memory_space<vmem>>, vector<32x1xf32>
    %310 = vector.broadcast %309 : vector<32x1xf32> to vector<32x256xf32>
    %311 = arith.addf %308, %310 : vector<32x256xf32>
    %cst_260 = arith.constant 2.000000e-01 : f32
    %312 = vector.broadcast %cst_260 : f32 to vector<32x256xf32>
    %313 = arith.mulf %312, %311 : vector<32x256xf32>
    %314 = arith.maximumf %311, %313 : vector<32x256xf32>
    %c0_261 = arith.constant 0 : index
    %c0_262 = arith.constant 0 : index
    %315 = vector.load %arg2[%c0_261, %c0_262] : memref<27x256xf32, #tpu.memory_space<vmem>>, vector<1x256xf32>
    %c17_i32_263 = arith.constant 17 : i32
    %316 = tpu.dynamic_rotate %314 by %c17_i32_263 dim 1 : vector<32x256xf32>, i32 -> vector<32x256xf32>
    %317 = vector.broadcast %315 : vector<1x256xf32> to vector<32x256xf32>
    %318 = arith.mulf %316, %317 : vector<32x256xf32>
    %c0_264 = arith.constant 0 : index
    %c0_265 = arith.constant 0 : index
    %319 = vector.load %arg19[%c0_264, %c0_265] : memref<288x256xf32, #tpu.memory_space<vmem>>, vector<32x256xf32>
    tpu.vector_store %arg19[%c0_264, %c0_265], %318 {strides = array<i32>} : memref<288x256xf32, #tpu.memory_space<vmem>>, vector<32x256xf32>,
    %c1_266 = arith.constant 1 : index
    %c0_267 = arith.constant 0 : index
    %320 = vector.load %arg2[%c1_266, %c0_267] : memref<27x256xf32, #tpu.memory_space<vmem>>, vector<1x256xf32>
    %c16_i32_268 = arith.constant 16 : i32
    %321 = tpu.dynamic_rotate %314 by %c16_i32_268 dim 1 : vector<32x256xf32>, i32 -> vector<32x256xf32>
    %322 = vector.broadcast %320 : vector<1x256xf32> to vector<32x256xf32>
    %323 = arith.mulf %321, %322 : vector<32x256xf32>
    %c32_269 = arith.constant 32 : index
    %c0_270 = arith.constant 0 : index
    %324 = vector.load %arg19[%c32_269, %c0_270] : memref<288x256xf32, #tpu.memory_space<vmem>>, vector<32x256xf32>
    tpu.vector_store %arg19[%c32_269, %c0_270], %323 {strides = array<i32>} : memref<288x256xf32, #tpu.memory_space<vmem>>, vector<32x256xf32>,
    %c2_271 = arith.constant 2 : index
    %c0_272 = arith.constant 0 : index
    %325 = vector.load %arg2[%c2_271, %c0_272] : memref<27x256xf32, #tpu.memory_space<vmem>>, vector<1x256xf32>
    %c15_i32_273 = arith.constant 15 : i32
    %326 = tpu.dynamic_rotate %314 by %c15_i32_273 dim 1 : vector<32x256xf32>, i32 -> vector<32x256xf32>
    %327 = vector.broadcast %325 : vector<1x256xf32> to vector<32x256xf32>
    %328 = arith.mulf %326, %327 : vector<32x256xf32>
    %c64_274 = arith.constant 64 : index
    %c0_275 = arith.constant 0 : index
    %329 = vector.load %arg19[%c64_274, %c0_275] : memref<288x256xf32, #tpu.memory_space<vmem>>, vector<32x256xf32>
    tpu.vector_store %arg19[%c64_274, %c0_275], %328 {strides = array<i32>} : memref<288x256xf32, #tpu.memory_space<vmem>>, vector<32x256xf32>,
    %c3_276 = arith.constant 3 : index
    %c0_277 = arith.constant 0 : index
    %330 = vector.load %arg2[%c3_276, %c0_277] : memref<27x256xf32, #tpu.memory_space<vmem>>, vector<1x256xf32>
    %c1_i32_278 = arith.constant 1 : i32
    %331 = tpu.dynamic_rotate %314 by %c1_i32_278 dim 1 : vector<32x256xf32>, i32 -> vector<32x256xf32>
    %332 = vector.broadcast %330 : vector<1x256xf32> to vector<32x256xf32>
    %333 = arith.mulf %331, %332 : vector<32x256xf32>
    %c96_279 = arith.constant 96 : index
    %c0_280 = arith.constant 0 : index
    %334 = vector.load %arg19[%c96_279, %c0_280] : memref<288x256xf32, #tpu.memory_space<vmem>>, vector<32x256xf32>
    tpu.vector_store %arg19[%c96_279, %c0_280], %333 {strides = array<i32>} : memref<288x256xf32, #tpu.memory_space<vmem>>, vector<32x256xf32>,
    %c128_281 = arith.constant 128 : index
    %c0_282 = arith.constant 0 : index
    %335 = vector.load %arg19[%c128_281, %c0_282] : memref<288x256xf32, #tpu.memory_space<vmem>>, vector<32x256xf32>
    tpu.vector_store %arg19[%c128_281, %c0_282], %314 {strides = array<i32>} : memref<288x256xf32, #tpu.memory_space<vmem>>, vector<32x256xf32>,
    %c5_283 = arith.constant 5 : index
    %c0_284 = arith.constant 0 : index
    %336 = vector.load %arg2[%c5_283, %c0_284] : memref<27x256xf32, #tpu.memory_space<vmem>>, vector<1x256xf32>
    %c255_i32_285 = arith.constant 255 : i32
    %337 = tpu.dynamic_rotate %314 by %c255_i32_285 dim 1 : vector<32x256xf32>, i32 -> vector<32x256xf32>
    %338 = vector.broadcast %336 : vector<1x256xf32> to vector<32x256xf32>
    %339 = arith.mulf %337, %338 : vector<32x256xf32>
    %c160_286 = arith.constant 160 : index
    %c0_287 = arith.constant 0 : index
    %340 = vector.load %arg19[%c160_286, %c0_287] : memref<288x256xf32, #tpu.memory_space<vmem>>, vector<32x256xf32>
    tpu.vector_store %arg19[%c160_286, %c0_287], %339 {strides = array<i32>} : memref<288x256xf32, #tpu.memory_space<vmem>>, vector<32x256xf32>,
    %c6_288 = arith.constant 6 : index
    %c0_289 = arith.constant 0 : index
    %341 = vector.load %arg2[%c6_288, %c0_289] : memref<27x256xf32, #tpu.memory_space<vmem>>, vector<1x256xf32>
    %c241_i32_290 = arith.constant 241 : i32
    %342 = tpu.dynamic_rotate %314 by %c241_i32_290 dim 1 : vector<32x256xf32>, i32 -> vector<32x256xf32>
    %343 = vector.broadcast %341 : vector<1x256xf32> to vector<32x256xf32>
    %344 = arith.mulf %342, %343 : vector<32x256xf32>
    %c192_291 = arith.constant 192 : index
    %c0_292 = arith.constant 0 : index
    %345 = vector.load %arg19[%c192_291, %c0_292] : memref<288x256xf32, #tpu.memory_space<vmem>>, vector<32x256xf32>
    tpu.vector_store %arg19[%c192_291, %c0_292], %344 {strides = array<i32>} : memref<288x256xf32, #tpu.memory_space<vmem>>, vector<32x256xf32>,
    %c7_293 = arith.constant 7 : index
    %c0_294 = arith.constant 0 : index
    %346 = vector.load %arg2[%c7_293, %c0_294] : memref<27x256xf32, #tpu.memory_space<vmem>>, vector<1x256xf32>
    %c240_i32_295 = arith.constant 240 : i32
    %347 = tpu.dynamic_rotate %314 by %c240_i32_295 dim 1 : vector<32x256xf32>, i32 -> vector<32x256xf32>
    %348 = vector.broadcast %346 : vector<1x256xf32> to vector<32x256xf32>
    %349 = arith.mulf %347, %348 : vector<32x256xf32>
    %c224_296 = arith.constant 224 : index
    %c0_297 = arith.constant 0 : index
    %350 = vector.load %arg19[%c224_296, %c0_297] : memref<288x256xf32, #tpu.memory_space<vmem>>, vector<32x256xf32>
    tpu.vector_store %arg19[%c224_296, %c0_297], %349 {strides = array<i32>} : memref<288x256xf32, #tpu.memory_space<vmem>>, vector<32x256xf32>,
    %c8_298 = arith.constant 8 : index
    %c0_299 = arith.constant 0 : index
    %351 = vector.load %arg2[%c8_298, %c0_299] : memref<27x256xf32, #tpu.memory_space<vmem>>, vector<1x256xf32>
    %c239_i32_300 = arith.constant 239 : i32
    %352 = tpu.dynamic_rotate %314 by %c239_i32_300 dim 1 : vector<32x256xf32>, i32 -> vector<32x256xf32>
    %353 = vector.broadcast %351 : vector<1x256xf32> to vector<32x256xf32>
    %354 = arith.mulf %352, %353 : vector<32x256xf32>
    %c256_301 = arith.constant 256 : index
    %c0_302 = arith.constant 0 : index
    %355 = vector.load %arg19[%c256_301, %c0_302] : memref<288x256xf32, #tpu.memory_space<vmem>>, vector<32x256xf32>
    tpu.vector_store %arg19[%c256_301, %c0_302], %354 {strides = array<i32>} : memref<288x256xf32, #tpu.memory_space<vmem>>, vector<32x256xf32>,
    %c64_303 = arith.constant 64 : index
    %c0_304 = arith.constant 0 : index
    %356 = vector.load %arg7[%c64_303, %c0_304] : memref<96x360xbf16, #tpu.memory_space<vmem>>, vector<32x360xbf16>
    %c64_305 = arith.constant 64 : index
    %c0_306 = arith.constant 0 : index
    %357 = vector.load %arg8[%c64_305, %c0_306] : memref<192x288xbf16, #tpu.memory_space<vmem>>, vector<32x288xbf16>
    %c0_307 = arith.constant 0 : index
    %c0_308 = arith.constant 0 : index
    %358 = vector.load %arg18[%c0_307, %c0_308] : memref<360x256xf32, #tpu.memory_space<vmem>>, vector<360x256xf32>
    %359 = arith.truncf %358 : vector<360x256xf32> to vector<360x256xbf16>
    %cst_309 = arith.constant dense<0.000000e+00> : vector<32x256xf32>
    %360 = tpu.matmul %356, %359, %cst_309 {dimension_numbers = #tpu.dot_dimension_numbers<[1], [0], [0], [1], [0, 0, 1, 1], [], []>} : vector<32x360xbf16>, vector<360x256xbf16>, vector<32x256xf32> -> vector<32x256xf32>
    %c0_310 = arith.constant 0 : index
    %c0_311 = arith.constant 0 : index
    %361 = vector.load %arg19[%c0_310, %c0_311] : memref<288x256xf32, #tpu.memory_space<vmem>>, vector<288x256xf32>
    %362 = arith.truncf %361 : vector<288x256xf32> to vector<288x256xbf16>
    %cst_312 = arith.constant dense<0.000000e+00> : vector<32x256xf32>
    %363 = tpu.matmul %357, %362, %cst_312 {dimension_numbers = #tpu.dot_dimension_numbers<[1], [0], [0], [1], [0, 0, 1, 1], [], []>} : vector<32x288xbf16>, vector<288x256xbf16>, vector<32x256xf32> -> vector<32x256xf32>
    %364 = arith.addf %360, %363 : vector<32x256xf32>
    %c0_313 = arith.constant 0 : index
    %c3_314 = arith.constant 3 : index
    %365 = vector.load %arg6[%c0_313, %c3_314] : memref<32x16xf32, #tpu.memory_space<vmem>>, vector<32x1xf32>
    %366 = vector.broadcast %365 : vector<32x1xf32> to vector<32x256xf32>
    %367 = arith.addf %364, %366 : vector<32x256xf32>
    %cst_315 = arith.constant 2.000000e-01 : f32
    %368 = vector.broadcast %cst_315 : f32 to vector<32x256xf32>
    %369 = arith.mulf %368, %367 : vector<32x256xf32>
    %370 = arith.maximumf %367, %369 : vector<32x256xf32>
    %c18 = arith.constant 18 : index
    %c0_316 = arith.constant 0 : index
    %371 = vector.load %arg2[%c18, %c0_316] : memref<27x256xf32, #tpu.memory_space<vmem>>, vector<1x256xf32>
    %c85_i32 = arith.constant 85 : i32
    %372 = tpu.dynamic_rotate %370 by %c85_i32 dim 1 : vector<32x256xf32>, i32 -> vector<32x256xf32>
    %373 = vector.broadcast %371 : vector<1x256xf32> to vector<32x256xf32>
    %374 = arith.mulf %372, %373 : vector<32x256xf32>
    %c0_317 = arith.constant 0 : index
    %c0_318 = arith.constant 0 : index
    %375 = vector.load %arg19[%c0_317, %c0_318] : memref<288x256xf32, #tpu.memory_space<vmem>>, vector<32x256xf32>
    tpu.vector_store %arg19[%c0_317, %c0_318], %374 {strides = array<i32>} : memref<288x256xf32, #tpu.memory_space<vmem>>, vector<32x256xf32>,
    %c19 = arith.constant 19 : index
    %c0_319 = arith.constant 0 : index
    %376 = vector.load %arg2[%c19, %c0_319] : memref<27x256xf32, #tpu.memory_space<vmem>>, vector<1x256xf32>
    %c80_i32 = arith.constant 80 : i32
    %377 = tpu.dynamic_rotate %370 by %c80_i32 dim 1 : vector<32x256xf32>, i32 -> vector<32x256xf32>
    %378 = vector.broadcast %376 : vector<1x256xf32> to vector<32x256xf32>
    %379 = arith.mulf %377, %378 : vector<32x256xf32>
    %c32_320 = arith.constant 32 : index
    %c0_321 = arith.constant 0 : index
    %380 = vector.load %arg19[%c32_320, %c0_321] : memref<288x256xf32, #tpu.memory_space<vmem>>, vector<32x256xf32>
    tpu.vector_store %arg19[%c32_320, %c0_321], %379 {strides = array<i32>} : memref<288x256xf32, #tpu.memory_space<vmem>>, vector<32x256xf32>,
    %c20 = arith.constant 20 : index
    %c0_322 = arith.constant 0 : index
    %381 = vector.load %arg2[%c20, %c0_322] : memref<27x256xf32, #tpu.memory_space<vmem>>, vector<1x256xf32>
    %c75_i32 = arith.constant 75 : i32
    %382 = tpu.dynamic_rotate %370 by %c75_i32 dim 1 : vector<32x256xf32>, i32 -> vector<32x256xf32>
    %383 = vector.broadcast %381 : vector<1x256xf32> to vector<32x256xf32>
    %384 = arith.mulf %382, %383 : vector<32x256xf32>
    %c64_323 = arith.constant 64 : index
    %c0_324 = arith.constant 0 : index
    %385 = vector.load %arg19[%c64_323, %c0_324] : memref<288x256xf32, #tpu.memory_space<vmem>>, vector<32x256xf32>
    tpu.vector_store %arg19[%c64_323, %c0_324], %384 {strides = array<i32>} : memref<288x256xf32, #tpu.memory_space<vmem>>, vector<32x256xf32>,
    %c21 = arith.constant 21 : index
    %c0_325 = arith.constant 0 : index
    %386 = vector.load %arg2[%c21, %c0_325] : memref<27x256xf32, #tpu.memory_space<vmem>>, vector<1x256xf32>
    %c5_i32 = arith.constant 5 : i32
    %387 = tpu.dynamic_rotate %370 by %c5_i32 dim 1 : vector<32x256xf32>, i32 -> vector<32x256xf32>
    %388 = vector.broadcast %386 : vector<1x256xf32> to vector<32x256xf32>
    %389 = arith.mulf %387, %388 : vector<32x256xf32>
    %c96_326 = arith.constant 96 : index
    %c0_327 = arith.constant 0 : index
    %390 = vector.load %arg19[%c96_326, %c0_327] : memref<288x256xf32, #tpu.memory_space<vmem>>, vector<32x256xf32>
    tpu.vector_store %arg19[%c96_326, %c0_327], %389 {strides = array<i32>} : memref<288x256xf32, #tpu.memory_space<vmem>>, vector<32x256xf32>,
    %c128_328 = arith.constant 128 : index
    %c0_329 = arith.constant 0 : index
    %391 = vector.load %arg19[%c128_328, %c0_329] : memref<288x256xf32, #tpu.memory_space<vmem>>, vector<32x256xf32>
    tpu.vector_store %arg19[%c128_328, %c0_329], %370 {strides = array<i32>} : memref<288x256xf32, #tpu.memory_space<vmem>>, vector<32x256xf32>,
    %c23 = arith.constant 23 : index
    %c0_330 = arith.constant 0 : index
    %392 = vector.load %arg2[%c23, %c0_330] : memref<27x256xf32, #tpu.memory_space<vmem>>, vector<1x256xf32>
    %c251_i32 = arith.constant 251 : i32
    %393 = tpu.dynamic_rotate %370 by %c251_i32 dim 1 : vector<32x256xf32>, i32 -> vector<32x256xf32>
    %394 = vector.broadcast %392 : vector<1x256xf32> to vector<32x256xf32>
    %395 = arith.mulf %393, %394 : vector<32x256xf32>
    %c160_331 = arith.constant 160 : index
    %c0_332 = arith.constant 0 : index
    %396 = vector.load %arg19[%c160_331, %c0_332] : memref<288x256xf32, #tpu.memory_space<vmem>>, vector<32x256xf32>
    tpu.vector_store %arg19[%c160_331, %c0_332], %395 {strides = array<i32>} : memref<288x256xf32, #tpu.memory_space<vmem>>, vector<32x256xf32>,
    %c24 = arith.constant 24 : index
    %c0_333 = arith.constant 0 : index
    %397 = vector.load %arg2[%c24, %c0_333] : memref<27x256xf32, #tpu.memory_space<vmem>>, vector<1x256xf32>
    %c181_i32 = arith.constant 181 : i32
    %398 = tpu.dynamic_rotate %370 by %c181_i32 dim 1 : vector<32x256xf32>, i32 -> vector<32x256xf32>
    %399 = vector.broadcast %397 : vector<1x256xf32> to vector<32x256xf32>
    %400 = arith.mulf %398, %399 : vector<32x256xf32>
    %c192_334 = arith.constant 192 : index
    %c0_335 = arith.constant 0 : index
    %401 = vector.load %arg19[%c192_334, %c0_335] : memref<288x256xf32, #tpu.memory_space<vmem>>, vector<32x256xf32>
    tpu.vector_store %arg19[%c192_334, %c0_335], %400 {strides = array<i32>} : memref<288x256xf32, #tpu.memory_space<vmem>>, vector<32x256xf32>,
    %c25 = arith.constant 25 : index
    %c0_336 = arith.constant 0 : index
    %402 = vector.load %arg2[%c25, %c0_336] : memref<27x256xf32, #tpu.memory_space<vmem>>, vector<1x256xf32>
    %c176_i32 = arith.constant 176 : i32
    %403 = tpu.dynamic_rotate %370 by %c176_i32 dim 1 : vector<32x256xf32>, i32 -> vector<32x256xf32>
    %404 = vector.broadcast %402 : vector<1x256xf32> to vector<32x256xf32>
    %405 = arith.mulf %403, %404 : vector<32x256xf32>
    %c224_337 = arith.constant 224 : index
    %c0_338 = arith.constant 0 : index
    %406 = vector.load %arg19[%c224_337, %c0_338] : memref<288x256xf32, #tpu.memory_space<vmem>>, vector<32x256xf32>
    tpu.vector_store %arg19[%c224_337, %c0_338], %405 {strides = array<i32>} : memref<288x256xf32, #tpu.memory_space<vmem>>, vector<32x256xf32>,
    %c26 = arith.constant 26 : index
    %c0_339 = arith.constant 0 : index
    %407 = vector.load %arg2[%c26, %c0_339] : memref<27x256xf32, #tpu.memory_space<vmem>>, vector<1x256xf32>
    %c171_i32 = arith.constant 171 : i32
    %408 = tpu.dynamic_rotate %370 by %c171_i32 dim 1 : vector<32x256xf32>, i32 -> vector<32x256xf32>
    %409 = vector.broadcast %407 : vector<1x256xf32> to vector<32x256xf32>
    %410 = arith.mulf %408, %409 : vector<32x256xf32>
    %c256_340 = arith.constant 256 : index
    %c0_341 = arith.constant 0 : index
    %411 = vector.load %arg19[%c256_340, %c0_341] : memref<288x256xf32, #tpu.memory_space<vmem>>, vector<32x256xf32>
    tpu.vector_store %arg19[%c256_340, %c0_341], %410 {strides = array<i32>} : memref<288x256xf32, #tpu.memory_space<vmem>>, vector<32x256xf32>,
    %c160_342 = arith.constant 160 : index
    %c0_343 = arith.constant 0 : index
    %412 = vector.load %arg8[%c160_342, %c0_343] : memref<192x288xbf16, #tpu.memory_space<vmem>>, vector<32x288xbf16>
    %c0_344 = arith.constant 0 : index
    %c0_345 = arith.constant 0 : index
    %413 = vector.load %arg19[%c0_344, %c0_345] : memref<288x256xf32, #tpu.memory_space<vmem>>, vector<288x256xf32>
    %414 = arith.truncf %413 : vector<288x256xf32> to vector<288x256xbf16>
    %cst_346 = arith.constant dense<0.000000e+00> : vector<32x256xf32>
    %415 = tpu.matmul %412, %414, %cst_346 {dimension_numbers = #tpu.dot_dimension_numbers<[1], [0], [0], [1], [0, 0, 1, 1], [], []>} : vector<32x288xbf16>, vector<288x256xbf16>, vector<32x256xf32> -> vector<32x256xf32>
    %c0_347 = arith.constant 0 : index
    %c6_348 = arith.constant 6 : index
    %416 = vector.load %arg6[%c0_347, %c6_348] : memref<32x16xf32, #tpu.memory_space<vmem>>, vector<32x1xf32>
    %417 = vector.broadcast %416 : vector<32x1xf32> to vector<32x256xf32>
    %418 = arith.addf %415, %417 : vector<32x256xf32>
    %cst_349 = arith.constant 2.000000e-01 : f32
    %419 = vector.broadcast %cst_349 : f32 to vector<32x256xf32>
    %420 = arith.mulf %419, %418 : vector<32x256xf32>
    %421 = arith.maximumf %418, %420 : vector<32x256xf32>
    %cst_350 = arith.constant 0.000000e+00 : f32
    %422 = vector.broadcast %cst_350 : f32 to vector<1x256xf32>
    %cst_351 = arith.constant dense<0.000000e+00> : vector<32xf32>
    %423 = vector.multi_reduction <add>, %59, %cst_351 [1] : vector<32x256xf32> to vector<32xf32>
    %424 = vector.shape_cast %423 : vector<32xf32> to vector<32x1xf32>
    %cst_352 = arith.constant 2.560000e+02 : f32
    %425 = vector.broadcast %cst_352 : f32 to vector<32x1xf32>
    %426 = arith.divf %424, %425 : vector<32x1xf32>
    %427 = arith.negf %426 : vector<32x1xf32>
    %428 = math.exp %427 : vector<32x1xf32>
    %cst_353 = arith.constant 1.000000e+00 : f32
    %429 = vector.broadcast %cst_353 : f32 to vector<32x1xf32>
    %430 = arith.addf %429, %428 : vector<32x1xf32>
    %431 = arith.divf %429, %430 : vector<32x1xf32>
    %cst_354 = arith.constant 2.000000e+00 : f32
    %432 = vector.broadcast %cst_354 : f32 to vector<32x1xf32>
    %433 = arith.mulf %431, %432 : vector<32x1xf32>
    %434 = vector.broadcast %433 : vector<32x1xf32> to vector<32x256xf32>
    %435 = arith.mulf %59, %434 : vector<32x256xf32>
    %cst_355 = arith.constant dense<0.000000e+00> : vector<256xf32>
    %436 = vector.multi_reduction <add>, %435, %cst_355 [0] : vector<32x256xf32> to vector<256xf32>
    %437 = vector.shape_cast %436 : vector<256xf32> to vector<1x256xf32>
    %438 = arith.addf %422, %437 : vector<1x256xf32>
    %cst_356 = arith.constant dense<0.000000e+00> : vector<32xf32>
    %439 = vector.multi_reduction <add>, %207, %cst_356 [1] : vector<32x256xf32> to vector<32xf32>
    %440 = vector.shape_cast %439 : vector<32xf32> to vector<32x1xf32>
    %cst_357 = arith.constant 2.560000e+02 : f32
    %441 = vector.broadcast %cst_357 : f32 to vector<32x1xf32>
    %442 = arith.divf %440, %441 : vector<32x1xf32>
    %443 = arith.negf %442 : vector<32x1xf32>
    %444 = math.exp %443 : vector<32x1xf32>
    %cst_358 = arith.constant 1.000000e+00 : f32
    %445 = vector.broadcast %cst_358 : f32 to vector<32x1xf32>
    %446 = arith.addf %445, %444 : vector<32x1xf32>
    %447 = arith.divf %445, %446 : vector<32x1xf32>
    %cst_359 = arith.constant 2.000000e+00 : f32
    %448 = vector.broadcast %cst_359 : f32 to vector<32x1xf32>
    %449 = arith.mulf %447, %448 : vector<32x1xf32>
    %450 = vector.broadcast %449 : vector<32x1xf32> to vector<32x256xf32>
    %451 = arith.mulf %207, %450 : vector<32x256xf32>
    %cst_360 = arith.constant dense<0.000000e+00> : vector<256xf32>
    %452 = vector.multi_reduction <add>, %451, %cst_360 [0] : vector<32x256xf32> to vector<256xf32>
    %453 = vector.shape_cast %452 : vector<256xf32> to vector<1x256xf32>
    %454 = arith.addf %438, %453 : vector<1x256xf32>
    %cst_361 = arith.constant dense<0.000000e+00> : vector<32xf32>
    %455 = vector.multi_reduction <add>, %314, %cst_361 [1] : vector<32x256xf32> to vector<32xf32>
    %456 = vector.shape_cast %455 : vector<32xf32> to vector<32x1xf32>
    %cst_362 = arith.constant 2.560000e+02 : f32
    %457 = vector.broadcast %cst_362 : f32 to vector<32x1xf32>
    %458 = arith.divf %456, %457 : vector<32x1xf32>
    %459 = arith.negf %458 : vector<32x1xf32>
    %460 = math.exp %459 : vector<32x1xf32>
    %cst_363 = arith.constant 1.000000e+00 : f32
    %461 = vector.broadcast %cst_363 : f32 to vector<32x1xf32>
    %462 = arith.addf %461, %460 : vector<32x1xf32>
    %463 = arith.divf %461, %462 : vector<32x1xf32>
    %cst_364 = arith.constant 2.000000e+00 : f32
    %464 = vector.broadcast %cst_364 : f32 to vector<32x1xf32>
    %465 = arith.mulf %463, %464 : vector<32x1xf32>
    %466 = vector.broadcast %465 : vector<32x1xf32> to vector<32x256xf32>
    %467 = arith.mulf %314, %466 : vector<32x256xf32>
    %cst_365 = arith.constant dense<0.000000e+00> : vector<256xf32>
    %468 = vector.multi_reduction <add>, %467, %cst_365 [0] : vector<32x256xf32> to vector<256xf32>
    %469 = vector.shape_cast %468 : vector<256xf32> to vector<1x256xf32>
    %470 = arith.addf %454, %469 : vector<1x256xf32>
    %cst_366 = arith.constant dense<0.000000e+00> : vector<32xf32>
    %471 = vector.multi_reduction <add>, %421, %cst_366 [1] : vector<32x256xf32> to vector<32xf32>
    %472 = vector.shape_cast %471 : vector<32xf32> to vector<32x1xf32>
    %cst_367 = arith.constant 2.560000e+02 : f32
    %473 = vector.broadcast %cst_367 : f32 to vector<32x1xf32>
    %474 = arith.divf %472, %473 : vector<32x1xf32>
    %475 = arith.negf %474 : vector<32x1xf32>
    %476 = math.exp %475 : vector<32x1xf32>
    %cst_368 = arith.constant 1.000000e+00 : f32
    %477 = vector.broadcast %cst_368 : f32 to vector<32x1xf32>
    %478 = arith.addf %477, %476 : vector<32x1xf32>
    %479 = arith.divf %477, %478 : vector<32x1xf32>
    %cst_369 = arith.constant 2.000000e+00 : f32
    %480 = vector.broadcast %cst_369 : f32 to vector<32x1xf32>
    %481 = arith.mulf %479, %480 : vector<32x1xf32>
    %482 = vector.broadcast %481 : vector<32x1xf32> to vector<32x256xf32>
    %483 = arith.mulf %421, %482 : vector<32x256xf32>
    %cst_370 = arith.constant dense<0.000000e+00> : vector<256xf32>
    %484 = vector.multi_reduction <add>, %483, %cst_370 [0] : vector<32x256xf32> to vector<256xf32>
    %485 = vector.shape_cast %484 : vector<256xf32> to vector<1x256xf32>
    %486 = arith.addf %470, %485 : vector<1x256xf32>
    %cst_371 = arith.constant 7.812500e-03 : f32
    %487 = vector.broadcast %cst_371 : f32 to vector<1x256xf32>
    %488 = arith.mulf %486, %487 : vector<1x256xf32>
    %c0_372 = arith.constant 0 : index
    %c0_373 = arith.constant 0 : index
    %489 = vector.load %arg3[%c0_372, %c0_373] : memref<16x256xf32, #tpu.memory_space<vmem>>, vector<16x256xf32>
    %c0_374 = arith.constant 0 : index
    %c0_375 = arith.constant 0 : index
    %490 = vector.load %arg4[%c0_374, %c0_375] : memref<16x256xf32, #tpu.memory_space<vmem>>, vector<16x256xf32>
    %491 = vector.broadcast %488 : vector<1x256xf32> to vector<16x256xf32>
    %492 = arith.mulf %489, %491 : vector<16x256xf32>
    %cst_376 = arith.constant dense<0.000000e+00> : vector<16xf32>
    %493 = vector.multi_reduction <add>, %492, %cst_376 [1] : vector<16x256xf32> to vector<16xf32>
    %494 = vector.shape_cast %493 : vector<16xf32> to vector<16x1xf32>
    %cst_377 = arith.constant 6.250000e-02 : f32
    %495 = vector.broadcast %cst_377 : f32 to vector<16x1xf32>
    %496 = arith.mulf %494, %495 : vector<16x1xf32>
    %497 = vector.broadcast %488 : vector<1x256xf32> to vector<16x256xf32>
    %498 = arith.mulf %490, %497 : vector<16x256xf32>
    %cst_378 = arith.constant dense<0.000000e+00> : vector<16xf32>
    %499 = vector.multi_reduction <add>, %498, %cst_378 [1] : vector<16x256xf32> to vector<16xf32>
    %500 = vector.shape_cast %499 : vector<16xf32> to vector<16x1xf32>
    %cst_379 = arith.constant 6.250000e-02 : f32
    %501 = vector.broadcast %cst_379 : f32 to vector<16x1xf32>
    %502 = arith.mulf %500, %501 : vector<16x1xf32>
    %503 = arith.negf %496 : vector<16x1xf32>
    %504 = math.exp %503 : vector<16x1xf32>
    %cst_380 = arith.constant 1.000000e+00 : f32
    %505 = vector.broadcast %cst_380 : f32 to vector<16x1xf32>
    %506 = arith.addf %505, %504 : vector<16x1xf32>
    %507 = arith.divf %505, %506 : vector<16x1xf32>
    %cst_381 = arith.constant 2.000000e+00 : f32
    %508 = vector.broadcast %cst_381 : f32 to vector<16x1xf32>
    %509 = arith.mulf %507, %508 : vector<16x1xf32>
    %510 = vector.broadcast %509 : vector<16x1xf32> to vector<16x256xf32>
    %511 = arith.mulf %489, %510 : vector<16x256xf32>
    %cst_382 = arith.constant dense<0.000000e+00> : vector<256xf32>
    %512 = vector.multi_reduction <add>, %511, %cst_382 [0] : vector<16x256xf32> to vector<256xf32>
    %513 = vector.shape_cast %512 : vector<256xf32> to vector<1x256xf32>
    %514 = arith.negf %502 : vector<16x1xf32>
    %515 = math.exp %514 : vector<16x1xf32>
    %cst_383 = arith.constant 1.000000e+00 : f32
    %516 = vector.broadcast %cst_383 : f32 to vector<16x1xf32>
    %517 = arith.addf %516, %515 : vector<16x1xf32>
    %518 = arith.divf %516, %517 : vector<16x1xf32>
    %cst_384 = arith.constant 2.000000e+00 : f32
    %519 = vector.broadcast %cst_384 : f32 to vector<16x1xf32>
    %520 = arith.mulf %518, %519 : vector<16x1xf32>
    %521 = vector.broadcast %520 : vector<16x1xf32> to vector<16x256xf32>
    %522 = arith.mulf %490, %521 : vector<16x256xf32>
    %cst_385 = arith.constant dense<0.000000e+00> : vector<256xf32>
    %523 = vector.multi_reduction <add>, %522, %cst_385 [0] : vector<16x256xf32> to vector<256xf32>
    %524 = vector.shape_cast %523 : vector<256xf32> to vector<1x256xf32>
    %cst_386 = arith.constant 1.000000e+00 : f32
    %525 = vector.broadcast %cst_386 : f32 to vector<1x256xf32>
    %526 = arith.addf %525, %513 : vector<1x256xf32>
    %527 = arith.addf %526, %524 : vector<1x256xf32>
    %c0_387 = arith.constant 0 : index
    %c7_388 = arith.constant 7 : index
    %528 = vector.load %arg6[%c0_387, %c7_388] : memref<32x16xf32, #tpu.memory_space<vmem>>, vector<32x1xf32>
    %529 = vector.broadcast %528 : vector<32x1xf32> to vector<32x256xf32>
    %530 = arith.addf %1, %529 : vector<32x256xf32>
    %531 = vector.broadcast %433 : vector<32x1xf32> to vector<32x256xf32>
    %532 = arith.mulf %59, %531 : vector<32x256xf32>
    %533 = vector.broadcast %527 : vector<1x256xf32> to vector<32x256xf32>
    %534 = arith.mulf %532, %533 : vector<32x256xf32>
    %c0_389 = arith.constant 0 : index
    %c0_390 = arith.constant 0 : index
    %535 = vector.load %arg11[%c0_389, %c0_390] : memref<128x32xbf16, #tpu.memory_space<vmem>>, vector<32x32xbf16>
    %536 = arith.truncf %534 : vector<32x256xf32> to vector<32x256xbf16>
    %cst_391 = arith.constant dense<0.000000e+00> : vector<32x256xf32>
    %537 = tpu.matmul %535, %536, %cst_391 {dimension_numbers = #tpu.dot_dimension_numbers<[1], [0], [0], [1], [0, 0, 1, 1], [], []>} : vector<32x32xbf16>, vector<32x256xbf16>, vector<32x256xf32> -> vector<32x256xf32>
    %538 = arith.addf %530, %537 : vector<32x256xf32>
    %539 = vector.broadcast %449 : vector<32x1xf32> to vector<32x256xf32>
    %540 = arith.mulf %207, %539 : vector<32x256xf32>
    %541 = vector.broadcast %527 : vector<1x256xf32> to vector<32x256xf32>
    %542 = arith.mulf %540, %541 : vector<32x256xf32>
    %c32_392 = arith.constant 32 : index
    %c0_393 = arith.constant 0 : index
    %543 = vector.load %arg11[%c32_392, %c0_393] : memref<128x32xbf16, #tpu.memory_space<vmem>>, vector<32x32xbf16>
    %544 = arith.truncf %542 : vector<32x256xf32> to vector<32x256xbf16>
    %cst_394 = arith.constant dense<0.000000e+00> : vector<32x256xf32>
    %545 = tpu.matmul %543, %544, %cst_394 {dimension_numbers = #tpu.dot_dimension_numbers<[1], [0], [0], [1], [0, 0, 1, 1], [], []>} : vector<32x32xbf16>, vector<32x256xbf16>, vector<32x256xf32> -> vector<32x256xf32>
    %546 = arith.addf %538, %545 : vector<32x256xf32>
    %547 = vector.broadcast %465 : vector<32x1xf32> to vector<32x256xf32>
    %548 = arith.mulf %314, %547 : vector<32x256xf32>
    %549 = vector.broadcast %527 : vector<1x256xf32> to vector<32x256xf32>
    %550 = arith.mulf %548, %549 : vector<32x256xf32>
    %c64_395 = arith.constant 64 : index
    %c0_396 = arith.constant 0 : index
    %551 = vector.load %arg11[%c64_395, %c0_396] : memref<128x32xbf16, #tpu.memory_space<vmem>>, vector<32x32xbf16>
    %552 = arith.truncf %550 : vector<32x256xf32> to vector<32x256xbf16>
    %cst_397 = arith.constant dense<0.000000e+00> : vector<32x256xf32>
    %553 = tpu.matmul %551, %552, %cst_397 {dimension_numbers = #tpu.dot_dimension_numbers<[1], [0], [0], [1], [0, 0, 1, 1], [], []>} : vector<32x32xbf16>, vector<32x256xbf16>, vector<32x256xf32> -> vector<32x256xf32>
    %554 = arith.addf %546, %553 : vector<32x256xf32>
    %555 = vector.broadcast %481 : vector<32x1xf32> to vector<32x256xf32>
    %556 = arith.mulf %421, %555 : vector<32x256xf32>
    %557 = vector.broadcast %527 : vector<1x256xf32> to vector<32x256xf32>
    %558 = arith.mulf %556, %557 : vector<32x256xf32>
    %c96_398 = arith.constant 96 : index
    %c0_399 = arith.constant 0 : index
    %559 = vector.load %arg11[%c96_398, %c0_399] : memref<128x32xbf16, #tpu.memory_space<vmem>>, vector<32x32xbf16>
    %560 = arith.truncf %558 : vector<32x256xf32> to vector<32x256xbf16>
    %cst_400 = arith.constant dense<0.000000e+00> : vector<32x256xf32>
    %561 = tpu.matmul %559, %560, %cst_400 {dimension_numbers = #tpu.dot_dimension_numbers<[1], [0], [0], [1], [0, 0, 1, 1], [], []>} : vector<32x32xbf16>, vector<32x256xbf16>, vector<32x256xf32> -> vector<32x256xf32>
    %562 = arith.addf %554, %561 : vector<32x256xf32>
    %c0_401 = arith.constant 0 : index
    %c9_402 = arith.constant 9 : index
    %563 = vector.load %arg6[%c0_401, %c9_402] : memref<32x16xf32, #tpu.memory_space<vmem>>, vector<32x1xf32>
    %c0_403 = arith.constant 0 : index
    %c10_404 = arith.constant 10 : index
    %564 = vector.load %arg6[%c0_403, %c10_404] : memref<32x16xf32, #tpu.memory_space<vmem>>, vector<32x1xf32>
    %c0_405 = arith.constant 0 : index
    %c0_406 = arith.constant 0 : index
    %565 = vector.load %arg5[%c0_405, %c0_406] : memref<32x32xf32, #tpu.memory_space<vmem>>, vector<32x32xf32>
    %cst_407 = arith.constant dense<0.000000e+00> : vector<32x256xf32>
    %566 = tpu.matmul %565, %562, %cst_407 {dimension_numbers = #tpu.dot_dimension_numbers<[1], [0], [0], [1], [0, 0, 1, 1], [], []>} : vector<32x32xf32>, vector<32x256xf32>, vector<32x256xf32> -> vector<32x256xf32>
    %cst_408 = arith.constant dense<0.000000e+00> : vector<32xf32>
    %567 = vector.multi_reduction <add>, %566, %cst_408 [1] : vector<32x256xf32> to vector<32xf32>
    %568 = vector.shape_cast %567 : vector<32xf32> to vector<32x1xf32>
    %cst_409 = arith.constant 0.001953125 : f32
    %569 = vector.broadcast %cst_409 : f32 to vector<32x1xf32>
    %570 = arith.mulf %568, %569 : vector<32x1xf32>
    %571 = vector.broadcast %570 : vector<32x1xf32> to vector<32x256xf32>
    %572 = arith.subf %562, %571 : vector<32x256xf32>
    %573 = arith.mulf %572, %572 : vector<32x256xf32>
    %cst_410 = arith.constant dense<0.000000e+00> : vector<32x256xf32>
    %574 = tpu.matmul %565, %573, %cst_410 {dimension_numbers = #tpu.dot_dimension_numbers<[1], [0], [0], [1], [0, 0, 1, 1], [], []>} : vector<32x32xf32>, vector<32x256xf32>, vector<32x256xf32> -> vector<32x256xf32>
    %cst_411 = arith.constant dense<0.000000e+00> : vector<32xf32>
    %575 = vector.multi_reduction <add>, %574, %cst_411 [1] : vector<32x256xf32> to vector<32xf32>
    %576 = vector.shape_cast %575 : vector<32xf32> to vector<32x1xf32>
    %cst_412 = arith.constant 0.00195694715 : f32
    %577 = vector.broadcast %cst_412 : f32 to vector<32x1xf32>
    %578 = arith.mulf %576, %577 : vector<32x1xf32>
    %579 = math.sqrt %578 : vector<32x1xf32>
    %cst_413 = arith.constant 1.000000e-10 : f32
    %580 = vector.broadcast %cst_413 : f32 to vector<32x1xf32>
    %581 = arith.addf %579, %580 : vector<32x1xf32>
    %582 = tpu.reciprocal %581 {approx = true} : vector<32x1xf32> -> vector<32x1xf32>
    %583 = vector.broadcast %582 : vector<32x1xf32> to vector<32x256xf32>
    %584 = arith.mulf %572, %583 : vector<32x256xf32>
    %585 = vector.broadcast %563 : vector<32x1xf32> to vector<32x256xf32>
    %586 = arith.mulf %584, %585 : vector<32x256xf32>
    %587 = vector.broadcast %564 : vector<32x1xf32> to vector<32x256xf32>
    %588 = arith.addf %586, %587 : vector<32x256xf32>
    %589 = vector.shape_cast %563 : vector<32x1xf32> to vector<1x32x1xf32>
    %cst_414 = arith.constant dense<0.000000e+00> : vector<1xf32>
    %590 = vector.multi_reduction <add>, %589, %cst_414 [1, 2] : vector<1x32x1xf32> to vector<1xf32>
    %591 = vector.shape_cast %590 : vector<1xf32> to vector<1x1x1xf32>
    %592 = vector.extract %591[0, 0, 0] : f32 from vector<1x1x1xf32>
    %593 = vector.broadcast %592 : f32 to vector<1x1xf32>
    %594 = vector.broadcast %593 : vector<1x1xf32> to vector<32x1xf32>
    %595 = arith.divf %563, %594 : vector<32x1xf32>
    %596 = vector.broadcast %595 : vector<32x1xf32> to vector<32x256xf32>
    %597 = arith.mulf %588, %596 : vector<32x256xf32>
    %598 = arith.negf %597 : vector<32x256xf32>
    %599 = math.exp %598 : vector<32x256xf32>
    %cst_415 = arith.constant 1.000000e+00 : f32
    %600 = vector.broadcast %cst_415 : f32 to vector<32x256xf32>
    %601 = arith.addf %600, %599 : vector<32x256xf32>
    %602 = arith.divf %600, %601 : vector<32x256xf32>
    %cst_416 = arith.constant 5.000000e-01 : f32
    %603 = vector.broadcast %cst_416 : f32 to vector<32x256xf32>
    %604 = arith.cmpf oge, %602, %603 : vector<32x256xf32>
    %cst_417 = arith.constant 0.000000e+00 : f32
    %605 = vector.broadcast %cst_417 : f32 to vector<32x256xf32>
    %606 = arith.select %604, %562, %605 : vector<32x256xi1>, vector<32x256xf32>
    %607 = arith.subf %562, %606 : vector<32x256xf32>
    %608 = vector.extract_strided_slice %607 {offsets = [16, 0], sizes = [16, 256], strides = [1, 1]} : vector<32x256xf32> to vector<16x256xf32>
    %609 = vector.extract_strided_slice %607 {offsets = [0, 0], sizes = [16, 256], strides = [1, 1]} : vector<32x256xf32> to vector<16x256xf32>
    %610 = tpu.concatenate %608, %609 in 0 : vector<16x256xf32>, vector<16x256xf32> -> vector<32x256xf32>
    %611 = arith.addf %606, %610 : vector<32x256xf32>
    %612 = vector.extract_strided_slice %611 {offsets = [0, 0], sizes = [16, 256], strides = [1, 1]} : vector<32x256xf32> to vector<16x256xf32>
    %613 = vector.extract_strided_slice %611 {offsets = [16, 0], sizes = [16, 256], strides = [1, 1]} : vector<32x256xf32> to vector<16x256xf32>
    %c0_418 = arith.constant 0 : index
    %c0_419 = arith.constant 0 : index
    %614 = vector.load %arg13[%c0_418, %c0_419] : memref<8x16xbf16, #tpu.memory_space<vmem>>, vector<8x16xbf16>
    %615 = arith.truncf %612 : vector<16x256xf32> to vector<16x256xbf16>
    %cst_420 = arith.constant dense<0.000000e+00> : vector<8x256xf32>
    %616 = tpu.matmul %614, %615, %cst_420 {dimension_numbers = #tpu.dot_dimension_numbers<[1], [0], [0], [1], [0, 0, 1, 1], [], []>} : vector<8x16xbf16>, vector<16x256xbf16>, vector<8x256xf32> -> vector<8x256xf32>
    %c0_421 = arith.constant 0 : index
    %c0_422 = arith.constant 0 : index
    %617 = vector.load %arg14[%c0_421, %c0_422] : memref<8x16xbf16, #tpu.memory_space<vmem>>, vector<8x16xbf16>
    %618 = arith.truncf %613 : vector<16x256xf32> to vector<16x256xbf16>
    %cst_423 = arith.constant dense<0.000000e+00> : vector<8x256xf32>
    %619 = tpu.matmul %617, %618, %cst_423 {dimension_numbers = #tpu.dot_dimension_numbers<[1], [0], [0], [1], [0, 0, 1, 1], [], []>} : vector<8x16xbf16>, vector<16x256xbf16>, vector<8x256xf32> -> vector<8x256xf32>
    %c0_424 = arith.constant 0 : index
    %c0_425 = arith.constant 0 : index
    %620 = vector.load %arg2[%c0_424, %c0_425] : memref<27x256xf32, #tpu.memory_space<vmem>>, vector<1x256xf32>
    %c17_i32_426 = arith.constant 17 : i32
    %621 = tpu.dynamic_rotate %616 by %c17_i32_426 dim 1 : vector<8x256xf32>, i32 -> vector<8x256xf32>
    %622 = vector.broadcast %620 : vector<1x256xf32> to vector<8x256xf32>
    %623 = arith.mulf %621, %622 : vector<8x256xf32>
    %c0_427 = arith.constant 0 : index
    %c0_428 = arith.constant 0 : index
    %624 = vector.load %arg19[%c0_427, %c0_428] : memref<288x256xf32, #tpu.memory_space<vmem>>, vector<8x256xf32>
    tpu.vector_store %arg19[%c0_427, %c0_428], %623 {strides = array<i32>} : memref<288x256xf32, #tpu.memory_space<vmem>>, vector<8x256xf32>,
    %c1_429 = arith.constant 1 : index
    %c0_430 = arith.constant 0 : index
    %625 = vector.load %arg2[%c1_429, %c0_430] : memref<27x256xf32, #tpu.memory_space<vmem>>, vector<1x256xf32>
    %c16_i32_431 = arith.constant 16 : i32
    %626 = tpu.dynamic_rotate %616 by %c16_i32_431 dim 1 : vector<8x256xf32>, i32 -> vector<8x256xf32>
    %627 = vector.broadcast %625 : vector<1x256xf32> to vector<8x256xf32>
    %628 = arith.mulf %626, %627 : vector<8x256xf32>
    %c8_432 = arith.constant 8 : index
    %c0_433 = arith.constant 0 : index
    %629 = vector.load %arg19[%c8_432, %c0_433] : memref<288x256xf32, #tpu.memory_space<vmem>>, vector<8x256xf32>
    tpu.vector_store %arg19[%c8_432, %c0_433], %628 {strides = array<i32>} : memref<288x256xf32, #tpu.memory_space<vmem>>, vector<8x256xf32>,
    %c2_434 = arith.constant 2 : index
    %c0_435 = arith.constant 0 : index
    %630 = vector.load %arg2[%c2_434, %c0_435] : memref<27x256xf32, #tpu.memory_space<vmem>>, vector<1x256xf32>
    %c15_i32_436 = arith.constant 15 : i32
    %631 = tpu.dynamic_rotate %616 by %c15_i32_436 dim 1 : vector<8x256xf32>, i32 -> vector<8x256xf32>
    %632 = vector.broadcast %630 : vector<1x256xf32> to vector<8x256xf32>
    %633 = arith.mulf %631, %632 : vector<8x256xf32>
    %c16_437 = arith.constant 16 : index
    %c0_438 = arith.constant 0 : index
    %634 = vector.load %arg19[%c16_437, %c0_438] : memref<288x256xf32, #tpu.memory_space<vmem>>, vector<8x256xf32>
    tpu.vector_store %arg19[%c16_437, %c0_438], %633 {strides = array<i32>} : memref<288x256xf32, #tpu.memory_space<vmem>>, vector<8x256xf32>,
    %c3_439 = arith.constant 3 : index
    %c0_440 = arith.constant 0 : index
    %635 = vector.load %arg2[%c3_439, %c0_440] : memref<27x256xf32, #tpu.memory_space<vmem>>, vector<1x256xf32>
    %c1_i32_441 = arith.constant 1 : i32
    %636 = tpu.dynamic_rotate %616 by %c1_i32_441 dim 1 : vector<8x256xf32>, i32 -> vector<8x256xf32>
    %637 = vector.broadcast %635 : vector<1x256xf32> to vector<8x256xf32>
    %638 = arith.mulf %636, %637 : vector<8x256xf32>
    %c24_442 = arith.constant 24 : index
    %c0_443 = arith.constant 0 : index
    %639 = vector.load %arg19[%c24_442, %c0_443] : memref<288x256xf32, #tpu.memory_space<vmem>>, vector<8x256xf32>
    tpu.vector_store %arg19[%c24_442, %c0_443], %638 {strides = array<i32>} : memref<288x256xf32, #tpu.memory_space<vmem>>, vector<8x256xf32>,
    %c32_444 = arith.constant 32 : index
    %c0_445 = arith.constant 0 : index
    %640 = vector.load %arg19[%c32_444, %c0_445] : memref<288x256xf32, #tpu.memory_space<vmem>>, vector<8x256xf32>
    tpu.vector_store %arg19[%c32_444, %c0_445], %616 {strides = array<i32>} : memref<288x256xf32, #tpu.memory_space<vmem>>, vector<8x256xf32>,
    %c5_446 = arith.constant 5 : index
    %c0_447 = arith.constant 0 : index
    %641 = vector.load %arg2[%c5_446, %c0_447] : memref<27x256xf32, #tpu.memory_space<vmem>>, vector<1x256xf32>
    %c255_i32_448 = arith.constant 255 : i32
    %642 = tpu.dynamic_rotate %616 by %c255_i32_448 dim 1 : vector<8x256xf32>, i32 -> vector<8x256xf32>
    %643 = vector.broadcast %641 : vector<1x256xf32> to vector<8x256xf32>
    %644 = arith.mulf %642, %643 : vector<8x256xf32>
    %c40_449 = arith.constant 40 : index
    %c0_450 = arith.constant 0 : index
    %645 = vector.load %arg19[%c40_449, %c0_450] : memref<288x256xf32, #tpu.memory_space<vmem>>, vector<8x256xf32>
    tpu.vector_store %arg19[%c40_449, %c0_450], %644 {strides = array<i32>} : memref<288x256xf32, #tpu.memory_space<vmem>>, vector<8x256xf32>,
    %c6_451 = arith.constant 6 : index
    %c0_452 = arith.constant 0 : index
    %646 = vector.load %arg2[%c6_451, %c0_452] : memref<27x256xf32, #tpu.memory_space<vmem>>, vector<1x256xf32>
    %c241_i32_453 = arith.constant 241 : i32
    %647 = tpu.dynamic_rotate %616 by %c241_i32_453 dim 1 : vector<8x256xf32>, i32 -> vector<8x256xf32>
    %648 = vector.broadcast %646 : vector<1x256xf32> to vector<8x256xf32>
    %649 = arith.mulf %647, %648 : vector<8x256xf32>
    %c48 = arith.constant 48 : index
    %c0_454 = arith.constant 0 : index
    %650 = vector.load %arg19[%c48, %c0_454] : memref<288x256xf32, #tpu.memory_space<vmem>>, vector<8x256xf32>
    tpu.vector_store %arg19[%c48, %c0_454], %649 {strides = array<i32>} : memref<288x256xf32, #tpu.memory_space<vmem>>, vector<8x256xf32>,
    %c7_455 = arith.constant 7 : index
    %c0_456 = arith.constant 0 : index
    %651 = vector.load %arg2[%c7_455, %c0_456] : memref<27x256xf32, #tpu.memory_space<vmem>>, vector<1x256xf32>
    %c240_i32_457 = arith.constant 240 : i32
    %652 = tpu.dynamic_rotate %616 by %c240_i32_457 dim 1 : vector<8x256xf32>, i32 -> vector<8x256xf32>
    %653 = vector.broadcast %651 : vector<1x256xf32> to vector<8x256xf32>
    %654 = arith.mulf %652, %653 : vector<8x256xf32>
    %c56 = arith.constant 56 : index
    %c0_458 = arith.constant 0 : index
    %655 = vector.load %arg19[%c56, %c0_458] : memref<288x256xf32, #tpu.memory_space<vmem>>, vector<8x256xf32>
    tpu.vector_store %arg19[%c56, %c0_458], %654 {strides = array<i32>} : memref<288x256xf32, #tpu.memory_space<vmem>>, vector<8x256xf32>,
    %c8_459 = arith.constant 8 : index
    %c0_460 = arith.constant 0 : index
    %656 = vector.load %arg2[%c8_459, %c0_460] : memref<27x256xf32, #tpu.memory_space<vmem>>, vector<1x256xf32>
    %c239_i32_461 = arith.constant 239 : i32
    %657 = tpu.dynamic_rotate %616 by %c239_i32_461 dim 1 : vector<8x256xf32>, i32 -> vector<8x256xf32>
    %658 = vector.broadcast %656 : vector<1x256xf32> to vector<8x256xf32>
    %659 = arith.mulf %657, %658 : vector<8x256xf32>
    %c64_462 = arith.constant 64 : index
    %c0_463 = arith.constant 0 : index
    %660 = vector.load %arg19[%c64_462, %c0_463] : memref<288x256xf32, #tpu.memory_space<vmem>>, vector<8x256xf32>
    tpu.vector_store %arg19[%c64_462, %c0_463], %659 {strides = array<i32>} : memref<288x256xf32, #tpu.memory_space<vmem>>, vector<8x256xf32>,
    %c0_464 = arith.constant 0 : index
    %c0_465 = arith.constant 0 : index
    %661 = vector.load %arg12[%c0_464, %c0_465] : memref<32x72xbf16, #tpu.memory_space<vmem>>, vector<32x72xbf16>
    %c0_466 = arith.constant 0 : index
    %c0_467 = arith.constant 0 : index
    %662 = vector.load %arg19[%c0_466, %c0_467] : memref<288x256xf32, #tpu.memory_space<vmem>>, vector<72x256xf32>
    %663 = arith.truncf %662 : vector<72x256xf32> to vector<72x256xbf16>
    %cst_468 = arith.constant dense<0.000000e+00> : vector<32x256xf32>
    %664 = tpu.matmul %661, %663, %cst_468 {dimension_numbers = #tpu.dot_dimension_numbers<[1], [0], [0], [1], [0, 0, 1, 1], [], []>} : vector<32x72xbf16>, vector<72x256xbf16>, vector<32x256xf32> -> vector<32x256xf32>
    %c0_469 = arith.constant 0 : index
    %c8_470 = arith.constant 8 : index
    %665 = vector.load %arg6[%c0_469, %c8_470] : memref<32x16xf32, #tpu.memory_space<vmem>>, vector<32x1xf32>
    %666 = vector.broadcast %665 : vector<32x1xf32> to vector<32x256xf32>
    %667 = arith.addf %664, %666 : vector<32x256xf32>
    %c0_471 = arith.constant 0 : index
    %c0_472 = arith.constant 0 : index
    %668 = vector.load %arg15[%c0_471, %c0_472] : memref<24x8xbf16, #tpu.memory_space<vmem>>, vector<24x8xbf16>
    %669 = arith.truncf %619 : vector<8x256xf32> to vector<8x256xbf16>
    %cst_473 = arith.constant dense<0.000000e+00> : vector<24x256xf32>
    %670 = tpu.matmul %668, %669, %cst_473 {dimension_numbers = #tpu.dot_dimension_numbers<[1], [0], [0], [1], [0, 0, 1, 1], [], []>} : vector<24x8xbf16>, vector<8x256xbf16>, vector<24x256xf32> -> vector<24x256xf32>
    %671 = tpu.concatenate %670, %619 in 0 : vector<24x256xf32>, vector<8x256xf32> -> vector<32x256xf32>
    %cst_474 = arith.constant dense<0.000000e+00> : vector<32xf32>
    %672 = vector.multi_reduction <add>, %667, %cst_474 [1] : vector<32x256xf32> to vector<32xf32>
    %673 = vector.shape_cast %672 : vector<32xf32> to vector<32x1xf32>
    %cst_475 = arith.constant 2.560000e+02 : f32
    %674 = vector.broadcast %cst_475 : f32 to vector<32x1xf32>
    %675 = arith.divf %673, %674 : vector<32x1xf32>
    %cst_476 = arith.constant dense<0.000000e+00> : vector<32xf32>
    %676 = vector.multi_reduction <add>, %671, %cst_476 [1] : vector<32x256xf32> to vector<32xf32>
    %677 = vector.shape_cast %676 : vector<32xf32> to vector<32x1xf32>
    %cst_477 = arith.constant 2.560000e+02 : f32
    %678 = vector.broadcast %cst_477 : f32 to vector<32x1xf32>
    %679 = arith.divf %677, %678 : vector<32x1xf32>
    %cst_478 = arith.constant dense<0xFF800000> : vector<1xf32>
    %680 = vector.multi_reduction <maximumf>, %675, %cst_478 [0] : vector<32x1xf32> to vector<1xf32>
    %681 = vector.shape_cast %680 : vector<1xf32> to vector<1x1xf32>
    %cst_479 = arith.constant dense<0xFF800000> : vector<1xf32>
    %682 = vector.multi_reduction <maximumf>, %679, %cst_479 [0] : vector<32x1xf32> to vector<1xf32>
    %683 = vector.shape_cast %682 : vector<1xf32> to vector<1x1xf32>
    %684 = arith.maximumf %681, %683 : vector<1x1xf32>
    %685 = vector.broadcast %684 : vector<1x1xf32> to vector<32x1xf32>
    %686 = arith.subf %675, %685 : vector<32x1xf32>
    %687 = math.exp %686 : vector<32x1xf32>
    %688 = vector.broadcast %684 : vector<1x1xf32> to vector<32x1xf32>
    %689 = arith.subf %679, %688 : vector<32x1xf32>
    %690 = math.exp %689 : vector<32x1xf32>
    %cst_480 = arith.constant dense<0.000000e+00> : vector<1xf32>
    %691 = vector.multi_reduction <add>, %687, %cst_480 [0] : vector<32x1xf32> to vector<1xf32>
    %692 = vector.shape_cast %691 : vector<1xf32> to vector<1x1xf32>
    %cst_481 = arith.constant dense<0.000000e+00> : vector<1xf32>
    %693 = vector.multi_reduction <add>, %690, %cst_481 [0] : vector<32x1xf32> to vector<1xf32>
    %694 = vector.shape_cast %693 : vector<1xf32> to vector<1x1xf32>
    %695 = arith.addf %692, %694 : vector<1x1xf32>
    %696 = tpu.reciprocal %695 {approx = true} : vector<1x1xf32> -> vector<1x1xf32>
    %697 = vector.broadcast %696 : vector<1x1xf32> to vector<32x1xf32>
    %698 = arith.mulf %687, %697 : vector<32x1xf32>
    %699 = vector.broadcast %698 : vector<32x1xf32> to vector<32x256xf32>
    %700 = arith.mulf %667, %699 : vector<32x256xf32>
    %701 = vector.broadcast %696 : vector<1x1xf32> to vector<32x1xf32>
    %702 = arith.mulf %690, %701 : vector<32x1xf32>
    %703 = vector.broadcast %702 : vector<32x1xf32> to vector<32x256xf32>
    %704 = arith.mulf %671, %703 : vector<32x256xf32>
    %705 = arith.addf %700, %704 : vector<32x256xf32>
    %c0_482 = arith.constant 0 : index
    %c0_483 = arith.constant 0 : index
    %c0_484 = arith.constant 0 : index
    %706 = vector.load %arg16[%c0_482, %c0_483, %c0_484] : memref<1x32x256xf32, #tpu.memory_space<vmem>>, vector<1x32x256xf32>
    %707 = vector.shape_cast %706 : vector<1x32x256xf32> to vector<32x256xf32>
    %708 = vector.shape_cast %705 : vector<32x256xf32> to vector<1x32x256xf32>
    tpu.vector_store %arg16[%c0_482, %c0_483, %c0_484], %708 {strides = array<i32>} : memref<1x32x256xf32, #tpu.memory_space<vmem>>, vector<1x32x256xf32>,
    %cst_485 = arith.constant dense<0.000000e+00> : vector<32xf32>
    %709 = vector.multi_reduction <add>, %705, %cst_485 [1] : vector<32x256xf32> to vector<32xf32>
    %710 = vector.shape_cast %709 : vector<32xf32> to vector<32x1xf32>
    %711 = arith.mulf %705, %705 : vector<32x256xf32>
    %cst_486 = arith.constant dense<0.000000e+00> : vector<32xf32>
    %712 = vector.multi_reduction <add>, %711, %cst_486 [1] : vector<32x256xf32> to vector<32xf32>
    %713 = vector.shape_cast %712 : vector<32xf32> to vector<32x1xf32>
    %714 = tpu.concatenate %710, %713 in 0 : vector<32x1xf32>, vector<32x1xf32> -> vector<64x1xf32>
    %c0_487 = arith.constant 0 : index
    %c0_488 = arith.constant 0 : index
    %c0_489 = arith.constant 0 : index
    %715 = vector.load %arg17[%c0_487, %c0_488, %c0_489] : memref<1x64x1xf32, #tpu.memory_space<vmem>>, vector<1x64x1xf32>
    %716 = vector.shape_cast %715 : vector<1x64x1xf32> to vector<64x1xf32>
    %717 = vector.shape_cast %714 : vector<64x1xf32> to vector<1x64x1xf32>
    tpu.vector_store %arg17[%c0_487, %c0_488, %c0_489], %717 {strides = array<i32>} : memref<1x64x1xf32, #tpu.memory_space<vmem>>, vector<1x64x1xf32>,
    return
  }
  func.func @transform_0(%arg0: i32) -> (i32, i32, i32) {
    %c0_i32 = arith.constant 0 : i32
    %c0_i32_0 = arith.constant 0 : i32
    %c0_i32_1 = arith.constant 0 : i32
    return %arg0, %c0_i32, %c0_i32_0 : i32, i32, i32
  }
  func.func @transform_1(%arg0: i32) -> (i32, i32) {
    %c0_i32 = arith.constant 0 : i32
    %c0_i32_0 = arith.constant 0 : i32
    %c0_i32_1 = arith.constant 0 : i32
    return %c0_i32, %c0_i32_0 : i32, i32
  }
  func.func @transform_2(%arg0: i32) -> (i32, i32) {
    %c0_i32 = arith.constant 0 : i32
    %c0_i32_0 = arith.constant 0 : i32
    %c0_i32_1 = arith.constant 0 : i32
    return %c0_i32, %c0_i32_0 : i32, i32
  }
  func.func @transform_3(%arg0: i32) -> (i32, i32) {
    %c0_i32 = arith.constant 0 : i32
    %c0_i32_0 = arith.constant 0 : i32
    %c0_i32_1 = arith.constant 0 : i32
    return %c0_i32, %c0_i32_0 : i32, i32
  }
  func.func @transform_4(%arg0: i32) -> (i32, i32) {
    %c0_i32 = arith.constant 0 : i32
    %c0_i32_0 = arith.constant 0 : i32
    %c0_i32_1 = arith.constant 0 : i32
    return %c0_i32, %c0_i32_0 : i32, i32
  }
  func.func @transform_5(%arg0: i32) -> (i32, i32) {
    %c0_i32 = arith.constant 0 : i32
    %c0_i32_0 = arith.constant 0 : i32
    %c0_i32_1 = arith.constant 0 : i32
    return %c0_i32, %c0_i32_0 : i32, i32
  }
  func.func @transform_6(%arg0: i32) -> (i32, i32) {
    %c0_i32 = arith.constant 0 : i32
    %c0_i32_0 = arith.constant 0 : i32
    %c0_i32_1 = arith.constant 0 : i32
    return %c0_i32, %c0_i32_0 : i32, i32
  }
  func.func @transform_7(%arg0: i32) -> (i32, i32) {
    %c0_i32 = arith.constant 0 : i32
    %c0_i32_0 = arith.constant 0 : i32
    %c0_i32_1 = arith.constant 0 : i32
    return %c0_i32, %c0_i32_0 : i32, i32
  }
  func.func @transform_8(%arg0: i32) -> (i32, i32) {
    %c0_i32 = arith.constant 0 : i32
    %c0_i32_0 = arith.constant 0 : i32
    %c0_i32_1 = arith.constant 0 : i32
    return %c0_i32, %c0_i32_0 : i32, i32
  }
  func.func @transform_9(%arg0: i32) -> (i32, i32) {
    %c0_i32 = arith.constant 0 : i32
    %c0_i32_0 = arith.constant 0 : i32
    %c0_i32_1 = arith.constant 0 : i32
    return %c0_i32, %c0_i32_0 : i32, i32
  }
  func.func @transform_10(%arg0: i32) -> (i32, i32) {
    %c0_i32 = arith.constant 0 : i32
    %c0_i32_0 = arith.constant 0 : i32
    %c0_i32_1 = arith.constant 0 : i32
    return %c0_i32, %c0_i32_0 : i32, i32
  }
  func.func @transform_11(%arg0: i32) -> (i32, i32) {
    %c0_i32 = arith.constant 0 : i32
    %c0_i32_0 = arith.constant 0 : i32
    %c0_i32_1 = arith.constant 0 : i32
    return %c0_i32, %c0_i32_0 : i32, i32
  }
  func.func @transform_12(%arg0: i32) -> (i32, i32) {
    %c0_i32 = arith.constant 0 : i32
    %c0_i32_0 = arith.constant 0 : i32
    %c0_i32_1 = arith.constant 0 : i32
    return %c0_i32, %c0_i32_0 : i32, i32
  }
  func.func @transform_13(%arg0: i32) -> (i32, i32) {
    %c0_i32 = arith.constant 0 : i32
    %c0_i32_0 = arith.constant 0 : i32
    %c0_i32_1 = arith.constant 0 : i32
    return %c0_i32, %c0_i32_0 : i32, i32
  }
  func.func @transform_14(%arg0: i32) -> (i32, i32) {
    %c0_i32 = arith.constant 0 : i32
    %c0_i32_0 = arith.constant 0 : i32
    %c0_i32_1 = arith.constant 0 : i32
    return %c0_i32, %c0_i32_0 : i32, i32
  }
  func.func @transform_15(%arg0: i32) -> (i32, i32, i32) {
    %c0_i32 = arith.constant 0 : i32
    %c0_i32_0 = arith.constant 0 : i32
    %c0_i32_1 = arith.constant 0 : i32
    return %arg0, %c0_i32, %c0_i32_0 : i32, i32, i32
  }
  func.func @transform_16(%arg0: i32) -> (i32, i32, i32) {
    %c0_i32 = arith.constant 0 : i32
    %c0_i32_0 = arith.constant 0 : i32
    %c0_i32_1 = arith.constant 0 : i32
    return %arg0, %c0_i32, %c0_i32_0 : i32, i32, i32
  }
}

</mosaic_0001>

<bundles_post_ra>
// kernel: mab_forward.3
= control target key start
LH: loop header
LB: loop body
LE: loop exit
PB: predicated region body
PF: predicated region fallthrough
CT: control target
= control target key end

     0   :  { %s375_s12 = smov 0   ;;  %s419_s0 = inlined_call_operand.vmem [shape: f32[2,32,256], index: 0, kind: input, shape index: {}]   ;;  %s420_s1 = inlined_call_operand.vmem [shape: f32[32,1], index: 1, kind: input, shape index: {}]   ;;  %s421_s2 = inlined_call_operand.vmem [shape: f32[32,1], index: 2, kind: input, shape index: {}]   ;;  %s422_s3 = inlined_call_operand.vmem [shape: f32[2,32,256], index: 3, kind: output, shape index: {}]  }
   0x1 LB: > { %s322_s13 = sadd.s32 4294967295, %s352_s12   ;;  %p326_p0 = scmp.ge.s32.totalorder %s352_s12, 1  ;;  %s352_s12 = sphi %s375_s12, %s13_s12  }
   0x2   : > { %p137_p1 = scmp.lt.s32.totalorder %s352_s12, 3 }
   0x4   : > { %p138_p2 = pnand %p326_p0, %p137_p1 }
   0x5   : > { %p161_p3 = scmp.lt.s32.totalorder (!%p138_p2), %s322_s13, 1 }
   0x6   : > { %141 = sbr.rel (%p138_p2) target bundleno = 158 (0x9e), region = 32 }
   0xb   : > { %v181_v0 = vld [vmem:[%s420_s1 + $0x10] sm:$0xff]  ;;  %v179_v1 = vld [vmem:[%s420_s1] sm:$0xff]  ;;  %v354_v2 = vmov 0   ;;  %v182_v3 = vld [vmem:[%s420_s1 + $0x18] sm:$0xff]  ;;  %s424_s13 = smov (!%p161_p3, %s322_s13), 1 }
   0xc   : > { %345 = vset.pattern.permute.xlu1 %v354_v2  ;;  %344 = vset.pattern.permute.xlu0 %v354_v2  ;;  %v180_v4 = vld [vmem:[%s420_s1 + $0x8] sm:$0xff]  ;;  %v211_v6 = vld [vmem:[%s421_s2] sm:$0xff]  ;;  %v214_v7 = vld [vmem:[%s421_s2 + $0x18] sm:$0xff]  ;;  %s333_s30 = sshll.u32 %s424_s13, 6 }
   0xd   : > { %195 = vperm.xlu1 %345, %v181_v0   ;;  %185 = vperm.xlu0 %344, %v179_v1   ;;  %v212_v5 = vld [vmem:[%s421_s2 + $0x8] sm:$0xff]  ;;  %v213_v8 = vld [vmem:[%s421_s2 + $0x10] sm:$0xff]  ;;  %s165_s6 = scalar_lea.vmem %s419_s0, %s333_s30  ;;  %s170_s9 = scalar_lea.vmem %s422_s3, %s333_s30 }
   0xe   : > { %v171_v11 = vld [vmem:[%s165_s6] sm:$0xff]  ;;  %v172_v12 = vld [vmem:[%s165_s6 + $0x8] sm:$0xff]  ;;  %v173_v15 = vld [vmem:[%s165_s6 + $0x10] sm:$0xff] }
   0xf   : > { %v174_v16 = vld [vmem:[%s165_s6 + $0x18] sm:$0xff]  ;;  %v177_v21 = vld [vmem:[%s165_s6 + $0x30] sm:$0xff]  ;;  %v175_v24 = vld [vmem:[%s165_s6 + $0x20] sm:$0xff] }
  0x10   : > { %v176_v25 = vld [vmem:[%s165_s6 + $0x28] sm:$0xff]  ;;  %v178_v26 = vld [vmem:[%s165_s6 + $0x38] sm:$0xff] }
  0x11   : > { %200 = vperm.xlu1 %345, %v182_v3   ;;  %190 = vperm.xlu0 %344, %v180_v4  }
  0x15   : > { %222 = vperm.xlu1 %345, %v212_v5   ;;  %217 = vperm.xlu0 %344, %v211_v6  }
  0x19   : > { %232 = vperm.xlu1 %345, %v214_v7   ;;  %227 = vperm.xlu0 %344, %v213_v8  }
  0x88   : > { %v196_v9 = vpop.permute.xlu1 %195  ;;  %v186_v10 = vpop.permute.xlu0 %185 }
  0x89   : > { %v203_v17 = vmul.f32 %v186_v10, %v171_v11  ;;  %v204_v18 = vmul.f32 %v186_v10, %v172_v12  ;;  %v207_v35 = vmul.f32 %v196_v9, %v175_v24  ;;  %v208_v36 = vmul.f32 %v196_v9, %v176_v25 }
  0x8c   : > { %v201_v13 = vpop.permute.xlu1 %200  ;;  %v191_v14 = vpop.permute.xlu0 %190 }
  0x8d   : > { %v205_v19 = vmul.f32 %v191_v14, %v173_v15  ;;  %v206_v20 = vmul.f32 %v191_v14, %v174_v16  ;;  %v209_v31 = vmul.f32 %v201_v13, %v177_v21  ;;  %v210_v37 = vmul.f32 %v201_v13, %v178_v26 }
  0x90   : > { %v223_v22 = vpop.permute.xlu1 %222  ;;  %v218_v23 = vpop.permute.xlu0 %217 }
  0x91   : > { %v237_v27 = vadd.f32 %v223_v22, %v205_v19  ;;  %v238_v28 = vadd.f32 %v223_v22, %v206_v20  ;;  %v235_v29 = vadd.f32 %v218_v23, %v203_v17  ;;  %v236_v30 = vadd.f32 %v218_v23, %v204_v18 }
  0x93   : > { %v245_v32 = vmul.f32 0.2, %v237_v27  ;;  %v246_v33 = vmul.f32 0.2, %v238_v28  ;;  %v243_v34 = vmul.f32 0.2, %v235_v29 }
  0x94   : > { %v244_v38 = vmul.f32 0.2, %v236_v30  ;;  %v233_v39 = vpop.permute.xlu1 %232  ;;  %v228_v40 = vpop.permute.xlu0 %227 }
  0x95   : > { %v253_v41 = vmax.f32 %v237_v27, %v245_v32  ;;  %v254_v42 = vmax.f32 %v238_v28, %v246_v33  ;;  %v251_v43 = vmax.f32 %v235_v29, %v243_v34  ;;  %v241_v44 = vadd.f32 %v233_v39, %v209_v31 }
  0x96   : > { %v252_v45 = vmax.f32 %v236_v30, %v244_v38  ;;  %v242_v46 = vadd.f32 %v233_v39, %v210_v37  ;;  %v239_v47 = vadd.f32 %v228_v40, %v207_v35  ;;  %v240_v48 = vadd.f32 %v228_v40, %v208_v36 }
  0x97   : > { %261 = vst [vmem:[%s170_s9 + $0x10] sm:$0xff] %v253_v41  ;;  %262 = vst [vmem:[%s170_s9 + $0x18] sm:$0xff] %v254_v42  ;;  %v249_v49 = vmul.f32 0.2, %v241_v44 }
  0x98   : > { %259 = vst [vmem:[%s170_s9] sm:$0xff] %v251_v43  ;;  %260 = vst [vmem:[%s170_s9 + $0x8] sm:$0xff] %v252_v45  ;;  %v250_v50 = vmul.f32 0.2, %v242_v46  ;;  %v247_v51 = vmul.f32 0.2, %v239_v47 }
  0x99   : > { %v248_v52 = vmul.f32 0.2, %v240_v48  ;;  %v257_v53 = vmax.f32 %v241_v44, %v249_v49 }
  0x9a   : > { %v258_v54 = vmax.f32 %v242_v46, %v250_v50  ;;  %v255_v55 = vmax.f32 %v239_v47, %v247_v51 }
  0x9b   : > { %v256_v56 = vmax.f32 %v240_v48, %v248_v52  ;;  %265 = vst [vmem:[%s170_s9 + $0x30] sm:$0xff] %v257_v53 }
  0x9c   : > { %266 = vst [vmem:[%s170_s9 + $0x38] sm:$0xff] %v258_v54  ;;  %263 = vst [vmem:[%s170_s9 + $0x20] sm:$0xff] %v255_v55 }
  0x9d   : > { %264 = vst [vmem:[%s170_s9 + $0x28] sm:$0xff] %v256_v56 }
  0x9e PF: > { %s13_s12 = sadd.s32 1, %s352_s12  }
  0x9f   : > { %p10_p4 = scmp.ge.s32.totalorder %s13_s12, 4  }
  0xa1   :  { %12 = sbr.rel (!%p10_p4) target bundleno = 1 (0x1), region = 62 }

// kernel: mab_forward.2
= control target key start
LH: loop header
LB: loop body
LE: loop exit
PB: predicated region body
PF: predicated region fallthrough
CT: control target
= control target key end

     0   :  { %s9602_s21 = smov 0   ;;  %s14458_s0 = inlined_call_operand.vmem [shape: f32[2,32,256], index: 0, kind: input, shape index: {}]   ;;  %s14459_s1 = inlined_call_operand.vmem [shape: f32[27,256], index: 1, kind: input, shape index: {}]   ;;  %s14460_s2 = inlined_call_operand.vmem [shape: f32[16,256], index: 2, kind: input, shape index: {}]   ;;  %s14461_s3 = inlined_call_operand.vmem [shape: f32[16,256], index: 3, kind: input, shape index: {}]   ;;  %s14462_s4 = inlined_call_operand.vmem [shape: f32[32,32], index: 4, kind: input, shape index: {}]   ;;  %s14463_s5 = inlined_call_operand.vmem [shape: f32[32,16], index: 5, kind: input, shape index: {}]   ;;  %s14464_s6 = inlined_call_operand.vmem [shape: bf16[96,360], index: 6, kind: input, shape index: {}]   ;;  %s14465_s7 = inlined_call_operand.vmem [shape: bf16[192,288], index: 7, kind: input, shape index: {}]   ;;  %s14466_s8 = inlined_call_operand.vmem [shape: bf16[8,288], index: 8, kind: input, shape index: {}]   ;;  %s14467_s9 = inlined_call_operand.vmem [shape: bf16[32,40], index: 9, kind: input, shape index: {}]   ;;  %s14468_s10 = inlined_call_operand.vmem [shape: bf16[128,32], index: 10, kind: input, shape index: {}]   ;;  %s14469_s11 = inlined_call_operand.vmem [shape: bf16[32,72], index: 11, kind: input, shape index: {}]   ;;  %s14470_s12 = inlined_call_operand.vmem [shape: bf16[8,16], index: 12, kind: input, shape index: {}]   ;;  %s14471_s13 = inlined_call_operand.vmem [shape: bf16[8,16], index: 13, kind: input, shape index: {}]   ;;  %s14472_s14 = inlined_call_operand.vmem [shape: bf16[24,8], index: 14, kind: input, shape index: {}]   ;;  %s14473_s15 = inlined_call_operand.vmem [shape: f32[2,32,256], index: 15, kind: output, shape index: {0}]   ;;  %s14474_s16 = inlined_call_operand.vmem [shape: f32[2,64,1], index: 16, kind: output, shape index: {1}]  }
   0x1   :  { %14663 = sst [smem:[#allocation75_spill]] %s14458_s0 }
   0x2   :  { %14664 = sst [smem:[#allocation76_spill]] %s14464_s6 }
   0x3   :  { %14665 = sst [smem:[#allocation77_spill]] %s14465_s7 }
   0x4   :  { %14666 = sst [smem:[#allocation78_spill]] %s14466_s8 }
   0x5   :  { %14667 = sst [smem:[#allocation79_spill]] %s14467_s9 }
   0x6 LB: > { %s8910_s22 = sadd.s32 4294967295, %s9479_s21   ;;  %p8914_p0 = scmp.ge.s32.totalorder %s9479_s21, 1  ;;  %s9479_s21 = sphi %s9602_s21, %s27_s21  }
   0x7   : > { %p465_p1 = scmp.lt.s32.totalorder %s9479_s21, 3 }
   0x9   : > { %p466_p2 = pnand %p8914_p0, %p465_p1 }
   0xb   : > { %469 = sbr.rel (%p466_p2) target bundleno = 5918 (0x171e), region = 80 }
  0x10   : > { %p520_p3 = scmp.lt.s32.totalorder %s8910_s22, 1  ;;  %s14668_s26 = sld [smem:[#allocation75_spill]]  ;;  %v561_v8 = vlaneseq  ;;  %v8923_v15 = vld [vmem:[%s14459_s1 + $0x3] ss:$8 sm:$0x3]  ;;  %v14479_v31 = vmov 0  }
  0x11   : > { %s14592_s28 = smov 1   ;;  %s14590_s29 = smov 15   ;;  %v8939_v24 = vld [vmem:[%s14459_s1 + $0x3] ss:$8 sm:$0x3]  ;;  %1188 = vmatprep.mubr.bf16.mxu1 %v14479_v31  ;;  %9186 = vset.pattern.permute.xlu1 %v14479_v31  ;;  %v9490_v38 = vmov 11  }
  0x12   : > { %s15018_s22 = smov (!%p520_p3, %s8910_s22), 1  ;;  %s14588_s30 = smov 16   ;;  %v574_v9 = vshrl.u32 %v561_v8, 7  ;;  %v9754_v10 = vand.u32 127, %v561_v8  ;;  %9185 = vset.pattern.permute.xlu0 %v9490_v38  ;;  %v1209_v39 = vld [vmem:[%s14463_s5 + $0x10] sm:$0xff]  ;;  %v1095_v44 = vld [vmem:[%s14463_s5] sm:$0xff] }
  0x13   : > { %s9610_s23 = sshll.u32 %s15018_s22, 6  ;;  %s14586_s0 = smov 17   ;;  %v8922_v53 = vld [vmem:[%s14459_s1 + $0x2] ss:$8 sm:$0x3]  ;;  %v1210_v57 = vld [vmem:[%s14463_s5 + $0x18] sm:$0xff] }
  0x14   : > { %s14547_s17 = smov 112   ;;  %s14477_s18 = smov 113   ;;  %14669 = vst [vmem:[#allocation4_spill] sm:$0xff] %v9754_v10  ;;  %v9767_v13 = vsub.s32 1, %v574_v9  ;;  %v9769_v14 = vsub.s32 0, %v574_v9  ;;  %vm725_vm0 = vcmp.lt.s32.totalorder %v9754_v10, 1 }
  0x15   : > { %s14475_s19 = smov 127   ;;  %s14670_s8 = sld [smem:[#allocation78_spill]]  ;;  %v8938_v56 = vld [vmem:[%s14459_s1 + $0x2] ss:$8 sm:$0x3]  ;;  %vm671_vm1 = vcmp.lt.s32.totalorder %v9754_v10, 15 }
  0x16   : > { %s9616_s27 = scalar_lea.vmem %s14668_s26, %s9610_s23  ;;  %s14545_s24 = smov 111   ;;  %14671 = vst [vmem:[#allocation5_spill] sm:$0xff] %v9767_v13  ;;  %14672 = vst [vmem:[#allocation6_spill] sm:$0xff] %v9769_v14  ;;  %v742_v18 = vrot.slane %v8923_v15, %v9767_v13  ;;  %v738_v20 = vrot.slane %v8923_v15, %v9769_v14  ;;  %v9805_v32 = vrot.slane %v8939_v24, %v9769_v14  ;;  %vm617_vm2 = vcmp.lt.s32.totalorder %v9754_v10, 16 }
  0x17   : > { %v9619_v0 = vld [vmem:[%s9616_s27 + $0x28] sm:$0xff]  ;;  %v9622_v1 = vld [vmem:[%s9616_s27 + $0x20] sm:$0xff]  ;;  %v9629_v2 = vld [vmem:[%s9616_s27 + $0x38] sm:$0xff]  ;;  %v9808_v36 = vrot.slane %v8939_v24, %v9767_v13  ;;  %vm563_vm3 = vcmp.lt.s32.totalorder %v9754_v10, 17  ;;  %vm895_vm4 = vcmp.lt.s32.totalorder %v9754_v10, 112  ;;  %vm841_vm5 = vcmp.lt.s32.totalorder %v9754_v10, 113 }
  0x18   : > { %721 = vrot.lane.b32.xlu1 %v9619_v0, %s14592_s28  ;;  %713 = vrot.lane.b32.xlu0 %v9622_v1, %s14592_s28  ;;  %v9632_v3 = vld [vmem:[%s9616_s27 + $0x30] sm:$0xff]  ;;  %v9638_v5 = vld [vmem:[%s9616_s27] sm:$0xff]  ;;  %14675 = vst [vmem:[#allocation9_spill] sm:$0xff] %v9805_v32  ;;  %vm787_vm6 = vcmp.lt.s32.totalorder %v9754_v10, 127  ;;  %vm949_vm7 = vcmp.lt.s32.totalorder %v9754_v10, 111  ;;  %vm1111_vm8 = vcmask 261120  }
  0x19   : > { %v9635_v4 = vld [vmem:[%s9616_s27 + $0x10] sm:$0xff]  ;;  %v9645_v6 = vld [vmem:[%s9616_s27 + $0x18] sm:$0xff]  ;;  %v9648_v7 = vld [vmem:[%s9616_s27 + $0x8] sm:$0xff]  ;;  %vm1248_vm9 = vcmask 1043456   ;;  %s14729_s9 = sld [smem:[#allocation79_spill]]  ;;  %vm1241_vm10 = vcmask 326656  }
  0x1a   : > { %s14736_s25 = smov 113   ;;  %s14739_s26 = smov 127   ;;  %vm2494_vm11 = vcmask 850944   ;;  %vm4585_vm12 = vcmp.lt.s32.totalorder %v9754_v10, 3  ;;  %vm4531_vm13 = vcmp.lt.s32.totalorder %v9754_v10, 45  ;;  %vm4477_vm14 = vcmp.lt.s32.totalorder %v9754_v10, 48 }
  0x1b   : > { %v9759_v11 = vld [vmem:[%s14670_s8] sm:$0xff]  ;;  %s14741_s7 = sld [smem:[#allocation77_spill]]  ;;  %s14832_s20 = smov 112   ;;  %vm4423_vm15 = vcmp.lt.s32.totalorder %v9754_v10, 51 }
  0x1c   : > { %723 = vrot.lane.b32.xlu1 %v9629_v2, %s14592_s28  ;;  %715 = vrot.lane.b32.xlu0 %v9632_v3, %s14592_s28  ;;  %v8929_v12 = vcombine.high %v9759_v11, %v9759_v11  ;;  %s14756_s6 = sld [smem:[#allocation76_spill]]  ;;  %s14833_s22 = smov 111  }
  0x1e   : > { %1147 = vmatprep.mubr.bf16.mxu0 %v8929_v12 }
  0x20   : > { %711 = vrot.lane.b32.xlu1 %v9635_v4, %s14592_s28  ;;  %709 = vrot.lane.b32.xlu0 %v9638_v5, %s14592_s28 }
  0x24   : > { %719 = vrot.lane.b32.xlu1 %v9645_v6, %s14592_s28  ;;  %717 = vrot.lane.b32.xlu0 %v9648_v7, %s14592_s28 }
  0x28   : > { %661 = vrot.lane.b32.xlu1 %v9632_v3, %s14590_s29  ;;  %659 = vrot.lane.b32.xlu0 %v9622_v1, %s14590_s29 }
  0x2c   : > { %669 = vrot.lane.b32.xlu1 %v9629_v2, %s14590_s29  ;;  %667 = vrot.lane.b32.xlu0 %v9619_v0, %s14590_s29 }
  0x30   : > { %657 = vrot.lane.b32.xlu1 %v9635_v4, %s14590_s29  ;;  %655 = vrot.lane.b32.xlu0 %v9638_v5, %s14590_s29 }
  0x34   : > { %665 = vrot.lane.b32.xlu1 %v9645_v6, %s14590_s29  ;;  %663 = vrot.lane.b32.xlu0 %v9648_v7, %s14590_s29 }
  0x38   : > { %607 = vrot.lane.b32.xlu1 %v9632_v3, %s14588_s30  ;;  %605 = vrot.lane.b32.xlu0 %v9622_v1, %s14588_s30 }
  0x3c   : > { %615 = vrot.lane.b32.xlu1 %v9629_v2, %s14588_s30  ;;  %613 = vrot.lane.b32.xlu0 %v9619_v0, %s14588_s30 }
  0x40   : > { %603 = vrot.lane.b32.xlu1 %v9635_v4, %s14588_s30  ;;  %601 = vrot.lane.b32.xlu0 %v9638_v5, %s14588_s30 }
  0x44   : > { %611 = vrot.lane.b32.xlu1 %v9645_v6, %s14588_s30  ;;  %609 = vrot.lane.b32.xlu0 %v9648_v7, %s14588_s30 }
  0x48   : > { %551 = vrot.lane.b32.xlu1 %v9632_v3, %s14586_s0  ;;  %549 = vrot.lane.b32.xlu0 %v9622_v1, %s14586_s0 }
  0x4c   : > { %559 = vrot.lane.b32.xlu1 %v9629_v2, %s14586_s0  ;;  %557 = vrot.lane.b32.xlu0 %v9619_v0, %s14586_s0 }
  0x50   : > { %547 = vrot.lane.b32.xlu1 %v9635_v4, %s14586_s0  ;;  %545 = vrot.lane.b32.xlu0 %v9638_v5, %s14586_s0 }
  0x54   : > { %555 = vrot.lane.b32.xlu1 %v9645_v6, %s14586_s0  ;;  %553 = vrot.lane.b32.xlu0 %v9648_v7, %s14586_s0 }
  0x58   : > { %885 = vrot.lane.b32.xlu1 %v9632_v3, %s14547_s17  ;;  %883 = vrot.lane.b32.xlu0 %v9622_v1, %s14547_s17 }
  0x5c   : > { %893 = vrot.lane.b32.xlu1 %v9629_v2, %s14547_s17  ;;  %891 = vrot.lane.b32.xlu0 %v9619_v0, %s14547_s17 }
  0x60   : > { %881 = vrot.lane.b32.xlu1 %v9635_v4, %s14547_s17  ;;  %879 = vrot.lane.b32.xlu0 %v9638_v5, %s14547_s17 }
  0x64   : > { %889 = vrot.lane.b32.xlu1 %v9645_v6, %s14547_s17  ;;  %887 = vrot.lane.b32.xlu0 %v9648_v7, %s14547_s17 }
  0x68   : > { %831 = vrot.lane.b32.xlu1 %v9632_v3, %s14477_s18  ;;  %829 = vrot.lane.b32.xlu0 %v9622_v1, %s14477_s18 }
  0x6c   : > { %839 = vrot.lane.b32.xlu1 %v9629_v2, %s14477_s18  ;;  %837 = vrot.lane.b32.xlu0 %v9619_v0, %s14477_s18 }
  0x70   : > { %827 = vrot.lane.b32.xlu1 %v9635_v4, %s14477_s18  ;;  %825 = vrot.lane.b32.xlu0 %v9638_v5, %s14477_s18 }
  0x74   : > { %835 = vrot.lane.b32.xlu1 %v9645_v6, %s14477_s18  ;;  %833 = vrot.lane.b32.xlu0 %v9648_v7, %s14477_s18  ;;  %s9494_s18 = smov 3  }
  0x78   : > { %777 = vrot.lane.b32.xlu1 %v9632_v3, %s14475_s19  ;;  %775 = vrot.lane.b32.xlu0 %v9622_v1, %s14475_s19 }
  0x7c   : > { %785 = vrot.lane.b32.xlu1 %v9629_v2, %s14475_s19  ;;  %783 = vrot.lane.b32.xlu0 %v9619_v0, %s14475_s19 }
  0x80   : > { %773 = vrot.lane.b32.xlu1 %v9635_v4, %s14475_s19  ;;  %771 = vrot.lane.b32.xlu0 %v9638_v5, %s14475_s19 }
  0x84   : > { %781 = vrot.lane.b32.xlu1 %v9645_v6, %s14475_s19  ;;  %779 = vrot.lane.b32.xlu0 %v9648_v7, %s14475_s19  ;;  %s9495_s19 = smov 45  }
  0x88   : > { %939 = vrot.lane.b32.xlu1 %v9632_v3, %s14545_s24  ;;  %937 = vrot.lane.b32.xlu0 %v9622_v1, %s14545_s24  ;;  %v688_v1 = vrot.slane %v8922_v53, %v9767_v13  ;;  %v9858_v3 = vrot.slane %v8938_v56, %v9767_v13 }
  0x8a   : > { %v722_v16 = vpop.permute.xlu1 %721  ;;  %v714_v17 = vpop.permute.xlu0 %713 }
  0x8b   : > { %v728_v19 = vsel %vm725_vm0, %v714_v17, %v722_v16  ;;  %v732_v21 = vsel %vm725_vm0, %v722_v16, %v714_v17 }
  0x8c   : > { %947 = vrot.lane.b32.xlu1 %v9629_v2, %s14545_s24  ;;  %945 = vrot.lane.b32.xlu0 %v9619_v0, %s14545_s24  ;;  %v750_v27 = vmul.f32 %v742_v18, %v728_v19  ;;  %v749_v29 = vmul.f32 %v738_v20, %v732_v21  ;;  %v1460_v40 = vmul.f32 %v9805_v32, %v732_v21 }
  0x8d   : > { %v1461_v41 = vmul.f32 %v9808_v36, %v728_v19  ;;  %v684_v0 = vrot.slane %v8922_v53, %v9769_v14  ;;  %v9855_v2 = vrot.slane %v8938_v56, %v9769_v14 }
  0x8e   : > { %v724_v22 = vpop.permute.xlu1 %723  ;;  %v716_v23 = vpop.permute.xlu0 %715 }
  0x8f   : > { %v9790_v25 = vsel %vm725_vm0, %v724_v22, %v716_v23  ;;  %v9794_v26 = vsel %vm725_vm0, %v716_v23, %v724_v22 }
  0x90   : > { %14673 = vst [vmem:[#allocation7_spill] sm:$0xff] %v9790_v25  ;;  %14674 = vst [vmem:[#allocation8_spill] sm:$0xff] %v9794_v26  ;;  %935 = vrot.lane.b32.xlu1 %v9635_v4, %s14545_s24  ;;  %933 = vrot.lane.b32.xlu0 %v9638_v5, %s14545_s24  ;;  %v752_v28 = vmul.f32 %v742_v18, %v9794_v26  ;;  %v751_v30 = vmul.f32 %v738_v20, %v9790_v25  ;;  %v1208_v4 = vld [vmem:[%s14463_s5 + $0x8] sm:$0xff] }
  0x92   : > { %v712_v33 = vpop.permute.xlu1 %711  ;;  %v710_v34 = vpop.permute.xlu0 %709  ;;  %v1074_v35 = vpack.c.bf16 %v752_v28, %v750_v27  ;;  %v1073_v37 = vpack.c.bf16 %v751_v30, %v749_v29 }
  0x94   : > { %1115 = vmatprep.subr.bf16.mxu0 %v1074_v35  ;;  %943 = vrot.lane.b32.xlu1 %v9645_v6, %s14545_s24 }
  0x95   : > { %941 = vrot.lane.b32.xlu0 %v9648_v7, %s14545_s24  ;;  %1116 = vmatpush1.bf16.msra.mxu0 %v1073_v37 }
  0x96   : > { %v720_v42 = vpop.permute.xlu1 %719  ;;  %v718_v43 = vpop.permute.xlu0 %717 }
  0x97   : > { %v727_v45 = vsel %vm725_vm0, %v712_v33, %v720_v42  ;;  %v731_v46 = vsel %vm725_vm0, %v720_v42, %v712_v33  ;;  %v9828_v47 = vsel %vm725_vm0, %v710_v34, %v718_v43  ;;  %v9832_v48 = vsel %vm725_vm0, %v718_v43, %v710_v34 }
  0x98   : > { %v747_v49 = vmul.f32 %v738_v20, %v731_v46  ;;  %v748_v50 = vmul.f32 %v742_v18, %v727_v45  ;;  %v1458_v51 = vmul.f32 %v9805_v32, %v731_v46  ;;  %v1459_v52 = vmul.f32 %v9808_v36, %v727_v45  ;;  %1223 = vperm.xlu1 %9186, %v1209_v39  }
  0x99   : > { %v745_v54 = vmul.f32 %v738_v20, %v9832_v48  ;;  %v746_v55 = vmul.f32 %v742_v18, %v9828_v47  ;;  %1098 = vperm.xlu0 %9185, %v1095_v44  }
  0x9a   : > { %v9847_v58 = vpack.c.bf16 %v1460_v40, %v1458_v51  ;;  %v662_v59 = vpop.permute.xlu1 %661  ;;  %v660_v60 = vpop.permute.xlu0 %659  ;;  %v9849_v61 = vpack.c.bf16 %v1461_v41, %v1459_v52 }
  0x9b   : > { %v1072_v62 = vpack.c.bf16 %v748_v50, %v746_v55  ;;  %v1071_v63 = vpack.c.bf16 %v747_v49, %v745_v54  ;;  %v8921_v50 = vld [vmem:[%s14459_s1 + $0x1] ss:$8 sm:$0x3] }
  0x9c   : > { %14676 = vst [vmem:[#allocation10_spill] sm:$0xff] %v9847_v58  ;;  %14677 = vst [vmem:[#allocation11_spill] sm:$0xff] %v9849_v61  ;;  %1228 = vperm.xlu1 %9186, %v1210_v57   ;;  %v630_v57 = vrot.slane %v8921_v50, %v9769_v14 }
  0x9d   : > { %1117 = vmatprep.subr.bf16.mxu0 %v1072_v62  ;;  %9187 = vset.pattern.permute.xlu0 %v14479_v31 }
  0x9e   : > { %1118 = vmatpush1.bf16.msra.mxu0 %v1071_v63  ;;  %v670_v5 = vpop.permute.xlu1 %669  ;;  %v668_v6 = vpop.permute.xlu0 %667  ;;  %1213 = vperm.xlu0 %9187, %v1095_v44   ;;  %v8937_v63 = vld [vmem:[%s14459_s1 + $0x1] ss:$8 sm:$0x3] }
  0x9f   : > { %v675_v7 = vsel %vm671_vm1, %v662_v59, %v670_v5  ;;  %v679_v8 = vsel %vm671_vm1, %v670_v5, %v662_v59  ;;  %v674_v9 = vsel %vm671_vm1, %v660_v60, %v668_v6  ;;  %v678_v12 = vsel %vm671_vm1, %v668_v6, %v660_v60 }
  0xa0   : > { %v697_v15 = vmul.f32 %v684_v0, %v679_v8  ;;  %v698_v16 = vmul.f32 %v688_v1, %v675_v7  ;;  %v1424_v17 = vmul.f32 %v9855_v2, %v679_v8  ;;  %v1425_v18 = vmul.f32 %v9858_v3, %v675_v7  ;;  %1218 = vperm.xlu1 %9186, %v1208_v4  }
  0xa1   : > { %v695_v19 = vmul.f32 %v684_v0, %v678_v12  ;;  %v696_v20 = vmul.f32 %v688_v1, %v674_v9  ;;  %v1422_v21 = vmul.f32 %v9855_v2, %v678_v12  ;;  %v1423_v22 = vmul.f32 %v9858_v3, %v674_v9 }
  0xa2   : > { %v658_v23 = vpop.permute.xlu1 %657  ;;  %v656_v24 = vpop.permute.xlu0 %655  ;;  %v634_v59 = vrot.slane %v8921_v50, %v9767_v13  ;;  %v9920_v12 = vrot.slane %v8937_v63, %v9769_v14 }
  0xa3   : > { %v9876_v27 = vpack.c.bf16 %v1424_v17, %v1422_v21  ;;  %v1070_v28 = vpack.c.bf16 %v698_v16, %v696_v20  ;;  %v1069_v29 = vpack.c.bf16 %v697_v15, %v695_v19  ;;  %v9878_v30 = vpack.c.bf16 %v1425_v18, %v1423_v22 }
  0xa4   : > { %14683 = vst [vmem:[#allocation17_spill] sm:$0xff] %v9920_v12  ;;  %v9923_v15 = vrot.slane %v8937_v63, %v9767_v13 }
  0xa5   : > { %14678 = vst [vmem:[#allocation12_spill] sm:$0xff] %v9876_v27  ;;  %14679 = vst [vmem:[#allocation13_spill] sm:$0xff] %v9878_v30  ;;  %1119 = vmatprep.subr.bf16.mxu0 %v1070_v28 }
  0xa6   : > { %1120 = vmatpush1.bf16.msra.mxu0 %v1069_v29  ;;  %v666_v33 = vpop.permute.xlu1 %665  ;;  %v664_v34 = vpop.permute.xlu0 %663 }
  0xa7   : > { %v673_v35 = vsel %vm671_vm1, %v658_v23, %v666_v33  ;;  %v677_v37 = vsel %vm671_vm1, %v666_v33, %v658_v23  ;;  %v672_v38 = vsel %vm671_vm1, %v656_v24, %v664_v34  ;;  %v676_v39 = vsel %vm671_vm1, %v664_v34, %v656_v24 }
  0xa8   : > { %v693_v40 = vmul.f32 %v684_v0, %v677_v37  ;;  %v694_v41 = vmul.f32 %v688_v1, %v673_v35  ;;  %v1420_v42 = vmul.f32 %v9855_v2, %v677_v37  ;;  %v1421_v43 = vmul.f32 %v9858_v3, %v673_v35 }
  0xa9   : > { %v691_v44 = vmul.f32 %v684_v0, %v676_v39  ;;  %v692_v45 = vmul.f32 %v688_v1, %v672_v38  ;;  %v1418_v46 = vmul.f32 %v9855_v2, %v676_v39  ;;  %v1419_v49 = vmul.f32 %v9858_v3, %v672_v38 }
  0xaa   : > { %v608_v51 = vpop.permute.xlu1 %607  ;;  %v606_v52 = vpop.permute.xlu0 %605 }
  0xab   : > { %v9895_v53 = vpack.c.bf16 %v1420_v42, %v1418_v46  ;;  %v1068_v54 = vpack.c.bf16 %v694_v41, %v692_v45  ;;  %v1067_v55 = vpack.c.bf16 %v693_v40, %v691_v44  ;;  %v9897_v56 = vpack.c.bf16 %v1421_v43, %v1419_v49  ;;  %v544_v41 = vld [vmem:[%s14459_s1] ss:$8 sm:$0x3] }
  0xac   : > { %v1324_v42 = vld [vmem:[%s14459_s1] ss:$8 sm:$0x3] }
  0xad   : > { %14680 = vst [vmem:[#allocation14_spill] sm:$0xff] %v9895_v53  ;;  %14681 = vst [vmem:[#allocation15_spill] sm:$0xff] %v9897_v56  ;;  %1121 = vmatprep.subr.bf16.mxu0 %v1068_v54  ;;  %v9957_v54 = vrot.slane %v1324_v42, %v9769_v14 }
  0xae   : > { %1122 = vmatpush1.bf16.msra.mxu0 %v1067_v55  ;;  %v616_v60 = vpop.permute.xlu1 %615  ;;  %v614_v62 = vpop.permute.xlu0 %613  ;;  %v9960_v55 = vrot.slane %v1324_v42, %v9767_v13 }
  0xaf   : > { %v9907_v0 = vsel %vm617_vm2, %v608_v51, %v616_v60  ;;  %v9911_v1 = vsel %vm617_vm2, %v616_v60, %v608_v51  ;;  %v620_v4 = vsel %vm617_vm2, %v606_v52, %v614_v62  ;;  %v624_v5 = vsel %vm617_vm2, %v614_v62, %v606_v52  ;;  %14688 = vst [vmem:[#allocation22_spill] sm:$0xff] %v9957_v54 }
  0xb0   : > { %14682 = vst [vmem:[#allocation16_spill] sm:$0xff] %v9911_v1  ;;  %v643_v6 = vmul.f32 %v630_v57, %v9911_v1  ;;  %v644_v7 = vmul.f32 %v634_v59, %v9907_v0  ;;  %v641_v8 = vmul.f32 %v630_v57, %v624_v5  ;;  %v642_v9 = vmul.f32 %v634_v59, %v620_v4 }
  0xb1   : > { %v1384_v20 = vmul.f32 %v9920_v12, %v624_v5  ;;  %v1385_v21 = vmul.f32 %v9923_v15, %v620_v4  ;;  %v576_v51 = vrot.slane %v544_v41, %v9769_v14  ;;  %v580_v52 = vrot.slane %v544_v41, %v9767_v13  ;;  %14689 = vst [vmem:[#allocation23_spill] sm:$0xff] %v9960_v55 }
  0xb2   : > { %v604_v16 = vpop.permute.xlu1 %603  ;;  %v602_v17 = vpop.permute.xlu0 %601  ;;  %v1066_v18 = vpack.c.bf16 %v644_v7, %v642_v9  ;;  %v1065_v19 = vpack.c.bf16 %v643_v6, %v641_v8 }
  0xb4   : > { %1123 = vmatprep.subr.bf16.mxu0 %v1066_v18 }
  0xb5   : > { %1124 = vmatpush1.bf16.msra.mxu0 %v1065_v19 }
  0xb6   : > { %v612_v22 = vpop.permute.xlu1 %611  ;;  %v610_v23 = vpop.permute.xlu0 %609 }
  0xb7   : > { %v619_v24 = vsel %vm617_vm2, %v604_v16, %v612_v22  ;;  %v623_v28 = vsel %vm617_vm2, %v612_v22, %v604_v16  ;;  %v9933_v29 = vsel %vm617_vm2, %v602_v17, %v610_v23  ;;  %v9937_v33 = vsel %vm617_vm2, %v610_v23, %v602_v17 }
  0xb8   : > { %14684 = vst [vmem:[#allocation18_spill] sm:$0xff] %v9933_v29  ;;  %14685 = vst [vmem:[#allocation19_spill] sm:$0xff] %v9937_v33  ;;  %v639_v34 = vmul.f32 %v630_v57, %v623_v28  ;;  %v640_v35 = vmul.f32 %v634_v59, %v619_v24  ;;  %v1382_v37 = vmul.f32 %v9920_v12, %v623_v28 }
  0xb9   : > { %v1383_v38 = vmul.f32 %v9923_v15, %v619_v24  ;;  %v637_v39 = vmul.f32 %v630_v57, %v9937_v33  ;;  %v638_v40 = vmul.f32 %v634_v59, %v9933_v29 }
  0xba   : > { %v9949_v43 = vpack.c.bf16 %v1384_v20, %v1382_v37  ;;  %v552_v44 = vpop.permute.xlu1 %551  ;;  %v550_v45 = vpop.permute.xlu0 %549 }
  0xbb   : > { %v9951_v46 = vpack.c.bf16 %v1385_v21, %v1383_v38  ;;  %v1064_v49 = vpack.c.bf16 %v640_v35, %v638_v40  ;;  %v1063_v50 = vpack.c.bf16 %v639_v34, %v637_v39 }
  0xbc   : > { %14686 = vst [vmem:[#allocation20_spill] sm:$0xff] %v9949_v43 }
  0xbd   : > { %14687 = vst [vmem:[#allocation21_spill] sm:$0xff] %v9951_v46  ;;  %1125 = vmatprep.subr.bf16.mxu0 %v1064_v49  ;;  %v8946_v46 = vld [vmem:[%s14459_s1 + $0x3] ss:$8 sm:$0x3] }
  0xbe   : > { %1126 = vmatpush1.bf16.msra.mxu0 %v1063_v50  ;;  %v560_v57 = vpop.permute.xlu1 %559  ;;  %v558_v59 = vpop.permute.xlu0 %557  ;;  %v1827_v53 = vrot.slane %v8946_v46, %v9767_v13  ;;  %v1823_v12 = vrot.slane %v8946_v46, %v9769_v14  ;;  %v8945_v46 = vld [vmem:[%s14459_s1 + $0x2] ss:$8 sm:$0x3] }
  0xbf   : > { %v567_v60 = vsel %vm563_vm3, %v552_v44, %v560_v57  ;;  %v571_v62 = vsel %vm563_vm3, %v560_v57, %v552_v44  ;;  %v566_v63 = vsel %vm563_vm3, %v550_v45, %v558_v59  ;;  %v570_v4 = vsel %vm563_vm3, %v558_v59, %v550_v45  ;;  %v8926_v59 = vld [vmem:[%s14459_s1 + $0x7] ss:$8 sm:$0x3] }
  0xc0   : > { %v589_v5 = vmul.f32 %v576_v51, %v571_v62  ;;  %v590_v6 = vmul.f32 %v580_v52, %v567_v60  ;;  %v1348_v7 = vmul.f32 %v9957_v54, %v571_v62  ;;  %v1349_v8 = vmul.f32 %v9960_v55, %v567_v60 }
  0xc1   : > { %v587_v9 = vmul.f32 %v576_v51, %v570_v4  ;;  %v588_v16 = vmul.f32 %v580_v52, %v566_v63  ;;  %v1346_v17 = vmul.f32 %v9957_v54, %v570_v4  ;;  %v1347_v18 = vmul.f32 %v9960_v55, %v566_v63 }
  0xc2   : > { %v548_v19 = vpop.permute.xlu1 %547  ;;  %v546_v20 = vpop.permute.xlu0 %545 }
  0xc3   : > { %v9974_v21 = vpack.c.bf16 %v1348_v7, %v1346_v17  ;;  %v1062_v22 = vpack.c.bf16 %v590_v6, %v588_v16  ;;  %v1061_v23 = vpack.c.bf16 %v589_v5, %v587_v9  ;;  %v9976_v24 = vpack.c.bf16 %v1349_v8, %v1347_v18  ;;  %v8942_v9 = vld [vmem:[%s14459_s1 + $0x7] ss:$8 sm:$0x3] }
  0xc5   : > { %14690 = vst [vmem:[#allocation24_spill] sm:$0xff] %v9974_v21  ;;  %14691 = vst [vmem:[#allocation25_spill] sm:$0xff] %v9976_v24  ;;  %1127 = vmatprep.subr.bf16.mxu0 %v1062_v22  ;;  %v2613_v21 = vld [vmem:[%s14463_s5] sm:$0xff] }
  0xc6   : > { %1128 = vmatpush1.bf16.msra.mxu0 %v1061_v23  ;;  %v556_v28 = vpop.permute.xlu1 %555  ;;  %v554_v34 = vpop.permute.xlu0 %553 }
  0xc7   : > { %v565_v35 = vsel %vm563_vm3, %v548_v19, %v556_v28  ;;  %v569_v37 = vsel %vm563_vm3, %v556_v28, %v548_v19  ;;  %v564_v38 = vsel %vm563_vm3, %v546_v20, %v554_v34  ;;  %v568_v39 = vsel %vm563_vm3, %v554_v34, %v546_v20 }
  0xc8   : > { %v585_v40 = vmul.f32 %v576_v51, %v569_v37  ;;  %v586_v41 = vmul.f32 %v580_v52, %v565_v35  ;;  %v1344_v42 = vmul.f32 %v9957_v54, %v569_v37  ;;  %v1345_v44 = vmul.f32 %v9960_v55, %v565_v35 }
  0xc9   : > { %v583_v45 = vmul.f32 %v576_v51, %v568_v39  ;;  %v584_v49 = vmul.f32 %v580_v52, %v564_v38  ;;  %v1342_v50 = vmul.f32 %v9957_v54, %v568_v39  ;;  %v1343_v57 = vmul.f32 %v9960_v55, %v564_v38 }
  0xca   : > { %v886_v60 = vpop.permute.xlu1 %885  ;;  %v884_v62 = vpop.permute.xlu0 %883  ;;  %v908_v51 = vrot.slane %v8926_v59, %v9769_v14  ;;  %v912_v52 = vrot.slane %v8926_v59, %v9767_v13  ;;  %v10018_v34 = vrot.slane %v8942_v9, %v9769_v14  ;;  %v10021_v35 = vrot.slane %v8942_v9, %v9767_v13  ;;  %v8925_v9 = vld [vmem:[%s14459_s1 + $0x6] ss:$8 sm:$0x3] }
  0xcb   : > { %v9993_v63 = vpack.c.bf16 %v1344_v42, %v1342_v50  ;;  %v1060_v4 = vpack.c.bf16 %v586_v41, %v584_v49  ;;  %v1059_v5 = vpack.c.bf16 %v585_v40, %v583_v45  ;;  %v9995_v6 = vpack.c.bf16 %v1345_v44, %v1343_v57 }
  0xcc   : > { %14696 = vst [vmem:[#allocation30_spill] sm:$0xff] %v10018_v34  ;;  %14697 = vst [vmem:[#allocation31_spill] sm:$0xff] %v10021_v35 }
  0xcd   : > { %14692 = vst [vmem:[#allocation26_spill] sm:$0xff] %v9993_v63  ;;  %14693 = vst [vmem:[#allocation27_spill] sm:$0xff] %v9995_v6  ;;  %1129 = vmatprep.subr.bf16.mxu0 %v1060_v4 }
  0xce   : > { %1130 = vmatpush1.bf16.msra.mxu0 %v1059_v5  ;;  %v894_v7 = vpop.permute.xlu1 %893  ;;  %v892_v8 = vpop.permute.xlu0 %891 }
  0xcf   : > { %v10005_v16 = vsel %vm895_vm4, %v886_v60, %v894_v7  ;;  %v10009_v17 = vsel %vm895_vm4, %v894_v7, %v886_v60  ;;  %v898_v18 = vsel %vm895_vm4, %v884_v62, %v892_v8  ;;  %v902_v19 = vsel %vm895_vm4, %v892_v8, %v884_v62 }
  0xd0   : > { %14694 = vst [vmem:[#allocation28_spill] sm:$0xff] %v10005_v16  ;;  %14695 = vst [vmem:[#allocation29_spill] sm:$0xff] %v10009_v17  ;;  %v921_v20 = vmul.f32 %v908_v51, %v10005_v16  ;;  %v922_v22 = vmul.f32 %v912_v52, %v10009_v17  ;;  %v919_v23 = vmul.f32 %v908_v51, %v898_v18 }
  0xd1   : > { %v920_v28 = vmul.f32 %v912_v52, %v902_v19  ;;  %v1584_v41 = vmul.f32 %v10018_v34, %v898_v18  ;;  %v1585_v42 = vmul.f32 %v10021_v35, %v902_v19  ;;  %v8941_v18 = vld [vmem:[%s14459_s1 + $0x6] ss:$8 sm:$0x3] }
  0xd2   : > { %v882_v37 = vpop.permute.xlu1 %881  ;;  %v880_v38 = vpop.permute.xlu0 %879  ;;  %v1089_v40 = vpack.c.bf16 %v921_v20, %v919_v23 }
  0xd3   : > { %v1090_v39 = vpack.c.bf16 %v922_v22, %v920_v28 }
  0xd5   : > { %1131 = vmatprep.subr.bf16.mxu0 %v1090_v39  ;;  %v10058_v39 = vrot.slane %v8941_v18, %v9767_v13 }
  0xd6   : > { %1132 = vmatpush2.bf16.msra.mxu0 %v1089_v40  ;;  %v890_v44 = vpop.permute.xlu1 %889  ;;  %v888_v45 = vpop.permute.xlu0 %887 }
  0xd7   : > { %v897_v49 = vsel %vm895_vm4, %v882_v37, %v890_v44  ;;  %v901_v50 = vsel %vm895_vm4, %v890_v44, %v882_v37  ;;  %v10031_v57 = vsel %vm895_vm4, %v880_v38, %v888_v45  ;;  %v10035_v59 = vsel %vm895_vm4, %v888_v45, %v880_v38  ;;  %14703 = vst [vmem:[#allocation37_spill] sm:$0xff] %v10058_v39 }
  0xd8   : > { %14698 = vst [vmem:[#allocation32_spill] sm:$0xff] %v10031_v57  ;;  %14699 = vst [vmem:[#allocation33_spill] sm:$0xff] %v10035_v59  ;;  %v917_v60 = vmul.f32 %v908_v51, %v897_v49  ;;  %v918_v62 = vmul.f32 %v912_v52, %v901_v50  ;;  %v1582_v4 = vmul.f32 %v10018_v34, %v897_v49 }
  0xd9   : > { %v1583_v5 = vmul.f32 %v10021_v35, %v901_v50  ;;  %v915_v7 = vmul.f32 %v908_v51, %v10031_v57  ;;  %v916_v8 = vmul.f32 %v912_v52, %v10035_v59  ;;  %v854_v51 = vrot.slane %v8925_v9, %v9769_v14  ;;  %v9446_v57 = vld [vmem:[%s9616_s27 + $0x38] sm:$0xff] }
  0xda   : > { %v10047_v19 = vpack.c.bf16 %v1584_v41, %v1582_v4  ;;  %v832_v20 = vpop.permute.xlu1 %831  ;;  %v830_v22 = vpop.permute.xlu0 %829  ;;  %v858_v52 = vrot.slane %v8925_v9, %v9767_v13  ;;  %v10055_v38 = vrot.slane %v8941_v18, %v9769_v14 }
  0xdb   : > { %v10049_v23 = vpack.c.bf16 %v1585_v42, %v1583_v5  ;;  %v1088_v28 = vpack.c.bf16 %v918_v62, %v916_v8  ;;  %v1087_v37 = vpack.c.bf16 %v917_v60, %v915_v7 }
  0xdc   : > { %14700 = vst [vmem:[#allocation34_spill] sm:$0xff] %v10047_v19  ;;  %14702 = vst [vmem:[#allocation36_spill] sm:$0xff] %v10055_v38 }
  0xdd   : > { %14701 = vst [vmem:[#allocation35_spill] sm:$0xff] %v10049_v23  ;;  %1133 = vmatprep.subr.bf16.mxu0 %v1088_v28 }
  0xde   : > { %1134 = vmatpush2.bf16.msra.mxu0 %v1087_v37  ;;  %v840_v40 = vpop.permute.xlu1 %839  ;;  %v838_v41 = vpop.permute.xlu0 %837 }
  0xdf   : > { %v845_v42 = vsel %vm841_vm5, %v832_v20, %v840_v40  ;;  %v849_v44 = vsel %vm841_vm5, %v840_v40, %v832_v20  ;;  %v844_v45 = vsel %vm841_vm5, %v830_v22, %v838_v41  ;;  %v848_v49 = vsel %vm841_vm5, %v838_v41, %v830_v22 }
  0xe0   : > { %v867_v50 = vmul.f32 %v854_v51, %v845_v42  ;;  %v868_v60 = vmul.f32 %v858_v52, %v849_v44  ;;  %v1548_v62 = vmul.f32 %v10055_v38, %v845_v42  ;;  %v1549_v4 = vmul.f32 %v10058_v39, %v849_v44 }
  0xe1   : > { %v865_v5 = vmul.f32 %v854_v51, %v844_v45  ;;  %v866_v7 = vmul.f32 %v858_v52, %v848_v49  ;;  %v1546_v8 = vmul.f32 %v10055_v38, %v844_v45  ;;  %v1547_v9 = vmul.f32 %v10058_v39, %v848_v49 }
  0xe2   : > { %v828_v18 = vpop.permute.xlu1 %827  ;;  %v826_v20 = vpop.permute.xlu0 %825 }
  0xe3   : > { %v10072_v28 = vpack.c.bf16 %v1548_v62, %v1546_v8  ;;  %v1086_v37 = vpack.c.bf16 %v868_v60, %v866_v7  ;;  %v1085_v40 = vpack.c.bf16 %v867_v50, %v865_v5  ;;  %v10074_v31 = vpack.c.bf16 %v1549_v4, %v1547_v9 }
  0xe5   : > { %14704 = vst [vmem:[#allocation38_spill] sm:$0xff] %v10072_v28  ;;  %14705 = vst [vmem:[#allocation39_spill] sm:$0xff] %v10074_v31  ;;  %1135 = vmatprep.subr.bf16.mxu0 %v1086_v37 }
  0xe6   : > { %1136 = vmatpush2.bf16.msra.mxu0 %v1085_v40  ;;  %v836_v22 = vpop.permute.xlu1 %835  ;;  %v834_v41 = vpop.permute.xlu0 %833 }
  0xe7   : > { %v843_v42 = vsel %vm841_vm5, %v828_v18, %v836_v22  ;;  %v847_v44 = vsel %vm841_vm5, %v836_v22, %v828_v18  ;;  %v842_v45 = vsel %vm841_vm5, %v826_v20, %v834_v41  ;;  %v846_v49 = vsel %vm841_vm5, %v834_v41, %v826_v20  ;;  %v8924_v18 = vld [vmem:[%s14459_s1 + $0x5] ss:$8 sm:$0x3] }
  0xe8   : > { %v863_v60 = vmul.f32 %v854_v51, %v843_v42  ;;  %v864_v50 = vmul.f32 %v858_v52, %v847_v44  ;;  %v1544_v62 = vmul.f32 %v10055_v38, %v843_v42  ;;  %v1545_v4 = vmul.f32 %v10058_v39, %v847_v44 }
  0xe9   : > { %v861_v5 = vmul.f32 %v854_v51, %v842_v45  ;;  %v862_v7 = vmul.f32 %v858_v52, %v846_v49  ;;  %v1542_v8 = vmul.f32 %v10055_v38, %v842_v45  ;;  %v1543_v9 = vmul.f32 %v10058_v39, %v846_v49  ;;  %v8940_v45 = vld [vmem:[%s14459_s1 + $0x5] ss:$8 sm:$0x3] }
  0xea   : > { %v778_v37 = vpop.permute.xlu1 %777  ;;  %v776_v40 = vpop.permute.xlu0 %775  ;;  %v800_v51 = vrot.slane %v8924_v18, %v9769_v14  ;;  %v804_v52 = vrot.slane %v8924_v18, %v9767_v13  ;;  %v10119_v18 = vrot.slane %v8940_v45, %v9767_v13 }
  0xeb   : > { %v10091_v22 = vpack.c.bf16 %v1544_v62, %v1542_v8  ;;  %v1084_v20 = vpack.c.bf16 %v864_v50, %v862_v7  ;;  %v1083_v41 = vpack.c.bf16 %v863_v60, %v861_v5  ;;  %v10093_v28 = vpack.c.bf16 %v1545_v4, %v1543_v9 }
  0xec   : > { %v10116_v9 = vrot.slane %v8940_v45, %v9769_v14  ;;  %14711 = vst [vmem:[#allocation45_spill] sm:$0xff] %v10119_v18 }
  0xed   : > { %14706 = vst [vmem:[#allocation40_spill] sm:$0xff] %v10091_v22  ;;  %14707 = vst [vmem:[#allocation41_spill] sm:$0xff] %v10093_v28  ;;  %1137 = vmatprep.subr.bf16.mxu0 %v1084_v20 }
  0xee   : > { %1138 = vmatpush2.bf16.msra.mxu0 %v1083_v41  ;;  %v786_v42 = vpop.permute.xlu1 %785  ;;  %v784_v44 = vpop.permute.xlu0 %783  ;;  %14710 = vst [vmem:[#allocation44_spill] sm:$0xff] %v10116_v9 }
  0xef   : > { %v10103_v49 = vsel %vm787_vm6, %v778_v37, %v786_v42  ;;  %v10107_v60 = vsel %vm787_vm6, %v786_v42, %v778_v37  ;;  %v790_v50 = vsel %vm787_vm6, %v776_v40, %v784_v44  ;;  %v794_v62 = vsel %vm787_vm6, %v784_v44, %v776_v40 }
  0xf0   : > { %14708 = vst [vmem:[#allocation42_spill] sm:$0xff] %v10103_v49  ;;  %14709 = vst [vmem:[#allocation43_spill] sm:$0xff] %v10107_v60  ;;  %v813_v4 = vmul.f32 %v800_v51, %v10103_v49  ;;  %v814_v5 = vmul.f32 %v804_v52, %v10107_v60  ;;  %v811_v7 = vmul.f32 %v800_v51, %v790_v50 }
  0xf1   : > { %v812_v8 = vmul.f32 %v804_v52, %v794_v62  ;;  %v1508_v31 = vmul.f32 %v10116_v9, %v790_v50  ;;  %v1509_v40 = vmul.f32 %v10119_v18, %v794_v62 }
  0xf2   : > { %v774_v37 = vpop.permute.xlu1 %773  ;;  %v772_v20 = vpop.permute.xlu0 %771  ;;  %v1081_v42 = vpack.c.bf16 %v813_v4, %v811_v7 }
  0xf3   : > { %v1082_v41 = vpack.c.bf16 %v814_v5, %v812_v8 }
  0xf5   : > { %1139 = vmatprep.subr.bf16.mxu0 %v1082_v41  ;;  %v8943_v41 = vld [vmem:[%s14459_s1 + $0x10] ss:$8 sm:$0x3] }
  0xf6   : > { %1140 = vmatpush2.bf16.msra.mxu0 %v1081_v42  ;;  %v782_v44 = vpop.permute.xlu1 %781  ;;  %v780_v58 = vpop.permute.xlu0 %779  ;;  %v10155_v23 = vrot.slane %v8943_v41, %v9769_v14 }
  0xf7   : > { %v789_v61 = vsel %vm787_vm6, %v774_v37, %v782_v44  ;;  %v793_v19 = vsel %vm787_vm6, %v782_v44, %v774_v37  ;;  %v10129_v45 = vsel %vm787_vm6, %v772_v20, %v780_v58  ;;  %v10133_v4 = vsel %vm787_vm6, %v780_v58, %v772_v20  ;;  %v8927_v58 = vld [vmem:[%s14459_s1 + $0x10] ss:$8 sm:$0x3] }
  0xf8   : > { %14712 = vst [vmem:[#allocation46_spill] sm:$0xff] %v10129_v45  ;;  %14713 = vst [vmem:[#allocation47_spill] sm:$0xff] %v10133_v4  ;;  %v809_v50 = vmul.f32 %v800_v51, %v789_v61  ;;  %v810_v62 = vmul.f32 %v804_v52, %v793_v19  ;;  %v1506_v5 = vmul.f32 %v10116_v9, %v789_v61 }
  0xf9   : > { %v1507_v7 = vmul.f32 %v10119_v18, %v793_v19  ;;  %v807_v8 = vmul.f32 %v800_v51, %v10129_v45  ;;  %v808_v37 = vmul.f32 %v804_v52, %v10133_v4  ;;  %v9445_v52 = vld [vmem:[%s9616_s27 + $0x28] sm:$0xff]  ;;  %14717 = vst [vmem:[#allocation51_spill] sm:$0xff] %v10155_v23 }
  0xfa   : > { %v10145_v20 = vpack.c.bf16 %v1508_v31, %v1506_v5  ;;  %v940_v42 = vpop.permute.xlu1 %939  ;;  %v938_v44 = vpop.permute.xlu0 %937  ;;  %v10151_v38 = vpack.c.bf16 %v9446_v57, %v9445_v52  ;;  %v966_v31 = vrot.slane %v8927_v58, %v9767_v13  ;;  %v9450_v52 = vld [vmem:[%s9616_s27 + $0x8] sm:$0xff] }
  0xfb   : > { %v10147_v61 = vpack.c.bf16 %v1509_v40, %v1507_v7  ;;  %v1080_v19 = vpack.c.bf16 %v810_v62, %v808_v37  ;;  %v1079_v51 = vpack.c.bf16 %v809_v50, %v807_v8  ;;  %v10159_v40 = vrot.slane %v8943_v41, %v9767_v13  ;;  %v9447_v7 = vld [vmem:[%s9616_s27 + $0x20] sm:$0xff]  ;;  %v9448_v8 = vld [vmem:[%s9616_s27 + $0x30] sm:$0xff]  ;;  %v9449_v37 = vld [vmem:[%s9616_s27 + $0x18] sm:$0xff] }
  0xfc   : > { %14714 = vst [vmem:[#allocation48_spill] sm:$0xff] %v10145_v20  ;;  %14716 = vst [vmem:[#allocation50_spill] sm:$0xff] %v10151_v38  ;;  %v962_v62 = vrot.slane %v8927_v58, %v9769_v14  ;;  %v10164_v57 = vpack.c.bf16 %v9448_v8, %v9447_v7  ;;  %v10168_v59 = vpack.c.bf16 %v9449_v37, %v9450_v52 }
  0xfd   : > { %14715 = vst [vmem:[#allocation49_spill] sm:$0xff] %v10147_v61  ;;  %1141 = vmatprep.subr.bf16.mxu0 %v1080_v19  ;;  %14718 = vst [vmem:[#allocation52_spill] sm:$0xff] %v10159_v40 }
  0xfe   : > { %1142 = vmatpush2.bf16.msra.mxu0 %v1079_v51  ;;  %v948_v50 = vpop.permute.xlu1 %947  ;;  %v946_v5 = vpop.permute.xlu0 %945  ;;  %14719 = vst [vmem:[#allocation53_spill] sm:$0xff] %v10164_v57  ;;  %14720 = vst [vmem:[#allocation54_spill] sm:$0xff] %v10168_v59 }
  0xff   : > { %v953_v25 = vsel %vm949_vm7, %v940_v42, %v948_v50  ;;  %v952_v41 = vsel %vm949_vm7, %v938_v44, %v946_v5  ;;  %1143 = vmatprep.subr.bf16.mxu0 %v10151_v38  ;;  %v956_v58 = vsel %vm949_vm7, %v946_v5, %v938_v44  ;;  %v957_v19 = vsel %vm949_vm7, %v948_v50, %v940_v42  ;;  %v9451_v42 = vld [vmem:[%s9616_s27 + $0x10] sm:$0xff]  ;;  %v9452_v50 = vld [vmem:[%s9616_s27] sm:$0xff] }
 0x100   : > { %v1624_v51 = vmul.f32 %v10155_v23, %v953_v25  ;;  %v1622_v7 = vmul.f32 %v10155_v23, %v952_v41  ;;  %v974_v8 = vmul.f32 %v966_v31, %v956_v58  ;;  %v976_v37 = vmul.f32 %v966_v31, %v957_v19 }
 0x101   : > { %v1623_v52 = vmul.f32 %v10159_v40, %v956_v58  ;;  %v1625_v39 = vmul.f32 %v10159_v40, %v957_v19  ;;  %v973_v26 = vmul.f32 %v962_v62, %v952_v41  ;;  %v975_v16 = vmul.f32 %v962_v62, %v953_v25 }
 0x102   : > { %v10183_v34 = vpack.c.bf16 %v1624_v51, %v1622_v7  ;;  %1144 = vmatpush2.bf16.msra.mxu0 %v10164_v57  ;;  %v936_v44 = vpop.permute.xlu1 %935  ;;  %v934_v5 = vpop.permute.xlu0 %933  ;;  %v1094_v17 = vpack.c.bf16 %v976_v37, %v974_v8  ;;  %v10188_v35 = vpack.c.bf16 %v9451_v42, %v9452_v50  ;;  %v8928_v25 = vcombine.low %v9759_v11, %v9759_v11 }
 0x103   : > { %1145 = vmatprep.subr.bf16.mxu0 %v10168_v59  ;;  %v1093_v20 = vpack.c.bf16 %v975_v16, %v973_v26  ;;  %v10191_v45 = vpack.c.bf16 %v1625_v39, %v1623_v52 }
 0x104   : > { %14721 = vst [vmem:[#allocation55_spill] sm:$0xff] %v10183_v34  ;;  %14722 = vst [vmem:[#allocation56_spill] sm:$0xff] %v10188_v35  ;;  %1168 = vmatprep.subr.bf16.mxu1 %v1094_v17 }
 0x105   : > { %14723 = vst [vmem:[#allocation57_spill] sm:$0xff] %v10191_v45  ;;  %1169 = vmatpush1.bf16.msra.mxu1 %v1093_v20  ;;  %v9216_v45 = vld [vmem:[%s14741_s7 + $0x4] ss:$12 sps:$4 sm:$0xff]  }
 0x106   : > { %1146 = vmatpush2.bf16.msra.mxu0 %v10188_v35  ;;  %v944_v41 = vpop.permute.xlu1 %943 }
 0x107   : > { %v951_v58 = vsel %vm949_vm7, %v936_v44, %v944_v41  ;;  %v955_v19 = vsel %vm949_vm7, %v944_v41, %v936_v44  ;;  %v942_v51 = vpop.permute.xlu0 %941  ;;  %v14724_v44 = vmov 0  }
 0x108   : > { %v971_v7 = vmul.f32 %v962_v62, %v951_v58  ;;  %v972_v8 = vmul.f32 %v966_v31, %v955_v19  ;;  %v1620_v26 = vmul.f32 %v10155_v23, %v951_v58  ;;  %v1621_v16 = vmul.f32 %v10159_v40, %v955_v19 }
 0x109   : > { %v950_v17 = vsel %vm949_vm7, %v934_v5, %v942_v51  ;;  %v954_v11 = vsel %vm949_vm7, %v942_v51, %v934_v5  ;;  %1148 = vmatmul.mubr.bf16.vlgmr.msra.gmra.mxu0 %v8928_v25  ;;  %v9210_v5 = vld [vmem:[%s14670_s8 + $0x8] ss:$0 sps:$4 sm:$0xff]   ;;  %s14631_s8 = smov 80  }
 0x10a   : > { %v969_v39 = vmul.f32 %v962_v62, %v950_v17  ;;  %v970_v20 = vmul.f32 %v966_v31, %v954_v11  ;;  %v1618_v37 = vmul.f32 %v10155_v23, %v950_v17  ;;  %v1619_v52 = vmul.f32 %v10159_v40, %v954_v11  ;;  %2443 = vmatprep.mubr.bf16.mxu0 %v14724_v44 }
 0x10c   : > { %v10209_v42 = vpack.c.bf16 %v1620_v26, %v1618_v37  ;;  %v1092_v50 = vpack.c.bf16 %v972_v8, %v970_v20  ;;  %v1091_v41 = vpack.c.bf16 %v971_v7, %v969_v39  ;;  %v10211_v58 = vpack.c.bf16 %v1621_v16, %v1619_v52 }
 0x10e   : > { %14725 = vst [vmem:[#allocation58_spill] sm:$0xff] %v10209_v42  ;;  %14726 = vst [vmem:[#allocation59_spill] sm:$0xff] %v10211_v58  ;;  %1170 = vmatprep.subr.bf16.mxu1 %v1092_v50 }
 0x10f   : > { %1171 = vmatpush1.bf16.msra.mxu1 %v1091_v41  ;;  %v9211_v41 = vld [vmem:[%s14729_s9] sm:$0xff]  }
 0x112   : > { %8931 = vmatmul.mubr.msk.bf16.vlgmr.msra.gmra.mxu1 %vm1111_vm8, %v9210_v5  ;;  %v9212_v5 = vld [vmem:[%s14729_s9 + $0x8] sm:$0xff]   ;;  %s9499_s9 = smov 83  }
 0x113   : > { %1287 = vmatprep.mubr.bf16.mxu1 %v14724_v44 }
 0x114   : > { %v1099_v25 = vpop.permute.xlu0 %1098 }
 0x1c9   : > { %v1149_v31 = vpop.f32.mrf.mxu0 }
 0x1ca   : > { %v1150_v8 = vadd.f32 %v1149_v31, %v1099_v25  ;;  %v1224_v31 = vpop.permute.xlu1 %1223 }
 0x1cb   : > { %v1151_v62 = vpop.f32.mrf.mxu0 }
 0x1cc   : > { %v1152_v16 = vadd.f32 %v1151_v62, %v1099_v25  ;;  %v1214_v25 = vpop.permute.xlu0 %1213 }
 0x1cd   : > { %v1153_v19 = vpop.f32.mrf.mxu0 }
 0x1ce   : > { %v10247_v62 = vpop.permute.xlu1 %1228 }
 0x1cf   : > { %v1154_v51 = vpop.f32.mrf.mxu0 }
 0x1d2   : > { %v1190_v7 = vpop.f32.mrf.mxu1 }
 0x1d3   : > { %v10218_v26 = vadd.f32 %v1190_v7, %v1150_v8 }
 0x1d4   : > { %v1192_v17 = vpop.f32.mrf.mxu1 }
 0x1d5   : > { %14727 = vst [vmem:[#allocation60_spill] sm:$0xff] %v10218_v26  ;;  %v10220_v11 = vadd.f32 %v1192_v17, %v1152_v16  ;;  %1401 = vrot.lane.b32.xlu1 %v10218_v26, %s14590_s29  ;;  %v1205_v39 = vpack.c.bf16 %v10218_v26, %v10218_v26  ;;  %v1219_v16 = vpop.permute.xlu1 %1218 }
 0x1d6   : > { %v1194_v20 = vpop.f32.mrf.mxu1 }
 0x1d7   : > { %14728 = vst [vmem:[#allocation61_spill] sm:$0xff] %v10220_v11  ;;  %1403 = vrot.lane.b32.xlu0 %v10220_v11, %s14590_s29  ;;  %v1206_v37 = vpack.c.bf16 %v10220_v11, %v10220_v11  ;;  %v1250_v50 = vsel %vm1248_vm9, %v1205_v39, 0 }
 0x1d8   : > { %v1195_v52 = vpop.f32.mrf.mxu1 }
 0x1d9   : > { %8934 = vmatprep.subr.msk.bf16.mxu1 %vm1248_vm9, %v1206_v37  ;;  %1363 = vrot.lane.b32.xlu1 %v10218_v26, %s14588_s30 }
 0x1da   : > { %1266 = vmatpush1.bf16.msra.mxu1 %v1250_v50 }
 0x1db   : > { %1365 = vrot.lane.b32.xlu0 %v10220_v11, %s14588_s30  ;;  %1267 = vmatprep.subr.bf16.mxu1 %v10151_v38 }
 0x1de   : > { %1268 = vmatpush1.bf16.msra.mxu1 %v10164_v57 }
 0x1df   : > { %1269 = vmatprep.subr.bf16.mxu1 %v10168_v59 }
 0x1e2   : > { %1270 = vmatpush1.bf16.msra.mxu1 %v10188_v35 }
 0x1e5   : > { %8935 = vmatmul.mubr.msk.bf16.vlgmr.msra.gmra.mxu1 %vm1241_vm10, %v9211_v41 }
 0x1e6   : > { %1297 = vmatprep.mubr.bf16.mxu1 %v14724_v44 }
 0x1ed   : > { %8936 = vmatmul.mubr.msk.bf16.gmra.mxu1 %vm1241_vm10, %v9212_v5  ;;  %vm4755_vm10 = vcmp.lt.s32.totalorder %v9754_v10, 80 }
 0x1ee   : > { %2390 = vmatprep.mubr.bf16.mxu1 %v9216_v45 }
 0x2a5   : > { %v1289_v19 = vpop.f32.mrf.mxu1 }
 0x2a6   : > { %v1290_v51 = vadd.f32 %v1289_v19, %v1214_v25 }
 0x2a7   : > { %v1291_v8 = vpop.f32.mrf.mxu1 }
 0x2a8   : > { %v1308_v7 = vmul.f32 0.2, %v1290_v51  ;;  %v1292_v50 = vadd.f32 %v1291_v8, %v1214_v25 }
 0x2a9   : > { %v1293_v17 = vpop.f32.mrf.mxu1 }
 0x2aa   : > { %v10249_v39 = vmax.f32 %v1290_v51, %v1308_v7  ;;  %v1294_v20 = vadd.f32 %v1293_v17, %v1219_v16  ;;  %v1309_v5 = vmul.f32 0.2, %v1292_v50 }
 0x2ab   : > { %v1295_v41 = vpop.f32.mrf.mxu1 }
 0x2ac   : > { %14730 = vst [vmem:[#allocation62_spill] sm:$0xff] %v10249_v39  ;;  %v1310_v37 = vmul.f32 0.2, %v1294_v20  ;;  %1795 = vrot.lane.b32.xlu1 %v10249_v39, %s14592_s28  ;;  %v1296_v19 = vadd.f32 %v1295_v41, %v1219_v16  ;;  %v10275_v51 = vmax.f32 %v1292_v50, %v1309_v5 }
 0x2ad   : > { %v1299_v8 = vpop.f32.mrf.mxu1 }
 0x2ae   : > { %v10253_v52 = vmax.f32 %v1294_v20, %v1310_v37  ;;  %14732 = vst [vmem:[#allocation64_spill] sm:$0xff] %v10275_v51  ;;  %v1311_v7 = vmul.f32 0.2, %v1296_v19  ;;  %v1300_v17 = vadd.f32 %v1299_v8, %v1224_v31 }
 0x2af   : > { %v1301_v16 = vpop.f32.mrf.mxu1 }
 0x2b0   : > { %14731 = vst [vmem:[#allocation63_spill] sm:$0xff] %v10253_v52  ;;  %1797 = vrot.lane.b32.xlu0 %v10253_v52, %s14592_s28  ;;  %1743 = vrot.lane.b32.xlu1 %v10249_v39, %s14590_s29  ;;  %v10281_v25 = vmax.f32 %v1296_v19, %v1311_v7  ;;  %v1312_v37 = vmul.f32 0.2, %v1300_v17  ;;  %v1302_v7 = vadd.f32 %v1301_v16, %v1224_v31  ;;  %v10375_v16 = vpop.permute.xlu0 %1403 }
 0x2b1   : > { %v1303_v20 = vpop.f32.mrf.mxu1 }
 0x2b2   : > { %14733 = vst [vmem:[#allocation65_spill] sm:$0xff] %v10281_v25  ;;  %v1304_v50 = vadd.f32 %v1303_v20, %v10247_v62  ;;  %v10304_v41 = vmax.f32 %v1300_v17, %v1312_v37  ;;  %v1313_v17 = vmul.f32 0.2, %v1302_v7 }
 0x2b3   : > { %v1305_v8 = vpop.f32.mrf.mxu1 }
 0x2b4   : > { %1745 = vrot.lane.b32.xlu0 %v10253_v52, %s14590_s29  ;;  %1691 = vrot.lane.b32.xlu1 %v10249_v39, %s14588_s30  ;;  %14734 = vst [vmem:[#allocation66_spill] sm:$0xff] %v10304_v41  ;;  %v1314_v5 = vmul.f32 0.2, %v1304_v50  ;;  %v1306_v20 = vadd.f32 %v1305_v8, %v10247_v62  ;;  %v10337_v37 = vmax.f32 %v1302_v7, %v1313_v17  ;;  %v10369_v62 = vpop.permute.xlu1 %1401  ;;  %v10387_v7 = vpop.permute.xlu0 %1365 }
 0x2b5   : > { %v1405_v55 = vsel %vm671_vm1, %v10369_v62, %v10375_v16 }
 0x2b6   : > { %v10310_v19 = vmax.f32 %v1304_v50, %v1314_v5  ;;  %14737 = vst [vmem:[#allocation68_spill] sm:$0xff] %v10337_v37  ;;  %v1315_v50 = vmul.f32 0.2, %v1306_v20  ;;  %v1427_v27 = vmul.f32 %v9858_v3, %v1405_v55 }
 0x2b8   : > { %1693 = vrot.lane.b32.xlu0 %v10253_v52, %s14588_s30  ;;  %2011 = vrot.lane.b32.xlu1 %v10249_v39, %s14545_s24  ;;  %14735 = vst [vmem:[#allocation67_spill] sm:$0xff] %v10310_v19  ;;  %v10343_v31 = vmax.f32 %v1306_v20, %v1315_v50  ;;  %v10381_v5 = vpop.permute.xlu1 %1363 }
 0x2ba   : > { %14738 = vst [vmem:[#allocation69_spill] sm:$0xff] %v10343_v31 }
 0x2bc   : > { %2013 = vrot.lane.b32.xlu0 %v10253_v52, %s14545_s24  ;;  %1639 = vrot.lane.b32.xlu1 %v10249_v39, %s14586_s0 }
 0x2c0   : > { %1641 = vrot.lane.b32.xlu0 %v10253_v52, %s14586_s0  ;;  %1959 = vrot.lane.b32.xlu1 %v10249_v39, %s14547_s17 }
 0x2c4   : > { %1961 = vrot.lane.b32.xlu0 %v10253_v52, %s14547_s17  ;;  %1803 = vrot.lane.b32.xlu1 %v10275_v51, %s14592_s28 }
 0x2c8   : > { %1805 = vrot.lane.b32.xlu0 %v10281_v25, %s14592_s28  ;;  %1751 = vrot.lane.b32.xlu1 %v10275_v51, %s14590_s29 }
 0x2cc   : > { %1753 = vrot.lane.b32.xlu0 %v10281_v25, %s14590_s29  ;;  %1699 = vrot.lane.b32.xlu1 %v10275_v51, %s14588_s30 }
 0x2d0   : > { %1701 = vrot.lane.b32.xlu0 %v10281_v25, %s14588_s30  ;;  %2019 = vrot.lane.b32.xlu1 %v10275_v51, %s14545_s24 }
 0x2d4   : > { %2021 = vrot.lane.b32.xlu0 %v10281_v25, %s14545_s24  ;;  %1647 = vrot.lane.b32.xlu1 %v10275_v51, %s14586_s0 }
 0x2d8   : > { %1649 = vrot.lane.b32.xlu0 %v10281_v25, %s14586_s0  ;;  %1967 = vrot.lane.b32.xlu1 %v10275_v51, %s14547_s17 }
 0x2dc   : > { %1969 = vrot.lane.b32.xlu0 %v10281_v25, %s14547_s17  ;;  %1799 = vrot.lane.b32.xlu1 %v10304_v41, %s14592_s28 }
 0x2e0   : > { %1801 = vrot.lane.b32.xlu0 %v10310_v19, %s14592_s28  ;;  %1747 = vrot.lane.b32.xlu1 %v10304_v41, %s14590_s29 }
 0x2e4   : > { %1749 = vrot.lane.b32.xlu0 %v10310_v19, %s14590_s29  ;;  %1695 = vrot.lane.b32.xlu1 %v10304_v41, %s14588_s30 }
 0x2e8   : > { %1697 = vrot.lane.b32.xlu0 %v10310_v19, %s14588_s30  ;;  %2015 = vrot.lane.b32.xlu1 %v10304_v41, %s14545_s24 }
 0x2ec   : > { %2017 = vrot.lane.b32.xlu0 %v10310_v19, %s14545_s24  ;;  %1643 = vrot.lane.b32.xlu1 %v10304_v41, %s14586_s0 }
 0x2f0   : > { %1645 = vrot.lane.b32.xlu0 %v10310_v19, %s14586_s0  ;;  %1963 = vrot.lane.b32.xlu1 %v10304_v41, %s14547_s17 }
 0x2f4   : > { %1965 = vrot.lane.b32.xlu0 %v10310_v19, %s14547_s17  ;;  %1911 = vrot.lane.b32.xlu1 %v10304_v41, %s14736_s25 }
 0x2f8   : > { %1913 = vrot.lane.b32.xlu0 %v10310_v19, %s14736_s25  ;;  %1807 = vrot.lane.b32.xlu1 %v10337_v37, %s14592_s28 }
 0x2fc   : > { %1809 = vrot.lane.b32.xlu0 %v10343_v31, %s14592_s28  ;;  %1907 = vrot.lane.b32.xlu1 %v10249_v39, %s14736_s25 }
 0x300   : > { %1909 = vrot.lane.b32.xlu0 %v10253_v52, %s14736_s25  ;;  %1755 = vrot.lane.b32.xlu1 %v10337_v37, %s14590_s29 }
 0x304   : > { %1757 = vrot.lane.b32.xlu0 %v10343_v31, %s14590_s29  ;;  %1703 = vrot.lane.b32.xlu1 %v10337_v37, %s14588_s30 }
 0x308   : > { %1705 = vrot.lane.b32.xlu0 %v10343_v31, %s14588_s30  ;;  %2023 = vrot.lane.b32.xlu1 %v10337_v37, %s14545_s24 }
 0x30c   : > { %2025 = vrot.lane.b32.xlu0 %v10343_v31, %s14545_s24  ;;  %1651 = vrot.lane.b32.xlu1 %v10337_v37, %s14586_s0 }
 0x310   : > { %1917 = vrot.lane.b32.xlu0 %v10281_v25, %s14736_s25  ;;  %1971 = vrot.lane.b32.xlu1 %v10337_v37, %s14547_s17 }
 0x314   : > { %1653 = vrot.lane.b32.xlu0 %v10343_v31, %s14586_s0  ;;  %1919 = vrot.lane.b32.xlu1 %v10337_v37, %s14736_s25 }
 0x318   : > { %1327 = vrot.lane.b32.xlu0 %v10220_v11, %s14586_s0  ;;  %1915 = vrot.lane.b32.xlu1 %v10275_v51, %s14736_s25 }
 0x31c   : > { %1973 = vrot.lane.b32.xlu0 %v10343_v31, %s14547_s17  ;;  %1325 = vrot.lane.b32.xlu1 %v10218_v26, %s14586_s0 }
 0x31e   : > { %v10389_v8 = vpop.permute.xlu1 %1795 }
 0x320   : > { %1861 = vrot.lane.b32.xlu0 %v10310_v19, %s14739_s26  ;;  %1859 = vrot.lane.b32.xlu1 %v10304_v41, %s14739_s26 }
 0x322   : > { %v10395_v17 = vpop.permute.xlu0 %1797  ;;  %v10397_v20 = vpop.permute.xlu1 %1743 }
 0x324   : > { %1921 = vrot.lane.b32.xlu0 %v10343_v31, %s14736_s25  ;;  %1867 = vrot.lane.b32.xlu1 %v10337_v37, %s14739_s26  ;;  %v2616_v37 = vld [vmem:[%s14463_s5 + $0x18] sm:$0xff] }
 0x326   : > { %v10403_v50 = vpop.permute.xlu0 %1745  ;;  %v10405_v35 = vpop.permute.xlu1 %1691 }
 0x328   : > { %1857 = vrot.lane.b32.xlu0 %v10253_v52, %s14739_s26  ;;  %1855 = vrot.lane.b32.xlu1 %v10249_v39, %s14739_s26 }
 0x32a   : > { %v10411_v59 = vpop.permute.xlu0 %1693  ;;  %v10413_v42 = vpop.permute.xlu1 %2011 }
 0x32c   : > { %1869 = vrot.lane.b32.xlu0 %v10343_v31, %s14739_s26  ;;  %1863 = vrot.lane.b32.xlu1 %v10275_v51, %s14739_s26  ;;  %v9491_v31 = vmov 1  }
 0x32d   : > { %9188 = vset.pattern.permute.xlu1 %v9491_v31  ;;  %9189 = vset.pattern.permute.xlu0 %v9491_v31  ;;  %v2614_v31 = vld [vmem:[%s14463_s5 + $0x8] sm:$0xff] }
 0x32e   : > { %v10419_v57 = vpop.permute.xlu0 %2013  ;;  %v10421_v38 = vpop.permute.xlu1 %1639 }
 0x330   : > { %1865 = vrot.lane.b32.xlu0 %v10281_v25, %s14739_s26  ;;  %1487 = vrot.lane.b32.xlu1 %v10218_v26, %s14739_s26 }
 0x332   : > { %v10427_v58 = vpop.permute.xlu0 %1641  ;;  %v10429_v34 = vpop.permute.xlu1 %1959 }
 0x333   : > { %14740 = vst [vmem:[#allocation70_spill] sm:$0xff] %v10429_v34 }
 0x334   : > { %1489 = vrot.lane.b32.xlu0 %v10220_v11, %s14739_s26  ;;  %1601 = vrot.lane.b32.xlu1 %v10218_v26, %s14545_s24 }
 0x336   : > { %v10438_v61 = vpop.permute.xlu0 %1961  ;;  %v10440_v4 = vpop.permute.xlu1 %1803 }
 0x337   : > { %v1811_v1 = vsel %vm725_vm0, %v10389_v8, %v10440_v4 }
 0x338   : > { %1603 = vrot.lane.b32.xlu0 %v10220_v11, %s14545_s24  ;;  %1563 = vrot.lane.b32.xlu1 %v10218_v26, %s14547_s17  ;;  %s14839_s24 = smov 17  }
 0x33a   : > { %v1806_v52 = vpop.permute.xlu0 %1805  ;;  %v10446_v39 = vpop.permute.xlu1 %1751 }
 0x33c   : > { %1565 = vrot.lane.b32.xlu0 %v10220_v11, %s14547_s17  ;;  %1439 = vrot.lane.b32.xlu1 %v10218_v26, %s14592_s28  ;;  %s14838_s17 = smov 16  }
 0x33e   : > { %v10452_v45 = vpop.permute.xlu0 %1753  ;;  %v10454_v22 = vpop.permute.xlu1 %1699 }
 0x340   : > { %1441 = vrot.lane.b32.xlu0 %v10220_v11, %s14592_s28  ;;  %1525 = vrot.lane.b32.xlu1 %v10218_v26, %s14736_s25 }
 0x342   : > { %v10460_v49 = vpop.permute.xlu0 %1701  ;;  %v10462_v25 = vpop.permute.xlu1 %2019 }
 0x344   : > { %1527 = vrot.lane.b32.xlu0 %v10220_v11, %s14736_s25  ;;  %v2615_v11 = vld [vmem:[%s14463_s5 + $0x10] sm:$0xff] }
 0x345   : > { %2629 = vperm.xlu1 %9188, %v2615_v11  }
 0x346   : > { %v10466_v51 = vpop.permute.xlu0 %2021  ;;  %v10468_v40 = vpop.permute.xlu1 %1647 }
 0x348   : > { %2634 = vperm.xlu0 %9189, %v2616_v37  }
 0x349   : > { %2619 = vperm.xlu1 %9188, %v2613_v21  }
 0x34a   : > { %v10470_v23 = vpop.permute.xlu0 %1649  ;;  %v10472_v19 = vpop.permute.xlu1 %1967 }
 0x34d   : > { %2624 = vperm.xlu1 %9188, %v2614_v31   ;;  %v1812_v31 = vsel %vm725_vm0, %v10395_v17, %v1806_v52 }
 0x34e   : > { %v10474_v41 = vpop.permute.xlu0 %1969  ;;  %v1800_v9 = vpop.permute.xlu1 %1799 }
 0x352   : > { %v1802_v28 = vpop.permute.xlu0 %1801  ;;  %v10476_v26 = vpop.permute.xlu1 %1747 }
 0x356   : > { %v10478_v60 = vpop.permute.xlu0 %1749  ;;  %v10480_v63 = vpop.permute.xlu1 %1695 }
 0x35a   : > { %v10488_v18 = vpop.permute.xlu0 %1697  ;;  %v10490_v6 = vpop.permute.xlu1 %2015 }
 0x35e   : > { %v10495_v24 = vpop.permute.xlu0 %2017  ;;  %v10497_v43 = vpop.permute.xlu1 %1643 }
 0x362   : > { %v10502_v54 = vpop.permute.xlu0 %1645  ;;  %v10504_v33 = vpop.permute.xlu1 %1963 }
 0x366   : > { %v10506_v11 = vpop.permute.xlu0 %1965  ;;  %v10508_v37 = vpop.permute.xlu1 %1911 }
 0x367   : > { %14742 = vst [vmem:[#allocation71_spill] sm:$0xff] %v10506_v11  ;;  %14743 = vst [vmem:[#allocation72_spill] sm:$0xff] %v10508_v37 }
 0x36a   : > { %v10513_v29 = vpop.permute.xlu0 %1913  ;;  %v1808_v21 = vpop.permute.xlu1 %1807 }
 0x36b   : > { %14744 = vst [vmem:[#allocation73_spill] sm:$0xff] %v10513_v29  ;;  %v1813_v37 = vsel %vm725_vm0, %v1800_v9, %v1808_v21  ;;  %v1817_v56 = vsel %vm725_vm0, %v1808_v21, %v1800_v9  ;;  %v1406_v29 = vsel %vm671_vm1, %v10375_v16, %v10369_v62  ;;  %v1816_v9 = vsel %vm725_vm0, %v1806_v52, %v10395_v17 }
 0x36c   : > { %v1833_v21 = vmul.f32 %v1827_v53, %v1812_v31  ;;  %v1834_v55 = vmul.f32 %v1823_v12, %v1817_v56  ;;  %v1835_v16 = vmul.f32 %v1827_v53, %v1813_v37  ;;  %v1457_v52 = vmul.f32 %v9808_v36, %v9828_v47  ;;  %v8944_v56 = vld [vmem:[%s14459_s1 + $0x1] ss:$8 sm:$0x3] }
 0x36d   : > { %v1832_v17 = vmul.f32 %v1823_v12, %v1816_v9  ;;  %v1771_v47 = vrot.slane %v8945_v46, %v9769_v14 }
 0x36e   : > { %v1810_v44 = vpop.permute.xlu0 %1809  ;;  %v10537_v11 = vpop.permute.xlu1 %1907 }
 0x36f   : > { %14745 = vst [vmem:[#allocation74_spill] sm:$0xff] %v10537_v11  ;;  %v1814_v62 = vsel %vm725_vm0, %v1802_v28, %v1810_v44  ;;  %v1818_v3 = vsel %vm725_vm0, %v1810_v44, %v1802_v28  ;;  %v10551_v11 = vmul.f32 %v9805_v32, %v9832_v48  ;;  %v1815_v28 = vsel %vm725_vm0, %v10440_v4, %v10389_v8 }
 0x370   : > { %v1836_v30 = vmul.f32 %v1823_v12, %v1818_v3  ;;  %v1837_v34 = vmul.f32 %v1827_v53, %v1814_v62  ;;  %v1831_v44 = vmul.f32 %v1827_v53, %v1811_v1  ;;  %v10565_v3 = vmul.f32 %v9855_v2, %v1406_v29  ;;  %v8950_v53 = vld [vmem:[%s14459_s1 + $0x10] ss:$8 sm:$0x3] }
 0x371   : > { %v1775_v32 = vrot.slane %v8945_v46, %v9767_v13  ;;  %v10572_v1 = vpack.c.bf16 %v1457_v52, %v1427_v27  ;;  %v1830_v4 = vmul.f32 %v1823_v12, %v1815_v28  ;;  %v1764_v2 = vsel %vm671_vm1, %v10452_v45, %v10403_v50 }
 0x372   : > { %v2300_v37 = vpack.c.bf16 %v1836_v30, %v1834_v55  ;;  %v10562_v31 = vpop.permute.xlu0 %1909  ;;  %v1756_v62 = vpop.permute.xlu1 %1755  ;;  %v2301_v48 = vpack.c.bf16 %v1837_v34, %v1835_v16  ;;  %v1760_v30 = vsel %vm671_vm1, %v10403_v50, %v10452_v45  ;;  %v2299_v29 = vpack.c.bf16 %v1833_v21, %v1831_v44 }
 0x373   : > { %v10583_v34 = vrot.slane %v8944_v56, %v9769_v14  ;;  %v1723_v8 = vrot.slane %v8944_v56, %v9767_v13  ;;  %v1761_v27 = vsel %vm671_vm1, %v10476_v26, %v1756_v62  ;;  %v1765_v12 = vsel %vm671_vm1, %v1756_v62, %v10476_v26 }
 0x374   : > { %2358 = vmatprep.subr.bf16.mxu1 %v2301_v48  ;;  %v2298_v9 = vpack.c.bf16 %v1832_v17, %v1830_v4  ;;  %v1759_v50 = vsel %vm671_vm1, %v10397_v20, %v10446_v39  ;;  %v1763_v45 = vsel %vm671_vm1, %v10446_v39, %v10397_v20  ;;  %v10601_v21 = vrot.slane %v8950_v53, %v9769_v14 }
 0x375   : > { %2359 = vmatpush1.bf16.msra.mxu1 %v2300_v37  ;;  %v1780_v16 = vmul.f32 %v1771_v47, %v1764_v2  ;;  %v1781_v26 = vmul.f32 %v1775_v32, %v1760_v30  ;;  %v1782_v44 = vmul.f32 %v1771_v47, %v1765_v12  ;;  %v1783_v17 = vmul.f32 %v1775_v32, %v1761_v27 }
 0x376   : > { %v1758_v46 = vpop.permute.xlu0 %1757  ;;  %2360 = vmatprep.subr.bf16.mxu1 %v2299_v29  ;;  %v1704_v55 = vpop.permute.xlu1 %1703  ;;  %v1778_v20 = vmul.f32 %v1771_v47, %v1763_v45  ;;  %v1779_v37 = vmul.f32 %v1775_v32, %v1759_v50  ;;  %v1707_v62 = vsel %vm617_vm2, %v10405_v35, %v10454_v22  ;;  %v2043_v48 = vrot.slane %v8950_v53, %v9767_v13 }
 0x377   : > { %v1762_v52 = vsel %vm671_vm1, %v10478_v60, %v1758_v46  ;;  %v1766_v28 = vsel %vm671_vm1, %v1758_v46, %v10478_v60  ;;  %v1711_v4 = vsel %vm617_vm2, %v10454_v22, %v10405_v35  ;;  %v1708_v60 = vsel %vm617_vm2, %v10411_v59, %v10460_v49 }
 0x378   : > { %v1784_v56 = vmul.f32 %v1771_v47, %v1766_v28  ;;  %v1785_v39 = vmul.f32 %v1775_v32, %v1762_v52  ;;  %v2294_v29 = vpack.c.bf16 %v1780_v16, %v1778_v20  ;;  %v2032_v53 = vsel %vm949_vm7, %v10466_v51, %v10419_v57 }
 0x379   : > { %2361 = vmatpush1.bf16.msra.mxu1 %v2298_v9  ;;  %v1709_v27 = vsel %vm617_vm2, %v10480_v63, %v1704_v55  ;;  %v2295_v50 = vpack.c.bf16 %v1781_v26, %v1779_v37  ;;  %v1712_v45 = vsel %vm617_vm2, %v10460_v49, %v10411_v59  ;;  %v1729_v46 = vmul.f32 %v1723_v8, %v1708_v60 }
 0x37a   : > { %v2296_v47 = vpack.c.bf16 %v1784_v56, %v1782_v44  ;;  %v1706_v32 = vpop.permute.xlu0 %1705  ;;  %v2024_v30 = vpop.permute.xlu1 %2023  ;;  %v2297_v2 = vpack.c.bf16 %v1785_v39, %v1783_v17  ;;  %v2031_v16 = vsel %vm949_vm7, %v10462_v25, %v10413_v42  ;;  %v2028_v26 = vsel %vm949_vm7, %v10419_v57, %v10466_v51 }
 0x37b   : > { %v1710_v35 = vsel %vm617_vm2, %v10488_v18, %v1706_v32  ;;  %v1714_v22 = vsel %vm617_vm2, %v1706_v32, %v10488_v18  ;;  %v2029_v9 = vsel %vm949_vm7, %v10490_v6, %v2024_v30  ;;  %v2033_v18 = vsel %vm949_vm7, %v2024_v30, %v10490_v6 }
 0x37c   : > { %v1733_v12 = vmul.f32 %v1723_v8, %v1710_v35  ;;  %2362 = vmatprep.subr.bf16.mxu1 %v2297_v2  ;;  %v2049_v52 = vmul.f32 %v2043_v48, %v2032_v53  ;;  %v1713_v59 = vsel %vm617_vm2, %v1704_v55, %v10480_v63  ;;  %v1731_v49 = vmul.f32 %v1723_v8, %v1709_v27  ;;  %v1638_v63 = vld [vmem:[%s14459_s1] ss:$8 sm:$0x3] }
 0x37d   : > { %2363 = vmatpush1.bf16.msra.mxu1 %v2296_v47  ;;  %v1732_v17 = vmul.f32 %v10583_v34, %v1714_v22  ;;  %v2050_v56 = vmul.f32 %v10601_v21, %v2029_v9  ;;  %v2051_v51 = vmul.f32 %v2043_v48, %v2033_v18  ;;  %v1727_v37 = vmul.f32 %v1723_v8, %v1707_v62 }
 0x37e   : > { %v2026_v28 = vpop.permute.xlu0 %2025  ;;  %2364 = vmatprep.subr.bf16.mxu1 %v2295_v50  ;;  %v1652_v44 = vpop.permute.xlu1 %1651  ;;  %v2293_v20 = vpack.c.bf16 %v1733_v12, %v1731_v49  ;;  %v1728_v60 = vmul.f32 %v10583_v34, %v1712_v45  ;;  %v2027_v47 = vsel %vm949_vm7, %v10413_v42, %v10462_v25  ;;  %v1730_v32 = vmul.f32 %v10583_v34, %v1713_v59  ;;  %v8949_v59 = vld [vmem:[%s14459_s1 + $0x7] ss:$8 sm:$0x3] }
 0x37f   : > { %v2030_v6 = vsel %vm949_vm7, %v10495_v24, %v2026_v28  ;;  %v2034_v57 = vsel %vm949_vm7, %v2026_v28, %v10495_v24  ;;  %v2047_v24 = vmul.f32 %v2043_v48, %v2031_v16  ;;  %v2048_v30 = vmul.f32 %v10601_v21, %v2028_v26 }
 0x380   : > { %v2052_v55 = vmul.f32 %v10601_v21, %v2030_v6  ;;  %v2053_v39 = vmul.f32 %v2043_v48, %v2034_v57  ;;  %v1367_v8 = vsel %vm617_vm2, %v10381_v5, %v10387_v7  ;;  %v1726_v62 = vmul.f32 %v10583_v34, %v1711_v4 }
 0x381   : > { %2365 = vmatpush1.bf16.msra.mxu1 %v2294_v29  ;;  %v1667_v42 = vrot.slane %v1638_v63, %v9769_v14  ;;  %v2292_v25 = vpack.c.bf16 %v1732_v17, %v1730_v32  ;;  %v2046_v48 = vmul.f32 %v10601_v21, %v2027_v47  ;;  %v1656_v29 = vsel %vm563_vm3, %v10427_v58, %v10470_v23 }
 0x382   : > { %v2320_v2 = vpack.c.bf16 %v2052_v55, %v2050_v56  ;;  %v10675_v53 = vpop.permute.xlu0 %1917  ;;  %2366 = vmatprep.subr.bf16.mxu1 %v2293_v20  ;;  %v1972_v27 = vpop.permute.xlu1 %1971  ;;  %v2321_v35 = vpack.c.bf16 %v2053_v39, %v2051_v51  ;;  %v2291_v22 = vpack.c.bf16 %v1729_v46, %v1727_v37  ;;  %v2319_v12 = vpack.c.bf16 %v2049_v52, %v2047_v24 }
 0x383   : > { %v1671_v9 = vrot.slane %v1638_v63, %v9767_v13  ;;  %v1657_v50 = vsel %vm563_vm3, %v10497_v43, %v1652_v44  ;;  %v1661_v34 = vsel %vm563_vm3, %v1652_v44, %v10497_v43  ;;  %v2290_v21 = vpack.c.bf16 %v1728_v60, %v1726_v62  ;;  %v14746_v60 = vld [vmem:[#allocation70_spill] sm:$0xff] }
 0x384   : > { %2423 = vmatprep.subr.bf16.mxu0 %v2321_v35  ;;  %v2318_v4 = vpack.c.bf16 %v2048_v30, %v2046_v48  ;;  %v1655_v45 = vsel %vm563_vm3, %v10421_v38, %v10468_v40  ;;  %v1660_v18 = vsel %vm563_vm3, %v10470_v23, %v10427_v58  ;;  %v1678_v49 = vmul.f32 %v1667_v42, %v1661_v34  ;;  %v9213_v23 = vld [vmem:[%s14741_s7 + $0x8] ss:$12 sps:$4 sm:$0xff]  }
 0x385   : > { %2367 = vmatpush1.bf16.msra.mxu1 %v2292_v25  ;;  %2424 = vmatpush1.bf16.msra.mxu0 %v2320_v2  ;;  %v1677_v43 = vmul.f32 %v1671_v9, %v1656_v29  ;;  %v1679_v28 = vmul.f32 %v1671_v9, %v1657_v50  ;;  %v1387_v58 = vmul.f32 %v9923_v15, %v9907_v0 }
 0x386   : > { %v1654_v46 = vpop.permute.xlu0 %1653  ;;  %2368 = vmatprep.subr.bf16.mxu1 %v2291_v22  ;;  %2425 = vmatprep.subr.bf16.mxu0 %v2319_v12  ;;  %v10699_v16 = vpop.permute.xlu1 %1919  ;;  %v10721_v56 = vpack.c.bf16 %v10551_v11, %v10565_v3  ;;  %v1675_v6 = vmul.f32 %v1671_v9, %v1655_v45  ;;  %v1368_v11 = vsel %vm617_vm2, %v10387_v7, %v10381_v5  ;;  %v9220_v22 = vld [vmem:[%s14741_s7 + $0x20] ss:$12 sps:$4 sm:$0xff]  }
 0x387   : > { %v1658_v26 = vsel %vm563_vm3, %v10502_v54, %v1654_v46  ;;  %v1662_v52 = vsel %vm563_vm3, %v1654_v46, %v10502_v54  ;;  %v1659_v54 = vsel %vm563_vm3, %v10468_v40, %v10421_v38  ;;  %v1389_v3 = vmul.f32 %v9923_v15, %v1367_v8  ;;  %v14748_v8 = vld [vmem:[#allocation71_spill] sm:$0xff]  ;;  %v14750_v12 = vld [vmem:[#allocation16_spill] sm:$0xff] }
 0x388   : > { %v1680_v44 = vmul.f32 %v1667_v42, %v1662_v52  ;;  %v1681_v17 = vmul.f32 %v1671_v9, %v1658_v26  ;;  %v1676_v55 = vmul.f32 %v1667_v42, %v1660_v18  ;;  %v1987_v39 = vrot.slane %v8949_v59, %v9769_v14  ;;  %v14751_v9 = vld [vmem:[#allocation17_spill] sm:$0xff] }
 0x389   : > { %2369 = vmatpush1.bf16.msra.mxu1 %v2290_v21  ;;  %2426 = vmatpush1.bf16.msra.mxu0 %v2318_v4  ;;  %v1991_v38 = vrot.slane %v8949_v59, %v9767_v13  ;;  %v1980_v40 = vsel %vm895_vm4, %v10474_v41, %v10438_v61  ;;  %v2287_v20 = vpack.c.bf16 %v1677_v43, %v1675_v6  ;;  %v14752_v4 = vld [vmem:[#allocation12_spill] sm:$0xff]  ;;  %v14753_v43 = vld [vmem:[#allocation15_spill] sm:$0xff]  ;;  %v14757_v6 = vld [vmem:[#allocation74_spill] sm:$0xff] }
 0x38a   : > { %v2288_v57 = vpack.c.bf16 %v1680_v44, %v1678_v49  ;;  %v10727_v63 = vpop.permute.xlu0 %1327  ;;  %2507 = vmatprep.subr.bf16.mxu0 %v10572_v1  ;;  %v10730_v51 = vpop.permute.xlu1 %1915  ;;  %v2289_v0 = vpack.c.bf16 %v1681_v17, %v1679_v28  ;;  %v1674_v37 = vmul.f32 %v1667_v42, %v1659_v54  ;;  %v1977_v5 = vsel %vm895_vm4, %v10504_v33, %v1972_v27  ;;  %v14755_v44 = vld [vmem:[#allocation72_spill] sm:$0xff] }
 0x38b   : > { %v1981_v7 = vsel %vm895_vm4, %v1972_v27, %v10504_v33  ;;  %v1975_v47 = vsel %vm895_vm4, %v14746_v60, %v10472_v19  ;;  %v1979_v32 = vsel %vm895_vm4, %v10472_v19, %v14746_v60  ;;  %v1976_v24 = vsel %vm895_vm4, %v10438_v61, %v10474_v41  ;;  %v14747_v33 = vld [vmem:[#allocation13_spill] sm:$0xff]  ;;  %v9223_v54 = vld [vmem:[%s14756_s6 + $0x4] ss:$12 sps:$4 sm:$0xff]  }
 0x38c   : > { %2370 = vmatprep.subr.bf16.mxu1 %v2289_v0  ;;  %8957 = vmatmul.mubr.msk.bf16.vlgmr.msra.gmra.mxu0 %vm1111_vm8, %v9213_v23  ;;  %v2286_v27 = vpack.c.bf16 %v1676_v55, %v1674_v37  ;;  %v1997_v35 = vmul.f32 %v1991_v38, %v1980_v40  ;;  %v14749_v42 = vmov 0   ;;  %v8948_v61 = vld [vmem:[%s14459_s1 + $0x6] ss:$8 sm:$0x3]  ;;  %v1998_v41 = vmul.f32 %v1987_v39, %v1977_v5  ;;  %v14759_v55 = vld [vmem:[#allocation14_spill] sm:$0xff] }
 0x38d   : > { %2371 = vmatpush1.bf16.msra.mxu1 %v2288_v57  ;;  %2508 = vmatpush1.bf16.msra.mxu0 %v10721_v56  ;;  %v1999_v25 = vmul.f32 %v1991_v38, %v1981_v7  ;;  %v1386_v50 = vmul.f32 %v14751_v9, %v14750_v12  ;;  %v1388_v34 = vmul.f32 %v14751_v9, %v1368_v11  ;;  %v14760_v60 = vld [vmem:[#allocation73_spill] sm:$0xff] }
 0x38e   : > { %v1974_v30 = vpop.permute.xlu0 %1973  ;;  %2372 = vmatprep.subr.bf16.mxu1 %v2287_v20  ;;  %2509 = vmatprep.subr.bf16.mxu0 %v14747_v33  ;;  %v1326_v2 = vpop.permute.xlu1 %1325  ;;  %v1996_v21 = vmul.f32 %v1987_v39, %v1976_v24  ;;  %v1995_v45 = vmul.f32 %v1991_v38, %v1979_v32  ;;  %v10784_v59 = vpack.c.bf16 %v1389_v3, %v1387_v58 }
 0x38f   : > { %v1978_v62 = vsel %vm895_vm4, %v14748_v8, %v1974_v30  ;;  %v1982_v19 = vsel %vm895_vm4, %v1974_v30, %v14748_v8  ;;  %2453 = vmatprep.mubr.bf16.mxu0 %v14749_v42  ;;  %v1994_v49 = vmul.f32 %v1987_v39, %v1975_v47  ;;  %v1935_v28 = vrot.slane %v8948_v61, %v9769_v14  ;;  %v14761_v30 = vld [vmem:[#allocation23_spill] sm:$0xff] }
 0x390   : > { %v2000_v48 = vmul.f32 %v1987_v39, %v1978_v62  ;;  %v2001_v29 = vmul.f32 %v1991_v38, %v1982_v19  ;;  %14754 = vst [vmem:[#allocation70_spill] sm:$0xff] %v10784_v59  ;;  %v1925_v17 = vsel %vm841_vm5, %v14755_v44, %v10699_v16  ;;  %v1929_v23 = vsel %vm841_vm5, %v10699_v16, %v14755_v44  ;;  %v14762_v62 = vld [vmem:[#allocation18_spill] sm:$0xff]  ;;  %v8947_v19 = vld [vmem:[%s14459_s1 + $0x5] ss:$8 sm:$0x3] }
 0x391   : > { %2373 = vmatpush1.bf16.msra.mxu1 %v2286_v27  ;;  %2510 = vmatpush1.bf16.msra.mxu0 %v14752_v4  ;;  %v1939_v58 = vrot.slane %v8948_v61, %v9767_v13  ;;  %v1927_v57 = vsel %vm841_vm5, %v10730_v51, %v14757_v6  ;;  %v2315_v0 = vpack.c.bf16 %v1997_v35, %v1995_v45 }
 0x392   : > { %v2316_v46 = vpack.c.bf16 %v2000_v48, %v1998_v41  ;;  %v10781_v18 = vpop.permute.xlu0 %1861  ;;  %2511 = vmatprep.subr.bf16.mxu0 %v14753_v43  ;;  %v1860_v26 = vpop.permute.xlu1 %1859  ;;  %v2317_v52 = vpack.c.bf16 %v2001_v29, %v1999_v25  ;;  %v10804_v11 = vpack.c.bf16 %v1388_v34, %v1386_v50  ;;  %v2314_v3 = vpack.c.bf16 %v1996_v21, %v1994_v49  ;;  %v14763_v25 = vld [vmem:[#allocation21_spill] sm:$0xff]  ;;  %v14765_v50 = vld [vmem:[#allocation22_spill] sm:$0xff] }
 0x393   : > { %v1329_v16 = vsel %vm563_vm3, %v1326_v2, %v10727_v63  ;;  %v1928_v39 = vsel %vm841_vm5, %v10675_v53, %v10562_v31  ;;  %v1946_v38 = vmul.f32 %v1935_v28, %v1925_v17  ;;  %v1947_v40 = vmul.f32 %v1939_v58, %v1929_v23 }
 0x394   : > { %2374 = vmatprep.subr.bf16.mxu1 %v2317_v52  ;;  %8958 = vmatmul.mubr.msk.bf16.gmra.mxu0 %vm1111_vm8, %v9220_v22  ;;  %14758 = vst [vmem:[#allocation71_spill] sm:$0xff] %v10804_v11  ;;  %v1923_v5 = vsel %vm841_vm5, %v14757_v6, %v10730_v51  ;;  %v1943_v7 = vmul.f32 %v1939_v58, %v1927_v57 }
 0x395   : > { %2375 = vmatpush2.bf16.msra.mxu1 %v2316_v46  ;;  %2512 = vmatpush1.bf16.msra.mxu0 %v14759_v55  ;;  %v1330_v24 = vsel %vm563_vm3, %v10727_v63, %v1326_v2  ;;  %v1351_v27 = vmul.f32 %v14761_v30, %v1329_v16  ;;  %v1381_v51 = vmul.f32 %v9923_v15, %v14762_v62  ;;  %v14764_v15 = vld [vmem:[#allocation19_spill] sm:$0xff] }
 0x396   : > { %v1922_v20 = vpop.permute.xlu0 %1921  ;;  %2376 = vmatprep.subr.bf16.mxu1 %v2315_v0  ;;  %2513 = vmatprep.subr.bf16.mxu0 %v10784_v59  ;;  %v1868_v37 = vpop.permute.xlu1 %1867  ;;  %v1924_v61 = vsel %vm841_vm5, %v10562_v31, %v10675_v53  ;;  %v1945_v63 = vmul.f32 %v1939_v58, %v1928_v39  ;;  %v1380_v22 = vmul.f32 %v14751_v9, %v14764_v15  ;;  %v14767_v9 = vld [vmem:[#allocation20_spill] sm:$0xff] }
 0x397   : > { %v1926_v47 = vsel %vm841_vm5, %v14760_v60, %v1922_v20  ;;  %v1930_v32 = vsel %vm841_vm5, %v1922_v20, %v14760_v60  ;;  %2539 = vmatprep.mubr.bf16.mxu0 %v9223_v54  ;;  %v1942_v12 = vmul.f32 %v1935_v28, %v1923_v5  ;;  %v1350_v34 = vmul.f32 %v14765_v50, %v1330_v24  ;;  %v14770_v24 = vld [vmem:[#allocation24_spill] sm:$0xff]  ;;  %v14777_v50 = vld [vmem:[#allocation41_spill] sm:$0xff] }
 0x398   : > { %v1948_v35 = vmul.f32 %v1935_v28, %v1926_v47  ;;  %v1949_v8 = vmul.f32 %v1939_v58, %v1930_v32  ;;  %v1883_v21 = vrot.slane %v8947_v19, %v9769_v14  ;;  %v1887_v45 = vrot.slane %v8947_v19, %v9767_v13  ;;  %v14772_v19 = vld [vmem:[#allocation45_spill] sm:$0xff] }
 0x399   : > { %2377 = vmatpush2.bf16.msra.mxu1 %v2314_v3  ;;  %2514 = vmatpush1.bf16.msra.mxu0 %v10804_v11  ;;  %v2311_v46 = vpack.c.bf16 %v1945_v63, %v1943_v7  ;;  %v10845_v31 = vpack.c.bf16 %v1381_v51, %v1351_v27  ;;  %v1944_v53 = vmul.f32 %v1935_v28, %v1924_v61  ;;  %v14773_v63 = vld [vmem:[#allocation68_spill] sm:$0xff] }
 0x39a   : > { %v2312_v2 = vpack.c.bf16 %v1948_v35, %v1946_v38  ;;  %v1858_v41 = vpop.permute.xlu0 %1857  ;;  %2515 = vmatprep.subr.bf16.mxu0 %v14763_v25  ;;  %v1856_v48 = vpop.permute.xlu1 %1855  ;;  %v2313_v29 = vpack.c.bf16 %v1949_v8, %v1947_v40  ;;  %v1873_v52 = vsel %vm787_vm6, %v1860_v26, %v1868_v37  ;;  %v1877_v49 = vsel %vm787_vm6, %v1868_v37, %v1860_v26  ;;  %v14769_v40 = vld [vmem:[#allocation25_spill] sm:$0xff]  ;;  %v14771_v35 = vld [vmem:[#allocation27_spill] sm:$0xff] }
 0x39b   : > { %14766 = vst [vmem:[#allocation16_spill] sm:$0xff] %v10845_v31  ;;  %v2310_v23 = vpack.c.bf16 %v1944_v53, %v1942_v12  ;;  %v10853_v54 = vpack.c.bf16 %v1380_v22, %v1350_v34  ;;  %v1894_v26 = vmul.f32 %v1883_v21, %v1873_v52  ;;  %v1895_v6 = vmul.f32 %v1887_v45, %v1877_v49  ;;  %v14778_v34 = vld [vmem:[#allocation44_spill] sm:$0xff]  ;;  %v14779_v53 = vld [vmem:[#allocation66_spill] sm:$0xff]  ;;  %v14780_v52 = vld [vmem:[#allocation67_spill] sm:$0xff] }
 0x39c   : > { %2378 = vmatprep.subr.bf16.mxu1 %v2313_v29  ;;  %v14776_v29 = vld [vmem:[#allocation43_spill] sm:$0xff]  ;;  %v2304_v49 = vpack.c.bf16 %v14780_v52, %v14779_v53 }
 0x39d   : > { %2379 = vmatpush2.bf16.msra.mxu1 %v2312_v2  ;;  %2516 = vmatpush1.bf16.msra.mxu0 %v14767_v9  ;;  %14768 = vst [vmem:[#allocation17_spill] sm:$0xff] %v10853_v54  ;;  %v14774_v2 = vld [vmem:[#allocation69_spill] sm:$0xff]  ;;  %v1511_v15 = vmul.f32 %v14772_v19, %v14776_v29  ;;  %v14797_v29 = vld [vmem:[#allocation46_spill] sm:$0xff]  ;;  %v14818_v52 = vld [vmem:[#allocation7_spill] sm:$0xff] }
 0x39e   : > { %v1870_v44 = vpop.permute.xlu0 %1869  ;;  %2380 = vmatprep.subr.bf16.mxu1 %v2311_v46  ;;  %2517 = vmatprep.subr.bf16.mxu0 %v10845_v31  ;;  %v1864_v17 = vpop.permute.xlu1 %1863 }
 0x39f   : > { %v1874_v28 = vsel %vm787_vm6, %v10781_v18, %v1870_v44  ;;  %v1878_v58 = vsel %vm787_vm6, %v1870_v44, %v10781_v18  ;;  %v1871_v3 = vsel %vm787_vm6, %v1856_v48, %v1864_v17  ;;  %v1875_v16 = vsel %vm787_vm6, %v1864_v17, %v1856_v48  ;;  %v14775_v48 = vld [vmem:[#allocation26_spill] sm:$0xff]  ;;  %v14781_v44 = vld [vmem:[#allocation51_spill] sm:$0xff] }
 0x3a0   : > { %v1896_v57 = vmul.f32 %v1883_v21, %v1874_v28  ;;  %v1897_v0 = vmul.f32 %v1887_v45, %v1878_v58  ;;  %v1890_v5 = vmul.f32 %v1883_v21, %v1871_v3  ;;  %v1891_v7 = vmul.f32 %v1887_v45, %v1875_v16  ;;  %v14783_v58 = vld [vmem:[#allocation64_spill] sm:$0xff] }
 0x3a1   : > { %2381 = vmatpush2.bf16.msra.mxu1 %v2310_v23  ;;  %2518 = vmatpush1.bf16.msra.mxu0 %v10853_v54  ;;  %v14782_v23 = vld [vmem:[#allocation52_spill] sm:$0xff] }
 0x3a2   : > { %v2308_v39 = vpack.c.bf16 %v1896_v57, %v1894_v26  ;;  %v1866_v38 = vpop.permute.xlu0 %1865  ;;  %2519 = vmatprep.subr.bf16.mxu0 %v14769_v40  ;;  %v2309_v20 = vpack.c.bf16 %v1897_v0, %v1895_v6  ;;  %v1488_v32 = vpop.permute.xlu1 %1487  ;;  %v14784_v26 = vld [vmem:[#allocation65_spill] sm:$0xff]  ;;  %v14786_v0 = vld [vmem:[#allocation42_spill] sm:$0xff]  ;;  %v14787_v16 = vld [vmem:[#allocation40_spill] sm:$0xff] }
 0x3a3   : > { %v1872_v18 = vsel %vm787_vm6, %v1858_v41, %v1866_v38  ;;  %v1876_v37 = vsel %vm787_vm6, %v1866_v38, %v1858_v41  ;;  %v2305_v41 = vpack.c.bf16 %v14774_v2, %v14773_v63  ;;  %v2303_v6 = vpack.c.bf16 %v14784_v26, %v14783_v58 }
 0x3a4   : > { %v1892_v60 = vmul.f32 %v1883_v21, %v1872_v18  ;;  %v1893_v47 = vmul.f32 %v1887_v45, %v1876_v37  ;;  %2382 = vmatprep.subr.bf16.mxu1 %v2309_v20  ;;  %v1510_v3 = vmul.f32 %v14778_v34, %v14786_v0  ;;  %v14789_v20 = vld [vmem:[#allocation62_spill] sm:$0xff]  ;;  %v14790_v18 = vld [vmem:[#allocation63_spill] sm:$0xff] }
 0x3a5   : > { %2383 = vmatpush2.bf16.msra.mxu1 %v2308_v39  ;;  %2520 = vmatpush1.bf16.msra.mxu0 %v14770_v24  ;;  %v2302_v37 = vpack.c.bf16 %v14790_v18, %v14789_v20 }
 0x3a6   : > { %v2306_v30 = vpack.c.bf16 %v1892_v60, %v1890_v5  ;;  %v1490_v27 = vpop.permute.xlu0 %1489  ;;  %2521 = vmatprep.subr.bf16.mxu0 %v14771_v35  ;;  %v2307_v8 = vpack.c.bf16 %v1893_v47, %v1891_v7  ;;  %v1602_v22 = vpop.permute.xlu1 %1601  ;;  %v9214_v47 = vld [vmem:[%s14741_s7] ss:$12 sps:$4 sm:$0xff]  }
 0x3a7   : > { %v1492_v62 = vsel %vm787_vm6, %v1490_v27, %v1488_v32  ;;  %v1491_v51 = vsel %vm787_vm6, %v1488_v32, %v1490_v27  ;;  %v14792_v32 = vld [vmem:[#allocation47_spill] sm:$0xff]  ;;  %v14793_v27 = vld [vmem:[#allocation49_spill] sm:$0xff] }
 0x3a8   : > { %v1513_v61 = vmul.f32 %v14772_v19, %v1492_v62  ;;  %2384 = vmatprep.subr.bf16.mxu1 %v2307_v8  ;;  %v1512_v21 = vmul.f32 %v14778_v34, %v1491_v51  ;;  %v9217_v8 = vld [vmem:[%s14741_s7 + $0x1c] ss:$12 sps:$4 sm:$0xff]  }
 0x3a9   : > { %2385 = vmatpush2.bf16.msra.mxu1 %v2306_v30  ;;  %2522 = vmatpush1.bf16.msra.mxu0 %v14775_v48  ;;  %v1505_v30 = vmul.f32 %v14772_v19, %v14792_v32  ;;  %v1504_v19 = vmul.f32 %v14778_v34, %v14797_v29  ;;  %v14802_v34 = vld [vmem:[#allocation31_spill] sm:$0xff] }
 0x3aa   : > { %v1604_v12 = vpop.permute.xlu0 %1603  ;;  %2386 = vmatprep.subr.bf16.mxu1 %v2305_v41  ;;  %2523 = vmatprep.subr.bf16.mxu0 %v14777_v50  ;;  %v10895_v57 = vpack.c.bf16 %v1513_v61, %v1511_v15  ;;  %v10901_v38 = vpack.c.bf16 %v1512_v21, %v1510_v3  ;;  %v1564_v60 = vpop.permute.xlu1 %1563  ;;  %v14795_v61 = vld [vmem:[#allocation61_spill] sm:$0xff] }
 0x3ab   : > { %v1605_v45 = vsel %vm949_vm7, %v1602_v22, %v1604_v12  ;;  %v1606_v46 = vsel %vm949_vm7, %v1604_v12, %v1602_v22  ;;  %v10923_v41 = vpack.c.bf16 %v1505_v30, %v14795_v61  ;;  %v14798_v22 = vld [vmem:[#allocation48_spill] sm:$0xff]  ;;  %v14799_v21 = vld [vmem:[#allocation57_spill] sm:$0xff] }
 0x3ac   : > { %v1626_v17 = vmul.f32 %v14781_v44, %v1605_v45  ;;  %v1627_v28 = vmul.f32 %v14782_v23, %v1606_v46  ;;  %14785 = vst [vmem:[#allocation72_spill] sm:$0xff] %v10895_v57  ;;  %14788 = vst [vmem:[#allocation74_spill] sm:$0xff] %v10901_v38  ;;  %v14800_v45 = vld [vmem:[#allocation60_spill] sm:$0xff] }
 0x3ad   : > { %2387 = vmatpush2.bf16.msra.mxu1 %v2304_v49  ;;  %2524 = vmatpush2.bf16.msra.mxu0 %v14787_v16  ;;  %14796 = vst [vmem:[#allocation18_spill] sm:$0xff] %v10923_v41  ;;  %v10934_v46 = vpack.c.bf16 %v1504_v19, %v14800_v45  ;;  %v14809_v61 = vld [vmem:[#allocation28_spill] sm:$0xff]  ;;  %v14811_v45 = vld [vmem:[#allocation58_spill] sm:$0xff] }
 0x3ae   : > { %v1566_v39 = vpop.permute.xlu0 %1565  ;;  %2388 = vmatprep.subr.bf16.mxu1 %v2303_v6  ;;  %2525 = vmatprep.subr.bf16.mxu0 %v10895_v57  ;;  %v2212_v5 = vpack.c.bf16 %v1626_v17, %v1626_v17  ;;  %v10905_v7 = vpack.c.bf16 %v1627_v28, %v1627_v28  ;;  %v1440_v12 = vpop.permute.xlu1 %1439  ;;  %v9219_v17 = vld [vmem:[%s14741_s7 + $0x18] ss:$12 sps:$4 sm:$0xff]   ;;  %v14804_v6 = vld [vmem:[#allocation29_spill] sm:$0xff] }
 0x3af   : > { %v1568_v15 = vsel %vm895_vm4, %v1566_v39, %v1564_v60  ;;  %14801 = vst [vmem:[#allocation19_spill] sm:$0xff] %v10934_v46  ;;  %v1567_v49 = vsel %vm895_vm4, %v1564_v60, %v1566_v39  ;;  %v14803_v28 = vld [vmem:[#allocation55_spill] sm:$0xff]  ;;  %v1587_v0 = vmul.f32 %v14802_v34, %v14804_v6  ;;  %v14806_v39 = vld [vmem:[#allocation50_spill] sm:$0xff] }
 0x3b0   : > { %14791 = vst [vmem:[#allocation73_spill] sm:$0xff] %v10905_v7  ;;  %v10920_v51 = vsel %vm1248_vm9, %v2212_v5, 0  ;;  %v1589_v44 = vmul.f32 %v14802_v34, %v1568_v15  ;;  %v14807_v5 = vld [vmem:[#allocation30_spill] sm:$0xff]  ;;  %v14810_v15 = vld [vmem:[#allocation53_spill] sm:$0xff] }
 0x3b1   : > { %2389 = vmatpush2.bf16.msra.mxu1 %v2302_v37  ;;  %2526 = vmatpush2.bf16.msra.mxu0 %v10901_v38  ;;  %14794 = vst [vmem:[#allocation23_spill] sm:$0xff] %v10920_v51  ;;  %v14805_v37 = vld [vmem:[#allocation59_spill] sm:$0xff]  ;;  %v1588_v60 = vmul.f32 %v14807_v5, %v1567_v49  ;;  %v1586_v29 = vmul.f32 %v14807_v5, %v14809_v61  ;;  %v14812_v49 = vld [vmem:[#allocation8_spill] sm:$0xff] }
 0x3b2   : > { %2527 = vmatprep.subr.bf16.mxu0 %v14793_v27  ;;  %8965 = vmatprep.subr.msk.bf16.mxu1 %vm1248_vm9, %v10905_v7  ;;  %v1442_v62 = vpop.permute.xlu0 %1441  ;;  %v1526_v30 = vpop.permute.xlu1 %1525  ;;  %v1463_v6 = vmul.f32 %v9808_v36, %v14812_v49  ;;  %v14819_v49 = vld [vmem:[#allocation56_spill] sm:$0xff] }
 0x3b3   : > { %v1443_v23 = vsel %vm725_vm0, %v1440_v12, %v1442_v62 }
 0x3b4   : > { %2391 = vmatmul.mubr.bf16.vlgmr.msra.gmra.mxu1 %v9214_v47  ;;  %v1444_v47 = vsel %vm725_vm0, %v1442_v62, %v1440_v12  ;;  %v1465_v32 = vmul.f32 %v9808_v36, %v1443_v23  ;;  %v14813_v62 = vld [vmem:[#allocation54_spill] sm:$0xff]  ;;  %v10966_v12 = vpack.c.bf16 %v1588_v60, %v1586_v29  ;;  %v14820_v60 = vld [vmem:[#allocation33_spill] sm:$0xff] }
 0x3b5   : > { %2528 = vmatpush2.bf16.msra.mxu0 %v14798_v22  ;;  %2563 = vmatpush1.bf16.msra.mxu1 %v10920_v51  ;;  %v1581_v29 = vmul.f32 %v14802_v34, %v14820_v60  ;;  %v9227_v60 = vld [vmem:[%s14756_s6 + $0x18] ss:$12 sps:$4 sm:$0xff]   ;;  %v8970_v22 = vld [vmem:[%s14459_s1 + $0x3] ss:$8 sm:$0x3] }
 0x3b6   : > { %2529 = vmatprep.subr.bf16.mxu0 %v10923_v41  ;;  %2564 = vmatprep.subr.bf16.mxu1 %v14799_v21  ;;  %v1528_v3 = vpop.permute.xlu0 %1527  ;;  %14814 = vst [vmem:[#allocation45_spill] sm:$0xff] %v10966_v12  ;;  %v10973_v2 = vpack.c.bf16 %v1465_v32, %v1463_v6  ;;  %v14826_v6 = vld [vmem:[#allocation34_spill] sm:$0xff]  ;;  %v2850_v57 = vrot.slane %v8970_v22, %v9767_v13 }
 0x3b7   : > { %2400 = vmatprep.mubr.bf16.mxu1 %v9217_v8  ;;  %v10954_v8 = vpack.c.bf16 %v1589_v44, %v1587_v0  ;;  %v1530_v19 = vsel %vm841_vm5, %v1528_v3, %v1526_v30  ;;  %v14815_v44 = vld [vmem:[#allocation9_spill] sm:$0xff]  ;;  %v1529_v23 = vsel %vm841_vm5, %v1526_v30, %v1528_v3  ;;  %v14823_v3 = vld [vmem:[#allocation36_spill] sm:$0xff]  ;;  %v2846_v48 = vrot.slane %v8970_v22, %v9769_v14 }
 0x3b8   : > { %v14816_v0 = vld [vmem:[#allocation37_spill] sm:$0xff]  ;;  %14817 = vst [vmem:[#allocation43_spill] sm:$0xff] %v10973_v2  ;;  %v1462_v36 = vmul.f32 %v14815_v44, %v14818_v52  ;;  %v1550_v30 = vmul.f32 %v14823_v3, %v1529_v23  ;;  %v14829_v23 = vld [vmem:[#allocation10_spill] sm:$0xff] }
 0x3b9   : > { %2530 = vmatpush2.bf16.msra.mxu0 %v10934_v46  ;;  %2565 = vmatpush1.bf16.msra.mxu1 %v14803_v28  ;;  %14808 = vst [vmem:[#allocation22_spill] sm:$0xff] %v10954_v8  ;;  %v1551_v61 = vmul.f32 %v14816_v0, %v1530_v19  ;;  %v14825_v19 = vld [vmem:[#allocation32_spill] sm:$0xff]  ;;  %v14830_v0 = vld [vmem:[#allocation39_spill] sm:$0xff] }
 0x3ba   : > { %2566 = vmatprep.subr.bf16.mxu1 %v14805_v37  ;;  %2531 = vmatprep.subr.bf16.mxu0 %v14806_v39  ;;  %v1580_v52 = vmul.f32 %v14807_v5, %v14825_v19  ;;  %v9225_v5 = vld [vmem:[%s14756_s6 + $0x1c] ss:$12 sps:$4 sm:$0xff]  }
 0x3bb   : > { %v10986_v32 = vpack.c.bf16 %v1581_v29, %v1551_v61  ;;  %v9224_v61 = vld [vmem:[%s14756_s6 + $0x8] ss:$12 sps:$4 sm:$0xff]   ;;  %v9228_v29 = vld [vmem:[%s14756_s6 + $0x20] ss:$12 sps:$4 sm:$0xff]  }
 0x3bc   : > { %2401 = vmatmul.mubr.bf16.gmra.mxu1 %v9219_v17  ;;  %v1464_v17 = vmul.f32 %v14815_v44, %v1444_v47  ;;  %v14821_v47 = vld [vmem:[#allocation35_spill] sm:$0xff]  ;;  %v10994_v34 = vpack.c.bf16 %v1580_v52, %v1550_v30 }
 0x3bd   : > { %2532 = vmatpush2.bf16.msra.mxu0 %v14810_v15  ;;  %2567 = vmatpush1.bf16.msra.mxu1 %v14811_v45  ;;  %14824 = vst [vmem:[#allocation51_spill] sm:$0xff] %v10986_v32  ;;  %v14827_v44 = vld [vmem:[#allocation11_spill] sm:$0xff] }
 0x3be   : > { %2568 = vmatprep.subr.bf16.mxu1 %v10954_v8  ;;  %2533 = vmatprep.subr.bf16.mxu0 %v14813_v62  ;;  %v10983_v58 = vpack.c.bf16 %v1464_v17, %v1462_v36  ;;  %14828 = vst [vmem:[#allocation52_spill] sm:$0xff] %v10994_v34  ;;  %v9221_v17 = vld [vmem:[%s14756_s6] ss:$12 sps:$4 sm:$0xff]   ;;  %v14831_v36 = vld [vmem:[#allocation38_spill] sm:$0xff] }
 0x3bf   : > { %2592 = vmatprep.mubr.bf16.mxu1 %v14749_v42 }
 0x3c0   : > { %14822 = vst [vmem:[#allocation44_spill] sm:$0xff] %v10983_v58 }
 0x3c1   : > { %2534 = vmatpush2.bf16.msra.mxu0 %v14819_v49  ;;  %2569 = vmatpush1.bf16.msra.mxu1 %v10966_v12 }
 0x3c2   : > { %2535 = vmatprep.subr.bf16.mxu0 %v10973_v2  ;;  %2570 = vmatprep.subr.bf16.mxu1 %v14821_v47 }
 0x3c5   : > { %2536 = vmatpush2.bf16.msra.mxu0 %v10983_v58  ;;  %2571 = vmatpush1.bf16.msra.mxu1 %v14826_v6 }
 0x3c6   : > { %2537 = vmatprep.subr.bf16.mxu0 %v14827_v44  ;;  %2572 = vmatprep.subr.bf16.mxu1 %v10986_v32 }
 0x3c9   : > { %2538 = vmatpush2.bf16.msra.mxu0 %v14829_v23  ;;  %2573 = vmatpush1.bf16.msra.mxu1 %v10994_v34 }
 0x3ca   : > { %2574 = vmatprep.subr.bf16.mxu1 %v14830_v0 }
 0x3cc   : > { %2540 = vmatmul.mubr.bf16.vlgmr.msra.gmra.mxu0 %v9221_v17 }
 0x3cd   : > { %2575 = vmatpush1.bf16.msra.mxu1 %v14831_v36  ;;  %2549 = vmatprep.mubr.bf16.mxu0 %v9225_v5  ;;  %v11023_v36 = vpop.permute.xlu1 %2629 }
 0x3d0   : > { %8966 = vmatmul.mubr.msk.bf16.vlgmr.msra.gmra.mxu1 %vm2494_vm11, %v9224_v61 }
 0x3d1   : > { %2602 = vmatprep.mubr.bf16.mxu1 %v14749_v42  ;;  %v2620_v6 = vpop.permute.xlu1 %2619 }
 0x3d4   : > { %2550 = vmatmul.mubr.bf16.gmra.mxu0 %v9227_v60 }
 0x3d5   : > { %3346 = vmatprep.mubr.bf16.mxu0 %v14749_v42  ;;  %v2625_v28 = vpop.permute.xlu1 %2624 }
 0x3d8   : > { %8967 = vmatmul.mubr.msk.bf16.gmra.mxu1 %vm2494_vm11, %v9228_v29 }
 0x44c   : > { %v2445_v3 = vpop.f32.mrf.mxu0 }
 0x44e   : > { %v2447_v30 = vpop.f32.mrf.mxu0 }
 0x450   : > { %v2449_v52 = vpop.f32.mrf.mxu0 }
 0x452   : > { %v2451_v5 = vpop.f32.mrf.mxu0 }
 0x454   : > { %v2455_v20 = vpop.f32.mrf.mxu0 }
 0x456   : > { %v11019_v26 = vpop.f32.mrf.mxu0 }
 0x458   : > { %v2459_v18 = vpop.f32.mrf.mxu0 }
 0x45a   : > { %v11025_v34 = vpop.f32.mrf.mxu0 }
 0x474   : > { %v2392_v19 = vpop.f32.mrf.mxu1 }
 0x475   : > { %v2446_v23 = vadd.f32 %v2445_v3, %v2392_v19 }
 0x476   : > { %v2394_v17 = vpop.f32.mrf.mxu1 }
 0x477   : > { %v2448_v19 = vadd.f32 %v2447_v30, %v2394_v17 }
 0x478   : > { %v2396_v61 = vpop.f32.mrf.mxu1 }
 0x479   : > { %v2450_v12 = vadd.f32 %v2449_v52, %v2396_v61 }
 0x47a   : > { %v2398_v63 = vpop.f32.mrf.mxu1 }
 0x47c   : > { %v2402_v53 = vpop.f32.mrf.mxu1 }
 0x47e   : > { %v11021_v60 = vpop.f32.mrf.mxu1 }
 0x480   : > { %v2406_v0 = vpop.f32.mrf.mxu1 }
 0x482   : > { %v11027_v32 = vpop.f32.mrf.mxu1 }
 0x48c   : > { %v2541_v29 = vpop.f32.mrf.mxu0 }
 0x48d   : > { %v2542_v58 = vadd.f32 %v2541_v29, %v2446_v23 }
 0x48e   : > { %v2543_v44 = vpop.f32.mrf.mxu0 }
 0x48f   : > { %v2544_v29 = vadd.f32 %v2543_v44, %v2448_v19  ;;  %v2456_v44 = vadd.f32 %v2455_v20, %v2402_v53 }
 0x490   : > { %v2545_v47 = vpop.f32.mrf.mxu0  ;;  %v2594_v2 = vpop.f32.mrf.mxu1 }
 0x491   : > { %v2595_v49 = vadd.f32 %v2594_v2, %v2542_v58  ;;  %v2546_v8 = vadd.f32 %v2545_v47, %v2450_v12  ;;  %v2452_v58 = vadd.f32 %v2451_v5, %v2398_v63  ;;  %v2460_v5 = vadd.f32 %v2459_v18, %v2406_v0 }
 0x492   : > { %v2596_v62 = vpop.f32.mrf.mxu1  ;;  %v2547_v2 = vpop.f32.mrf.mxu0 }
 0x493   : > { %v2637_v45 = vadd.f32 %v2620_v6, %v2595_v49 }
 0x494   : > { %v2598_v15 = vpop.f32.mrf.mxu1  ;;  %v2551_v63 = vpop.f32.mrf.mxu0 }
 0x495   : > { %v2645_v39 = vmul.f32 0.2, %v2637_v45  ;;  %v2599_v37 = vadd.f32 %v2598_v15, %v2546_v8  ;;  %v2597_v8 = vadd.f32 %v2596_v62, %v2544_v29  ;;  %v2548_v15 = vadd.f32 %v2547_v2, %v2452_v58  ;;  %v2635_v29 = vpop.permute.xlu0 %2634 }
 0x496   : > { %v2552_v52 = vadd.f32 %v2551_v63, %v2456_v44 }
 0x497   : > { %v11029_v46 = vmax.f32 %v2637_v45, %v2645_v39  ;;  %v2639_v21 = vadd.f32 %v2625_v28, %v2599_v37  ;;  %v2600_v39 = vpop.f32.mrf.mxu1 }
 0x498   : > { %v2601_v37 = vadd.f32 %v2600_v39, %v2548_v15 }
 0x499   : > { %v2647_v3 = vmul.f32 0.2, %v2639_v21  ;;  %2818 = vrot.lane.b32.xlu0 %v11029_v46, %s14592_s28  ;;  %v2604_v47 = vpop.f32.mrf.mxu1 }
 0x49a   : > { %v2640_v12 = vadd.f32 %v2625_v28, %v2601_v37  ;;  %v2605_v61 = vadd.f32 %v2604_v47, %v2552_v52  ;;  %v2462_v37 = vadd.f32 %v11025_v34, %v11027_v32  ;;  %v9231_v52 = vld [vmem:[%s14741_s7 + $0x94] ss:$12 sps:$4 sm:$0xff]  }
 0x49b   : > { %v11033_v23 = vmax.f32 %v2639_v21, %v2647_v3  ;;  %v2638_v21 = vadd.f32 %v2620_v6, %v2597_v8  ;;  %v2553_v6 = vpop.f32.mrf.mxu0  ;;  %v2606_v30 = vpop.f32.mrf.mxu1  ;;  %v2458_v8 = vadd.f32 %v11019_v26, %v11021_v60  ;;  %3293 = vmatprep.mubr.bf16.mxu1 %v9231_v52 }
 0x49c   : > { %v2648_v49 = vmul.f32 0.2, %v2640_v12  ;;  %v2641_v53 = vadd.f32 %v11023_v36, %v2605_v61 }
 0x49d   : > { %2820 = vrot.lane.b32.xlu1 %v11033_v23, %s14592_s28  ;;  %2766 = vrot.lane.b32.xlu0 %v11029_v46, %s14590_s29  ;;  %v2646_v45 = vmul.f32 0.2, %v2638_v21  ;;  %v2555_v17 = vpop.f32.mrf.mxu0  ;;  %v2608_v3 = vpop.f32.mrf.mxu1  ;;  %v2554_v15 = vadd.f32 %v2553_v6, %v2458_v8 }
 0x49e   : > { %v11057_v28 = vmax.f32 %v2640_v12, %v2648_v49  ;;  %v2556_v19 = vadd.f32 %v2555_v17, %v2460_v5  ;;  %v2649_v18 = vmul.f32 0.2, %v2641_v53 }
 0x49f   : > { %v11051_v62 = vmax.f32 %v2638_v21, %v2646_v45  ;;  %v2557_v21 = vpop.f32.mrf.mxu0  ;;  %v2607_v45 = vadd.f32 %v2606_v30, %v2554_v15  ;;  %v2610_v12 = vpop.f32.mrf.mxu1 }
 0x4a0   : > { %v2609_v20 = vadd.f32 %v2608_v3, %v2556_v19  ;;  %v11076_v2 = vmax.f32 %v2641_v53, %v2649_v18  ;;  %v2558_v63 = vadd.f32 %v2557_v21, %v2462_v37  ;;  %v9455_v21 = vld [vmem:[%s14463_s5 + $0x8] sm:$0xff]  ;;  %v9456_v37 = vld [vmem:[%s14463_s5] sm:$0xff] }
 0x4a1   : > { %2768 = vrot.lane.b32.xlu1 %v11033_v23, %s14590_s29  ;;  %2714 = vrot.lane.b32.xlu0 %v11029_v46, %s14588_s30  ;;  %v2642_v26 = vadd.f32 %v11023_v36, %v2607_v45 }
 0x4a2   : > { %v2643_v0 = vadd.f32 %v2635_v29, %v2609_v20  ;;  %v2611_v60 = vadd.f32 %v2610_v12, %v2558_v63  ;;  %v9492_v20 = vmov 4  }
 0x4a3   : > { %v2650_v49 = vmul.f32 0.2, %v2642_v26  ;;  %9190 = vset.pattern.permute.xlu0 %v9492_v20  ;;  %9191 = vset.pattern.permute.xlu1 %v9492_v20 }
 0x4a4   : > { %v2651_v58 = vmul.f32 0.2, %v2643_v0  ;;  %v2644_v32 = vadd.f32 %v2635_v29, %v2611_v60 }
 0x4a5   : > { %2716 = vrot.lane.b32.xlu1 %v11033_v23, %s14588_s30  ;;  %2662 = vrot.lane.b32.xlu0 %v11029_v46, %s14586_s0  ;;  %v11105_v34 = vmax.f32 %v2642_v26, %v2650_v49 }
 0x4a6   : > { %v11084_v39 = vmax.f32 %v2643_v0, %v2651_v58  ;;  %v2652_v47 = vmul.f32 0.2, %v2644_v32  ;;  %v9453_v0 = vld [vmem:[%s14463_s5 + $0x10] sm:$0xff]  ;;  %v9454_v58 = vld [vmem:[%s14463_s5 + $0x18] sm:$0xff] }
 0x4a8   : > { %v11111_v36 = vmax.f32 %v2644_v32, %v2652_v47 }
 0x4a9   : > { %2664 = vrot.lane.b32.xlu1 %v11033_v23, %s14586_s0  ;;  %2982 = vrot.lane.b32.xlu0 %v11029_v46, %s14832_s20 }
 0x4ad   : > { %2984 = vrot.lane.b32.xlu1 %v11033_v23, %s14832_s20  ;;  %2826 = vrot.lane.b32.xlu0 %v11051_v62, %s14592_s28 }
 0x4b1   : > { %2828 = vrot.lane.b32.xlu1 %v11057_v28, %s14592_s28  ;;  %2774 = vrot.lane.b32.xlu0 %v11051_v62, %s14590_s29 }
 0x4b5   : > { %2776 = vrot.lane.b32.xlu1 %v11057_v28, %s14590_s29  ;;  %2722 = vrot.lane.b32.xlu0 %v11051_v62, %s14588_s30 }
 0x4b9   : > { %2724 = vrot.lane.b32.xlu1 %v11057_v28, %s14588_s30  ;;  %2670 = vrot.lane.b32.xlu0 %v11051_v62, %s14586_s0 }
 0x4bd   : > { %2672 = vrot.lane.b32.xlu1 %v11057_v28, %s14586_s0  ;;  %2990 = vrot.lane.b32.xlu0 %v11051_v62, %s14832_s20 }
 0x4c1   : > { %2992 = vrot.lane.b32.xlu1 %v11057_v28, %s14832_s20  ;;  %2822 = vrot.lane.b32.xlu0 %v11076_v2, %s14592_s28 }
 0x4c5   : > { %2824 = vrot.lane.b32.xlu1 %v11084_v39, %s14592_s28  ;;  %2770 = vrot.lane.b32.xlu0 %v11076_v2, %s14590_s29 }
 0x4c9   : > { %2772 = vrot.lane.b32.xlu1 %v11084_v39, %s14590_s29  ;;  %2718 = vrot.lane.b32.xlu0 %v11076_v2, %s14588_s30 }
 0x4cd   : > { %2720 = vrot.lane.b32.xlu1 %v11084_v39, %s14588_s30  ;;  %2666 = vrot.lane.b32.xlu0 %v11076_v2, %s14586_s0 }
 0x4d1   : > { %2668 = vrot.lane.b32.xlu1 %v11084_v39, %s14586_s0  ;;  %2986 = vrot.lane.b32.xlu0 %v11076_v2, %s14832_s20 }
 0x4d5   : > { %2988 = vrot.lane.b32.xlu1 %v11084_v39, %s14832_s20  ;;  %2830 = vrot.lane.b32.xlu0 %v11105_v34, %s14592_s28 }
 0x4d9   : > { %2934 = vrot.lane.b32.xlu0 %v11076_v2, %s14736_s25  ;;  %2832 = vrot.lane.b32.xlu1 %v11111_v36, %s14592_s28  ;;  %s14629_s28 = smov 48  }
 0x4dd   : > { %2778 = vrot.lane.b32.xlu0 %v11105_v34, %s14590_s29  ;;  %2936 = vrot.lane.b32.xlu1 %v11084_v39, %s14736_s25 }
 0x4e1   : > { %2726 = vrot.lane.b32.xlu0 %v11105_v34, %s14588_s30  ;;  %2780 = vrot.lane.b32.xlu1 %v11111_v36, %s14590_s29  ;;  %s9497_s29 = smov 51  }
 0x4e5   : > { %2674 = vrot.lane.b32.xlu0 %v11105_v34, %s14586_s0  ;;  %2932 = vrot.lane.b32.xlu1 %v11033_v23, %s14736_s25 }
 0x4e9   : > { %2994 = vrot.lane.b32.xlu0 %v11105_v34, %s14832_s20  ;;  %2728 = vrot.lane.b32.xlu1 %v11111_v36, %s14588_s30  ;;  %s14835_s30 = smov 1  }
 0x4ed   : > { %2942 = vrot.lane.b32.xlu0 %v11105_v34, %s14736_s25  ;;  %2940 = vrot.lane.b32.xlu1 %v11057_v28, %s14736_s25 }
 0x4f1   : > { %2930 = vrot.lane.b32.xlu0 %v11029_v46, %s14736_s25  ;;  %2676 = vrot.lane.b32.xlu1 %v11111_v36, %s14586_s0  ;;  %s14837_s0 = smov 15  }
 0x4f5   : > { %2938 = vrot.lane.b32.xlu0 %v11051_v62, %s14736_s25  ;;  %2884 = vrot.lane.b32.xlu1 %v11084_v39, %s14739_s26 }
 0x4f9   : > { %2882 = vrot.lane.b32.xlu0 %v11076_v2, %s14739_s26  ;;  %2996 = vrot.lane.b32.xlu1 %v11111_v36, %s14832_s20 }
 0x4fd   : > { %2890 = vrot.lane.b32.xlu0 %v11105_v34, %s14739_s26  ;;  %2880 = vrot.lane.b32.xlu1 %v11033_v23, %s14739_s26 }
 0x501   : > { %2878 = vrot.lane.b32.xlu0 %v11029_v46, %s14739_s26  ;;  %2944 = vrot.lane.b32.xlu1 %v11111_v36, %s14736_s25 }
 0x505   : > { %2886 = vrot.lane.b32.xlu0 %v11051_v62, %s14739_s26  ;;  %2888 = vrot.lane.b32.xlu1 %v11057_v28, %s14739_s26 }
 0x509   : > { %3038 = vrot.lane.b32.xlu0 %v11076_v2, %s14833_s22  ;;  %2892 = vrot.lane.b32.xlu1 %v11111_v36, %s14739_s26 }
 0x50b   : > { %v11165_v6 = vpop.permute.xlu0 %2818 }
 0x50d   : > { %3046 = vrot.lane.b32.xlu0 %v11105_v34, %s14833_s22  ;;  %3040 = vrot.lane.b32.xlu1 %v11084_v39, %s14833_s22 }
 0x50f   : > { %v2821_v44 = vpop.permute.xlu1 %2820  ;;  %v11171_v30 = vpop.permute.xlu0 %2766 }
 0x511   : > { %3034 = vrot.lane.b32.xlu0 %v11029_v46, %s14833_s22  ;;  %3036 = vrot.lane.b32.xlu1 %v11033_v23, %s14833_s22 }
 0x513   : > { %v11180_v17 = vpop.permute.xlu1 %2768  ;;  %v11182_v5 = vpop.permute.xlu0 %2714 }
 0x515   : > { %3042 = vrot.lane.b32.xlu0 %v11051_v62, %s14833_s22  ;;  %3048 = vrot.lane.b32.xlu1 %v11111_v36, %s14833_s22 }
 0x517   : > { %v11188_v61 = vpop.permute.xlu1 %2716  ;;  %v11190_v3 = vpop.permute.xlu0 %2662 }
 0x519   : > { %3044 = vrot.lane.b32.xlu1 %v11057_v28, %s14833_s22  ;;  %3217 = vperm.xlu0 %9190, %v9453_v0  }
 0x51b   : > { %v11194_v19 = vpop.permute.xlu1 %2664  ;;  %v11196_v53 = vpop.permute.xlu0 %2982 }
 0x51d   : > { %3222 = vperm.xlu1 %9191, %v9454_v58   ;;  %3212 = vperm.xlu0 %9190, %v9455_v21  }
 0x51f   : > { %v11198_v29 = vpop.permute.xlu1 %2984  ;;  %v2827_v18 = vpop.permute.xlu0 %2826 }
 0x520   : > { %v2834_v35 = vsel %vm725_vm0, %v11165_v6, %v2827_v18  ;;  %v2838_v59 = vsel %vm725_vm0, %v2827_v18, %v11165_v6 }
 0x521   : > { %3207 = vperm.xlu1 %9191, %v9456_v37   ;;  %v2854_v55 = vmul.f32 %v2850_v57, %v2834_v35 }
 0x523   : > { %v2829_v8 = vpop.permute.xlu1 %2828  ;;  %v11206_v15 = vpop.permute.xlu0 %2774 }
 0x524   : > { %v2835_v38 = vsel %vm725_vm0, %v2821_v44, %v2829_v8  ;;  %v2839_v54 = vsel %vm725_vm0, %v2829_v8, %v2821_v44 }
 0x525   : > { %v2856_v31 = vmul.f32 %v2850_v57, %v2835_v38  ;;  %v2855_v43 = vmul.f32 %v2846_v48, %v2839_v54  ;;  %v8969_v38 = vld [vmem:[%s14459_s1 + $0x2] ss:$8 sm:$0x3] }
 0x527   : > { %v2777_v45 = vpop.permute.xlu1 %2776  ;;  %v11214_v12 = vpop.permute.xlu0 %2722 }
 0x52b   : > { %v11216_v63 = vpop.permute.xlu1 %2724  ;;  %v11218_v26 = vpop.permute.xlu0 %2670 }
 0x52f   : > { %v11220_v60 = vpop.permute.xlu1 %2672  ;;  %v11222_v49 = vpop.permute.xlu0 %2990 }
 0x533   : > { %v11224_v32 = vpop.permute.xlu1 %2992  ;;  %v2823_v47 = vpop.permute.xlu0 %2822 }
 0x537   : > { %v2825_v52 = vpop.permute.xlu1 %2824  ;;  %v2771_v20 = vpop.permute.xlu0 %2770 }
 0x53b   : > { %v2773_v0 = vpop.permute.xlu1 %2772  ;;  %v11226_v58 = vpop.permute.xlu0 %2718 }
 0x53f   : > { %v11228_v21 = vpop.permute.xlu1 %2720  ;;  %v11230_v37 = vpop.permute.xlu0 %2666 }
 0x543   : > { %v11232_v41 = vpop.permute.xlu1 %2668  ;;  %v11234_v51 = vpop.permute.xlu0 %2986 }
 0x547   : > { %v11239_v7 = vpop.permute.xlu1 %2988  ;;  %v2831_v27 = vpop.permute.xlu0 %2830 }
 0x548   : > { %v2836_v16 = vsel %vm725_vm0, %v2823_v47, %v2831_v27  ;;  %v2840_v50 = vsel %vm725_vm0, %v2831_v27, %v2823_v47 }
 0x549   : > { %v2857_v27 = vmul.f32 %v2846_v48, %v2840_v50  ;;  %v2858_v47 = vmul.f32 %v2850_v57, %v2836_v16  ;;  %v2798_v50 = vrot.slane %v8969_v38, %v9767_v13  ;;  %v2794_v16 = vrot.slane %v8969_v38, %v9769_v14 }
 0x54b   : > { %v11252_v24 = vpop.permute.xlu0 %2934  ;;  %v2833_v40 = vpop.permute.xlu1 %2832 }
 0x54c   : > { %v2837_v9 = vsel %vm725_vm0, %v2825_v52, %v2833_v40  ;;  %v2841_v25 = vsel %vm725_vm0, %v2833_v40, %v2825_v52  ;;  %v2853_v40 = vmul.f32 %v2846_v48, %v2838_v59  ;;  %v2782_v59 = vsel %vm671_vm1, %v11171_v30, %v11206_v15 }
 0x54d   : > { %v2859_v22 = vmul.f32 %v2846_v48, %v2841_v25  ;;  %v2860_v11 = vmul.f32 %v2850_v57, %v2837_v9  ;;  %v2783_v25 = vsel %vm671_vm1, %v11180_v17, %v2777_v45  ;;  %v3178_v9 = vpack.c.bf16 %v2856_v31, %v2854_v55 }
 0x54e   : > { %v3177_v57 = vpack.c.bf16 %v2855_v43, %v2853_v40  ;;  %v2787_v55 = vsel %vm671_vm1, %v2777_v45, %v11180_v17  ;;  %v2804_v31 = vmul.f32 %v2798_v50, %v2783_v25  ;;  %v8968_v17 = vld [vmem:[%s14459_s1 + $0x1] ss:$8 sm:$0x3]  ;;  %v2731_v40 = vsel %vm617_vm2, %v11188_v61, %v11216_v63 }
 0x54f   : > { %v3179_v44 = vpack.c.bf16 %v2859_v22, %v2857_v27  ;;  %v2779_v8 = vpop.permute.xlu0 %2778  ;;  %v11266_v4 = vpop.permute.xlu1 %2936  ;;  %v3180_v33 = vpack.c.bf16 %v2860_v11, %v2858_v47  ;;  %v2786_v27 = vsel %vm671_vm1, %v11206_v15, %v11171_v30  ;;  %v2802_v47 = vmul.f32 %v2798_v50, %v2782_v59 }
 0x550   : > { %v2784_v54 = vsel %vm671_vm1, %v2771_v20, %v2779_v8  ;;  %v2788_v35 = vsel %vm671_vm1, %v2779_v8, %v2771_v20  ;;  %v2803_v22 = vmul.f32 %v2794_v16, %v2787_v55  ;;  %v2801_v8 = vmul.f32 %v2794_v16, %v2786_v27 }
 0x551   : > { %3261 = vmatprep.subr.bf16.mxu1 %v3180_v33  ;;  %v2805_v6 = vmul.f32 %v2794_v16, %v2788_v35  ;;  %v2806_v18 = vmul.f32 %v2798_v50, %v2784_v54  ;;  %v3174_v30 = vpack.c.bf16 %v2804_v31, %v2802_v47  ;;  %v2746_v15 = vrot.slane %v8968_v17, %v9767_v13 }
 0x552   : > { %3262 = vmatpush1.bf16.msra.mxu1 %v3179_v44  ;;  %v2742_v54 = vrot.slane %v8968_v17, %v9769_v14  ;;  %v2730_v35 = vsel %vm617_vm2, %v11182_v5, %v11214_v12  ;;  %v2735_v59 = vsel %vm617_vm2, %v11216_v63, %v11188_v61 }
 0x553   : > { %v2727_v11 = vpop.permute.xlu0 %2726  ;;  %3263 = vmatprep.subr.bf16.mxu1 %v3178_v9  ;;  %v2781_v33 = vpop.permute.xlu1 %2780  ;;  %v2750_v61 = vmul.f32 %v2746_v15, %v2730_v35 }
 0x554   : > { %v2785_v48 = vsel %vm671_vm1, %v2773_v0, %v2781_v33  ;;  %v2789_v43 = vsel %vm671_vm1, %v2781_v33, %v2773_v0  ;;  %v2732_v25 = vsel %vm617_vm2, %v11226_v58, %v2727_v11  ;;  %v2736_v9 = vsel %vm617_vm2, %v2727_v11, %v11226_v58 }
 0x555   : > { %v2807_v52 = vmul.f32 %v2794_v16, %v2789_v43  ;;  %v2808_v20 = vmul.f32 %v2798_v50, %v2785_v48  ;;  %v3173_v50 = vpack.c.bf16 %v2803_v22, %v2801_v8  ;;  %v2752_v33 = vmul.f32 %v2746_v15, %v2731_v40 }
 0x556   : > { %3264 = vmatpush1.bf16.msra.mxu1 %v3177_v57  ;;  %v2753_v55 = vmul.f32 %v2742_v54, %v2736_v9  ;;  %v2754_v31 = vmul.f32 %v2746_v15, %v2732_v25  ;;  %v2751_v63 = vmul.f32 %v2742_v54, %v2735_v59  ;;  %v2679_v22 = vsel %vm563_vm3, %v11194_v19, %v11220_v60 }
 0x557   : > { %v3175_v45 = vpack.c.bf16 %v2807_v52, %v2805_v6  ;;  %v2675_v38 = vpop.permute.xlu0 %2674  ;;  %v11295_v44 = vpop.permute.xlu1 %2932  ;;  %v3176_v0 = vpack.c.bf16 %v2808_v20, %v2806_v18  ;;  %v2734_v6 = vsel %vm617_vm2, %v11214_v12, %v11182_v5  ;;  %v2661_v18 = vld [vmem:[%s14459_s1] ss:$8 sm:$0x3]  ;;  %v3170_v5 = vpack.c.bf16 %v2752_v33, %v2750_v61  ;;  %v8973_v33 = vld [vmem:[%s14459_s1 + $0x7] ss:$8 sm:$0x3] }
 0x558   : > { %v2749_v47 = vmul.f32 %v2742_v54, %v2734_v6  ;;  %v2694_v12 = vrot.slane %v2661_v18, %v9767_v13  ;;  %v2680_v17 = vsel %vm563_vm3, %v11230_v37, %v2675_v38  ;;  %v2690_v8 = vrot.slane %v2661_v18, %v9769_v14 }
 0x559   : > { %3265 = vmatprep.subr.bf16.mxu1 %v3176_v0  ;;  %v2678_v40 = vsel %vm563_vm3, %v11190_v3, %v11218_v26  ;;  %v2683_v25 = vsel %vm563_vm3, %v11220_v60, %v11194_v19  ;;  %v2682_v59 = vsel %vm563_vm3, %v11218_v26, %v11190_v3  ;;  %v3014_v26 = vrot.slane %v8973_v33, %v9767_v13 }
 0x55a   : > { %3266 = vmatpush1.bf16.msra.mxu1 %v3175_v45  ;;  %v2684_v45 = vsel %vm563_vm3, %v2675_v38, %v11230_v37  ;;  %v3169_v0 = vpack.c.bf16 %v2751_v63, %v2749_v47  ;;  %v2700_v9 = vmul.f32 %v2694_v12, %v2679_v22  ;;  %v2698_v19 = vmul.f32 %v2694_v12, %v2678_v40 }
 0x55b   : > { %v2995_v57 = vpop.permute.xlu0 %2994  ;;  %3267 = vmatprep.subr.bf16.mxu1 %v3174_v30  ;;  %v2729_v16 = vpop.permute.xlu1 %2728  ;;  %v2699_v60 = vmul.f32 %v2690_v8, %v2683_v25  ;;  %v3010_v63 = vrot.slane %v8973_v33, %v9769_v14  ;;  %v3002_v18 = vsel %vm895_vm4, %v11222_v49, %v11196_v53  ;;  %v2999_v47 = vsel %vm895_vm4, %v11198_v29, %v11224_v32 }
 0x55c   : > { %v2733_v58 = vsel %vm617_vm2, %v11228_v21, %v2729_v16  ;;  %v2737_v11 = vsel %vm617_vm2, %v2729_v16, %v11228_v21  ;;  %v3166_v3 = vpack.c.bf16 %v2700_v9, %v2698_v19  ;;  %v3004_v6 = vsel %vm895_vm4, %v2995_v57, %v11234_v51 }
 0x55d   : > { %v2755_v48 = vmul.f32 %v2742_v54, %v2737_v11  ;;  %v2756_v43 = vmul.f32 %v2746_v15, %v2733_v58  ;;  %v2702_v54 = vmul.f32 %v2694_v12, %v2680_v17  ;;  %v8972_v17 = vld [vmem:[%s14459_s1 + $0x6] ss:$8 sm:$0x3] }
 0x55e   : > { %3268 = vmatpush1.bf16.msra.mxu1 %v3173_v50  ;;  %v2701_v50 = vmul.f32 %v2690_v8, %v2684_v45  ;;  %v2958_v9 = vrot.slane %v8972_v17, %v9769_v14 }
 0x55f   : > { %v3171_v52 = vpack.c.bf16 %v2755_v48, %v2753_v55  ;;  %v11330_v20 = vpop.permute.xlu0 %2942  ;;  %v11332_v21 = vpop.permute.xlu1 %2940  ;;  %v3172_v27 = vpack.c.bf16 %v2756_v43, %v2754_v31  ;;  %v2697_v31 = vmul.f32 %v2690_v8, %v2682_v59  ;;  %v3003_v48 = vsel %vm895_vm4, %v11224_v32, %v11198_v29  ;;  %v8971_v59 = vld [vmem:[%s14459_s1 + $0x5] ss:$8 sm:$0x3] }
 0x560   : > { %v3000_v43 = vsel %vm895_vm4, %v11234_v51, %v2995_v57  ;;  %v3020_v22 = vmul.f32 %v3014_v26, %v3003_v48  ;;  %v2998_v29 = vsel %vm895_vm4, %v11196_v53, %v11222_v49  ;;  %v3018_v32 = vmul.f32 %v3014_v26, %v3002_v18 }
 0x561   : > { %3269 = vmatprep.subr.bf16.mxu1 %v3172_v27  ;;  %v3165_v61 = vpack.c.bf16 %v2699_v60, %v2697_v31  ;;  %v2952_v53 = vsel %vm841_vm5, %v11330_v20, %v11252_v24 }
 0x562   : > { %3270 = vmatpush1.bf16.msra.mxu1 %v3171_v52 }
 0x563   : > { %v11350_v30 = vpop.permute.xlu0 %2930  ;;  %3271 = vmatprep.subr.bf16.mxu1 %v3170_v5  ;;  %v2677_v15 = vpop.permute.xlu1 %2676  ;;  %v3021_v5 = vmul.f32 %v3010_v63, %v3000_v43  ;;  %v2906_v43 = vrot.slane %v8971_v59, %v9769_v14 }
 0x564   : > { %v2681_v37 = vsel %vm563_vm3, %v11232_v41, %v2677_v15  ;;  %v2685_v38 = vsel %vm563_vm3, %v2677_v15, %v11232_v41 }
 0x565   : > { %v2703_v35 = vmul.f32 %v2690_v8, %v2685_v38  ;;  %v2704_v16 = vmul.f32 %v2694_v12, %v2681_v37  ;;  %v3022_v12 = vmul.f32 %v3014_v26, %v3004_v6  ;;  %v3019_v8 = vmul.f32 %v3010_v63, %v2999_v47 }
 0x566   : > { %3272 = vmatpush1.bf16.msra.mxu1 %v3169_v0  ;;  %v3017_v37 = vmul.f32 %v3010_v63, %v2998_v29  ;;  %v2962_v38 = vrot.slane %v8972_v17, %v9767_v13 }
 0x567   : > { %v3167_v58 = vpack.c.bf16 %v2703_v35, %v2701_v50  ;;  %v2939_v11 = vpop.permute.xlu0 %2938  ;;  %v11369_v55 = vpop.permute.xlu1 %2884  ;;  %v3168_v41 = vpack.c.bf16 %v2704_v16, %v2702_v54  ;;  %v2948_v50 = vsel %vm841_vm5, %v11252_v24, %v11330_v20  ;;  %v3194_v54 = vpack.c.bf16 %v3020_v22, %v3018_v32 }
 0x568   : > { %v2950_v49 = vsel %vm841_vm5, %v2939_v11, %v11350_v30  ;;  %v3193_v35 = vpack.c.bf16 %v3019_v8, %v3017_v37  ;;  %v2951_v16 = vsel %vm841_vm5, %v11332_v21, %v11295_v44  ;;  %v2969_v33 = vmul.f32 %v2958_v9, %v2948_v50 }
 0x569   : > { %3273 = vmatprep.subr.bf16.mxu1 %v3168_v41  ;;  %v2946_v24 = vsel %vm841_vm5, %v11350_v30, %v2939_v11  ;;  %v2970_v41 = vmul.f32 %v2962_v38, %v2952_v53  ;;  %v2966_v31 = vmul.f32 %v2962_v38, %v2950_v49  ;;  %v2910_v30 = vrot.slane %v8971_v59, %v9767_v13  ;;  %v8974_v49 = vld [vmem:[%s14459_s1 + $0x10] ss:$8 sm:$0x3] }
 0x56a   : > { %3274 = vmatpush1.bf16.msra.mxu1 %v3167_v58  ;;  %v2968_v11 = vmul.f32 %v2962_v38, %v2951_v16  ;;  %v2965_v6 = vmul.f32 %v2958_v9, %v2946_v24  ;;  %v3062_v59 = vrot.slane %v8974_v49, %v9769_v14 }
 0x56b   : > { %v2883_v52 = vpop.permute.xlu0 %2882  ;;  %3275 = vmatprep.subr.bf16.mxu1 %v3166_v3  ;;  %v2997_v27 = vpop.permute.xlu1 %2996 }
 0x56c   : > { %v3001_v51 = vsel %vm895_vm4, %v11239_v7, %v2997_v27  ;;  %v3005_v57 = vsel %vm895_vm4, %v2997_v27, %v11239_v7 }
 0x56d   : > { %v3023_v45 = vmul.f32 %v3010_v63, %v3001_v51  ;;  %v3024_v0 = vmul.f32 %v3014_v26, %v3005_v57  ;;  %v2947_v26 = vsel %vm841_vm5, %v11295_v44, %v11332_v21  ;;  %v3190_v44 = vpack.c.bf16 %v2968_v11, %v2966_v31 }
 0x56e   : > { %3276 = vmatpush1.bf16.msra.mxu1 %v3165_v61  ;;  %v2967_v22 = vmul.f32 %v2958_v9, %v2947_v26 }
 0x56f   : > { %v3195_v40 = vpack.c.bf16 %v3023_v45, %v3021_v5  ;;  %v2891_v15 = vpop.permute.xlu0 %2890  ;;  %v2881_v25 = vpop.permute.xlu1 %2880  ;;  %v3196_v7 = vpack.c.bf16 %v3024_v0, %v3022_v12 }
 0x570   : > { %v2896_v27 = vsel %vm787_vm6, %v2883_v52, %v2891_v15  ;;  %v2900_v47 = vsel %vm787_vm6, %v2891_v15, %v2883_v52  ;;  %v3189_v57 = vpack.c.bf16 %v2967_v22, %v2965_v6  ;;  %v9233_v22 = vld [vmem:[%s14741_s7 + $0xac] ss:$12 sps:$4 sm:$0xff]  }
 0x571   : > { %3277 = vmatprep.subr.bf16.mxu1 %v3196_v7  ;;  %v2917_v5 = vmul.f32 %v2906_v43, %v2896_v27  ;;  %v2918_v12 = vmul.f32 %v2910_v30, %v2900_v47  ;;  %v9229_v47 = vld [vmem:[%s14741_s7 + $0x90] ss:$12 sps:$4 sm:$0xff]  }
 0x572   : > { %3278 = vmatpush2.bf16.msra.mxu1 %v3195_v40 }
 0x573   : > { %v2879_v19 = vpop.permute.xlu0 %2878  ;;  %3279 = vmatprep.subr.bf16.mxu1 %v3194_v54  ;;  %v2945_v60 = vpop.permute.xlu1 %2944 }
 0x574   : > { %v2949_v20 = vsel %vm841_vm5, %v11266_v4, %v2945_v60  ;;  %v2953_v58 = vsel %vm841_vm5, %v2945_v60, %v11266_v4  ;;  %v3184_v60 = vpack.c.bf16 %v11111_v36, %v11105_v34  ;;  %v3182_v34 = vpack.c.bf16 %v11057_v28, %v11051_v62 }
 0x575   : > { %v2971_v48 = vmul.f32 %v2958_v9, %v2949_v20  ;;  %v2972_v3 = vmul.f32 %v2962_v38, %v2953_v58  ;;  %v3181_v28 = vpack.c.bf16 %v11033_v23, %v11029_v46  ;;  %v9232_v46 = vld [vmem:[%s14741_s7 + $0x98] ss:$12 sps:$4 sm:$0xff]   ;;  %v9235_v23 = vld [vmem:[%s14741_s7 + $0xa8] ss:$12 sps:$4 sm:$0xff]  }
 0x576   : > { %3280 = vmatpush2.bf16.msra.mxu1 %v3193_v35 }
 0x577   : > { %v3191_v61 = vpack.c.bf16 %v2971_v48, %v2969_v33  ;;  %v2887_v63 = vpop.permute.xlu0 %2886  ;;  %v2889_v18 = vpop.permute.xlu1 %2888  ;;  %v3192_v4 = vpack.c.bf16 %v2972_v3, %v2970_v41  ;;  %v3183_v48 = vpack.c.bf16 %v11084_v39, %v11076_v2 }
 0x578   : > { %v2898_v21 = vsel %vm787_vm6, %v2887_v63, %v2879_v19  ;;  %v2899_v51 = vsel %vm787_vm6, %v2889_v18, %v2881_v25  ;;  %v2894_v0 = vsel %vm787_vm6, %v2879_v19, %v2887_v63  ;;  %v2895_v52 = vsel %vm787_vm6, %v2881_v25, %v2889_v18 }
 0x579   : > { %3281 = vmatprep.subr.bf16.mxu1 %v3192_v4  ;;  %v2914_v8 = vmul.f32 %v2910_v30, %v2898_v21  ;;  %v2916_v40 = vmul.f32 %v2910_v30, %v2899_v51  ;;  %v2913_v54 = vmul.f32 %v2906_v43, %v2894_v0  ;;  %v2915_v53 = vmul.f32 %v2906_v43, %v2895_v52  ;;  %v9236_v51 = vld [vmem:[%s14741_s7 + $0xb0] ss:$12 sps:$4 sm:$0xff]  }
 0x57a   : > { %3282 = vmatpush2.bf16.msra.mxu1 %v3191_v61  ;;  %v3066_v19 = vrot.slane %v8974_v49, %v9767_v13 }
 0x57b   : > { %v3039_v17 = vpop.permute.xlu0 %3038  ;;  %3283 = vmatprep.subr.bf16.mxu1 %v3190_v44  ;;  %v2893_v45 = vpop.permute.xlu1 %2892  ;;  %v3186_v25 = vpack.c.bf16 %v2916_v40, %v2914_v8  ;;  %v3185_v16 = vpack.c.bf16 %v2915_v53, %v2913_v54 }
 0x57c   : > { %v2897_v29 = vsel %vm787_vm6, %v11369_v55, %v2893_v45  ;;  %v2901_v32 = vsel %vm787_vm6, %v2893_v45, %v11369_v55 }
 0x57d   : > { %v2919_v15 = vmul.f32 %v2906_v43, %v2897_v29  ;;  %v2920_v7 = vmul.f32 %v2910_v30, %v2901_v32 }
 0x57e   : > { %3284 = vmatpush2.bf16.msra.mxu1 %v3189_v57 }
 0x57f   : > { %v3187_v9 = vpack.c.bf16 %v2919_v15, %v2917_v5  ;;  %v3047_v37 = vpop.permute.xlu0 %3046  ;;  %v3041_v38 = vpop.permute.xlu1 %3040  ;;  %v3188_v50 = vpack.c.bf16 %v2920_v7, %v2918_v12 }
 0x580   : > { %v3052_v33 = vsel %vm949_vm7, %v3039_v17, %v3047_v37  ;;  %v3056_v24 = vsel %vm949_vm7, %v3047_v37, %v3039_v17 }
 0x581   : > { %3285 = vmatprep.subr.bf16.mxu1 %v3188_v50  ;;  %v3073_v36 = vmul.f32 %v3062_v59, %v3052_v33  ;;  %v3074_v3 = vmul.f32 %v3066_v19, %v3056_v24 }
 0x582   : > { %3286 = vmatpush2.bf16.msra.mxu1 %v3187_v9 }
 0x583   : > { %v3035_v35 = vpop.permute.xlu0 %3034  ;;  %3287 = vmatprep.subr.bf16.mxu1 %v3186_v25  ;;  %v3037_v55 = vpop.permute.xlu1 %3036 }
 0x586   : > { %3288 = vmatpush2.bf16.msra.mxu1 %v3185_v16 }
 0x587   : > { %v3043_v20 = vpop.permute.xlu0 %3042  ;;  %v3049_v58 = vpop.permute.xlu1 %3048  ;;  %3289 = vmatprep.subr.bf16.mxu1 %v3184_v60 }
 0x588   : > { %v3053_v41 = vsel %vm949_vm7, %v3041_v38, %v3049_v58  ;;  %v3057_v31 = vsel %vm949_vm7, %v3049_v58, %v3041_v38  ;;  %v3050_v30 = vsel %vm949_vm7, %v3035_v35, %v3043_v20  ;;  %v3054_v11 = vsel %vm949_vm7, %v3043_v20, %v3035_v35 }
 0x589   : > { %v3075_v26 = vmul.f32 %v3062_v59, %v3053_v41  ;;  %v3076_v43 = vmul.f32 %v3066_v19, %v3057_v31  ;;  %v3069_v39 = vmul.f32 %v3062_v59, %v3050_v30  ;;  %v3070_v18 = vmul.f32 %v3066_v19, %v3054_v11 }
 0x58a   : > { %3290 = vmatpush2.bf16.msra.mxu1 %v3183_v48 }
 0x58b   : > { %v3199_v6 = vpack.c.bf16 %v3075_v26, %v3073_v36  ;;  %v3045_v61 = vpop.permute.xlu1 %3044  ;;  %3291 = vmatprep.subr.bf16.mxu1 %v3182_v34  ;;  %v3200_v63 = vpack.c.bf16 %v3076_v43, %v3074_v3 }
 0x58c   : > { %v3051_v2 = vsel %vm949_vm7, %v3037_v55, %v3045_v61  ;;  %v3055_v62 = vsel %vm949_vm7, %v3045_v61, %v3037_v55 }
 0x58d   : > { %v3071_v4 = vmul.f32 %v3062_v59, %v3051_v2  ;;  %v3072_v27 = vmul.f32 %v3066_v19, %v3055_v62  ;;  %3326 = vmatprep.subr.bf16.mxu0 %v3200_v63 }
 0x58e   : > { %3292 = vmatpush2.bf16.msra.mxu1 %v3181_v28  ;;  %3327 = vmatpush1.bf16.msra.mxu0 %v3199_v6 }
 0x58f   : > { %v3197_v44 = vpack.c.bf16 %v3071_v4, %v3069_v39  ;;  %v3198_v21 = vpack.c.bf16 %v3072_v27, %v3070_v18 }
 0x591   : > { %3294 = vmatmul.mubr.bf16.vlgmr.msra.gmra.mxu1 %v9229_v47  ;;  %3328 = vmatprep.subr.bf16.mxu0 %v3198_v21 }
 0x592   : > { %3329 = vmatpush1.bf16.msra.mxu0 %v3197_v44  ;;  %3303 = vmatprep.mubr.bf16.mxu1 %v9233_v22 }
 0x594   : > { %v11507_v12 = vpop.permute.xlu0 %3217 }
 0x595   : > { %8981 = vmatmul.mubr.msk.bf16.vlgmr.msra.gmra.mxu0 %vm1111_vm8, %v9232_v46 }
 0x596   : > { %3356 = vmatprep.mubr.bf16.mxu0 %v14749_v42 }
 0x598   : > { %v11505_v57 = vpop.permute.xlu1 %3222  ;;  %v3213_v8 = vpop.permute.xlu0 %3212 }
 0x599   : > { %3304 = vmatmul.mubr.bf16.gmra.mxu1 %v9235_v23 }
 0x59a   : > { %4188 = vmatprep.mubr.bf16.mxu1 %v14749_v42 }
 0x59c   : > { %v3208_v5 = vpop.permute.xlu1 %3207 }
 0x59d   : > { %8982 = vmatmul.mubr.msk.bf16.gmra.mxu0 %vm1111_vm8, %v9236_v51 }
 0x651   : > { %v3295_v17 = vpop.f32.mrf.mxu1 }
 0x652   : > { %v3296_v45 = vadd.f32 %v3295_v17, %v3208_v5  ;;  %v9240_v17 = vld [vmem:[%s14741_s7 + $0x34] ss:$12 sps:$4 sm:$0xff]  }
 0x653   : > { %v3297_v0 = vpop.f32.mrf.mxu1  ;;  %4135 = vmatprep.mubr.bf16.mxu0 %v9240_v17 }
 0x654   : > { %v3298_v53 = vadd.f32 %v3297_v0, %v3208_v5 }
 0x655   : > { %v3299_v52 = vpop.f32.mrf.mxu1  ;;  %v3348_v29 = vpop.f32.mrf.mxu0 }
 0x656   : > { %v3349_v32 = vadd.f32 %v3348_v29, %v3296_v45  ;;  %v3300_v15 = vadd.f32 %v3299_v52, %v3213_v8 }
 0x657   : > { %v3350_v40 = vpop.f32.mrf.mxu0  ;;  %v3301_v25 = vpop.f32.mrf.mxu1 }
 0x658   : > { %v3367_v7 = vmul.f32 0.2, %v3349_v32  ;;  %v3351_v49 = vadd.f32 %v3350_v40, %v3298_v53  ;;  %v3302_v55 = vadd.f32 %v3301_v25, %v3213_v8 }
 0x659   : > { %v3352_v9 = vpop.f32.mrf.mxu0  ;;  %v3305_v24 = vpop.f32.mrf.mxu1 }
 0x65a   : > { %v11509_v37 = vmax.f32 %v3349_v32, %v3367_v7  ;;  %v3353_v38 = vadd.f32 %v3352_v9, %v3300_v15  ;;  %v3368_v16 = vmul.f32 0.2, %v3351_v49  ;;  %v3306_v31 = vadd.f32 %v3305_v24, %v11507_v12  ;;  %v4360_v24 = vld [vmem:[%s14463_s5 + $0x18] sm:$0xff] }
 0x65b   : > { %v3354_v35 = vpop.f32.mrf.mxu0  ;;  %v3307_v58 = vpop.f32.mrf.mxu1 }
 0x65c   : > { %14834 = vst [vmem:[#allocation42_spill] sm:$0xff] %v11509_v37  ;;  %v3369_v50 = vmul.f32 0.2, %v3353_v38  ;;  %3540 = vrot.lane.b32.xlu1 %v11509_v37, %s14835_s30  ;;  %v3355_v59 = vadd.f32 %v3354_v35, %v3302_v55  ;;  %v11535_v19 = vmax.f32 %v3351_v49, %v3368_v16  ;;  %v3308_v61 = vadd.f32 %v3307_v58, %v11507_v12 }
 0x65d   : > { %v3358_v20 = vpop.f32.mrf.mxu0  ;;  %v3309_v48 = vpop.f32.mrf.mxu1 }
 0x65e   : > { %v11513_v54 = vmax.f32 %v3353_v38, %v3369_v50  ;;  %14840 = vst [vmem:[#allocation61_spill] sm:$0xff] %v11535_v19  ;;  %v3370_v60 = vmul.f32 0.2, %v3355_v59  ;;  %v3359_v34 = vadd.f32 %v3358_v20, %v3306_v31  ;;  %v3310_v3 = vadd.f32 %v3309_v48, %v11505_v57 }
 0x65f   : > { %v3360_v41 = vpop.f32.mrf.mxu0  ;;  %v3311_v63 = vpop.f32.mrf.mxu1 }
 0x660   : > { %14836 = vst [vmem:[#allocation47_spill] sm:$0xff] %v11513_v54  ;;  %3542 = vrot.lane.b32.xlu0 %v11513_v54, %s14835_s30  ;;  %3488 = vrot.lane.b32.xlu1 %v11509_v37, %s14837_s0  ;;  %v11541_v33 = vmax.f32 %v3355_v59, %v3370_v60  ;;  %v3371_v26 = vmul.f32 0.2, %v3359_v34  ;;  %v3361_v2 = vadd.f32 %v3360_v41, %v3308_v61  ;;  %v4359_v59 = vld [vmem:[%s14463_s5 + $0x10] sm:$0xff]  ;;  %v9493_v60 = vmov 2   ;;  %v4357_v41 = vld [vmem:[%s14463_s5] sm:$0xff] }
 0x661   : > { %v3362_v36 = vpop.f32.mrf.mxu0  ;;  %v3312_v28 = vadd.f32 %v3311_v63, %v11505_v57  ;;  %9192 = vset.pattern.permute.xlu1 %v9493_v60  ;;  %9193 = vset.pattern.permute.xlu0 %v9493_v60 }
 0x662   : > { %14841 = vst [vmem:[#allocation46_spill] sm:$0xff] %v11541_v33  ;;  %v3363_v43 = vadd.f32 %v3362_v36, %v3310_v3  ;;  %v11565_v30 = vmax.f32 %v3359_v34, %v3371_v26  ;;  %v3372_v39 = vmul.f32 0.2, %v3361_v2  ;;  %v11724_v34 = vld [vmem:[%s14463_s5 + $0x8] sm:$0xff] }
 0x663   : > { %v3364_v62 = vpop.f32.mrf.mxu0  ;;  %14846 = vst [vmem:[#allocation28_spill] sm:$0xff] %v11724_v34 }
 0x664   : > { %3490 = vrot.lane.b32.xlu0 %v11513_v54, %s14837_s0  ;;  %3436 = vrot.lane.b32.xlu1 %v11509_v37, %s14838_s17  ;;  %14842 = vst [vmem:[#allocation60_spill] sm:$0xff] %v11565_v30  ;;  %v3373_v11 = vmul.f32 0.2, %v3363_v43  ;;  %v3365_v18 = vadd.f32 %v3364_v62, %v3312_v28  ;;  %v11595_v4 = vmax.f32 %v3361_v2, %v3372_v39 }
 0x666   : > { %v11571_v6 = vmax.f32 %v3363_v43, %v3373_v11  ;;  %14844 = vst [vmem:[#allocation29_spill] sm:$0xff] %v11595_v4  ;;  %v3374_v27 = vmul.f32 0.2, %v3365_v18  ;;  %v8985_v11 = vld [vmem:[%s14459_s1 + $0x3] ss:$8 sm:$0x3] }
 0x667   : > { %v3572_v62 = vrot.slane %v8985_v11, %v9767_v13 }
 0x668   : > { %3438 = vrot.lane.b32.xlu0 %v11513_v54, %s14838_s17  ;;  %3756 = vrot.lane.b32.xlu1 %v11509_v37, %s14833_s22  ;;  %14843 = vst [vmem:[#allocation31_spill] sm:$0xff] %v11571_v6  ;;  %v11601_v47 = vmax.f32 %v3365_v18, %v3374_v27  ;;  %v3568_v18 = vrot.slane %v8985_v11, %v9769_v14  ;;  %v8984_v11 = vld [vmem:[%s14459_s1 + $0x2] ss:$8 sm:$0x3] }
 0x66a   : > { %14845 = vst [vmem:[#allocation30_spill] sm:$0xff] %v11601_v47 }
 0x66c   : > { %3758 = vrot.lane.b32.xlu0 %v11513_v54, %s14833_s22  ;;  %3384 = vrot.lane.b32.xlu1 %v11509_v37, %s14839_s24 }
 0x670   : > { %3386 = vrot.lane.b32.xlu0 %v11513_v54, %s14839_s24  ;;  %3704 = vrot.lane.b32.xlu1 %v11509_v37, %s14832_s20 }
 0x674   : > { %3706 = vrot.lane.b32.xlu0 %v11513_v54, %s14832_s20  ;;  %3548 = vrot.lane.b32.xlu1 %v11535_v19, %s14835_s30 }
 0x678   : > { %3550 = vrot.lane.b32.xlu0 %v11541_v33, %s14835_s30  ;;  %3496 = vrot.lane.b32.xlu1 %v11535_v19, %s14837_s0 }
 0x67c   : > { %3498 = vrot.lane.b32.xlu0 %v11541_v33, %s14837_s0  ;;  %3444 = vrot.lane.b32.xlu1 %v11535_v19, %s14838_s17 }
 0x680   : > { %3446 = vrot.lane.b32.xlu0 %v11541_v33, %s14838_s17  ;;  %3764 = vrot.lane.b32.xlu1 %v11535_v19, %s14833_s22 }
 0x684   : > { %3766 = vrot.lane.b32.xlu0 %v11541_v33, %s14833_s22  ;;  %3392 = vrot.lane.b32.xlu1 %v11535_v19, %s14839_s24 }
 0x688   : > { %3394 = vrot.lane.b32.xlu0 %v11541_v33, %s14839_s24  ;;  %3712 = vrot.lane.b32.xlu1 %v11535_v19, %s14832_s20 }
 0x68c   : > { %3714 = vrot.lane.b32.xlu0 %v11541_v33, %s14832_s20  ;;  %3544 = vrot.lane.b32.xlu1 %v11565_v30, %s14835_s30 }
 0x690   : > { %3546 = vrot.lane.b32.xlu0 %v11571_v6, %s14835_s30  ;;  %3492 = vrot.lane.b32.xlu1 %v11565_v30, %s14837_s0 }
 0x694   : > { %3494 = vrot.lane.b32.xlu0 %v11571_v6, %s14837_s0  ;;  %3440 = vrot.lane.b32.xlu1 %v11565_v30, %s14838_s17 }
 0x698   : > { %3442 = vrot.lane.b32.xlu0 %v11571_v6, %s14838_s17  ;;  %3760 = vrot.lane.b32.xlu1 %v11565_v30, %s14833_s22 }
 0x69c   : > { %3762 = vrot.lane.b32.xlu0 %v11571_v6, %s14833_s22  ;;  %3388 = vrot.lane.b32.xlu1 %v11565_v30, %s14839_s24 }
 0x6a0   : > { %3390 = vrot.lane.b32.xlu0 %v11571_v6, %s14839_s24  ;;  %3708 = vrot.lane.b32.xlu1 %v11565_v30, %s14832_s20 }
 0x6a4   : > { %3710 = vrot.lane.b32.xlu0 %v11571_v6, %s14832_s20  ;;  %3552 = vrot.lane.b32.xlu1 %v11595_v4, %s14835_s30 }
 0x6a8   : > { %3554 = vrot.lane.b32.xlu0 %v11601_v47, %s14835_s30  ;;  %3656 = vrot.lane.b32.xlu1 %v11565_v30, %s14736_s25 }
 0x6ac   : > { %3658 = vrot.lane.b32.xlu0 %v11571_v6, %s14736_s25  ;;  %3500 = vrot.lane.b32.xlu1 %v11595_v4, %s14837_s0 }
 0x6b0   : > { %3502 = vrot.lane.b32.xlu0 %v11601_v47, %s14837_s0  ;;  %3448 = vrot.lane.b32.xlu1 %v11595_v4, %s14838_s17 }
 0x6b4   : > { %3450 = vrot.lane.b32.xlu0 %v11601_v47, %s14838_s17  ;;  %3768 = vrot.lane.b32.xlu1 %v11595_v4, %s14833_s22 }
 0x6b8   : > { %3770 = vrot.lane.b32.xlu0 %v11601_v47, %s14833_s22  ;;  %3396 = vrot.lane.b32.xlu1 %v11595_v4, %s14839_s24 }
 0x6bc   : > { %3654 = vrot.lane.b32.xlu0 %v11513_v54, %s14736_s25  ;;  %3716 = vrot.lane.b32.xlu1 %v11595_v4, %s14832_s20 }
 0x6c0   : > { %3398 = vrot.lane.b32.xlu0 %v11601_v47, %s14839_s24  ;;  %3664 = vrot.lane.b32.xlu1 %v11595_v4, %s14736_s25 }
 0x6c4   : > { %3662 = vrot.lane.b32.xlu0 %v11541_v33, %s14736_s25  ;;  %3652 = vrot.lane.b32.xlu1 %v11509_v37, %s14736_s25 }
 0x6c8   : > { %3718 = vrot.lane.b32.xlu0 %v11601_v47, %s14832_s20  ;;  %3660 = vrot.lane.b32.xlu1 %v11535_v19, %s14736_s25 }
 0x6cc   : > { %3606 = vrot.lane.b32.xlu0 %v11571_v6, %s14739_s26  ;;  %3604 = vrot.lane.b32.xlu1 %v11565_v30, %s14739_s26 }
 0x6ce   : > { %v11643_v22 = vpop.permute.xlu1 %3540 }
 0x6d0   : > { %3666 = vrot.lane.b32.xlu0 %v11601_v47, %s14736_s25  ;;  %3612 = vrot.lane.b32.xlu1 %v11595_v4, %s14739_s26 }
 0x6d2   : > { %v11649_v44 = vpop.permute.xlu0 %3542  ;;  %v11651_v21 = vpop.permute.xlu1 %3488 }
 0x6d4   : > { %3602 = vrot.lane.b32.xlu0 %v11513_v54, %s14739_s26  ;;  %3600 = vrot.lane.b32.xlu1 %v11509_v37, %s14739_s26 }
 0x6d6   : > { %v11657_v46 = vpop.permute.xlu0 %3490  ;;  %v11659_v23 = vpop.permute.xlu1 %3436 }
 0x6d8   : > { %3614 = vrot.lane.b32.xlu0 %v11601_v47, %s14739_s26  ;;  %3608 = vrot.lane.b32.xlu1 %v11535_v19, %s14739_s26 }
 0x6da   : > { %v11665_v51 = vpop.permute.xlu0 %3438  ;;  %v11667_v57 = vpop.permute.xlu1 %3756 }
 0x6dc   : > { %3610 = vrot.lane.b32.xlu0 %v11541_v33, %s14739_s26  ;;  %4373 = vperm.xlu1 %9192, %v4359_v59  }
 0x6de   : > { %v11671_v5 = vpop.permute.xlu0 %3758  ;;  %v11673_v12 = vpop.permute.xlu1 %3384 }
 0x6e0   : > { %4378 = vperm.xlu0 %9193, %v4360_v24   ;;  %4363 = vperm.xlu1 %9192, %v4357_v41  }
 0x6e2   : > { %v11678_v45 = vpop.permute.xlu0 %3386  ;;  %v11680_v0 = vpop.permute.xlu1 %3704 }
 0x6e4   : > { %4368 = vperm.xlu1 %9192, %v11724_v34  }
 0x6e6   : > { %v11682_v52 = vpop.permute.xlu0 %3706  ;;  %v3549_v29 = vpop.permute.xlu1 %3548 }
 0x6e7   : > { %v3556_v27 = vsel %vm725_vm0, %v11643_v22, %v3549_v29  ;;  %v3560_v33 = vsel %vm725_vm0, %v3549_v29, %v11643_v22 }
 0x6e8   : > { %v3575_v22 = vmul.f32 %v3568_v18, %v3560_v33 }
 0x6ea   : > { %v3551_v32 = vpop.permute.xlu0 %3550  ;;  %v11684_v8 = vpop.permute.xlu1 %3496 }
 0x6eb   : > { %v3557_v2 = vsel %vm725_vm0, %v11649_v44, %v3551_v32  ;;  %v3561_v60 = vsel %vm725_vm0, %v3551_v32, %v11649_v44  ;;  %v3576_v44 = vmul.f32 %v3572_v62, %v3556_v27 }
 0x6ec   : > { %v3578_v24 = vmul.f32 %v3572_v62, %v3557_v2  ;;  %v3577_v32 = vmul.f32 %v3568_v18, %v3561_v60  ;;  %v8983_v2 = vld [vmem:[%s14459_s1 + $0x1] ss:$8 sm:$0x3] }
 0x6ee   : > { %v11686_v40 = vpop.permute.xlu0 %3498  ;;  %v11688_v15 = vpop.permute.xlu1 %3444  ;;  %v4043_v27 = vpack.c.bf16 %v3577_v32, %v3575_v22 }
 0x6ef   : > { %v3505_v29 = vsel %vm671_vm1, %v11657_v46, %v11686_v40 }
 0x6f2   : > { %v11690_v7 = vpop.permute.xlu0 %3446  ;;  %v11692_v9 = vpop.permute.xlu1 %3764 }
 0x6f6   : > { %v11694_v38 = vpop.permute.xlu0 %3766  ;;  %v11696_v50 = vpop.permute.xlu1 %3392 }
 0x6fa   : > { %v11698_v53 = vpop.permute.xlu0 %3394  ;;  %v11700_v25 = vpop.permute.xlu1 %3712 }
 0x6fe   : > { %v11702_v49 = vpop.permute.xlu0 %3714  ;;  %v3545_v35 = vpop.permute.xlu1 %3544 }
 0x702   : > { %v3547_v55 = vpop.permute.xlu0 %3546  ;;  %v3493_v16 = vpop.permute.xlu1 %3492 }
 0x706   : > { %v11710_v20 = vpop.permute.xlu0 %3494  ;;  %v11712_v58 = vpop.permute.xlu1 %3440 }
 0x70a   : > { %v11717_v31 = vpop.permute.xlu0 %3442  ;;  %v11719_v48 = vpop.permute.xlu1 %3760 }
 0x70e   : > { %v11726_v36 = vpop.permute.xlu0 %3762  ;;  %v11728_v3 = vpop.permute.xlu1 %3388 }
 0x712   : > { %v11731_v26 = vpop.permute.xlu0 %3390  ;;  %v11733_v43 = vpop.permute.xlu1 %3708 }
 0x716   : > { %v11738_v61 = vpop.permute.xlu0 %3710  ;;  %v3553_v63 = vpop.permute.xlu1 %3552 }
 0x717   : > { %v3558_v28 = vsel %vm725_vm0, %v3545_v35, %v3553_v63  ;;  %v3562_v39 = vsel %vm725_vm0, %v3553_v63, %v3545_v35 }
 0x718   : > { %v3579_v63 = vmul.f32 %v3568_v18, %v3562_v39  ;;  %v3580_v34 = vmul.f32 %v3572_v62, %v3558_v28  ;;  %v3516_v39 = vrot.slane %v8984_v11, %v9769_v14  ;;  %v3520_v28 = vrot.slane %v8984_v11, %v9767_v13 }
 0x71a   : > { %v3555_v17 = vpop.permute.xlu0 %3554  ;;  %v11752_v59 = vpop.permute.xlu1 %3656 }
 0x71b   : > { %v3559_v41 = vsel %vm725_vm0, %v3547_v55, %v3555_v17  ;;  %v3563_v35 = vsel %vm725_vm0, %v3555_v17, %v3547_v55 }
 0x71c   : > { %v3581_v54 = vmul.f32 %v3568_v18, %v3563_v35  ;;  %v3582_v37 = vmul.f32 %v3572_v62, %v3559_v41  ;;  %v8989_v41 = vld [vmem:[%s14459_s1 + $0x10] ss:$8 sm:$0x3]  ;;  %v3468_v62 = vrot.slane %v8983_v2, %v9767_v13 }
 0x71d   : > { %v3788_v22 = vrot.slane %v8989_v41, %v9767_v13 }
 0x71e   : > { %v4045_v19 = vpack.c.bf16 %v3581_v54, %v3579_v63  ;;  %v11770_v55 = vpop.permute.xlu0 %3658  ;;  %v3501_v17 = vpop.permute.xlu1 %3500  ;;  %v4046_v6 = vpack.c.bf16 %v3582_v37, %v3580_v34  ;;  %v3509_v54 = vsel %vm671_vm1, %v11686_v40, %v11657_v46  ;;  %v4044_v37 = vpack.c.bf16 %v3578_v24, %v3576_v44 }
 0x71f   : > { %v11786_v34 = vrot.slane %v8983_v2, %v9769_v14  ;;  %v3506_v33 = vsel %vm671_vm1, %v3493_v16, %v3501_v17  ;;  %v3510_v18 = vsel %vm671_vm1, %v3501_v17, %v3493_v16  ;;  %v3504_v46 = vsel %vm671_vm1, %v11651_v21, %v11684_v8 }
 0x720   : > { %4103 = vmatprep.subr.bf16.mxu0 %v4046_v6  ;;  %v3508_v6 = vsel %vm671_vm1, %v11684_v8, %v11651_v21  ;;  %v11802_v40 = vrot.slane %v8989_v41, %v9769_v14  ;;  %v3525_v35 = vmul.f32 %v3516_v39, %v3509_v54  ;;  %v3526_v16 = vmul.f32 %v3520_v28, %v3505_v29 }
 0x721   : > { %4104 = vmatpush1.bf16.msra.mxu0 %v4045_v19  ;;  %v3527_v63 = vmul.f32 %v3516_v39, %v3510_v18  ;;  %v3528_v44 = vmul.f32 %v3520_v28, %v3506_v33  ;;  %v3523_v8 = vmul.f32 %v3516_v39, %v3508_v6  ;;  %v3524_v2 = vmul.f32 %v3520_v28, %v3504_v46 }
 0x722   : > { %v3503_v60 = vpop.permute.xlu0 %3502  ;;  %4105 = vmatprep.subr.bf16.mxu0 %v4044_v37  ;;  %v3449_v24 = vpop.permute.xlu1 %3448  ;;  %v3452_v17 = vsel %vm617_vm2, %v11659_v23, %v11688_v15  ;;  %v3456_v29 = vsel %vm617_vm2, %v11688_v15, %v11659_v23  ;;  %v3777_v41 = vsel %vm949_vm7, %v11694_v38, %v11671_v5 }
 0x723   : > { %v3507_v19 = vsel %vm671_vm1, %v11710_v20, %v3503_v60  ;;  %v3511_v11 = vsel %vm671_vm1, %v3503_v60, %v11710_v20  ;;  %v3453_v20 = vsel %vm617_vm2, %v11665_v51, %v11690_v7  ;;  %v4039_v33 = vpack.c.bf16 %v3525_v35, %v3523_v8 }
 0x724   : > { %v3529_v32 = vmul.f32 %v3516_v39, %v3511_v11  ;;  %v3530_v21 = vmul.f32 %v3520_v28, %v3507_v19  ;;  %v3454_v18 = vsel %vm617_vm2, %v11712_v58, %v3449_v24  ;;  %v4040_v6 = vpack.c.bf16 %v3526_v16, %v3524_v2 }
 0x725   : > { %4106 = vmatpush1.bf16.msra.mxu0 %v4043_v27  ;;  %v3457_v60 = vsel %vm617_vm2, %v11690_v7, %v11665_v51  ;;  %v3474_v35 = vmul.f32 %v3468_v62, %v3453_v20  ;;  %v3776_v19 = vsel %vm949_vm7, %v11692_v9, %v11667_v57  ;;  %v3773_v16 = vsel %vm949_vm7, %v11671_v5, %v11694_v38  ;;  %v3383_v38 = vld [vmem:[%s14459_s1] ss:$8 sm:$0x3] }
 0x726   : > { %v4041_v39 = vpack.c.bf16 %v3529_v32, %v3527_v63  ;;  %v3451_v28 = vpop.permute.xlu0 %3450  ;;  %v3769_v54 = vpop.permute.xlu1 %3768  ;;  %v4042_v37 = vpack.c.bf16 %v3530_v21, %v3528_v44  ;;  %v3794_v11 = vmul.f32 %v3788_v22, %v3777_v41  ;;  %v3458_v51 = vsel %vm617_vm2, %v3449_v24, %v11712_v58 }
 0x727   : > { %v3455_v23 = vsel %vm617_vm2, %v11717_v31, %v3451_v28  ;;  %v3459_v15 = vsel %vm617_vm2, %v3451_v28, %v11717_v31  ;;  %v3774_v46 = vsel %vm949_vm7, %v11719_v48, %v3769_v54  ;;  %v3778_v31 = vsel %vm949_vm7, %v3769_v54, %v11719_v48 }
 0x728   : > { %v3478_v27 = vmul.f32 %v3468_v62, %v3455_v23  ;;  %4107 = vmatprep.subr.bf16.mxu0 %v4042_v37  ;;  %v3476_v7 = vmul.f32 %v3468_v62, %v3454_v18  ;;  %v3477_v32 = vmul.f32 %v11786_v34, %v3459_v15  ;;  %v3795_v21 = vmul.f32 %v11802_v40, %v3774_v46 }
 0x729   : > { %4108 = vmatpush1.bf16.msra.mxu0 %v4041_v39  ;;  %v3796_v58 = vmul.f32 %v3788_v22, %v3778_v31  ;;  %v3472_v20 = vmul.f32 %v3468_v62, %v3452_v17  ;;  %v3473_v39 = vmul.f32 %v11786_v34, %v3457_v60  ;;  %v3772_v28 = vsel %vm949_vm7, %v11667_v57, %v11692_v9 }
 0x72a   : > { %v3771_v63 = vpop.permute.xlu0 %3770  ;;  %4109 = vmatprep.subr.bf16.mxu0 %v4040_v6  ;;  %v3397_v44 = vpop.permute.xlu1 %3396  ;;  %v4038_v2 = vpack.c.bf16 %v3478_v27, %v3476_v7  ;;  %v3475_v54 = vmul.f32 %v11786_v34, %v3458_v51  ;;  %v3793_v37 = vmul.f32 %v11802_v40, %v3773_v16  ;;  %v3471_v62 = vmul.f32 %v11786_v34, %v3456_v29 }
 0x72b   : > { %v3775_v48 = vsel %vm949_vm7, %v11726_v36, %v3771_v63  ;;  %v3779_v5 = vsel %vm949_vm7, %v3771_v63, %v11726_v36  ;;  %v3792_v36 = vmul.f32 %v3788_v22, %v3776_v19  ;;  %v3412_v17 = vrot.slane %v3383_v38, %v9769_v14 }
 0x72c   : > { %v3797_v24 = vmul.f32 %v11802_v40, %v3775_v48  ;;  %v3798_v8 = vmul.f32 %v3788_v22, %v3779_v5  ;;  %v4037_v27 = vpack.c.bf16 %v3477_v32, %v3475_v54  ;;  %v3791_v46 = vmul.f32 %v11802_v40, %v3772_v28  ;;  %v9237_v32 = vld [vmem:[%s14741_s7 + $0x38] ss:$12 sps:$4 sm:$0xff]  }
 0x72d   : > { %4110 = vmatpush1.bf16.msra.mxu0 %v4039_v33  ;;  %v3401_v57 = vsel %vm563_vm3, %v11678_v45, %v11698_v53  ;;  %v4036_v9 = vpack.c.bf16 %v3474_v35, %v3472_v20  ;;  %v4064_v22 = vpack.c.bf16 %v3794_v11, %v3792_v36  ;;  %v3416_v33 = vrot.slane %v3383_v38, %v9767_v13  ;;  %v8987_v36 = vld [vmem:[%s14459_s1 + $0x6] ss:$8 sm:$0x3] }
 0x72e   : > { %v4065_v41 = vpack.c.bf16 %v3797_v24, %v3795_v21  ;;  %v11876_v18 = vpop.permute.xlu0 %3654  ;;  %4111 = vmatprep.subr.bf16.mxu0 %v4038_v2  ;;  %v3717_v23 = vpop.permute.xlu1 %3716  ;;  %v4066_v15 = vpack.c.bf16 %v3798_v8, %v3796_v58  ;;  %v3402_v6 = vsel %vm563_vm3, %v11728_v3, %v3397_v44  ;;  %v3406_v34 = vsel %vm563_vm3, %v3397_v44, %v11728_v3 }
 0x72f   : > { %v4035_v40 = vpack.c.bf16 %v3473_v39, %v3471_v62  ;;  %v4063_v29 = vpack.c.bf16 %v3793_v37, %v3791_v46  ;;  %v3400_v60 = vsel %vm563_vm3, %v11673_v12, %v11696_v50  ;;  %v3405_v31 = vsel %vm563_vm3, %v11698_v53, %v11678_v45 }
 0x730   : > { %4168 = vmatprep.subr.bf16.mxu1 %v4066_v15  ;;  %v3422_v3 = vmul.f32 %v3416_v33, %v3401_v57  ;;  %v3423_v51 = vmul.f32 %v3412_v17, %v3406_v34  ;;  %v3424_v7 = vmul.f32 %v3416_v33, %v3402_v6  ;;  %v3404_v45 = vsel %vm563_vm3, %v11696_v50, %v11673_v12 }
 0x731   : > { %4112 = vmatpush1.bf16.msra.mxu0 %v4037_v27  ;;  %4169 = vmatpush1.bf16.msra.mxu1 %v4065_v41  ;;  %v3420_v53 = vmul.f32 %v3416_v33, %v3400_v60  ;;  %v3421_v21 = vmul.f32 %v3412_v17, %v3405_v31  ;;  %v3419_v24 = vmul.f32 %v3412_v17, %v3404_v45  ;;  %v14847_v41 = vld [vmem:[#allocation13_spill] sm:$0xff]  ;;  %v14851_v45 = vld [vmem:[#allocation70_spill] sm:$0xff] }
 0x732   : > { %v3399_v35 = vpop.permute.xlu0 %3398  ;;  %4113 = vmatprep.subr.bf16.mxu0 %v4036_v9  ;;  %4170 = vmatprep.subr.bf16.mxu1 %v4064_v22  ;;  %v11896_v19 = vpop.permute.xlu1 %3664  ;;  %v3725_v12 = vsel %vm895_vm4, %v11702_v49, %v11682_v52  ;;  %v3722_v2 = vsel %vm895_vm4, %v11733_v43, %v3717_v23  ;;  %v3726_v20 = vsel %vm895_vm4, %v3717_v23, %v11733_v43  ;;  %v9244_v22 = vld [vmem:[%s14741_s7 + $0x50] ss:$12 sps:$4 sm:$0xff]  }
 0x733   : > { %v3403_v16 = vsel %vm563_vm3, %v11731_v26, %v3399_v35  ;;  %v3407_v11 = vsel %vm563_vm3, %v3399_v35, %v11731_v26  ;;  %v8988_v26 = vld [vmem:[%s14459_s1 + $0x7] ss:$8 sm:$0x3]  ;;  %v4032_v50 = vpack.c.bf16 %v3422_v3, %v3420_v53  ;;  %v4031_v39 = vpack.c.bf16 %v3421_v21, %v3419_v24 }
 0x734   : > { %v3425_v63 = vmul.f32 %v3412_v17, %v3407_v11  ;;  %v3426_v44 = vmul.f32 %v3416_v33, %v3403_v16  ;;  %v3736_v8 = vrot.slane %v8988_v26, %v9767_v13  ;;  %v3732_v28 = vrot.slane %v8988_v26, %v9769_v14  ;;  %v14848_v33 = vld [vmem:[#allocation12_spill] sm:$0xff] }
 0x735   : > { %4114 = vmatpush1.bf16.msra.mxu0 %v4035_v40  ;;  %4171 = vmatpush1.bf16.msra.mxu1 %v4063_v29  ;;  %v3724_v54 = vsel %vm895_vm4, %v11700_v25, %v11680_v0  ;;  %v3721_v23 = vsel %vm895_vm4, %v11682_v52, %v11702_v49  ;;  %v3720_v52 = vsel %vm895_vm4, %v11680_v0, %v11700_v25  ;;  %v14849_v29 = vld [vmem:[#allocation15_spill] sm:$0xff]  ;;  %v9247_v25 = vld [vmem:[%s14756_s6 + $0x34] ss:$12 sps:$4 sm:$0xff]  }
 0x736   : > { %v4033_v48 = vpack.c.bf16 %v3425_v63, %v3423_v51  ;;  %v11918_v5 = vpop.permute.xlu0 %3662  ;;  %4251 = vmatprep.subr.bf16.mxu1 %v10572_v1  ;;  %v11921_v38 = vpop.permute.xlu1 %3652  ;;  %v4034_v58 = vpack.c.bf16 %v3426_v44, %v3424_v7  ;;  %v3742_v15 = vmul.f32 %v3736_v8, %v3725_v12  ;;  %v3743_v27 = vmul.f32 %v3732_v28, %v3722_v2  ;;  %v14850_v7 = vld [vmem:[#allocation14_spill] sm:$0xff] }
 0x737   : > { %v3744_v46 = vmul.f32 %v3736_v8, %v3726_v20  ;;  %v3680_v49 = vrot.slane %v8987_v36, %v9769_v14  ;;  %v3741_v6 = vmul.f32 %v3732_v28, %v3721_v23  ;;  %v3684_v31 = vrot.slane %v8987_v36, %v9767_v13 }
 0x738   : > { %4115 = vmatprep.subr.bf16.mxu0 %v4034_v58  ;;  %8996 = vmatmul.mubr.msk.bf16.vlgmr.msra.gmra.mxu1 %vm1111_vm8, %v9237_v32  ;;  %v3670_v0 = vsel %vm841_vm5, %v11752_v59, %v11896_v19  ;;  %v3739_v3 = vmul.f32 %v3732_v28, %v3720_v52  ;;  %v3674_v16 = vsel %vm841_vm5, %v11896_v19, %v11752_v59 }
 0x739   : > { %4116 = vmatpush1.bf16.msra.mxu0 %v4033_v48  ;;  %4252 = vmatpush1.bf16.msra.mxu1 %v10721_v56  ;;  %v3691_v44 = vmul.f32 %v3680_v49, %v3670_v0  ;;  %v3692_v21 = vmul.f32 %v3684_v31, %v3674_v16  ;;  %v3673_v59 = vsel %vm841_vm5, %v11918_v5, %v11876_v18 }
 0x73a   : > { %v3719_v37 = vpop.permute.xlu0 %3718  ;;  %4117 = vmatprep.subr.bf16.mxu0 %v4032_v50  ;;  %4253 = vmatprep.subr.bf16.mxu1 %v14847_v41  ;;  %v3661_v43 = vpop.permute.xlu1 %3660  ;;  %v4059_v63 = vpack.c.bf16 %v3741_v6, %v3739_v3  ;;  %v8986_v50 = vld [vmem:[%s14459_s1 + $0x5] ss:$8 sm:$0x3]  ;;  %v3690_v2 = vmul.f32 %v3684_v31, %v3673_v59 }
 0x73b   : > { %v3723_v62 = vsel %vm895_vm4, %v11738_v61, %v3719_v37  ;;  %v3727_v17 = vsel %vm895_vm4, %v3719_v37, %v11738_v61  ;;  %4198 = vmatprep.mubr.bf16.mxu1 %v14749_v42  ;;  %v3740_v61 = vmul.f32 %v3736_v8, %v3724_v54  ;;  %v3672_v51 = vsel %vm841_vm5, %v3661_v43, %v11921_v38 }
 0x73c   : > { %v3745_v57 = vmul.f32 %v3732_v28, %v3723_v62  ;;  %v3746_v9 = vmul.f32 %v3736_v8, %v3727_v17  ;;  %v3668_v48 = vsel %vm841_vm5, %v11921_v38, %v3661_v43  ;;  %v3688_v58 = vmul.f32 %v3684_v31, %v3672_v51  ;;  %v14852_v8 = vld [vmem:[#allocation71_spill] sm:$0xff]  ;;  %v14853_v28 = vld [vmem:[#allocation21_spill] sm:$0xff] }
 0x73d   : > { %4118 = vmatpush1.bf16.msra.mxu0 %v4031_v39  ;;  %4254 = vmatpush1.bf16.msra.mxu1 %v14848_v33  ;;  %v4060_v11 = vpack.c.bf16 %v3742_v15, %v3740_v61  ;;  %v3687_v36 = vmul.f32 %v3680_v49, %v3668_v48  ;;  %v3628_v37 = vrot.slane %v8986_v50, %v9769_v14  ;;  %v14861_v48 = vld [vmem:[#allocation41_spill] sm:$0xff] }
 0x73e   : > { %v4061_v34 = vpack.c.bf16 %v3745_v57, %v3743_v27  ;;  %v3607_v40 = vpop.permute.xlu0 %3606  ;;  %4255 = vmatprep.subr.bf16.mxu1 %v14849_v29  ;;  %v3605_v60 = vpop.permute.xlu1 %3604  ;;  %v4062_v35 = vpack.c.bf16 %v3746_v9, %v3744_v46  ;;  %v3632_v43 = vrot.slane %v8986_v50, %v9767_v13  ;;  %v4056_v23 = vpack.c.bf16 %v3690_v2, %v3688_v58  ;;  %v14855_v27 = vld [vmem:[#allocation16_spill] sm:$0xff]  ;;  %v14862_v58 = vld [vmem:[#allocation31_spill] sm:$0xff]  ;;  %v14864_v50 = vld [vmem:[#allocation46_spill] sm:$0xff] }
 0x73f   : > { %v14865_v2 = vld [vmem:[#allocation40_spill] sm:$0xff] }
 0x740   : > { %4119 = vmatprep.subr.bf16.mxu0 %v4062_v35  ;;  %8997 = vmatmul.mubr.msk.bf16.gmra.mxu1 %vm1111_vm8, %v9244_v22  ;;  %v14856_v35 = vld [vmem:[#allocation17_spill] sm:$0xff] }
 0x741   : > { %4120 = vmatpush2.bf16.msra.mxu0 %v4061_v34  ;;  %4256 = vmatpush1.bf16.msra.mxu1 %v14850_v7 }
 0x742   : > { %v3667_v32 = vpop.permute.xlu0 %3666  ;;  %4121 = vmatprep.subr.bf16.mxu0 %v4060_v11  ;;  %4257 = vmatprep.subr.bf16.mxu1 %v14851_v45  ;;  %v3613_v53 = vpop.permute.xlu1 %3612 }
 0x743   : > { %v3671_v19 = vsel %vm841_vm5, %v11770_v55, %v3667_v32  ;;  %v3675_v26 = vsel %vm841_vm5, %v3667_v32, %v11770_v55  ;;  %4283 = vmatprep.mubr.bf16.mxu1 %v9247_v25  ;;  %v3669_v55 = vsel %vm841_vm5, %v11876_v18, %v11918_v5  ;;  %v3618_v62 = vsel %vm787_vm6, %v3605_v60, %v3613_v53  ;;  %v14854_v5 = vld [vmem:[#allocation20_spill] sm:$0xff]  ;;  %v14857_v25 = vld [vmem:[#allocation25_spill] sm:$0xff] }
 0x744   : > { %v3693_v24 = vmul.f32 %v3680_v49, %v3671_v19  ;;  %v3694_v12 = vmul.f32 %v3684_v31, %v3675_v26  ;;  %v3689_v15 = vmul.f32 %v3680_v49, %v3669_v55  ;;  %v3622_v18 = vsel %vm787_vm6, %v3613_v53, %v3605_v60  ;;  %v14858_v32 = vld [vmem:[#allocation24_spill] sm:$0xff]  ;;  %v14860_v26 = vld [vmem:[#allocation26_spill] sm:$0xff] }
 0x745   : > { %4122 = vmatpush2.bf16.msra.mxu0 %v4059_v63  ;;  %4258 = vmatpush1.bf16.msra.mxu1 %v14852_v8  ;;  %v3639_v52 = vmul.f32 %v3628_v37, %v3618_v62  ;;  %v3640_v49 = vmul.f32 %v3632_v43, %v3622_v18  ;;  %v4050_v19 = vpack.c.bf16 %v11601_v47, %v11595_v4  ;;  %v14872_v62 = vld [vmem:[#allocation48_spill] sm:$0xff]  ;;  %v14873_v18 = vld [vmem:[#allocation23_spill] sm:$0xff] }
 0x746   : > { %v4057_v20 = vpack.c.bf16 %v3693_v24, %v3691_v44  ;;  %v3603_v39 = vpop.permute.xlu0 %3602  ;;  %4259 = vmatprep.subr.bf16.mxu1 %v14853_v28  ;;  %v3601_v38 = vpop.permute.xlu1 %3600  ;;  %v4058_v54 = vpack.c.bf16 %v3694_v12, %v3692_v21  ;;  %v4055_v57 = vpack.c.bf16 %v3689_v15, %v3687_v36  ;;  %v14859_v21 = vld [vmem:[#allocation27_spill] sm:$0xff]  ;;  %v4049_v24 = vpack.c.bf16 %v14862_v58, %v11565_v30  ;;  %v14863_v12 = vld [vmem:[#allocation61_spill] sm:$0xff] }
 0x747   : > { %v4048_v55 = vpack.c.bf16 %v14864_v50, %v14863_v12  ;;  %v9238_v36 = vld [vmem:[%s14741_s7 + $0x30] ss:$12 sps:$4 sm:$0xff]   ;;  %v9241_v15 = vld [vmem:[%s14741_s7 + $0x4c] ss:$12 sps:$4 sm:$0xff]  }
 0x748   : > { %4123 = vmatprep.subr.bf16.mxu0 %v4058_v54 }
 0x749   : > { %4124 = vmatpush2.bf16.msra.mxu0 %v4057_v20  ;;  %4260 = vmatpush1.bf16.msra.mxu1 %v14854_v5  ;;  %v14866_v20 = vld [vmem:[#allocation72_spill] sm:$0xff] }
 0x74a   : > { %v3615_v17 = vpop.permute.xlu0 %3614  ;;  %4125 = vmatprep.subr.bf16.mxu0 %v4056_v23  ;;  %4261 = vmatprep.subr.bf16.mxu1 %v14855_v27  ;;  %v3609_v46 = vpop.permute.xlu1 %3608  ;;  %v14871_v23 = vld [vmem:[#allocation73_spill] sm:$0xff] }
 0x74b   : > { %v3619_v9 = vsel %vm787_vm6, %v3607_v40, %v3615_v17  ;;  %v3623_v22 = vsel %vm787_vm6, %v3615_v17, %v3607_v40  ;;  %v3616_v34 = vsel %vm787_vm6, %v3601_v38, %v3609_v46  ;;  %v3620_v60 = vsel %vm787_vm6, %v3609_v46, %v3601_v38  ;;  %v14868_v38 = vld [vmem:[#allocation47_spill] sm:$0xff]  ;;  %v14874_v17 = vld [vmem:[#allocation18_spill] sm:$0xff]  ;;  %v14875_v46 = vld [vmem:[#allocation57_spill] sm:$0xff] }
 0x74c   : > { %v3641_v61 = vmul.f32 %v3628_v37, %v3619_v9  ;;  %v3642_v6 = vmul.f32 %v3632_v43, %v3623_v22  ;;  %v3635_v11 = vmul.f32 %v3628_v37, %v3616_v34  ;;  %v3636_v51 = vmul.f32 %v3632_v43, %v3620_v60  ;;  %v14876_v9 = vld [vmem:[#allocation19_spill] sm:$0xff]  ;;  %v14882_v34 = vld [vmem:[#allocation22_spill] sm:$0xff] }
 0x74d   : > { %4126 = vmatpush2.bf16.msra.mxu0 %v4055_v57  ;;  %4262 = vmatpush1.bf16.msra.mxu1 %v14856_v35  ;;  %v9243_v57 = vld [vmem:[%s14741_s7 + $0x48] ss:$12 sps:$4 sm:$0xff]   ;;  %v14877_v22 = vld [vmem:[#allocation55_spill] sm:$0xff] }
 0x74e   : > { %v4053_v31 = vpack.c.bf16 %v3641_v61, %v3639_v52  ;;  %v3611_v0 = vpop.permute.xlu0 %3610  ;;  %4263 = vmatprep.subr.bf16.mxu1 %v14857_v25  ;;  %v4054_v3 = vpack.c.bf16 %v3642_v6, %v3640_v49  ;;  %v14878_v52 = vld [vmem:[#allocation59_spill] sm:$0xff]  ;;  %v14879_v49 = vld [vmem:[#allocation50_spill] sm:$0xff]  ;;  %v14880_v61 = vld [vmem:[#allocation53_spill] sm:$0xff] }
 0x74f   : > { %v3617_v40 = vsel %vm787_vm6, %v3603_v39, %v3611_v0  ;;  %v3621_v16 = vsel %vm787_vm6, %v3611_v0, %v3603_v39  ;;  %v14867_v39 = vld [vmem:[#allocation42_spill] sm:$0xff]  ;;  %v14885_v0 = vld [vmem:[#allocation45_spill] sm:$0xff] }
 0x750   : > { %v3637_v63 = vmul.f32 %v3628_v37, %v3617_v40  ;;  %v3638_v44 = vmul.f32 %v3632_v43, %v3621_v16  ;;  %4127 = vmatprep.subr.bf16.mxu0 %v4054_v3  ;;  %v4047_v54 = vpack.c.bf16 %v14868_v38, %v14867_v39  ;;  %v14869_v37 = vld [vmem:[#allocation74_spill] sm:$0xff]  ;;  %v14870_v43 = vld [vmem:[#allocation49_spill] sm:$0xff]  ;;  %v14886_v3 = vld [vmem:[#allocation43_spill] sm:$0xff] }
 0x751   : > { %4128 = vmatpush2.bf16.msra.mxu0 %v4053_v31  ;;  %4264 = vmatpush1.bf16.msra.mxu1 %v14858_v32  ;;  %v14881_v6 = vld [vmem:[#allocation58_spill] sm:$0xff]  ;;  %v14884_v31 = vld [vmem:[#allocation56_spill] sm:$0xff]  ;;  %v14887_v40 = vld [vmem:[#allocation35_spill] sm:$0xff] }
 0x752   : > { %v4051_v53 = vpack.c.bf16 %v3637_v63, %v3635_v11  ;;  %4265 = vmatprep.subr.bf16.mxu1 %v14859_v21  ;;  %v4052_v59 = vpack.c.bf16 %v3638_v44, %v3636_v51  ;;  %v14883_v60 = vld [vmem:[#allocation54_spill] sm:$0xff]  ;;  %v14888_v16 = vld [vmem:[#allocation44_spill] sm:$0xff]  ;;  %v14890_v51 = vld [vmem:[#allocation11_spill] sm:$0xff] }
 0x753   : > { %v14889_v11 = vld [vmem:[#allocation34_spill] sm:$0xff]  ;;  %v14891_v63 = vld [vmem:[#allocation51_spill] sm:$0xff] }
 0x754   : > { %4129 = vmatprep.subr.bf16.mxu0 %v4052_v59  ;;  %v9245_v44 = vld [vmem:[%s14756_s6 + $0x30] ss:$12 sps:$4 sm:$0xff]   ;;  %v14893_v59 = vld [vmem:[#allocation52_spill] sm:$0xff] }
 0x755   : > { %4130 = vmatpush2.bf16.msra.mxu0 %v4051_v53  ;;  %4266 = vmatpush1.bf16.msra.mxu1 %v14860_v26  ;;  %v14892_v53 = vld [vmem:[#allocation10_spill] sm:$0xff] }
 0x756   : > { %4131 = vmatprep.subr.bf16.mxu0 %v4050_v19  ;;  %4267 = vmatprep.subr.bf16.mxu1 %v14861_v48  ;;  %v9249_v19 = vld [vmem:[%s14756_s6 + $0x4c] ss:$12 sps:$4 sm:$0xff]  }
 0x759   : > { %4132 = vmatpush2.bf16.msra.mxu0 %v4049_v24  ;;  %4268 = vmatpush2.bf16.msra.mxu1 %v14865_v2  ;;  %v14894_v24 = vld [vmem:[#allocation39_spill] sm:$0xff] }
 0x75a   : > { %4133 = vmatprep.subr.bf16.mxu0 %v4048_v55  ;;  %4269 = vmatprep.subr.bf16.mxu1 %v14866_v20  ;;  %v9248_v55 = vld [vmem:[%s14756_s6 + $0x38] ss:$12 sps:$4 sm:$0xff]  }
 0x75d   : > { %4134 = vmatpush2.bf16.msra.mxu0 %v4047_v54  ;;  %4270 = vmatpush2.bf16.msra.mxu1 %v14869_v37  ;;  %v14895_v54 = vld [vmem:[#allocation38_spill] sm:$0xff] }
 0x75e   : > { %4271 = vmatprep.subr.bf16.mxu1 %v14870_v43  ;;  %9004 = vmatprep.subr.msk.bf16.mxu0 %vm1248_vm9, %v14871_v23 }
 0x760   : > { %4136 = vmatmul.mubr.bf16.vlgmr.msra.gmra.mxu0 %v9238_v36  ;;  %v9251_v36 = vld [vmem:[%s14756_s6 + $0x48] ss:$12 sps:$4 sm:$0xff]  }
 0x761   : > { %4272 = vmatpush2.bf16.msra.mxu1 %v14872_v62  ;;  %4307 = vmatpush1.bf16.msra.mxu0 %v14873_v18  ;;  %v9010_v62 = vld [vmem:[%s14459_s1 + $0x14] ss:$8 sm:$0x3] }
 0x762   : > { %4273 = vmatprep.subr.bf16.mxu1 %v14874_v17  ;;  %4308 = vmatprep.subr.bf16.mxu0 %v14875_v46  ;;  %v4602_v20 = vrot.slane %v9010_v62, %v9767_v13  ;;  %v4598_v26 = vrot.slane %v9010_v62, %v9769_v14 }
 0x763   : > { %4145 = vmatprep.mubr.bf16.mxu0 %v9241_v15  ;;  %v9252_v15 = vld [vmem:[%s14756_s6 + $0x50] ss:$12 sps:$4 sm:$0xff]  }
 0x765   : > { %4274 = vmatpush2.bf16.msra.mxu1 %v14876_v9  ;;  %4309 = vmatpush1.bf16.msra.mxu0 %v14877_v22 }
 0x766   : > { %4310 = vmatprep.subr.bf16.mxu0 %v14878_v52  ;;  %4275 = vmatprep.subr.bf16.mxu1 %v14879_v49 }
 0x768   : > { %4146 = vmatmul.mubr.bf16.gmra.mxu0 %v9243_v57 }
 0x769   : > { %4276 = vmatpush2.bf16.msra.mxu1 %v14880_v61  ;;  %4311 = vmatpush1.bf16.msra.mxu0 %v14881_v6 }
 0x76a   : > { %4312 = vmatprep.subr.bf16.mxu0 %v14882_v34  ;;  %4277 = vmatprep.subr.bf16.mxu1 %v14883_v60 }
 0x76b   : > { %4336 = vmatprep.mubr.bf16.mxu0 %v14749_v42 }
 0x76d   : > { %4278 = vmatpush2.bf16.msra.mxu1 %v14884_v31  ;;  %4313 = vmatpush1.bf16.msra.mxu0 %v14885_v0 }
 0x76e   : > { %4279 = vmatprep.subr.bf16.mxu1 %v14886_v3  ;;  %4314 = vmatprep.subr.bf16.mxu0 %v14887_v40 }
 0x771   : > { %4280 = vmatpush2.bf16.msra.mxu1 %v14888_v16  ;;  %4315 = vmatpush1.bf16.msra.mxu0 %v14889_v11 }
 0x772   : > { %4281 = vmatprep.subr.bf16.mxu1 %v14890_v51  ;;  %4316 = vmatprep.subr.bf16.mxu0 %v14891_v63 }
 0x775   : > { %4282 = vmatpush2.bf16.msra.mxu1 %v14892_v53  ;;  %4317 = vmatpush1.bf16.msra.mxu0 %v14893_v59 }
 0x776   : > { %4318 = vmatprep.subr.bf16.mxu0 %v14894_v24 }
 0x778   : > { %4284 = vmatmul.mubr.bf16.vlgmr.msra.gmra.mxu1 %v9245_v44 }
 0x779   : > { %4319 = vmatpush1.bf16.msra.mxu0 %v14895_v54  ;;  %4293 = vmatprep.mubr.bf16.mxu1 %v9249_v19  ;;  %v12105_v54 = vpop.permute.xlu1 %4373 }
 0x77c   : > { %9005 = vmatmul.mubr.msk.bf16.vlgmr.msra.gmra.mxu0 %vm2494_vm11, %v9248_v55 }
 0x77d   : > { %4346 = vmatprep.mubr.bf16.mxu0 %v14749_v42  ;;  %v4364_v11 = vpop.permute.xlu1 %4363 }
 0x780   : > { %4294 = vmatmul.mubr.bf16.gmra.mxu1 %v9251_v36 }
 0x781   : > { %5106 = vmatprep.mubr.bf16.mxu1 %v14749_v42  ;;  %v4369_v22 = vpop.permute.xlu1 %4368 }
 0x784   : > { %9006 = vmatmul.mubr.msk.bf16.gmra.mxu0 %vm2494_vm11, %v9252_v15 }
 0x7f8   : > { %v4190_v57 = vpop.f32.mrf.mxu1 }
 0x7fa   : > { %v4192_v44 = vpop.f32.mrf.mxu1 }
 0x7fc   : > { %v4194_v47 = vpop.f32.mrf.mxu1 }
 0x7fe   : > { %v4196_v58 = vpop.f32.mrf.mxu1 }
 0x800   : > { %v4200_v30 = vpop.f32.mrf.mxu1 }
 0x802   : > { %v12099_v12 = vpop.f32.mrf.mxu1 }
 0x804   : > { %v12103_v39 = vpop.f32.mrf.mxu1 }
 0x806   : > { %v12107_v15 = vpop.f32.mrf.mxu1 }
 0x820   : > { %v4137_v19 = vpop.f32.mrf.mxu0 }
 0x821   : > { %v4191_v53 = vadd.f32 %v4190_v57, %v4137_v19 }
 0x822   : > { %v4139_v55 = vpop.f32.mrf.mxu0 }
 0x824   : > { %v4141_v4 = vpop.f32.mrf.mxu0 }
 0x825   : > { %v4195_v0 = vadd.f32 %v4194_v47, %v4141_v4 }
 0x826   : > { %v4143_v50 = vpop.f32.mrf.mxu0 }
 0x828   : > { %v4147_v38 = vpop.f32.mrf.mxu0 }
 0x82a   : > { %v12101_v36 = vpop.f32.mrf.mxu0 }
 0x82c   : > { %v4151_v24 = vpop.f32.mrf.mxu0 }
 0x82d   : > { %v4205_v19 = vadd.f32 %v12103_v39, %v4151_v24 }
 0x82e   : > { %v12109_v63 = vpop.f32.mrf.mxu0 }
 0x838   : > { %v4285_v59 = vpop.f32.mrf.mxu1 }
 0x839   : > { %v4286_v16 = vadd.f32 %v4285_v59, %v4191_v53  ;;  %v4193_v53 = vadd.f32 %v4192_v44, %v4139_v55 }
 0x83a   : > { %v4287_v51 = vpop.f32.mrf.mxu1 }
 0x83b   : > { %v4288_v4 = vadd.f32 %v4287_v51, %v4193_v53 }
 0x83c   : > { %v4289_v40 = vpop.f32.mrf.mxu1  ;;  %v4338_v3 = vpop.f32.mrf.mxu0 }
 0x83d   : > { %v4339_v31 = vadd.f32 %v4338_v3, %v4286_v16  ;;  %v4290_v34 = vadd.f32 %v4289_v40, %v4195_v0 }
 0x83e   : > { %v4340_v60 = vpop.f32.mrf.mxu0  ;;  %v4291_v47 = vpop.f32.mrf.mxu1 }
 0x83f   : > { %v4381_v6 = vadd.f32 %v4364_v11, %v4339_v31 }
 0x840   : > { %v4342_v61 = vpop.f32.mrf.mxu0 }
 0x841   : > { %v4389_v49 = vmul.f32 0.2, %v4381_v6  ;;  %v4343_v52 = vadd.f32 %v4342_v61, %v4290_v34  ;;  %v4341_v61 = vadd.f32 %v4340_v60, %v4288_v4  ;;  %v4295_v60 = vpop.f32.mrf.mxu1  ;;  %v4379_v4 = vpop.permute.xlu0 %4378 }
 0x843   : > { %v12111_v9 = vmax.f32 %v4381_v6, %v4389_v49  ;;  %v4383_v46 = vadd.f32 %v4369_v22, %v4343_v52  ;;  %v4197_v49 = vadd.f32 %v4196_v58, %v4143_v50  ;;  %v4344_v52 = vpop.f32.mrf.mxu0  ;;  %v4297_v40 = vpop.f32.mrf.mxu1 }
 0x845   : > { %v4391_v57 = vmul.f32 0.2, %v4383_v46  ;;  %4569 = vrot.lane.b32.xlu0 %v12111_v9, %s9494_s18  ;;  %v4292_v6 = vadd.f32 %v4291_v47, %v4197_v49  ;;  %v4348_v3 = vpop.f32.mrf.mxu0  ;;  %v4299_v44 = vpop.f32.mrf.mxu1 }
 0x846   : > { %v4300_v53 = vadd.f32 %v4299_v44, %v4205_v19 }
 0x847   : > { %v12115_v59 = vmax.f32 %v4383_v46, %v4391_v57  ;;  %v4382_v46 = vadd.f32 %v4364_v11, %v4341_v61  ;;  %v4345_v34 = vadd.f32 %v4344_v52, %v4292_v6  ;;  %v4350_v11 = vpop.f32.mrf.mxu0  ;;  %v4203_v61 = vadd.f32 %v12099_v12, %v12101_v36 }
 0x849   : > { %4571 = vrot.lane.b32.xlu1 %v12115_v59, %s9494_s18  ;;  %4515 = vrot.lane.b32.xlu0 %v12111_v9, %s9495_s19  ;;  %v4390_v58 = vmul.f32 0.2, %v4382_v46  ;;  %v4384_v50 = vadd.f32 %v4369_v22, %v4345_v34  ;;  %v4201_v22 = vadd.f32 %v4200_v30, %v4147_v38  ;;  %v4352_v57 = vpop.f32.mrf.mxu0  ;;  %v4298_v6 = vadd.f32 %v4297_v40, %v4203_v61 }
 0x84a   : > { %v4353_v38 = vadd.f32 %v4352_v57, %v4300_v53  ;;  %v4207_v34 = vadd.f32 %v12107_v15, %v12109_v63 }
 0x84b   : > { %v12133_v31 = vmax.f32 %v4382_v46, %v4390_v58  ;;  %v4392_v0 = vmul.f32 0.2, %v4384_v50  ;;  %v4296_v51 = vadd.f32 %v4295_v60, %v4201_v22  ;;  %v4301_v46 = vpop.f32.mrf.mxu1  ;;  %v4351_v58 = vadd.f32 %v4350_v11, %v4298_v6 }
 0x84c   : > { %v4387_v24 = vadd.f32 %v4379_v4, %v4353_v38  ;;  %v4302_v60 = vadd.f32 %v4301_v46, %v4207_v34  ;;  %v9502_v38 = vmov 5   ;;  %v14896_v46 = vld [vmem:[#allocation28_spill] sm:$0xff] }
 0x84d   : > { %4517 = vrot.lane.b32.xlu1 %v12115_v59, %s9495_s19  ;;  %4461 = vrot.lane.b32.xlu0 %v12111_v9, %s14629_s28  ;;  %v12139_v16 = vmax.f32 %v4384_v50, %v4392_v0  ;;  %v4349_v55 = vadd.f32 %v4348_v3, %v4296_v51  ;;  %v4354_v50 = vpop.f32.mrf.mxu0  ;;  %v4386_v12 = vadd.f32 %v12105_v54, %v4351_v58  ;;  %v9255_v51 = vld [vmem:[%s14741_s7 + $0xc4] ss:$12 sps:$4 sm:$0xff]  }
 0x84e   : > { %v4395_v49 = vmul.f32 0.2, %v4387_v24  ;;  %v4355_v36 = vadd.f32 %v4354_v50, %v4302_v60  ;;  %5053 = vmatprep.mubr.bf16.mxu0 %v9255_v51  ;;  %9194 = vset.pattern.permute.xlu0 %v9502_v38  ;;  %v9459_v34 = vld [vmem:[%s14463_s5] sm:$0xff] }
 0x84f   : > { %v4385_v30 = vadd.f32 %v12105_v54, %v4349_v55  ;;  %v4394_v0 = vmul.f32 0.2, %v4386_v12  ;;  %9195 = vset.pattern.permute.xlu1 %v9502_v38 }
 0x850   : > { %v12167_v52 = vmax.f32 %v4387_v24, %v4395_v49  ;;  %v4388_v63 = vadd.f32 %v4379_v4, %v4355_v36  ;;  %v9457_v24 = vld [vmem:[%s14463_s5 + $0x10] sm:$0xff]  ;;  %v9458_v49 = vld [vmem:[%s14463_s5 + $0x18] sm:$0xff] }
 0x851   : > { %4463 = vrot.lane.b32.xlu1 %v12115_v59, %s14629_s28  ;;  %4407 = vrot.lane.b32.xlu0 %v12111_v9, %s9497_s29  ;;  %v4393_v39 = vmul.f32 0.2, %v4385_v30  ;;  %v12188_v15 = vmax.f32 %v4386_v12, %v4394_v0 }
 0x852   : > { %v4396_v3 = vmul.f32 0.2, %v4388_v63 }
 0x853   : > { %v12159_v47 = vmax.f32 %v4385_v30, %v4393_v39 }
 0x854   : > { %v12194_v54 = vmax.f32 %v4388_v63, %v4396_v3 }
 0x855   : > { %4409 = vrot.lane.b32.xlu1 %v12115_v59, %s9497_s29  ;;  %4739 = vrot.lane.b32.xlu0 %v12111_v9, %s14631_s8 }
 0x859   : > { %4741 = vrot.lane.b32.xlu1 %v12115_v59, %s14631_s8  ;;  %4577 = vrot.lane.b32.xlu0 %v12133_v31, %s9494_s18 }
 0x85d   : > { %4579 = vrot.lane.b32.xlu1 %v12139_v16, %s9494_s18  ;;  %4523 = vrot.lane.b32.xlu0 %v12133_v31, %s9495_s19 }
 0x861   : > { %4525 = vrot.lane.b32.xlu1 %v12139_v16, %s9495_s19  ;;  %4469 = vrot.lane.b32.xlu0 %v12133_v31, %s14629_s28 }
 0x865   : > { %4471 = vrot.lane.b32.xlu1 %v12139_v16, %s14629_s28  ;;  %4415 = vrot.lane.b32.xlu0 %v12133_v31, %s9497_s29 }
 0x869   : > { %4417 = vrot.lane.b32.xlu1 %v12139_v16, %s9497_s29  ;;  %4747 = vrot.lane.b32.xlu0 %v12133_v31, %s14631_s8 }
 0x86d   : > { %4749 = vrot.lane.b32.xlu1 %v12139_v16, %s14631_s8  ;;  %4573 = vrot.lane.b32.xlu0 %v12159_v47, %s9494_s18 }
 0x871   : > { %4575 = vrot.lane.b32.xlu1 %v12167_v52, %s9494_s18  ;;  %4519 = vrot.lane.b32.xlu0 %v12159_v47, %s9495_s19 }
 0x875   : > { %4521 = vrot.lane.b32.xlu1 %v12167_v52, %s9495_s19  ;;  %4465 = vrot.lane.b32.xlu0 %v12159_v47, %s14629_s28 }
 0x879   : > { %4467 = vrot.lane.b32.xlu1 %v12167_v52, %s14629_s28  ;;  %4411 = vrot.lane.b32.xlu0 %v12159_v47, %s9497_s29 }
 0x87d   : > { %4413 = vrot.lane.b32.xlu1 %v12167_v52, %s9497_s29  ;;  %4743 = vrot.lane.b32.xlu0 %v12159_v47, %s14631_s8 }
 0x881   : > { %4745 = vrot.lane.b32.xlu1 %v12167_v52, %s14631_s8  ;;  %4581 = vrot.lane.b32.xlu0 %v12188_v15, %s9494_s18 }
 0x885   : > { %4689 = vrot.lane.b32.xlu0 %v12159_v47, %s9499_s9  ;;  %4583 = vrot.lane.b32.xlu1 %v12194_v54, %s9494_s18  ;;  %s9500_s18 = smov 125  }
 0x889   : > { %4527 = vrot.lane.b32.xlu0 %v12188_v15, %s9495_s19  ;;  %4691 = vrot.lane.b32.xlu1 %v12167_v52, %s9499_s9 }
 0x88d   : > { %4473 = vrot.lane.b32.xlu0 %v12188_v15, %s14629_s28  ;;  %4529 = vrot.lane.b32.xlu1 %v12194_v54, %s9495_s19  ;;  %s9501_s19 = smov 77  }
 0x891   : > { %4419 = vrot.lane.b32.xlu0 %v12188_v15, %s9497_s29  ;;  %4687 = vrot.lane.b32.xlu1 %v12115_v59, %s9499_s9 }
 0x895   : > { %4751 = vrot.lane.b32.xlu0 %v12188_v15, %s14631_s8  ;;  %4475 = vrot.lane.b32.xlu1 %v12194_v54, %s14629_s28  ;;  %s14957_s28 = smov 48  }
 0x899   : > { %4697 = vrot.lane.b32.xlu0 %v12188_v15, %s9499_s9  ;;  %4695 = vrot.lane.b32.xlu1 %v12139_v16, %s9499_s9 }
 0x89d   : > { %4685 = vrot.lane.b32.xlu0 %v12111_v9, %s9499_s9  ;;  %4421 = vrot.lane.b32.xlu1 %v12194_v54, %s9497_s29  ;;  %s9506_s29 = smov 75  }
 0x8a1   : > { %4693 = vrot.lane.b32.xlu0 %v12133_v31, %s9499_s9  ;;  %4637 = vrot.lane.b32.xlu1 %v12167_v52, %s9500_s18 }
 0x8a5   : > { %4635 = vrot.lane.b32.xlu0 %v12159_v47, %s9500_s18  ;;  %4753 = vrot.lane.b32.xlu1 %v12194_v54, %s14631_s8  ;;  %s9508_s8 = smov 53  }
 0x8a9   : > { %4643 = vrot.lane.b32.xlu0 %v12188_v15, %s9500_s18  ;;  %4633 = vrot.lane.b32.xlu1 %v12115_v59, %s9500_s18 }
 0x8ad   : > { %4631 = vrot.lane.b32.xlu0 %v12111_v9, %s9500_s18  ;;  %4699 = vrot.lane.b32.xlu1 %v12194_v54, %s9499_s9  ;;  %s14956_s9 = smov 80  }
 0x8b1   : > { %4639 = vrot.lane.b32.xlu0 %v12133_v31, %s9500_s18  ;;  %4641 = vrot.lane.b32.xlu1 %v12139_v16, %s9500_s18 }
 0x8b5   : > { %4797 = vrot.lane.b32.xlu0 %v12159_v47, %s9501_s19  ;;  %4645 = vrot.lane.b32.xlu1 %v12194_v54, %s9500_s18  ;;  %s9504_s18 = smov 5  }
 0x8b7   : > { %v12231_v40 = vpop.permute.xlu0 %4569 }
 0x8b9   : > { %4805 = vrot.lane.b32.xlu0 %v12188_v15, %s9501_s19  ;;  %4799 = vrot.lane.b32.xlu1 %v12167_v52, %s9501_s19 }
 0x8bb   : > { %v4572_v22 = vpop.permute.xlu1 %4571  ;;  %v12235_v11 = vpop.permute.xlu0 %4515 }
 0x8bd   : > { %4793 = vrot.lane.b32.xlu0 %v12111_v9, %s9501_s19  ;;  %4795 = vrot.lane.b32.xlu1 %v12115_v59, %s9501_s19 }
 0x8bf   : > { %v12242_v44 = vpop.permute.xlu1 %4517  ;;  %v12244_v19 = vpop.permute.xlu0 %4461 }
 0x8c1   : > { %4801 = vrot.lane.b32.xlu0 %v12133_v31, %s9501_s19  ;;  %4807 = vrot.lane.b32.xlu1 %v12194_v54, %s9501_s19 }
 0x8c3   : > { %v12248_v55 = vpop.permute.xlu1 %4463  ;;  %v12250_v57 = vpop.permute.xlu0 %4407 }
 0x8c5   : > { %4803 = vrot.lane.b32.xlu1 %v12139_v16, %s9501_s19  ;;  %4977 = vperm.xlu0 %9194, %v9457_v24   ;;  %s9507_s19 = smov 85  }
 0x8c7   : > { %v12253_v53 = vpop.permute.xlu1 %4409  ;;  %v12255_v30 = vpop.permute.xlu0 %4739 }
 0x8c9   : > { %4982 = vperm.xlu1 %9195, %v9458_v49   ;;  %4972 = vperm.xlu0 %9194, %v14896_v46  }
 0x8cb   : > { %v12257_v4 = vpop.permute.xlu1 %4741  ;;  %v4578_v39 = vpop.permute.xlu0 %4577 }
 0x8cc   : > { %v4586_v21 = vsel %vm4585_vm12, %v12231_v40, %v4578_v39  ;;  %v4590_v45 = vsel %vm4585_vm12, %v4578_v39, %v12231_v40 }
 0x8cd   : > { %4967 = vperm.xlu1 %9195, %v9459_v34   ;;  %v4606_v7 = vmul.f32 %v4602_v20, %v4586_v21 }
 0x8cf   : > { %v4580_v61 = vpop.permute.xlu1 %4579  ;;  %v12265_v6 = vpop.permute.xlu0 %4523 }
 0x8d0   : > { %v4587_v37 = vsel %vm4585_vm12, %v4572_v22, %v4580_v61  ;;  %v4591_v35 = vsel %vm4585_vm12, %v4580_v61, %v4572_v22 }
 0x8d1   : > { %v4608_v27 = vmul.f32 %v4602_v20, %v4587_v37  ;;  %v4607_v29 = vmul.f32 %v4598_v26, %v4591_v35  ;;  %v9009_v37 = vld [vmem:[%s14459_s1 + $0x13] ss:$8 sm:$0x3] }
 0x8d2   : > { %v4548_v35 = vrot.slane %v9009_v37, %v9767_v13 }
 0x8d3   : > { %v4526_v58 = vpop.permute.xlu1 %4525  ;;  %v12271_v50 = vpop.permute.xlu0 %4469 }
 0x8d7   : > { %v12273_v60 = vpop.permute.xlu1 %4471  ;;  %v12275_v12 = vpop.permute.xlu0 %4415 }
 0x8db   : > { %v12277_v36 = vpop.permute.xlu1 %4417  ;;  %v12279_v0 = vpop.permute.xlu0 %4747 }
 0x8df   : > { %v12281_v63 = vpop.permute.xlu1 %4749  ;;  %v4574_v3 = vpop.permute.xlu0 %4573 }
 0x8e3   : > { %v4576_v51 = vpop.permute.xlu1 %4575  ;;  %v4520_v38 = vpop.permute.xlu0 %4519 }
 0x8e7   : > { %v4522_v24 = vpop.permute.xlu1 %4521  ;;  %v12283_v49 = vpop.permute.xlu0 %4465 }
 0x8eb   : > { %v12285_v46 = vpop.permute.xlu1 %4467  ;;  %v12287_v34 = vpop.permute.xlu0 %4411 }
 0x8ef   : > { %v12289_v17 = vpop.permute.xlu1 %4413  ;;  %v12291_v18 = vpop.permute.xlu0 %4743 }
 0x8f3   : > { %v12296_v23 = vpop.permute.xlu1 %4745  ;;  %v4582_v43 = vpop.permute.xlu0 %4581 }
 0x8f4   : > { %v4588_v2 = vsel %vm4585_vm12, %v4574_v3, %v4582_v43  ;;  %v4592_v48 = vsel %vm4585_vm12, %v4582_v43, %v4574_v3 }
 0x8f5   : > { %v4609_v43 = vmul.f32 %v4598_v26, %v4592_v48  ;;  %v4610_v3 = vmul.f32 %v4602_v20, %v4588_v2 }
 0x8f7   : > { %v12310_v32 = vpop.permute.xlu0 %4689  ;;  %v4584_v25 = vpop.permute.xlu1 %4583 }
 0x8f8   : > { %v4589_v5 = vsel %vm4585_vm12, %v4576_v51, %v4584_v25  ;;  %v4593_v28 = vsel %vm4585_vm12, %v4584_v25, %v4576_v51  ;;  %v4605_v25 = vmul.f32 %v4598_v26, %v4590_v45  ;;  %v4532_v45 = vsel %vm4531_vm13, %v12235_v11, %v12265_v6 }
 0x8f9   : > { %v4611_v62 = vmul.f32 %v4598_v26, %v4593_v28  ;;  %v4612_v8 = vmul.f32 %v4602_v20, %v4589_v5  ;;  %v4533_v28 = vsel %vm4531_vm13, %v12242_v44, %v4526_v58  ;;  %v4938_v5 = vpack.c.bf16 %v4608_v27, %v4606_v7 }
 0x8fa   : > { %v4937_v2 = vpack.c.bf16 %v4607_v29, %v4605_v25  ;;  %v4537_v7 = vsel %vm4531_vm13, %v4526_v58, %v12242_v44  ;;  %v4554_v27 = vmul.f32 %v4548_v35, %v4533_v28  ;;  %v9008_v44 = vld [vmem:[%s14459_s1 + $0x12] ss:$8 sm:$0x3]  ;;  %vm4701_vm12 = vcmp.lt.s32.totalorder %v9754_v10, 83 }
 0x8fb   : > { %v4939_v22 = vpack.c.bf16 %v4611_v62, %v4609_v43  ;;  %v4528_v61 = vpop.permute.xlu0 %4527  ;;  %v12324_v33 = vpop.permute.xlu1 %4691  ;;  %v4940_v41 = vpack.c.bf16 %v4612_v8, %v4610_v3  ;;  %v4544_v8 = vrot.slane %v9009_v37, %v9769_v14  ;;  %v4536_v43 = vsel %vm4531_vm13, %v12265_v6, %v12235_v11 }
 0x8fc   : > { %v4534_v21 = vsel %vm4531_vm13, %v4520_v38, %v4528_v61  ;;  %v4538_v48 = vsel %vm4531_vm13, %v4528_v61, %v4520_v38  ;;  %v4552_v3 = vmul.f32 %v4548_v35, %v4532_v45  ;;  %v4479_v11 = vsel %vm4477_vm14, %v12248_v55, %v12273_v60 }
 0x8fd   : > { %5021 = vmatprep.subr.bf16.mxu0 %v4940_v41  ;;  %v4555_v40 = vmul.f32 %v4544_v8, %v4538_v48  ;;  %v4556_v39 = vmul.f32 %v4548_v35, %v4534_v21  ;;  %v4553_v62 = vmul.f32 %v4544_v8, %v4537_v7  ;;  %v4551_v61 = vmul.f32 %v4544_v8, %v4536_v43 }
 0x8fe   : > { %5022 = vmatpush1.bf16.msra.mxu0 %v4939_v22  ;;  %v4934_v6 = vpack.c.bf16 %v4554_v27, %v4552_v3  ;;  %v4494_v25 = vrot.slane %v9008_v44, %v9767_v13  ;;  %v4490_v21 = vrot.slane %v9008_v44, %v9769_v14  ;;  %v4478_v48 = vsel %vm4477_vm14, %v12244_v19, %v12271_v50 }
 0x8ff   : > { %v4474_v26 = vpop.permute.xlu0 %4473  ;;  %5023 = vmatprep.subr.bf16.mxu0 %v4938_v5  ;;  %v4530_v41 = vpop.permute.xlu1 %4529  ;;  %v4483_v45 = vsel %vm4477_vm14, %v12273_v60, %v12248_v55 }
 0x900   : > { %v4535_v20 = vsel %vm4531_vm13, %v4522_v24, %v4530_v41  ;;  %v4539_v29 = vsel %vm4531_vm13, %v4530_v41, %v4522_v24  ;;  %v4480_v28 = vsel %vm4477_vm14, %v12283_v49, %v4474_v26  ;;  %v4484_v5 = vsel %vm4477_vm14, %v4474_v26, %v12283_v49 }
 0x901   : > { %v4557_v51 = vmul.f32 %v4544_v8, %v4539_v29  ;;  %v4558_v38 = vmul.f32 %v4548_v35, %v4535_v20  ;;  %v4933_v35 = vpack.c.bf16 %v4553_v62, %v4551_v61  ;;  %v4500_v41 = vmul.f32 %v4494_v25, %v4479_v11 }
 0x902   : > { %5024 = vmatpush1.bf16.msra.mxu0 %v4937_v2  ;;  %v4501_v7 = vmul.f32 %v4490_v21, %v4484_v5  ;;  %v4502_v27 = vmul.f32 %v4494_v25, %v4480_v28  ;;  %v4498_v55 = vmul.f32 %v4494_v25, %v4478_v48  ;;  %v4499_v60 = vmul.f32 %v4490_v21, %v4483_v45 }
 0x903   : > { %v4935_v58 = vpack.c.bf16 %v4557_v51, %v4555_v40  ;;  %v4420_v37 = vpop.permute.xlu0 %4419  ;;  %v12354_v22 = vpop.permute.xlu1 %4687  ;;  %v4936_v24 = vpack.c.bf16 %v4558_v38, %v4556_v39  ;;  %v4482_v40 = vsel %vm4477_vm14, %v12271_v50, %v12244_v19  ;;  %v9007_v39 = vld [vmem:[%s14459_s1 + $0x11] ss:$8 sm:$0x3]  ;;  %v4425_v19 = vsel %vm4423_vm15, %v12253_v53, %v12277_v36 }
 0x904   : > { %v4497_v3 = vmul.f32 %v4490_v21, %v4482_v40  ;;  %v4930_v50 = vpack.c.bf16 %v4500_v41, %v4498_v55  ;;  %v4440_v62 = vrot.slane %v9007_v39, %v9767_v13  ;;  %v4426_v44 = vsel %vm4423_vm15, %v12287_v34, %v4420_v37  ;;  %v9013_v41 = vld [vmem:[%s14459_s1 + $0x20] ss:$8 sm:$0x3] }
 0x905   : > { %5025 = vmatprep.subr.bf16.mxu0 %v4936_v24  ;;  %v4436_v61 = vrot.slane %v9007_v39, %v9769_v14  ;;  %v4424_v11 = vsel %vm4423_vm15, %v12250_v57, %v12275_v12  ;;  %v4429_v28 = vsel %vm4423_vm15, %v12277_v36, %v12253_v53  ;;  %v4428_v45 = vsel %vm4423_vm15, %v12275_v12, %v12250_v57 }
 0x906   : > { %5026 = vmatpush1.bf16.msra.mxu0 %v4935_v58  ;;  %v4430_v58 = vsel %vm4423_vm15, %v4420_v37, %v12287_v34  ;;  %v4929_v24 = vpack.c.bf16 %v4499_v60, %v4497_v3  ;;  %v4446_v5 = vmul.f32 %v4440_v62, %v4425_v19  ;;  %v4444_v53 = vmul.f32 %v4440_v62, %v4424_v11 }
 0x907   : > { %v4752_v2 = vpop.permute.xlu0 %4751  ;;  %5027 = vmatprep.subr.bf16.mxu0 %v4934_v6  ;;  %v4476_v8 = vpop.permute.xlu1 %4475  ;;  %v4445_v36 = vmul.f32 %v4436_v61, %v4429_v28  ;;  %v4761_v57 = vsel %vm4755_vm10, %v12281_v63, %v12257_v4  ;;  %v4768_v60 = vrot.slane %v9013_v41, %v9769_v14  ;;  %v4760_v39 = vsel %vm4755_vm10, %v12279_v0, %v12255_v30 }
 0x908   : > { %v4481_v49 = vsel %vm4477_vm14, %v12285_v46, %v4476_v8  ;;  %v4485_v26 = vsel %vm4477_vm14, %v4476_v8, %v12285_v46  ;;  %v4926_v12 = vpack.c.bf16 %v4446_v5, %v4444_v53  ;;  %v4762_v40 = vsel %vm4755_vm10, %v4752_v2, %v12291_v18 }
 0x909   : > { %v4503_v20 = vmul.f32 %v4490_v21, %v4485_v26  ;;  %v4504_v29 = vmul.f32 %v4494_v25, %v4481_v49  ;;  %v4448_v21 = vmul.f32 %v4440_v62, %v4426_v44  ;;  %v4757_v3 = vsel %vm4755_vm10, %v12257_v4, %v12281_v63  ;;  %v9012_v44 = vld [vmem:[%s14459_s1 + $0x17] ss:$8 sm:$0x3] }
 0x90a   : > { %5028 = vmatpush1.bf16.msra.mxu0 %v4933_v35  ;;  %v4447_v35 = vmul.f32 %v4436_v61, %v4430_v58  ;;  %v4756_v4 = vsel %vm4755_vm10, %v12255_v30, %v12279_v0  ;;  %v4714_v5 = vrot.slane %v9012_v44, %v9769_v14  ;;  %vm4647_vm13 = vcmp.lt.s32.totalorder %v9754_v10, 125 }
 0x90b   : > { %v4931_v51 = vpack.c.bf16 %v4503_v20, %v4501_v7  ;;  %v12390_v38 = vpop.permute.xlu0 %4697  ;;  %v12392_v46 = vpop.permute.xlu1 %4695  ;;  %v4932_v43 = vpack.c.bf16 %v4504_v29, %v4502_v27  ;;  %v4443_v27 = vmul.f32 %v4436_v61, %v4428_v45  ;;  %v4772_v20 = vrot.slane %v9013_v41, %v9767_v13  ;;  %v9011_v45 = vld [vmem:[%s14459_s1 + $0x16] ss:$8 sm:$0x3] }
 0x90c   : > { %v4758_v29 = vsel %vm4755_vm10, %v12291_v18, %v4752_v2  ;;  %v4708_v0 = vsel %vm4701_vm12, %v12390_v38, %v12310_v32 }
 0x90d   : > { %5029 = vmatprep.subr.bf16.mxu0 %v4932_v43  ;;  %v4925_v55 = vpack.c.bf16 %v4445_v36, %v4443_v27  ;;  %v4778_v19 = vmul.f32 %v4772_v20, %v4761_v57  ;;  %v4776_v63 = vmul.f32 %v4772_v20, %v4760_v39 }
 0x90e   : > { %5030 = vmatpush1.bf16.msra.mxu0 %v4931_v51 }
 0x90f   : > { %v12411_v6 = vpop.permute.xlu0 %4685  ;;  %5031 = vmatprep.subr.bf16.mxu0 %v4930_v50  ;;  %v4422_v25 = vpop.permute.xlu1 %4421  ;;  %v4779_v50 = vmul.f32 %v4768_v60, %v4758_v29  ;;  %v4954_v30 = vpack.c.bf16 %v4778_v19, %v4776_v63  ;;  %v4660_v29 = vrot.slane %v9011_v45, %v9769_v14 }
 0x910   : > { %v4427_v34 = vsel %vm4423_vm15, %v12289_v17, %v4422_v25  ;;  %v4431_v37 = vsel %vm4423_vm15, %v4422_v25, %v12289_v17  ;;  %vm4809_vm15 = vcmp.lt.s32.totalorder %v9754_v10, 77 }
 0x911   : > { %v4449_v48 = vmul.f32 %v4436_v61, %v4431_v37  ;;  %v4450_v8 = vmul.f32 %v4440_v62, %v4427_v34  ;;  %v4780_v62 = vmul.f32 %v4772_v20, %v4762_v40  ;;  %v4777_v61 = vmul.f32 %v4768_v60, %v4757_v3 }
 0x912   : > { %5032 = vmatpush1.bf16.msra.mxu0 %v4929_v24  ;;  %v4775_v34 = vmul.f32 %v4768_v60, %v4756_v4  ;;  %v4718_v37 = vrot.slane %v9012_v44, %v9767_v13 }
 0x913   : > { %v4927_v49 = vpack.c.bf16 %v4449_v48, %v4447_v35  ;;  %v4694_v26 = vpop.permute.xlu0 %4693  ;;  %v12430_v7 = vpop.permute.xlu1 %4637  ;;  %v4928_v17 = vpack.c.bf16 %v4450_v8, %v4448_v21  ;;  %v4704_v35 = vsel %vm4701_vm12, %v12310_v32, %v12390_v38  ;;  %v4707_v8 = vsel %vm4701_vm12, %v12392_v46, %v12354_v22 }
 0x914   : > { %v4706_v21 = vsel %vm4701_vm12, %v4694_v26, %v12411_v6  ;;  %v4953_v48 = vpack.c.bf16 %v4777_v61, %v4775_v34  ;;  %v4725_v38 = vmul.f32 %v4714_v5, %v4704_v35  ;;  %v4702_v36 = vsel %vm4701_vm12, %v12411_v6, %v4694_v26 }
 0x915   : > { %5033 = vmatprep.subr.bf16.mxu0 %v4928_v17  ;;  %v4726_v17 = vmul.f32 %v4718_v37, %v4708_v0  ;;  %v4722_v27 = vmul.f32 %v4718_v37, %v4706_v21  ;;  %v4664_v6 = vrot.slane %v9011_v45, %v9767_v13  ;;  %v4724_v26 = vmul.f32 %v4718_v37, %v4707_v8  ;;  %v9014_v21 = vld [vmem:[%s14459_s1 + $0x21] ss:$8 sm:$0x3] }
 0x916   : > { %5034 = vmatpush1.bf16.msra.mxu0 %v4927_v49  ;;  %v4721_v40 = vmul.f32 %v4714_v5, %v4702_v36  ;;  %v4822_v45 = vrot.slane %v9014_v21, %v9769_v14 }
 0x917   : > { %v4636_v51 = vpop.permute.xlu0 %4635  ;;  %5035 = vmatprep.subr.bf16.mxu0 %v4926_v12  ;;  %v4754_v43 = vpop.permute.xlu1 %4753 }
 0x918   : > { %v4759_v18 = vsel %vm4755_vm10, %v12296_v23, %v4754_v43  ;;  %v4763_v2 = vsel %vm4755_vm10, %v4754_v43, %v12296_v23 }
 0x919   : > { %v4781_v58 = vmul.f32 %v4768_v60, %v4759_v18  ;;  %v4782_v24 = vmul.f32 %v4772_v20, %v4763_v2  ;;  %v4703_v20 = vsel %vm4701_vm12, %v12354_v22, %v12392_v46  ;;  %v4950_v22 = vpack.c.bf16 %v4724_v26, %v4722_v27 }
 0x91a   : > { %5036 = vmatpush1.bf16.msra.mxu0 %v4925_v55  ;;  %v4723_v19 = vmul.f32 %v4714_v5, %v4703_v20 }
 0x91b   : > { %v4955_v11 = vpack.c.bf16 %v4781_v58, %v4779_v50  ;;  %v4644_v23 = vpop.permute.xlu0 %4643  ;;  %v4634_v25 = vpop.permute.xlu1 %4633  ;;  %v4956_v28 = vpack.c.bf16 %v4782_v24, %v4780_v62 }
 0x91c   : > { %v4650_v43 = vsel %vm4647_vm13, %v4636_v51, %v4644_v23  ;;  %v4654_v3 = vsel %vm4647_vm13, %v4644_v23, %v4636_v51  ;;  %v4949_v2 = vpack.c.bf16 %v4723_v19, %v4721_v40  ;;  %v9257_v19 = vld [vmem:[%s14741_s7 + $0xdc] ss:$12 sps:$4 sm:$0xff]  }
 0x91d   : > { %5037 = vmatprep.subr.bf16.mxu0 %v4956_v28  ;;  %v4671_v50 = vmul.f32 %v4660_v29, %v4650_v43  ;;  %v4672_v62 = vmul.f32 %v4664_v6, %v4654_v3  ;;  %v9253_v3 = vld [vmem:[%s14741_s7 + $0xc0] ss:$12 sps:$4 sm:$0xff]  }
 0x91e   : > { %5038 = vmatpush2.bf16.msra.mxu0 %v4955_v11 }
 0x91f   : > { %v4632_v53 = vpop.permute.xlu0 %4631  ;;  %5039 = vmatprep.subr.bf16.mxu0 %v4954_v30  ;;  %v4700_v32 = vpop.permute.xlu1 %4699 }
 0x920   : > { %v4705_v41 = vsel %vm4701_vm12, %v12324_v33, %v4700_v32  ;;  %v4709_v49 = vsel %vm4701_vm12, %v4700_v32, %v12324_v33  ;;  %v4944_v32 = vpack.c.bf16 %v12194_v54, %v12188_v15  ;;  %v4942_v15 = vpack.c.bf16 %v12139_v16, %v12133_v31 }
 0x921   : > { %v4727_v57 = vmul.f32 %v4714_v5, %v4705_v41  ;;  %v4728_v12 = vmul.f32 %v4718_v37, %v4709_v49  ;;  %v4941_v16 = vpack.c.bf16 %v12115_v59, %v12111_v9  ;;  %v9256_v9 = vld [vmem:[%s14741_s7 + $0xc8] ss:$12 sps:$4 sm:$0xff]   ;;  %v9259_v59 = vld [vmem:[%s14741_s7 + $0xd8] ss:$12 sps:$4 sm:$0xff]   ;;  %vm6290_vm12 = vcmp.lt.s32.totalorder %v9754_v10, 75 }
 0x922   : > { %5040 = vmatpush2.bf16.msra.mxu0 %v4953_v48 }
 0x923   : > { %v4951_v55 = vpack.c.bf16 %v4727_v57, %v4725_v38  ;;  %v4640_v60 = vpop.permute.xlu0 %4639  ;;  %v4642_v39 = vpop.permute.xlu1 %4641  ;;  %v4952_v33 = vpack.c.bf16 %v4728_v12, %v4726_v17  ;;  %v4943_v57 = vpack.c.bf16 %v12167_v52, %v12159_v47 }
 0x924   : > { %v4652_v46 = vsel %vm4647_vm13, %v4640_v60, %v4632_v53  ;;  %v4653_v18 = vsel %vm4647_vm13, %v4642_v39, %v4634_v25  ;;  %v4648_v24 = vsel %vm4647_vm13, %v4632_v53, %v4640_v60  ;;  %v4649_v51 = vsel %vm4647_vm13, %v4634_v25, %v4642_v39 }
 0x925   : > { %5041 = vmatprep.subr.bf16.mxu0 %v4952_v33  ;;  %v4668_v61 = vmul.f32 %v4664_v6, %v4652_v46  ;;  %v4670_v11 = vmul.f32 %v4664_v6, %v4653_v18  ;;  %v4667_v30 = vmul.f32 %v4660_v29, %v4648_v24  ;;  %v4669_v0 = vmul.f32 %v4660_v29, %v4649_v51  ;;  %v9260_v18 = vld [vmem:[%s14741_s7 + $0xe0] ss:$12 sps:$4 sm:$0xff]  }
 0x926   : > { %5042 = vmatpush2.bf16.msra.mxu0 %v4951_v55  ;;  %v4826_v53 = vrot.slane %v9014_v21, %v9767_v13 }
 0x927   : > { %v4798_v44 = vpop.permute.xlu0 %4797  ;;  %5043 = vmatprep.subr.bf16.mxu0 %v4950_v22  ;;  %v4646_v58 = vpop.permute.xlu1 %4645  ;;  %v4946_v25 = vpack.c.bf16 %v4670_v11, %v4668_v61  ;;  %v4945_v8 = vpack.c.bf16 %v4669_v0, %v4667_v30 }
 0x928   : > { %v4651_v4 = vsel %vm4647_vm13, %v12430_v7, %v4646_v58  ;;  %v4655_v63 = vsel %vm4647_vm13, %v4646_v58, %v12430_v7  ;;  %vm6183_vm13 = vcmp.lt.s32.totalorder %v9754_v10, 85 }
 0x929   : > { %v4673_v23 = vmul.f32 %v4660_v29, %v4651_v4  ;;  %v4674_v28 = vmul.f32 %v4664_v6, %v4655_v63 }
 0x92a   : > { %5044 = vmatpush2.bf16.msra.mxu0 %v4949_v2 }
 0x92b   : > { %v4947_v5 = vpack.c.bf16 %v4673_v23, %v4671_v50  ;;  %v4806_v34 = vpop.permute.xlu0 %4805  ;;  %v4800_v37 = vpop.permute.xlu1 %4799  ;;  %v4948_v35 = vpack.c.bf16 %v4674_v28, %v4672_v62 }
 0x92c   : > { %v4812_v38 = vsel %vm4809_vm15, %v4798_v44, %v4806_v34  ;;  %v4816_v36 = vsel %vm4809_vm15, %v4806_v34, %v4798_v44 }
 0x92d   : > { %5045 = vmatprep.subr.bf16.mxu0 %v4948_v35  ;;  %v4833_v54 = vmul.f32 %v4822_v45, %v4812_v38  ;;  %v4834_v12 = vmul.f32 %v4826_v53, %v4816_v36 }
 0x92e   : > { %5046 = vmatpush2.bf16.msra.mxu0 %v4947_v5 }
 0x92f   : > { %v4794_v7 = vpop.permute.xlu0 %4793  ;;  %5047 = vmatprep.subr.bf16.mxu0 %v4946_v25  ;;  %v4796_v48 = vpop.permute.xlu1 %4795 }
 0x932   : > { %5048 = vmatpush2.bf16.msra.mxu0 %v4945_v8 }
 0x933   : > { %v4802_v41 = vpop.permute.xlu0 %4801  ;;  %v4808_v49 = vpop.permute.xlu1 %4807  ;;  %5049 = vmatprep.subr.bf16.mxu0 %v4944_v32 }
 0x934   : > { %v4813_v17 = vsel %vm4809_vm15, %v4800_v37, %v4808_v49  ;;  %v4817_v27 = vsel %vm4809_vm15, %v4808_v49, %v4800_v37  ;;  %v4810_v6 = vsel %vm4809_vm15, %v4794_v7, %v4802_v41  ;;  %v4814_v26 = vsel %vm4809_vm15, %v4802_v41, %v4794_v7 }
 0x935   : > { %v4835_v20 = vmul.f32 %v4822_v45, %v4813_v17  ;;  %v4836_v29 = vmul.f32 %v4826_v53, %v4817_v27  ;;  %v4829_v52 = vmul.f32 %v4822_v45, %v4810_v6  ;;  %v4830_v39 = vmul.f32 %v4826_v53, %v4814_v26 }
 0x936   : > { %5050 = vmatpush2.bf16.msra.mxu0 %v4943_v57 }
 0x937   : > { %v4959_v40 = vpack.c.bf16 %v4835_v20, %v4833_v54  ;;  %v4804_v55 = vpop.permute.xlu1 %4803  ;;  %5051 = vmatprep.subr.bf16.mxu0 %v4942_v15  ;;  %v4960_v60 = vpack.c.bf16 %v4836_v29, %v4834_v12 }
 0x938   : > { %v4811_v47 = vsel %vm4809_vm15, %v4796_v48, %v4804_v55  ;;  %v4815_v31 = vsel %vm4809_vm15, %v4804_v55, %v4796_v48  ;;  %vm6567_vm15 = vcmp.lt.s32.totalorder %v9754_v10, 43 }
 0x939   : > { %v4831_v33 = vmul.f32 %v4822_v45, %v4811_v47  ;;  %v4832_v43 = vmul.f32 %v4826_v53, %v4815_v31  ;;  %5086 = vmatprep.subr.bf16.mxu1 %v4960_v60 }
 0x93a   : > { %5052 = vmatpush2.bf16.msra.mxu0 %v4941_v16  ;;  %5087 = vmatpush1.bf16.msra.mxu1 %v4959_v40 }
 0x93b   : > { %v4957_v22 = vpack.c.bf16 %v4831_v33, %v4829_v52  ;;  %v4958_v46 = vpack.c.bf16 %v4832_v43, %v4830_v39 }
 0x93d   : > { %5054 = vmatmul.mubr.bf16.vlgmr.msra.gmra.mxu0 %v9253_v3  ;;  %5088 = vmatprep.subr.bf16.mxu1 %v4958_v46 }
 0x93e   : > { %5089 = vmatpush1.bf16.msra.mxu1 %v4957_v22  ;;  %5063 = vmatprep.mubr.bf16.mxu0 %v9257_v19 }
 0x940   : > { %v12572_v62 = vpop.permute.xlu0 %4977 }
 0x941   : > { %9021 = vmatmul.mubr.msk.bf16.vlgmr.msra.gmra.mxu1 %vm1111_vm8, %v9256_v9 }
 0x942   : > { %5116 = vmatprep.mubr.bf16.mxu1 %v14749_v42 }
 0x944   : > { %v12570_v2 = vpop.permute.xlu1 %4982  ;;  %v4973_v61 = vpop.permute.xlu0 %4972 }
 0x945   : > { %5064 = vmatmul.mubr.bf16.gmra.mxu0 %v9259_v59 }
 0x946   : > { %5948 = vmatprep.mubr.bf16.mxu0 %v14749_v42 }
 0x948   : > { %v4968_v50 = vpop.permute.xlu1 %4967 }
 0x949   : > { %9022 = vmatmul.mubr.msk.bf16.gmra.mxu1 %vm1111_vm8, %v9260_v18 }
 0x9fd   : > { %v5055_v44 = vpop.f32.mrf.mxu0 }
 0x9fe   : > { %v5056_v58 = vadd.f32 %v5055_v44, %v4968_v50  ;;  %v9264_v44 = vld [vmem:[%s14741_s7 + $0x64] ss:$12 sps:$4 sm:$0xff]  }
 0x9ff   : > { %v5057_v24 = vpop.f32.mrf.mxu0  ;;  %5895 = vmatprep.mubr.bf16.mxu1 %v9264_v44 }
 0xa00   : > { %v5058_v0 = vadd.f32 %v5057_v24, %v4968_v50 }
 0xa01   : > { %v5059_v51 = vpop.f32.mrf.mxu0  ;;  %v5108_v4 = vpop.f32.mrf.mxu1 }
 0xa02   : > { %v5109_v63 = vadd.f32 %v5108_v4, %v5056_v58  ;;  %v5060_v23 = vadd.f32 %v5059_v51, %v4973_v61 }
 0xa03   : > { %v5110_v11 = vpop.f32.mrf.mxu1  ;;  %v5061_v25 = vpop.f32.mrf.mxu0 }
 0xa04   : > { %v5127_v28 = vmul.f32 0.2, %v5109_v63  ;;  %v5111_v21 = vadd.f32 %v5110_v11, %v5058_v0  ;;  %v5062_v48 = vadd.f32 %v5061_v25, %v4973_v61 }
 0xa05   : > { %v5112_v5 = vpop.f32.mrf.mxu1  ;;  %v5065_v36 = vpop.f32.mrf.mxu0 }
 0xa06   : > { %v12574_v34 = vmax.f32 %v5109_v63, %v5127_v28  ;;  %v5113_v37 = vadd.f32 %v5112_v5, %v5060_v23  ;;  %v5128_v8 = vmul.f32 0.2, %v5111_v21  ;;  %v5066_v27 = vadd.f32 %v5065_v36, %v12572_v62  ;;  %v12775_v36 = vld [vmem:[%s14463_s5 + $0x18] sm:$0xff] }
 0xa07   : > { %v5114_v7 = vpop.f32.mrf.mxu1  ;;  %v5067_v49 = vpop.f32.mrf.mxu0  ;;  %14902 = vst [vmem:[#allocation36_spill] sm:$0xff] %v12775_v36 }
 0xa08   : > { %14897 = vst [vmem:[#allocation8_spill] sm:$0xff] %v12574_v34  ;;  %v5129_v35 = vmul.f32 0.2, %v5113_v37  ;;  %5300 = vrot.lane.b32.xlu1 %v12574_v34, %s14835_s30  ;;  %v5115_v45 = vadd.f32 %v5114_v7, %v5062_v48  ;;  %v12600_v53 = vmax.f32 %v5111_v21, %v5128_v8  ;;  %v5068_v55 = vadd.f32 %v5067_v49, %v12572_v62 }
 0xa09   : > { %v5118_v41 = vpop.f32.mrf.mxu1  ;;  %v5069_v57 = vpop.f32.mrf.mxu0 }
 0xa0a   : > { %v12578_v30 = vmax.f32 %v5113_v37, %v5129_v35  ;;  %14899 = vst [vmem:[#allocation37_spill] sm:$0xff] %v12600_v53  ;;  %v5130_v32 = vmul.f32 0.2, %v5115_v45  ;;  %v5119_v15 = vadd.f32 %v5118_v41, %v5066_v27  ;;  %v5070_v12 = vadd.f32 %v5069_v57, %v12570_v2 }
 0xa0b   : > { %v5120_v17 = vpop.f32.mrf.mxu1  ;;  %v5071_v60 = vpop.f32.mrf.mxu0 }
 0xa0c   : > { %14898 = vst [vmem:[#allocation9_spill] sm:$0xff] %v12578_v30  ;;  %5302 = vrot.lane.b32.xlu0 %v12578_v30, %s14835_s30  ;;  %5248 = vrot.lane.b32.xlu1 %v12574_v34, %s14837_s0  ;;  %v12606_v38 = vmax.f32 %v5115_v45, %v5130_v32  ;;  %v5131_v20 = vmul.f32 0.2, %v5119_v15  ;;  %v5121_v47 = vadd.f32 %v5120_v17, %v5068_v55  ;;  %v6119_v45 = vld [vmem:[%s14463_s5 + $0x10] sm:$0xff]  ;;  %v9503_v32 = vmov 3   ;;  %v12785_v17 = vld [vmem:[%s14463_s5] sm:$0xff] }
 0xa0d   : > { %v5122_v54 = vpop.f32.mrf.mxu1  ;;  %v5072_v16 = vadd.f32 %v5071_v60, %v12570_v2  ;;  %9196 = vset.pattern.permute.xlu1 %v9503_v32  ;;  %9197 = vset.pattern.permute.xlu0 %v9503_v32  ;;  %14903 = vst [vmem:[#allocation32_spill] sm:$0xff] %v12785_v17 }
 0xa0e   : > { %14900 = vst [vmem:[#allocation7_spill] sm:$0xff] %v12606_v38  ;;  %v5123_v29 = vadd.f32 %v5122_v54, %v5070_v12  ;;  %v12630_v6 = vmax.f32 %v5119_v15, %v5131_v20  ;;  %v5132_v52 = vmul.f32 0.2, %v5121_v47  ;;  %v12795_v15 = vld [vmem:[%s14463_s5 + $0x8] sm:$0xff] }
 0xa0f   : > { %v5124_v31 = vpop.f32.mrf.mxu1  ;;  %14904 = vst [vmem:[#allocation28_spill] sm:$0xff] %v12795_v15 }
 0xa10   : > { %5250 = vrot.lane.b32.xlu0 %v12578_v30, %s14837_s0  ;;  %5196 = vrot.lane.b32.xlu1 %v12574_v34, %s14838_s17  ;;  %v5133_v26 = vmul.f32 0.2, %v5123_v29  ;;  %v5125_v39 = vadd.f32 %v5124_v31, %v5072_v16  ;;  %v12660_v33 = vmax.f32 %v5121_v47, %v5132_v52 }
 0xa12   : > { %v12636_v40 = vmax.f32 %v5123_v29, %v5133_v26  ;;  %v5134_v43 = vmul.f32 0.2, %v5125_v39  ;;  %v9025_v26 = vld [vmem:[%s14459_s1 + $0x3] ss:$8 sm:$0x3] }
 0xa13   : > { %v5332_v31 = vrot.slane %v9025_v26, %v9767_v13 }
 0xa14   : > { %5198 = vrot.lane.b32.xlu0 %v12578_v30, %s14838_s17  ;;  %5516 = vrot.lane.b32.xlu1 %v12574_v34, %s14833_s22  ;;  %14901 = vst [vmem:[#allocation33_spill] sm:$0xff] %v12636_v40  ;;  %v12666_v3 = vmax.f32 %v5125_v39, %v5134_v43  ;;  %v5328_v39 = vrot.slane %v9025_v26, %v9769_v14  ;;  %v9024_v26 = vld [vmem:[%s14459_s1 + $0x2] ss:$8 sm:$0x3] }
 0xa18   : > { %5518 = vrot.lane.b32.xlu0 %v12578_v30, %s14833_s22  ;;  %5144 = vrot.lane.b32.xlu1 %v12574_v34, %s14839_s24 }
 0xa1c   : > { %5146 = vrot.lane.b32.xlu0 %v12578_v30, %s14839_s24  ;;  %5464 = vrot.lane.b32.xlu1 %v12574_v34, %s14832_s20 }
 0xa20   : > { %5466 = vrot.lane.b32.xlu0 %v12578_v30, %s14832_s20  ;;  %5308 = vrot.lane.b32.xlu1 %v12600_v53, %s14835_s30 }
 0xa24   : > { %5310 = vrot.lane.b32.xlu0 %v12606_v38, %s14835_s30  ;;  %5256 = vrot.lane.b32.xlu1 %v12600_v53, %s14837_s0 }
 0xa28   : > { %5258 = vrot.lane.b32.xlu0 %v12606_v38, %s14837_s0  ;;  %5204 = vrot.lane.b32.xlu1 %v12600_v53, %s14838_s17 }
 0xa2c   : > { %5206 = vrot.lane.b32.xlu0 %v12606_v38, %s14838_s17  ;;  %5524 = vrot.lane.b32.xlu1 %v12600_v53, %s14833_s22 }
 0xa30   : > { %5526 = vrot.lane.b32.xlu0 %v12606_v38, %s14833_s22  ;;  %5152 = vrot.lane.b32.xlu1 %v12600_v53, %s14839_s24 }
 0xa34   : > { %5154 = vrot.lane.b32.xlu0 %v12606_v38, %s14839_s24  ;;  %5472 = vrot.lane.b32.xlu1 %v12600_v53, %s14832_s20 }
 0xa38   : > { %5474 = vrot.lane.b32.xlu0 %v12606_v38, %s14832_s20  ;;  %5304 = vrot.lane.b32.xlu1 %v12630_v6, %s14835_s30 }
 0xa3c   : > { %5306 = vrot.lane.b32.xlu0 %v12636_v40, %s14835_s30  ;;  %5252 = vrot.lane.b32.xlu1 %v12630_v6, %s14837_s0 }
 0xa40   : > { %5254 = vrot.lane.b32.xlu0 %v12636_v40, %s14837_s0  ;;  %5200 = vrot.lane.b32.xlu1 %v12630_v6, %s14838_s17 }
 0xa44   : > { %5202 = vrot.lane.b32.xlu0 %v12636_v40, %s14838_s17  ;;  %5520 = vrot.lane.b32.xlu1 %v12630_v6, %s14833_s22 }
 0xa48   : > { %5522 = vrot.lane.b32.xlu0 %v12636_v40, %s14833_s22  ;;  %5148 = vrot.lane.b32.xlu1 %v12630_v6, %s14839_s24 }
 0xa4c   : > { %5150 = vrot.lane.b32.xlu0 %v12636_v40, %s14839_s24  ;;  %5468 = vrot.lane.b32.xlu1 %v12630_v6, %s14832_s20 }
 0xa50   : > { %5470 = vrot.lane.b32.xlu0 %v12636_v40, %s14832_s20  ;;  %5312 = vrot.lane.b32.xlu1 %v12660_v33, %s14835_s30 }
 0xa54   : > { %5314 = vrot.lane.b32.xlu0 %v12666_v3, %s14835_s30  ;;  %5416 = vrot.lane.b32.xlu1 %v12630_v6, %s14736_s25 }
 0xa58   : > { %5418 = vrot.lane.b32.xlu0 %v12636_v40, %s14736_s25  ;;  %5260 = vrot.lane.b32.xlu1 %v12660_v33, %s14837_s0 }
 0xa5c   : > { %5262 = vrot.lane.b32.xlu0 %v12666_v3, %s14837_s0  ;;  %5208 = vrot.lane.b32.xlu1 %v12660_v33, %s14838_s17 }
 0xa60   : > { %5210 = vrot.lane.b32.xlu0 %v12666_v3, %s14838_s17  ;;  %5528 = vrot.lane.b32.xlu1 %v12660_v33, %s14833_s22 }
 0xa64   : > { %5530 = vrot.lane.b32.xlu0 %v12666_v3, %s14833_s22  ;;  %5156 = vrot.lane.b32.xlu1 %v12660_v33, %s14839_s24 }
 0xa68   : > { %5414 = vrot.lane.b32.xlu0 %v12578_v30, %s14736_s25  ;;  %5476 = vrot.lane.b32.xlu1 %v12660_v33, %s14832_s20 }
 0xa6c   : > { %5158 = vrot.lane.b32.xlu0 %v12666_v3, %s14839_s24  ;;  %5424 = vrot.lane.b32.xlu1 %v12660_v33, %s14736_s25 }
 0xa70   : > { %5422 = vrot.lane.b32.xlu0 %v12606_v38, %s14736_s25  ;;  %5412 = vrot.lane.b32.xlu1 %v12574_v34, %s14736_s25 }
 0xa74   : > { %5478 = vrot.lane.b32.xlu0 %v12666_v3, %s14832_s20  ;;  %5420 = vrot.lane.b32.xlu1 %v12600_v53, %s14736_s25 }
 0xa78   : > { %5366 = vrot.lane.b32.xlu0 %v12636_v40, %s14739_s26  ;;  %5364 = vrot.lane.b32.xlu1 %v12630_v6, %s14739_s26 }
 0xa7a   : > { %v12708_v19 = vpop.permute.xlu1 %5300 }
 0xa7c   : > { %5426 = vrot.lane.b32.xlu0 %v12666_v3, %s14736_s25  ;;  %5372 = vrot.lane.b32.xlu1 %v12660_v33, %s14739_s26 }
 0xa7e   : > { %v12714_v22 = vpop.permute.xlu0 %5302  ;;  %v12716_v46 = vpop.permute.xlu1 %5248 }
 0xa80   : > { %5362 = vrot.lane.b32.xlu0 %v12578_v30, %s14739_s26  ;;  %5360 = vrot.lane.b32.xlu1 %v12574_v34, %s14739_s26 }
 0xa82   : > { %v12722_v9 = vpop.permute.xlu0 %5250  ;;  %v12724_v59 = vpop.permute.xlu1 %5196 }
 0xa84   : > { %5374 = vrot.lane.b32.xlu0 %v12666_v3, %s14739_s26  ;;  %5368 = vrot.lane.b32.xlu1 %v12600_v53, %s14739_s26 }
 0xa86   : > { %v12730_v18 = vpop.permute.xlu0 %5198  ;;  %v12732_v2 = vpop.permute.xlu1 %5516 }
 0xa88   : > { %5370 = vrot.lane.b32.xlu0 %v12606_v38, %s14739_s26  ;;  %6133 = vperm.xlu1 %9196, %v6119_v45  }
 0xa8a   : > { %v12736_v50 = vpop.permute.xlu0 %5518  ;;  %v12738_v62 = vpop.permute.xlu1 %5144 }
 0xa8c   : > { %6138 = vperm.xlu0 %9197, %v12775_v36   ;;  %6123 = vperm.xlu1 %9196, %v12785_v17  }
 0xa8e   : > { %v12743_v58 = vpop.permute.xlu0 %5146  ;;  %v12745_v24 = vpop.permute.xlu1 %5464 }
 0xa90   : > { %6128 = vperm.xlu1 %9196, %v12795_v15  }
 0xa92   : > { %v12747_v51 = vpop.permute.xlu0 %5466  ;;  %v5309_v4 = vpop.permute.xlu1 %5308 }
 0xa93   : > { %v5316_v43 = vsel %vm725_vm0, %v12708_v19, %v5309_v4  ;;  %v5320_v38 = vsel %vm725_vm0, %v5309_v4, %v12708_v19 }
 0xa94   : > { %v5335_v19 = vmul.f32 %v5328_v39, %v5320_v38 }
 0xa96   : > { %v5311_v63 = vpop.permute.xlu0 %5310  ;;  %v12749_v61 = vpop.permute.xlu1 %5256 }
 0xa97   : > { %v5317_v47 = vsel %vm725_vm0, %v12714_v22, %v5311_v63  ;;  %v5321_v32 = vsel %vm725_vm0, %v5311_v63, %v12714_v22  ;;  %v5336_v22 = vmul.f32 %v5332_v31, %v5316_v43 }
 0xa98   : > { %v5338_v15 = vmul.f32 %v5332_v31, %v5317_v47  ;;  %v5337_v63 = vmul.f32 %v5328_v39, %v5321_v32  ;;  %v9023_v47 = vld [vmem:[%s14459_s1 + $0x1] ss:$8 sm:$0x3] }
 0xa9a   : > { %v12751_v11 = vpop.permute.xlu0 %5258  ;;  %v12753_v23 = vpop.permute.xlu1 %5204  ;;  %v5803_v43 = vpack.c.bf16 %v5337_v63, %v5335_v19 }
 0xa9b   : > { %v5265_v4 = vsel %vm671_vm1, %v12722_v9, %v12751_v11 }
 0xa9e   : > { %v12755_v28 = vpop.permute.xlu0 %5206  ;;  %v12757_v5 = vpop.permute.xlu1 %5524 }
 0xaa2   : > { %v12759_v37 = vpop.permute.xlu0 %5526  ;;  %v12761_v35 = vpop.permute.xlu1 %5152 }
 0xaa6   : > { %v12763_v0 = vpop.permute.xlu0 %5154  ;;  %v12765_v25 = vpop.permute.xlu1 %5472 }
 0xaaa   : > { %v12767_v21 = vpop.permute.xlu0 %5474  ;;  %v5305_v7 = vpop.permute.xlu1 %5304 }
 0xaae   : > { %v5307_v48 = vpop.permute.xlu0 %5306  ;;  %v5253_v8 = vpop.permute.xlu1 %5252 }
 0xab2   : > { %v12777_v41 = vpop.permute.xlu0 %5254  ;;  %v12779_v49 = vpop.permute.xlu1 %5200 }
 0xab6   : > { %v12787_v27 = vpop.permute.xlu0 %5202  ;;  %v12789_v57 = vpop.permute.xlu1 %5520 }
 0xaba   : > { %v12797_v54 = vpop.permute.xlu0 %5522  ;;  %v12799_v12 = vpop.permute.xlu1 %5148 }
 0xabe   : > { %v12802_v20 = vpop.permute.xlu0 %5150  ;;  %v12804_v29 = vpop.permute.xlu1 %5468 }
 0xac2   : > { %v12809_v55 = vpop.permute.xlu0 %5470  ;;  %v5313_v60 = vpop.permute.xlu1 %5312 }
 0xac3   : > { %v5318_v16 = vsel %vm725_vm0, %v5305_v7, %v5313_v60  ;;  %v5322_v52 = vsel %vm725_vm0, %v5313_v60, %v5305_v7 }
 0xac4   : > { %v5339_v60 = vmul.f32 %v5328_v39, %v5322_v52  ;;  %v5340_v17 = vmul.f32 %v5332_v31, %v5318_v16  ;;  %v5276_v52 = vrot.slane %v9024_v26, %v9769_v14  ;;  %v5280_v16 = vrot.slane %v9024_v26, %v9767_v13 }
 0xac6   : > { %v5315_v44 = vpop.permute.xlu0 %5314  ;;  %v12823_v45 = vpop.permute.xlu1 %5416 }
 0xac7   : > { %v5319_v36 = vsel %vm725_vm0, %v5307_v48, %v5315_v44  ;;  %v5323_v7 = vsel %vm725_vm0, %v5315_v44, %v5307_v48 }
 0xac8   : > { %v5341_v30 = vmul.f32 %v5328_v39, %v5323_v7  ;;  %v5342_v34 = vmul.f32 %v5332_v31, %v5319_v36  ;;  %v9029_v36 = vld [vmem:[%s14459_s1 + $0x10] ss:$8 sm:$0x3]  ;;  %v5228_v31 = vrot.slane %v9023_v47, %v9767_v13 }
 0xac9   : > { %v5548_v19 = vrot.slane %v9029_v36, %v9767_v13 }
 0xaca   : > { %v5805_v53 = vpack.c.bf16 %v5341_v30, %v5339_v60  ;;  %v12841_v48 = vpop.permute.xlu0 %5418  ;;  %v5261_v44 = vpop.permute.xlu1 %5260  ;;  %v5806_v40 = vpack.c.bf16 %v5342_v34, %v5340_v17  ;;  %v5269_v30 = vsel %vm671_vm1, %v12751_v11, %v12722_v9  ;;  %v5804_v34 = vpack.c.bf16 %v5338_v15, %v5336_v22 }
 0xacb   : > { %v12857_v17 = vrot.slane %v9023_v47, %v9769_v14  ;;  %v5266_v38 = vsel %vm671_vm1, %v5253_v8, %v5261_v44  ;;  %v5270_v39 = vsel %vm671_vm1, %v5261_v44, %v5253_v8  ;;  %v5264_v9 = vsel %vm671_vm1, %v12716_v46, %v12749_v61 }
 0xacc   : > { %5863 = vmatprep.subr.bf16.mxu1 %v5806_v40  ;;  %v5268_v40 = vsel %vm671_vm1, %v12749_v61, %v12716_v46  ;;  %v12873_v11 = vrot.slane %v9029_v36, %v9769_v14  ;;  %v5285_v7 = vmul.f32 %v5276_v52, %v5269_v30  ;;  %v5286_v8 = vmul.f32 %v5280_v16, %v5265_v4 }
 0xacd   : > { %5864 = vmatpush1.bf16.msra.mxu1 %v5805_v53  ;;  %v5287_v60 = vmul.f32 %v5276_v52, %v5270_v39  ;;  %v5288_v22 = vmul.f32 %v5280_v16, %v5266_v38  ;;  %v5283_v61 = vmul.f32 %v5276_v52, %v5268_v40  ;;  %v5284_v47 = vmul.f32 %v5280_v16, %v5264_v9 }
 0xace   : > { %v5263_v15 = vpop.permute.xlu0 %5262  ;;  %5865 = vmatprep.subr.bf16.mxu1 %v5804_v34  ;;  %v5209_v32 = vpop.permute.xlu1 %5208  ;;  %v5212_v44 = vsel %vm617_vm2, %v12724_v59, %v12753_v23  ;;  %v5216_v4 = vsel %vm617_vm2, %v12753_v23, %v12724_v59  ;;  %v5537_v36 = vsel %vm949_vm7, %v12759_v37, %v12736_v50 }
 0xacf   : > { %v5267_v53 = vsel %vm671_vm1, %v12777_v41, %v5263_v15  ;;  %v5271_v26 = vsel %vm671_vm1, %v5263_v15, %v12777_v41  ;;  %v5213_v41 = vsel %vm617_vm2, %v12730_v18, %v12755_v28  ;;  %v5799_v38 = vpack.c.bf16 %v5285_v7, %v5283_v61 }
 0xad0   : > { %v5289_v63 = vmul.f32 %v5276_v52, %v5271_v26  ;;  %v5290_v46 = vmul.f32 %v5280_v16, %v5267_v53  ;;  %v5214_v39 = vsel %vm617_vm2, %v12779_v49, %v5209_v32  ;;  %v5800_v40 = vpack.c.bf16 %v5286_v8, %v5284_v47 }
 0xad1   : > { %5866 = vmatpush1.bf16.msra.mxu1 %v5803_v43  ;;  %v5217_v15 = vsel %vm617_vm2, %v12755_v28, %v12730_v18  ;;  %v5234_v7 = vmul.f32 %v5228_v31, %v5213_v41  ;;  %v5536_v53 = vsel %vm949_vm7, %v12757_v5, %v12732_v2  ;;  %v5533_v8 = vsel %vm949_vm7, %v12736_v50, %v12759_v37  ;;  %v5143_v37 = vld [vmem:[%s14459_s1] ss:$8 sm:$0x3] }
 0xad2   : > { %v5801_v52 = vpack.c.bf16 %v5289_v63, %v5287_v60  ;;  %v5211_v16 = vpop.permute.xlu0 %5210  ;;  %v5529_v30 = vpop.permute.xlu1 %5528  ;;  %v5802_v34 = vpack.c.bf16 %v5290_v46, %v5288_v22  ;;  %v5554_v26 = vmul.f32 %v5548_v19, %v5537_v36  ;;  %v5218_v18 = vsel %vm617_vm2, %v5209_v32, %v12779_v49 }
 0xad3   : > { %v5215_v59 = vsel %vm617_vm2, %v12787_v27, %v5211_v16  ;;  %v5219_v23 = vsel %vm617_vm2, %v5211_v16, %v12787_v27  ;;  %v5534_v9 = vsel %vm949_vm7, %v12789_v57, %v5529_v30  ;;  %v5538_v27 = vsel %vm949_vm7, %v5529_v30, %v12789_v57 }
 0xad4   : > { %v5238_v43 = vmul.f32 %v5228_v31, %v5215_v59  ;;  %5867 = vmatprep.subr.bf16.mxu1 %v5802_v34  ;;  %v5236_v28 = vmul.f32 %v5228_v31, %v5214_v39  ;;  %v5237_v63 = vmul.f32 %v12857_v17, %v5219_v23  ;;  %v5555_v46 = vmul.f32 %v12873_v11, %v5534_v9 }
 0xad5   : > { %5868 = vmatpush1.bf16.msra.mxu1 %v5801_v52  ;;  %v5556_v49 = vmul.f32 %v5548_v19, %v5538_v27  ;;  %v5232_v41 = vmul.f32 %v5228_v31, %v5212_v44  ;;  %v5233_v52 = vmul.f32 %v12857_v17, %v5217_v15  ;;  %v5532_v16 = vsel %vm949_vm7, %v12732_v2, %v12757_v5 }
 0xad6   : > { %v5531_v60 = vpop.permute.xlu0 %5530  ;;  %5869 = vmatprep.subr.bf16.mxu1 %v5800_v40  ;;  %v5157_v22 = vpop.permute.xlu1 %5156  ;;  %v5798_v47 = vpack.c.bf16 %v5238_v43, %v5236_v28  ;;  %v5235_v30 = vmul.f32 %v12857_v17, %v5218_v18  ;;  %v5553_v34 = vmul.f32 %v12873_v11, %v5533_v8  ;;  %v5231_v31 = vmul.f32 %v12857_v17, %v5216_v4 }
 0xad7   : > { %v5535_v57 = vsel %vm949_vm7, %v12797_v54, %v5531_v60  ;;  %v5539_v50 = vsel %vm949_vm7, %v5531_v60, %v12797_v54  ;;  %v5552_v54 = vmul.f32 %v5548_v19, %v5536_v53  ;;  %v5172_v44 = vrot.slane %v5143_v37, %v9769_v14 }
 0xad8   : > { %v5557_v32 = vmul.f32 %v12873_v11, %v5535_v57  ;;  %v5558_v61 = vmul.f32 %v5548_v19, %v5539_v50  ;;  %v5797_v43 = vpack.c.bf16 %v5237_v63, %v5235_v30  ;;  %v5551_v9 = vmul.f32 %v12873_v11, %v5532_v16  ;;  %v9261_v63 = vld [vmem:[%s14741_s7 + $0x68] ss:$12 sps:$4 sm:$0xff]   ;;  %v9027_v30 = vld [vmem:[%s14459_s1 + $0x6] ss:$8 sm:$0x3] }
 0xad9   : > { %5870 = vmatpush1.bf16.msra.mxu1 %v5799_v38  ;;  %v5161_v2 = vsel %vm563_vm3, %v12743_v58, %v12763_v0  ;;  %v5796_v5 = vpack.c.bf16 %v5234_v7, %v5232_v41  ;;  %v5824_v19 = vpack.c.bf16 %v5554_v26, %v5552_v54  ;;  %v5176_v38 = vrot.slane %v5143_v37, %v9767_v13 }
 0xada   : > { %v5825_v36 = vpack.c.bf16 %v5557_v32, %v5555_v46  ;;  %v12947_v39 = vpop.permute.xlu0 %5414  ;;  %5871 = vmatprep.subr.bf16.mxu1 %v5798_v47  ;;  %v5477_v59 = vpop.permute.xlu1 %5476  ;;  %v5826_v23 = vpack.c.bf16 %v5558_v61, %v5556_v49  ;;  %v5162_v40 = vsel %vm563_vm3, %v12799_v12, %v5157_v22  ;;  %v5166_v17 = vsel %vm563_vm3, %v5157_v22, %v12799_v12 }
 0xadb   : > { %v5795_v11 = vpack.c.bf16 %v5233_v52, %v5231_v31  ;;  %v5823_v4 = vpack.c.bf16 %v5553_v34, %v5551_v9  ;;  %v5160_v15 = vsel %vm563_vm3, %v12738_v62, %v12761_v35  ;;  %v5165_v27 = vsel %vm563_vm3, %v12763_v0, %v12743_v58  ;;  %v14905_v34 = vld [vmem:[#allocation13_spill] sm:$0xff] }
 0xadc   : > { %5928 = vmatprep.subr.bf16.mxu0 %v5826_v23  ;;  %v5182_v12 = vmul.f32 %v5176_v38, %v5161_v2  ;;  %v5183_v18 = vmul.f32 %v5172_v44, %v5166_v17  ;;  %v5184_v28 = vmul.f32 %v5176_v38, %v5162_v40  ;;  %v5164_v58 = vsel %vm563_vm3, %v12761_v35, %v12738_v62  ;;  %v9268_v2 = vld [vmem:[%s14741_s7 + $0x80] ss:$12 sps:$4 sm:$0xff]   ;;  %v14907_v17 = vld [vmem:[#allocation15_spill] sm:$0xff] }
 0xadd   : > { %5872 = vmatpush1.bf16.msra.mxu1 %v5797_v43  ;;  %5929 = vmatpush1.bf16.msra.mxu0 %v5825_v36  ;;  %v5180_v0 = vmul.f32 %v5176_v38, %v5160_v15  ;;  %v5181_v46 = vmul.f32 %v5172_v44, %v5165_v27  ;;  %v5179_v32 = vmul.f32 %v5172_v44, %v5164_v58 }
 0xade   : > { %v5159_v7 = vpop.permute.xlu0 %5158  ;;  %5873 = vmatprep.subr.bf16.mxu1 %v5796_v5  ;;  %5930 = vmatprep.subr.bf16.mxu0 %v5824_v19  ;;  %v12967_v53 = vpop.permute.xlu1 %5424  ;;  %v5485_v62 = vsel %vm895_vm4, %v12767_v21, %v12747_v51  ;;  %v5482_v47 = vsel %vm895_vm4, %v12804_v29, %v5477_v59  ;;  %v5484_v16 = vsel %vm895_vm4, %v12765_v25, %v12745_v24  ;;  %v14906_v5 = vld [vmem:[#allocation12_spill] sm:$0xff] }
 0xadf   : > { %v5163_v8 = vsel %vm563_vm3, %v12802_v20, %v5159_v7  ;;  %v5167_v26 = vsel %vm563_vm3, %v5159_v7, %v12802_v20  ;;  %v9028_v20 = vld [vmem:[%s14459_s1 + $0x7] ss:$8 sm:$0x3]  ;;  %v5792_v35 = vpack.c.bf16 %v5182_v12, %v5180_v0  ;;  %v5791_v41 = vpack.c.bf16 %v5181_v46, %v5179_v32  ;;  %v9026_v32 = vld [vmem:[%s14459_s1 + $0x5] ss:$8 sm:$0x3] }
 0xae0   : > { %v5185_v60 = vmul.f32 %v5172_v44, %v5167_v26  ;;  %v5186_v22 = vmul.f32 %v5176_v38, %v5163_v8  ;;  %v5496_v61 = vrot.slane %v9028_v20, %v9767_v13  ;;  %v5492_v52 = vrot.slane %v9028_v20, %v9769_v14  ;;  %v14908_v26 = vld [vmem:[#allocation14_spill] sm:$0xff] }
 0xae1   : > { %5874 = vmatpush1.bf16.msra.mxu1 %v5795_v11  ;;  %5931 = vmatpush1.bf16.msra.mxu0 %v5823_v4  ;;  %v5444_v15 = vrot.slane %v9027_v30, %v9767_v13  ;;  %v5434_v27 = vsel %vm841_vm5, %v12967_v53, %v12823_v45 }
 0xae2   : > { %v5793_v57 = vpack.c.bf16 %v5185_v60, %v5183_v18  ;;  %v12989_v50 = vpop.permute.xlu0 %5422  ;;  %6011 = vmatprep.subr.bf16.mxu0 %v10572_v1  ;;  %v12992_v37 = vpop.permute.xlu1 %5412  ;;  %v5794_v49 = vpack.c.bf16 %v5186_v22, %v5184_v28  ;;  %v5486_v1 = vsel %vm895_vm4, %v5477_v59, %v12804_v29  ;;  %v5502_v36 = vmul.f32 %v5496_v61, %v5485_v62  ;;  %v14909_v22 = vld [vmem:[#allocation70_spill] sm:$0xff]  ;;  %v14910_v62 = vld [vmem:[#allocation71_spill] sm:$0xff] }
 0xae3   : > { %v5503_v31 = vmul.f32 %v5492_v52, %v5482_v47  ;;  %v5504_v44 = vmul.f32 %v5496_v61, %v5486_v1  ;;  %v5452_v58 = vmul.f32 %v5444_v15, %v5434_v27  ;;  %v14911_v1 = vld [vmem:[#allocation21_spill] sm:$0xff]  ;;  %v14916_v27 = vld [vmem:[#allocation24_spill] sm:$0xff] }
 0xae4   : > { %5875 = vmatprep.subr.bf16.mxu1 %v5794_v49  ;;  %9036 = vmatmul.mubr.msk.bf16.vlgmr.msra.gmra.mxu0 %vm1111_vm8, %v9261_v63 }
 0xae5   : > { %5876 = vmatpush1.bf16.msra.mxu1 %v5793_v57  ;;  %6012 = vmatpush1.bf16.msra.mxu0 %v10721_v56  ;;  %v5481_v56 = vsel %vm895_vm4, %v12747_v51, %v12767_v21  ;;  %v5480_v51 = vsel %vm895_vm4, %v12745_v24, %v12765_v25  ;;  %v5440_v21 = vrot.slane %v9027_v30, %v9769_v14  ;;  %v9271_v25 = vld [vmem:[%s14756_s6 + $0x64] ss:$12 sps:$4 sm:$0xff]  }
 0xae6   : > { %v5479_v54 = vpop.permute.xlu0 %5478  ;;  %5877 = vmatprep.subr.bf16.mxu1 %v5792_v35  ;;  %6013 = vmatprep.subr.bf16.mxu0 %v14905_v34  ;;  %v5421_v29 = vpop.permute.xlu1 %5420  ;;  %v5501_v19 = vmul.f32 %v5492_v52, %v5481_v56  ;;  %v5430_v24 = vsel %vm841_vm5, %v12823_v45, %v12967_v53  ;;  %v5499_v7 = vmul.f32 %v5492_v52, %v5480_v51 }
 0xae7   : > { %v5483_v59 = vsel %vm895_vm4, %v12809_v55, %v5479_v54  ;;  %v5487_v23 = vsel %vm895_vm4, %v5479_v54, %v12809_v55  ;;  %5958 = vmatprep.mubr.bf16.mxu0 %v14749_v42  ;;  %v5500_v55 = vmul.f32 %v5496_v61, %v5484_v16  ;;  %v5432_v8 = vsel %vm841_vm5, %v5421_v29, %v12992_v37 }
 0xae8   : > { %v5505_v43 = vmul.f32 %v5492_v52, %v5483_v59  ;;  %v5506_v9 = vmul.f32 %v5496_v61, %v5487_v23  ;;  %v5819_v18 = vpack.c.bf16 %v5501_v19, %v5499_v7  ;;  %v5451_v28 = vmul.f32 %v5440_v21, %v5430_v24 }
 0xae9   : > { %5878 = vmatpush1.bf16.msra.mxu1 %v5791_v41  ;;  %6014 = vmatpush1.bf16.msra.mxu0 %v14906_v5  ;;  %v5820_v12 = vpack.c.bf16 %v5502_v36, %v5500_v55  ;;  %v5433_v45 = vsel %vm841_vm5, %v12989_v50, %v12947_v39  ;;  %v5428_v46 = vsel %vm841_vm5, %v12992_v37, %v5421_v29  ;;  %v14913_v36 = vld [vmem:[#allocation16_spill] sm:$0xff]  ;;  %v14914_v55 = vld [vmem:[#allocation17_spill] sm:$0xff] }
 0xaea   : > { %v5821_v38 = vpack.c.bf16 %v5505_v43, %v5503_v31  ;;  %v5367_v40 = vpop.permute.xlu0 %5366  ;;  %6015 = vmatprep.subr.bf16.mxu0 %v14907_v17  ;;  %v5365_v11 = vpop.permute.xlu1 %5364  ;;  %v5822_v4 = vpack.c.bf16 %v5506_v9, %v5504_v44  ;;  %v5448_v20 = vmul.f32 %v5444_v15, %v5432_v8  ;;  %v5450_v35 = vmul.f32 %v5444_v15, %v5433_v45  ;;  %v14915_v17 = vld [vmem:[#allocation25_spill] sm:$0xff]  ;;  %v14917_v8 = vld [vmem:[#allocation27_spill] sm:$0xff] }
 0xaeb   : > { %v5447_v52 = vmul.f32 %v5440_v21, %v5428_v46  ;;  %v5388_v16 = vrot.slane %v9026_v32, %v9769_v14  ;;  %v5392_v30 = vrot.slane %v9026_v32, %v9767_v13  ;;  %v14922_v45 = vld [vmem:[#allocation7_spill] sm:$0xff]  ;;  %v14924_v46 = vld [vmem:[#allocation72_spill] sm:$0xff] }
 0xaec   : > { %5879 = vmatprep.subr.bf16.mxu1 %v5822_v4  ;;  %9037 = vmatmul.mubr.msk.bf16.gmra.mxu0 %vm1111_vm8, %v9268_v2  ;;  %v5816_v54 = vpack.c.bf16 %v5450_v35, %v5448_v20  ;;  %v14925_v20 = vld [vmem:[#allocation8_spill] sm:$0xff]  ;;  %v14929_v35 = vld [vmem:[#allocation73_spill] sm:$0xff] }
 0xaed   : > { %5880 = vmatpush2.bf16.msra.mxu1 %v5821_v38  ;;  %6016 = vmatpush1.bf16.msra.mxu0 %v14908_v26  ;;  %v9262_v32 = vld [vmem:[%s14741_s7 + $0x60] ss:$12 sps:$4 sm:$0xff]  }
 0xaee   : > { %v5427_v60 = vpop.permute.xlu0 %5426  ;;  %5881 = vmatprep.subr.bf16.mxu1 %v5820_v12  ;;  %6017 = vmatprep.subr.bf16.mxu0 %v14909_v22  ;;  %v5373_v63 = vpop.permute.xlu1 %5372  ;;  %v14920_v22 = vld [vmem:[#allocation33_spill] sm:$0xff] }
 0xaef   : > { %v5431_v53 = vsel %vm841_vm5, %v12841_v48, %v5427_v60  ;;  %v5435_v0 = vsel %vm841_vm5, %v5427_v60, %v12841_v48  ;;  %6043 = vmatprep.mubr.bf16.mxu0 %v9271_v25  ;;  %v5429_v48 = vsel %vm841_vm5, %v12947_v39, %v12989_v50  ;;  %v5378_v29 = vsel %vm787_vm6, %v5365_v11, %v5373_v63  ;;  %v14912_v50 = vld [vmem:[#allocation20_spill] sm:$0xff]  ;;  %v14919_v60 = vld [vmem:[#allocation41_spill] sm:$0xff] }
 0xaf0   : > { %v5453_v57 = vmul.f32 %v5440_v21, %v5431_v53  ;;  %v5454_v49 = vmul.f32 %v5444_v15, %v5435_v0  ;;  %v5449_v34 = vmul.f32 %v5440_v21, %v5429_v48  ;;  %v5382_v39 = vsel %vm787_vm6, %v5373_v63, %v5365_v11  ;;  %v14923_v0 = vld [vmem:[#allocation40_spill] sm:$0xff]  ;;  %v14928_v48 = vld [vmem:[#allocation49_spill] sm:$0xff] }
 0xaf1   : > { %5882 = vmatpush2.bf16.msra.mxu1 %v5819_v18  ;;  %6018 = vmatpush1.bf16.msra.mxu0 %v14910_v62  ;;  %v5399_v43 = vmul.f32 %v5388_v16, %v5378_v29  ;;  %v5400_v9 = vmul.f32 %v5392_v30, %v5382_v39  ;;  %v5810_v18 = vpack.c.bf16 %v12666_v3, %v12660_v33  ;;  %v14927_v62 = vld [vmem:[#allocation74_spill] sm:$0xff]  ;;  %v14938_v29 = vld [vmem:[#allocation53_spill] sm:$0xff] }
 0xaf2   : > { %v5817_v61 = vpack.c.bf16 %v5453_v57, %v5451_v28  ;;  %v5363_v47 = vpop.permute.xlu0 %5362  ;;  %6019 = vmatprep.subr.bf16.mxu0 %v14911_v1  ;;  %v5361_v37 = vpop.permute.xlu1 %5360  ;;  %v5818_v41 = vpack.c.bf16 %v5454_v49, %v5452_v58  ;;  %v5815_v23 = vpack.c.bf16 %v5449_v34, %v5447_v52  ;;  %v14918_v28 = vld [vmem:[#allocation26_spill] sm:$0xff]  ;;  %v5809_v63 = vpack.c.bf16 %v14920_v22, %v12630_v6  ;;  %v14921_v58 = vld [vmem:[#allocation37_spill] sm:$0xff]  ;;  %v14931_v1 = vld [vmem:[#allocation23_spill] sm:$0xff] }
 0xaf3   : > { %v5808_v53 = vpack.c.bf16 %v14922_v45, %v14921_v58  ;;  %v14926_v57 = vld [vmem:[#allocation9_spill] sm:$0xff]  ;;  %v9267_v52 = vld [vmem:[%s14741_s7 + $0x78] ss:$12 sps:$4 sm:$0xff]   ;;  %v14937_v34 = vld [vmem:[#allocation50_spill] sm:$0xff] }
 0xaf4   : > { %5883 = vmatprep.subr.bf16.mxu1 %v5818_v41  ;;  %v5807_v49 = vpack.c.bf16 %v14926_v57, %v14925_v20  ;;  %v14933_v41 = vld [vmem:[#allocation57_spill] sm:$0xff]  ;;  %v14939_v39 = vld [vmem:[#allocation58_spill] sm:$0xff] }
 0xaf5   : > { %5884 = vmatpush2.bf16.msra.mxu1 %v5817_v61  ;;  %6020 = vmatpush1.bf16.msra.mxu0 %v14912_v50  ;;  %v9265_v61 = vld [vmem:[%s14741_s7 + $0x7c] ss:$12 sps:$4 sm:$0xff]   ;;  %v14940_v50 = vld [vmem:[#allocation22_spill] sm:$0xff] }
 0xaf6   : > { %v5375_v56 = vpop.permute.xlu0 %5374  ;;  %5885 = vmatprep.subr.bf16.mxu1 %v5816_v54  ;;  %6021 = vmatprep.subr.bf16.mxu0 %v14913_v36  ;;  %v5369_v59 = vpop.permute.xlu1 %5368  ;;  %v14936_v54 = vld [vmem:[#allocation59_spill] sm:$0xff]  ;;  %v14942_v36 = vld [vmem:[#allocation56_spill] sm:$0xff] }
 0xaf7   : > { %v5379_v31 = vsel %vm787_vm6, %v5367_v40, %v5375_v56  ;;  %v5383_v44 = vsel %vm787_vm6, %v5375_v56, %v5367_v40  ;;  %v5376_v21 = vsel %vm787_vm6, %v5361_v37, %v5369_v59  ;;  %v5380_v5 = vsel %vm787_vm6, %v5369_v59, %v5361_v37  ;;  %v14932_v37 = vld [vmem:[#allocation18_spill] sm:$0xff]  ;;  %v14943_v59 = vld [vmem:[#allocation45_spill] sm:$0xff] }
 0xaf8   : > { %v5401_v2 = vmul.f32 %v5388_v16, %v5379_v31  ;;  %v5402_v51 = vmul.f32 %v5392_v30, %v5383_v44  ;;  %v5395_v15 = vmul.f32 %v5388_v16, %v5376_v21  ;;  %v5396_v24 = vmul.f32 %v5392_v30, %v5380_v5  ;;  %v14941_v56 = vld [vmem:[#allocation54_spill] sm:$0xff]  ;;  %v14945_v31 = vld [vmem:[#allocation35_spill] sm:$0xff]  ;;  %v14946_v44 = vld [vmem:[#allocation44_spill] sm:$0xff] }
 0xaf9   : > { %5886 = vmatpush2.bf16.msra.mxu1 %v5815_v23  ;;  %6022 = vmatpush1.bf16.msra.mxu0 %v14914_v55  ;;  %v14944_v23 = vld [vmem:[#allocation43_spill] sm:$0xff]  ;;  %v14950_v21 = vld [vmem:[#allocation10_spill] sm:$0xff]  ;;  %v14951_v5 = vld [vmem:[#allocation52_spill] sm:$0xff] }
 0xafa   : > { %v5813_v19 = vpack.c.bf16 %v5401_v2, %v5399_v43  ;;  %v5371_v38 = vpop.permute.xlu0 %5370  ;;  %6023 = vmatprep.subr.bf16.mxu0 %v14915_v17  ;;  %v5814_v11 = vpack.c.bf16 %v5402_v51, %v5400_v9  ;;  %v14947_v43 = vld [vmem:[#allocation34_spill] sm:$0xff]  ;;  %v14948_v9 = vld [vmem:[#allocation11_spill] sm:$0xff]  ;;  %v9269_v51 = vld [vmem:[%s14756_s6 + $0x60] ss:$12 sps:$4 sm:$0xff]  }
 0xafb   : > { %v5377_v40 = vsel %vm787_vm6, %v5363_v47, %v5371_v38  ;;  %v5381_v4 = vsel %vm787_vm6, %v5371_v38, %v5363_v47  ;;  %v14930_v47 = vld [vmem:[#allocation48_spill] sm:$0xff]  ;;  %v14949_v2 = vld [vmem:[#allocation51_spill] sm:$0xff]  ;;  %v9272_v38 = vld [vmem:[%s14756_s6 + $0x68] ss:$12 sps:$4 sm:$0xff]  }
 0xafc   : > { %v5397_v25 = vmul.f32 %v5388_v16, %v5377_v40  ;;  %v5398_v7 = vmul.f32 %v5392_v30, %v5381_v4  ;;  %5887 = vmatprep.subr.bf16.mxu1 %v5814_v11  ;;  %v14934_v16 = vld [vmem:[#allocation19_spill] sm:$0xff]  ;;  %v14953_v17 = vld [vmem:[#allocation38_spill] sm:$0xff]  ;;  %v9276_v40 = vld [vmem:[%s14756_s6 + $0x80] ss:$12 sps:$4 sm:$0xff]  }
 0xafd   : > { %5888 = vmatpush2.bf16.msra.mxu1 %v5813_v19  ;;  %6024 = vmatpush1.bf16.msra.mxu0 %v14916_v27  ;;  %v14935_v30 = vld [vmem:[#allocation55_spill] sm:$0xff] }
 0xafe   : > { %v5811_v12 = vpack.c.bf16 %v5397_v25, %v5395_v15  ;;  %6025 = vmatprep.subr.bf16.mxu0 %v14917_v8  ;;  %v5812_v26 = vpack.c.bf16 %v5398_v7, %v5396_v24  ;;  %v9273_v55 = vld [vmem:[%s14756_s6 + $0x7c] ss:$12 sps:$4 sm:$0xff]   ;;  %v9275_v11 = vld [vmem:[%s14756_s6 + $0x78] ss:$12 sps:$4 sm:$0xff]  }
 0xaff   : > { %v14952_v19 = vld [vmem:[#allocation39_spill] sm:$0xff] }
 0xb00   : > { %5889 = vmatprep.subr.bf16.mxu1 %v5812_v26 }
 0xb01   : > { %5890 = vmatpush2.bf16.msra.mxu1 %v5811_v12  ;;  %6026 = vmatpush1.bf16.msra.mxu0 %v14918_v28 }
 0xb02   : > { %5891 = vmatprep.subr.bf16.mxu1 %v5810_v18  ;;  %6027 = vmatprep.subr.bf16.mxu0 %v14919_v60 }
 0xb05   : > { %5892 = vmatpush2.bf16.msra.mxu1 %v5809_v63  ;;  %6028 = vmatpush2.bf16.msra.mxu0 %v14923_v0 }
 0xb06   : > { %5893 = vmatprep.subr.bf16.mxu1 %v5808_v53  ;;  %6029 = vmatprep.subr.bf16.mxu0 %v14924_v46  ;;  %v13178_v53 = vpop.permute.xlu1 %6133 }
 0xb09   : > { %5894 = vmatpush2.bf16.msra.mxu1 %v5807_v49  ;;  %6030 = vmatpush2.bf16.msra.mxu0 %v14927_v62 }
 0xb0a   : > { %6031 = vmatprep.subr.bf16.mxu0 %v14928_v48  ;;  %9044 = vmatprep.subr.msk.bf16.mxu1 %vm1248_vm9, %v14929_v35  ;;  %v6124_v35 = vpop.permute.xlu1 %6123 }
 0xb0c   : > { %5896 = vmatmul.mubr.bf16.vlgmr.msra.gmra.mxu1 %v9262_v32 }
 0xb0d   : > { %6032 = vmatpush2.bf16.msra.mxu0 %v14930_v47  ;;  %6067 = vmatpush1.bf16.msra.mxu1 %v14931_v1 }
 0xb0e   : > { %6033 = vmatprep.subr.bf16.mxu0 %v14932_v37  ;;  %6068 = vmatprep.subr.bf16.mxu1 %v14933_v41 }
 0xb0f   : > { %5905 = vmatprep.mubr.bf16.mxu1 %v9265_v61 }
 0xb11   : > { %6034 = vmatpush2.bf16.msra.mxu0 %v14934_v16  ;;  %6069 = vmatpush1.bf16.msra.mxu1 %v14935_v30 }
 0xb12   : > { %6070 = vmatprep.subr.bf16.mxu1 %v14936_v54  ;;  %6035 = vmatprep.subr.bf16.mxu0 %v14937_v34 }
 0xb14   : > { %5906 = vmatmul.mubr.bf16.gmra.mxu1 %v9267_v52 }
 0xb15   : > { %6036 = vmatpush2.bf16.msra.mxu0 %v14938_v29  ;;  %6071 = vmatpush1.bf16.msra.mxu1 %v14939_v39  ;;  %v6129_v39 = vpop.permute.xlu1 %6128 }
 0xb16   : > { %6072 = vmatprep.subr.bf16.mxu1 %v14940_v50  ;;  %6037 = vmatprep.subr.bf16.mxu0 %v14941_v56 }
 0xb17   : > { %6096 = vmatprep.mubr.bf16.mxu1 %v14749_v42 }
 0xb19   : > { %6038 = vmatpush2.bf16.msra.mxu0 %v14942_v36  ;;  %6073 = vmatpush1.bf16.msra.mxu1 %v14943_v59  ;;  %v9505_v59 = vmov 6  }
 0xb1a   : > { %6039 = vmatprep.subr.bf16.mxu0 %v14944_v23  ;;  %6074 = vmatprep.subr.bf16.mxu1 %v14945_v31 }
 0xb1b   : > { %9199 = vset.pattern.permute.xlu1 %v9505_v59  ;;  %9198 = vset.pattern.permute.xlu0 %v9505_v59 }
 0xb1d   : > { %6040 = vmatpush2.bf16.msra.mxu0 %v14946_v44  ;;  %6075 = vmatpush1.bf16.msra.mxu1 %v14947_v43 }
 0xb1e   : > { %6041 = vmatprep.subr.bf16.mxu0 %v14948_v9  ;;  %6076 = vmatprep.subr.bf16.mxu1 %v14949_v2 }
 0xb21   : > { %6042 = vmatpush2.bf16.msra.mxu0 %v14950_v21  ;;  %6077 = vmatpush1.bf16.msra.mxu1 %v14951_v5 }
 0xb22   : > { %6078 = vmatprep.subr.bf16.mxu1 %v14952_v19 }
 0xb24   : > { %6044 = vmatmul.mubr.bf16.vlgmr.msra.gmra.mxu0 %v9269_v51 }
 0xb25   : > { %6079 = vmatpush1.bf16.msra.mxu1 %v14953_v17  ;;  %6053 = vmatprep.mubr.bf16.mxu0 %v9273_v55 }
 0xb28   : > { %9045 = vmatmul.mubr.msk.bf16.vlgmr.msra.gmra.mxu1 %vm2494_vm11, %v9272_v38 }
 0xb29   : > { %6106 = vmatprep.mubr.bf16.mxu1 %v14749_v42 }
 0xb2c   : > { %6054 = vmatmul.mubr.bf16.gmra.mxu0 %v9275_v11 }
 0xb2d   : > { %6864 = vmatprep.mubr.bf16.mxu0 %v14749_v42 }
 0xb30   : > { %9046 = vmatmul.mubr.msk.bf16.gmra.mxu1 %vm2494_vm11, %v9276_v40  ;;  %vm6344_vm11 = vcmp.lt.s32.totalorder %v9754_v10, 5 }
 0xba4   : > { %v5950_v4 = vpop.f32.mrf.mxu0 }
 0xba6   : > { %v5952_v15 = vpop.f32.mrf.mxu0 }
 0xba8   : > { %v5954_v25 = vpop.f32.mrf.mxu0 }
 0xbaa   : > { %v5956_v27 = vpop.f32.mrf.mxu0 }
 0xbac   : > { %v13170_v8 = vpop.f32.mrf.mxu0 }
 0xbae   : > { %v13172_v28 = vpop.f32.mrf.mxu0 }
 0xbb0   : > { %v13176_v63 = vpop.f32.mrf.mxu0 }
 0xbb2   : > { %v13182_v46 = vpop.f32.mrf.mxu0 }
 0xbcc   : > { %v5897_v24 = vpop.f32.mrf.mxu1 }
 0xbcd   : > { %v5951_v32 = vadd.f32 %v5950_v4, %v5897_v24 }
 0xbce   : > { %v5899_v7 = vpop.f32.mrf.mxu1 }
 0xbcf   : > { %v5953_v23 = vadd.f32 %v5952_v15, %v5899_v7 }
 0xbd0   : > { %v5901_v12 = vpop.f32.mrf.mxu1 }
 0xbd1   : > { %v5955_v37 = vadd.f32 %v5954_v25, %v5901_v12 }
 0xbd2   : > { %v5903_v26 = vpop.f32.mrf.mxu1 }
 0xbd3   : > { %v5957_v9 = vadd.f32 %v5956_v27, %v5903_v26 }
 0xbd4   : > { %v5907_v18 = vpop.f32.mrf.mxu1 }
 0xbd5   : > { %v5961_v24 = vadd.f32 %v13170_v8, %v5907_v18 }
 0xbd6   : > { %v13174_v60 = vpop.f32.mrf.mxu1 }
 0xbd8   : > { %v13180_v0 = vpop.f32.mrf.mxu1 }
 0xbd9   : > { %v5965_v26 = vadd.f32 %v13176_v63, %v13180_v0 }
 0xbda   : > { %v13184_v62 = vpop.f32.mrf.mxu1 }
 0xbe4   : > { %v6045_v49 = vpop.f32.mrf.mxu0 }
 0xbe5   : > { %v6046_v61 = vadd.f32 %v6045_v49, %v5951_v32 }
 0xbe6   : > { %v6047_v48 = vpop.f32.mrf.mxu0 }
 0xbe7   : > { %v6048_v44 = vadd.f32 %v6047_v48, %v5953_v23  ;;  %v9279_v23 = vld [vmem:[%s14741_s7 + $0xf4] ss:$12 sps:$4 sm:$0xff]  }
 0xbe8   : > { %v6049_v47 = vpop.f32.mrf.mxu0  ;;  %v6098_v1 = vpop.f32.mrf.mxu1  ;;  %6811 = vmatprep.mubr.bf16.mxu1 %v9279_v23  ;;  %v14968_v23 = vld [vmem:[#allocation64_spill] sm:$0xff] }
 0xbe9   : > { %v6099_v41 = vadd.f32 %v6098_v1, %v6046_v61  ;;  %v6050_v16 = vadd.f32 %v6049_v47, %v5955_v37  ;;  %v5963_v1 = vadd.f32 %v13172_v28, %v13174_v60 }
 0xbea   : > { %v6100_v52 = vpop.f32.mrf.mxu1  ;;  %v6051_v43 = vpop.f32.mrf.mxu0 }
 0xbeb   : > { %v6141_v30 = vadd.f32 %v6124_v35, %v6099_v41  ;;  %v6101_v2 = vadd.f32 %v6100_v52, %v6048_v44  ;;  %v6052_v21 = vadd.f32 %v6051_v43, %v5957_v9 }
 0xbec   : > { %v6102_v54 = vpop.f32.mrf.mxu1  ;;  %v6055_v17 = vpop.f32.mrf.mxu0 }
 0xbed   : > { %v6149_v34 = vmul.f32 0.2, %v6141_v30  ;;  %v6103_v29 = vadd.f32 %v6102_v54, %v6050_v16  ;;  %v6142_v5 = vadd.f32 %v6124_v35, %v6101_v2  ;;  %v6056_v27 = vadd.f32 %v6055_v17, %v5961_v24  ;;  %v6139_v35 = vpop.permute.xlu0 %6138 }
 0xbee   : > { %v6104_v51 = vpop.f32.mrf.mxu1  ;;  %v6057_v15 = vpop.f32.mrf.mxu0  ;;  %v5967_v16 = vadd.f32 %v13182_v46, %v13184_v62 }
 0xbef   : > { %v13186_v50 = vmax.f32 %v6141_v30, %v6149_v34  ;;  %v6143_v56 = vadd.f32 %v6129_v39, %v6103_v29  ;;  %v6105_v55 = vadd.f32 %v6104_v51, %v6052_v21  ;;  %v6150_v19 = vmul.f32 0.2, %v6142_v5  ;;  %v14958_v51 = vld [vmem:[#allocation32_spill] sm:$0xff] }
 0xbf0   : > { %v6108_v4 = vpop.f32.mrf.mxu1  ;;  %v6059_v12 = vpop.f32.mrf.mxu0  ;;  %v6058_v41 = vadd.f32 %v6057_v15, %v5963_v1 }
 0xbf1   : > { %14954 = vst [vmem:[#allocation13_spill] sm:$0xff] %v13186_v50  ;;  %v6151_v36 = vmul.f32 0.2, %v6143_v56  ;;  %6328 = vrot.lane.b32.xlu0 %v13186_v50, %s9504_s18  ;;  %v6144_v38 = vadd.f32 %v6129_v39, %v6105_v55  ;;  %v13208_v11 = vmax.f32 %v6142_v5, %v6150_v19  ;;  %v6109_v49 = vadd.f32 %v6108_v4, %v6056_v27  ;;  %v14959_v55 = vld [vmem:[#allocation36_spill] sm:$0xff] }
 0xbf2   : > { %v6110_v7 = vpop.f32.mrf.mxu1  ;;  %v6060_v48 = vadd.f32 %v6059_v12, %v5965_v26  ;;  %v6061_v52 = vpop.f32.mrf.mxu0  ;;  %v14960_v19 = vld [vmem:[#allocation28_spill] sm:$0xff] }
 0xbf3   : > { %v13190_v31 = vmax.f32 %v6143_v56, %v6151_v36  ;;  %v6152_v40 = vmul.f32 0.2, %v6144_v38  ;;  %v6145_v8 = vadd.f32 %v13178_v53, %v6109_v49  ;;  %v6111_v30 = vadd.f32 %v6110_v7, %v6058_v41  ;;  %v14963_v41 = vld [vmem:[#allocation42_spill] sm:$0xff] }
 0xbf4   : > { %v6112_v32 = vpop.f32.mrf.mxu1  ;;  %v6062_v34 = vadd.f32 %v6061_v52, %v5967_v16  ;;  %v14964_v52 = vld [vmem:[#allocation61_spill] sm:$0xff] }
 0xbf5   : > { %14955 = vst [vmem:[#allocation12_spill] sm:$0xff] %v13190_v31  ;;  %6330 = vrot.lane.b32.xlu1 %v13190_v31, %s9504_s18  ;;  %6274 = vrot.lane.b32.xlu0 %v13186_v50, %s9506_s29  ;;  %v13215_v25 = vmax.f32 %v6144_v38, %v6152_v40  ;;  %v6113_v18 = vadd.f32 %v6112_v32, %v6060_v48  ;;  %v6153_v63 = vmul.f32 0.2, %v6145_v8  ;;  %v9460_v40 = vld [vmem:[%s14463_s5 + $0x10] sm:$0xff] }
 0xbf6   : > { %v6114_v54 = vpop.f32.mrf.mxu1  ;;  %v6146_v28 = vadd.f32 %v13178_v53, %v6111_v30  ;;  %v6974_v16 = vadd.f32 %v14964_v52, %v14963_v41  ;;  %v14972_v52 = vld [vmem:[#allocation69_spill] sm:$0xff] }
 0xbf7   : > { %v6147_v0 = vadd.f32 %v6139_v35, %v6113_v18  ;;  %v13236_v61 = vmax.f32 %v6145_v8, %v6153_v63  ;;  %v6115_v60 = vadd.f32 %v6114_v54, %v6062_v34  ;;  %v14962_v63 = vld [vmem:[#allocation65_spill] sm:$0xff]  ;;  %v14965_v34 = vld [vmem:[#allocation66_spill] sm:$0xff] }
 0xbf8   : > { %v6154_v29 = vmul.f32 0.2, %v6146_v28 }
 0xbf9   : > { %6276 = vrot.lane.b32.xlu1 %v13190_v31, %s9506_s29  ;;  %6221 = vrot.lane.b32.xlu0 %v13186_v50, %s14956_s9  ;;  %v6155_v47 = vmul.f32 0.2, %v6147_v0  ;;  %v6148_v46 = vadd.f32 %v6139_v35, %v6115_v60  ;;  %v14961_v35 = vld [vmem:[#allocation63_spill] sm:$0xff] }
 0xbfa   : > { %v13265_v62 = vmax.f32 %v6146_v28, %v6154_v29  ;;  %v14966_v28 = vld [vmem:[#allocation68_spill] sm:$0xff] }
 0xbfb   : > { %v13244_v37 = vmax.f32 %v6147_v0, %v6155_v47  ;;  %v6156_v39 = vmul.f32 0.2, %v6148_v46  ;;  %v6904_v0 = vadd.f32 %v14962_v63, %v14961_v35  ;;  %v6907_v60 = vadd.f32 %v14966_v28, %v14965_v34  ;;  %v14970_v28 = vld [vmem:[#allocation46_spill] sm:$0xff]  ;;  %v14973_v63 = vld [vmem:[#allocation60_spill] sm:$0xff]  ;;  %v14974_v35 = vld [vmem:[#allocation29_spill] sm:$0xff] }
 0xbfd   : > { %6223 = vrot.lane.b32.xlu1 %v13190_v31, %s14956_s9  ;;  %6167 = vrot.lane.b32.xlu0 %v13186_v50, %s9507_s19  ;;  %v13271_v53 = vmax.f32 %v6148_v46, %v6156_v39  ;;  %v14967_v39 = vld [vmem:[#allocation62_spill] sm:$0xff] }
 0xc01   : > { %6169 = vrot.lane.b32.xlu1 %v13190_v31, %s9507_s19  ;;  %6498 = vrot.lane.b32.xlu0 %v13186_v50, %s14957_s28 }
 0xc05   : > { %6500 = vrot.lane.b32.xlu1 %v13190_v31, %s14957_s28  ;;  %6336 = vrot.lane.b32.xlu0 %v13208_v11, %s9504_s18 }
 0xc09   : > { %6338 = vrot.lane.b32.xlu1 %v13215_v25, %s9504_s18  ;;  %6282 = vrot.lane.b32.xlu0 %v13208_v11, %s9506_s29 }
 0xc0d   : > { %6284 = vrot.lane.b32.xlu1 %v13215_v25, %s9506_s29  ;;  %6229 = vrot.lane.b32.xlu0 %v13208_v11, %s14956_s9 }
 0xc11   : > { %6231 = vrot.lane.b32.xlu1 %v13215_v25, %s14956_s9  ;;  %6175 = vrot.lane.b32.xlu0 %v13208_v11, %s9507_s19 }
 0xc15   : > { %6177 = vrot.lane.b32.xlu1 %v13215_v25, %s9507_s19  ;;  %6506 = vrot.lane.b32.xlu0 %v13208_v11, %s14957_s28 }
 0xc19   : > { %6508 = vrot.lane.b32.xlu1 %v13215_v25, %s14957_s28  ;;  %6332 = vrot.lane.b32.xlu0 %v13236_v61, %s9504_s18 }
 0xc1d   : > { %6334 = vrot.lane.b32.xlu1 %v13244_v37, %s9504_s18  ;;  %6278 = vrot.lane.b32.xlu0 %v13236_v61, %s9506_s29 }
 0xc21   : > { %6280 = vrot.lane.b32.xlu1 %v13244_v37, %s9506_s29  ;;  %6225 = vrot.lane.b32.xlu0 %v13236_v61, %s14956_s9 }
 0xc25   : > { %6227 = vrot.lane.b32.xlu1 %v13244_v37, %s14956_s9  ;;  %6171 = vrot.lane.b32.xlu0 %v13236_v61, %s9507_s19 }
 0xc29   : > { %6173 = vrot.lane.b32.xlu1 %v13244_v37, %s9507_s19  ;;  %6502 = vrot.lane.b32.xlu0 %v13236_v61, %s14957_s28 }
 0xc2d   : > { %6504 = vrot.lane.b32.xlu1 %v13244_v37, %s14957_s28  ;;  %6340 = vrot.lane.b32.xlu0 %v13265_v62, %s9504_s18 }
 0xc31   : > { %6448 = vrot.lane.b32.xlu0 %v13236_v61, %s9508_s8  ;;  %6342 = vrot.lane.b32.xlu1 %v13271_v53, %s9504_s18  ;;  %s9509_s18 = smov 123  }
 0xc35   : > { %6286 = vrot.lane.b32.xlu0 %v13265_v62, %s9506_s29  ;;  %6450 = vrot.lane.b32.xlu1 %v13244_v37, %s9508_s8 }
 0xc39   : > { %6233 = vrot.lane.b32.xlu0 %v13265_v62, %s14956_s9  ;;  %6288 = vrot.lane.b32.xlu1 %v13271_v53, %s9506_s29  ;;  %s9510_s29 = smov 43  }
 0xc3d   : > { %6179 = vrot.lane.b32.xlu0 %v13265_v62, %s9507_s19  ;;  %6446 = vrot.lane.b32.xlu1 %v13190_v31, %s9508_s8 }
 0xc41   : > { %6510 = vrot.lane.b32.xlu0 %v13265_v62, %s14957_s28  ;;  %6235 = vrot.lane.b32.xlu1 %v13271_v53, %s14956_s9 }
 0xc45   : > { %6456 = vrot.lane.b32.xlu0 %v13265_v62, %s9508_s8  ;;  %6454 = vrot.lane.b32.xlu1 %v13215_v25, %s9508_s8 }
 0xc49   : > { %6444 = vrot.lane.b32.xlu0 %v13186_v50, %s9508_s8  ;;  %6181 = vrot.lane.b32.xlu1 %v13271_v53, %s9507_s19 }
 0xc4d   : > { %6452 = vrot.lane.b32.xlu0 %v13208_v11, %s9508_s8  ;;  %6396 = vrot.lane.b32.xlu1 %v13244_v37, %s9509_s18 }
 0xc51   : > { %6394 = vrot.lane.b32.xlu0 %v13236_v61, %s9509_s18  ;;  %6512 = vrot.lane.b32.xlu1 %v13271_v53, %s14957_s28 }
 0xc55   : > { %6402 = vrot.lane.b32.xlu0 %v13265_v62, %s9509_s18  ;;  %6392 = vrot.lane.b32.xlu1 %v13190_v31, %s9509_s18 }
 0xc59   : > { %6390 = vrot.lane.b32.xlu0 %v13186_v50, %s9509_s18  ;;  %6458 = vrot.lane.b32.xlu1 %v13271_v53, %s9508_s8 }
 0xc5d   : > { %6398 = vrot.lane.b32.xlu0 %v13208_v11, %s9509_s18  ;;  %6400 = vrot.lane.b32.xlu1 %v13215_v25, %s9509_s18 }
 0xc61   : > { %6555 = vrot.lane.b32.xlu0 %v13236_v61, %s9510_s29  ;;  %6404 = vrot.lane.b32.xlu1 %v13271_v53, %s9509_s18 }
 0xc63   : > { %v13308_v56 = vpop.permute.xlu0 %6328 }
 0xc65   : > { %6563 = vrot.lane.b32.xlu0 %v13265_v62, %s9510_s29  ;;  %6557 = vrot.lane.b32.xlu1 %v13244_v37, %s9510_s29 }
 0xc67   : > { %v13312_v36 = vpop.permute.xlu1 %6330  ;;  %v13314_v59 = vpop.permute.xlu0 %6274 }
 0xc69   : > { %6551 = vrot.lane.b32.xlu0 %v13186_v50, %s9510_s29  ;;  %6553 = vrot.lane.b32.xlu1 %v13190_v31, %s9510_s29 }
 0xc6b   : > { %v13321_v44 = vpop.permute.xlu1 %6276  ;;  %v13323_v43 = vpop.permute.xlu0 %6221 }
 0xc6d   : > { %6559 = vrot.lane.b32.xlu0 %v13208_v11, %s9510_s29  ;;  %6565 = vrot.lane.b32.xlu1 %v13271_v53, %s9510_s29 }
 0xc6f   : > { %v13327_v9 = vpop.permute.xlu1 %6223  ;;  %v13329_v2 = vpop.permute.xlu0 %6167 }
 0xc71   : > { %6725 = vperm.xlu0 %9198, %v14958_v51   ;;  %6561 = vrot.lane.b32.xlu1 %v13215_v25, %s9510_s29  ;;  %v6901_v51 = vadd.f32 %v14968_v23, %v14967_v39  ;;  %v14971_v23 = vld [vmem:[#allocation67_spill] sm:$0xff]  ;;  %v6980_v39 = vadd.f32 %v14974_v35, %v14973_v63 }
 0xc72   : > { %v6910_v41 = vadd.f32 %v14972_v52, %v14971_v23 }
 0xc73   : > { %v13333_v21 = vpop.permute.xlu1 %6169  ;;  %v13335_v5 = vpop.permute.xlu0 %6498 }
 0xc75   : > { %6740 = vperm.xlu0 %9198, %v14959_v55   ;;  %6730 = vperm.xlu1 %9199, %v14960_v19   ;;  %v7046_v55 = vadd.f32 %v14921_v58, %v14925_v20  ;;  %v9050_v19 = vld [vmem:[%s14459_s1 + $0x25] ss:$8 sm:$0x3] }
 0xc77   : > { %v13339_v38 = vpop.permute.xlu1 %6500  ;;  %v6337_v17 = vpop.permute.xlu0 %6336 }
 0xc78   : > { %v6349_v35 = vsel %vm6344_vm11, %v6337_v17, %v13308_v56 }
 0xc79   : > { %6735 = vperm.xlu1 %9199, %v9460_v40  }
 0xc7b   : > { %v6339_v4 = vpop.permute.xlu1 %6338  ;;  %v13344_v15 = vpop.permute.xlu0 %6282 }
 0xc7c   : > { %v6350_v42 = vsel %vm6344_vm11, %v6339_v4, %v13312_v36 }
 0xc7f   : > { %v13346_v24 = vpop.permute.xlu1 %6284  ;;  %v13348_v7 = vpop.permute.xlu0 %6229 }
 0xc83   : > { %v13350_v27 = vpop.permute.xlu1 %6231  ;;  %v13352_v12 = vpop.permute.xlu0 %6175 }
 0xc87   : > { %v13354_v26 = vpop.permute.xlu1 %6177  ;;  %v13356_v49 = vpop.permute.xlu0 %6506 }
 0xc8b   : > { %v13358_v32 = vpop.permute.xlu1 %6508  ;;  %v6333_v48 = vpop.permute.xlu0 %6332 }
 0xc8f   : > { %v6335_v8 = vpop.permute.xlu1 %6334  ;;  %v13360_v18 = vpop.permute.xlu0 %6278 }
 0xc93   : > { %v13364_v47 = vpop.permute.xlu1 %6280  ;;  %v13366_v1 = vpop.permute.xlu0 %6225 }
 0xc94   : > { %6905 = vadd.xlane.f32.xlu0 %v6904_v0 }
 0xc97   : > { %v13370_v30 = vpop.permute.xlu1 %6227  ;;  %v13372_v54 = vpop.permute.xlu0 %6171 }
 0xc98   : > { %6975 = vadd.xlane.f32.xlu0 %v6974_v16  ;;  %v14969_v16 = vld [vmem:[#allocation47_spill] sm:$0xff] }
 0xc99   : > { %v6977_v34 = vadd.f32 %v14970_v28, %v14969_v16  ;;  %v6357_v28 = vrot.slane %v9050_v19, %v9769_v14 }
 0xc9b   : > { %v13376_v29 = vpop.permute.xlu1 %6173  ;;  %v13378_v46 = vpop.permute.xlu0 %6502  ;;  %v6366_v63 = vmul.f32 %v6357_v28, %v6350_v42 }
 0xc9c   : > { %6908 = vadd.xlane.f32.xlu0 %v6907_v60  ;;  %v6346_v60 = vsel %vm6344_vm11, %v13312_v36, %v6339_v4  ;;  %v7052_v36 = vadd.f32 %v12660_v33, %v12630_v6  ;;  %v7049_v4 = vadd.f32 %v14922_v45, %v14926_v57 }
 0xc9d   : > { %6902 = vadd.xlane.f32.xlu1 %v6901_v51  ;;  %v6361_v51 = vrot.slane %v9050_v19, %v9767_v13 }
 0xc9f   : > { %v13387_v40 = vpop.permute.xlu1 %6504  ;;  %v6341_v0 = vpop.permute.xlu0 %6340 }
 0xca0   : > { %7047 = vadd.xlane.f32.xlu0 %v7046_v55  ;;  %v6347_v58 = vsel %vm6344_vm11, %v6333_v48, %v6341_v0  ;;  %v6351_v20 = vsel %vm6344_vm11, %v6341_v0, %v6333_v48  ;;  %v6345_v55 = vsel %vm6344_vm11, %v13308_v56, %v6337_v17  ;;  %v6367_v48 = vmul.f32 %v6361_v51, %v6346_v60 }
 0xca1   : > { %6978 = vadd.xlane.f32.xlu1 %v6977_v34  ;;  %v6368_v52 = vmul.f32 %v6357_v28, %v6351_v20  ;;  %v6369_v23 = vmul.f32 %v6361_v51, %v6347_v58  ;;  %v6365_v60 = vmul.f32 %v6361_v51, %v6345_v55  ;;  %v9049_v20 = vld [vmem:[%s14459_s1 + $0x24] ss:$8 sm:$0x3]  ;;  %v6364_v56 = vmul.f32 %v6357_v28, %v6349_v35 }
 0xca2   : > { %v6292_v17 = vsel %vm6290_vm12, %v13321_v44, %v13346_v24 }
 0xca3   : > { %v13406_v16 = vpop.permute.xlu0 %6448  ;;  %v6343_v34 = vpop.permute.xlu1 %6342  ;;  %v6696_v42 = vpack.c.bf16 %v6367_v48, %v6365_v60  ;;  %v6695_v35 = vpack.c.bf16 %v6366_v63, %v6364_v56  ;;  %v14976_v48 = vld [vmem:[#allocation30_spill] sm:$0xff] }
 0xca4   : > { %v6348_v0 = vsel %vm6344_vm11, %v6335_v8, %v6343_v34  ;;  %v6352_v19 = vsel %vm6344_vm11, %v6343_v34, %v6335_v8  ;;  %6911 = vadd.xlane.f32.xlu0 %v6910_v41  ;;  %v14975_v34 = vld [vmem:[#allocation31_spill] sm:$0xff]  ;;  %vm14662_vm11 = vcmask 7168  }
 0xca5   : > { %v6370_v31 = vmul.f32 %v6357_v28, %v6352_v19  ;;  %v6371_v50 = vmul.f32 %v6361_v51, %v6348_v0  ;;  %6981 = vadd.xlane.f32.xlu1 %v6980_v39  ;;  %v6307_v51 = vrot.slane %v9049_v20, %v9767_v13  ;;  %v6291_v28 = vsel %vm6290_vm12, %v13314_v59, %v13344_v15 }
 0xca6   : > { %v6983_v0 = vadd.f32 %v14976_v48, %v14975_v34 }
 0xca7   : > { %v6697_v58 = vpack.c.bf16 %v6370_v31, %v6368_v52  ;;  %v6287_v8 = vpop.permute.xlu0 %6286  ;;  %v13427_v41 = vpop.permute.xlu1 %6450  ;;  %v6698_v39 = vpack.c.bf16 %v6371_v50, %v6369_v23  ;;  %v6303_v52 = vrot.slane %v9049_v20, %v9769_v14  ;;  %v6313_v19 = vmul.f32 %v6307_v51, %v6292_v17 }
 0xca8   : > { %7053 = vadd.xlane.f32.xlu0 %v7052_v36  ;;  %v6293_v31 = vsel %vm6290_vm12, %v13360_v18, %v6287_v8  ;;  %v6297_v50 = vsel %vm6290_vm12, %v6287_v8, %v13360_v18  ;;  %v6296_v18 = vsel %vm6290_vm12, %v13346_v24, %v13321_v44  ;;  %v6295_v8 = vsel %vm6290_vm12, %v13344_v15, %v13314_v59 }
 0xca9   : > { %7050 = vadd.xlane.f32.xlu1 %v7049_v4  ;;  %6779 = vmatprep.subr.bf16.mxu1 %v6698_v39  ;;  %v6314_v4 = vmul.f32 %v6303_v52, %v6297_v50  ;;  %v6315_v60 = vmul.f32 %v6307_v51, %v6293_v31  ;;  %v7055_v44 = vadd.f32 %v12666_v3, %v14920_v22 }
 0xcaa   : > { %6780 = vmatpush1.bf16.msra.mxu1 %v6697_v58  ;;  %v6311_v24 = vmul.f32 %v6307_v51, %v6291_v28  ;;  %v6312_v39 = vmul.f32 %v6303_v52, %v6296_v18  ;;  %v6310_v50 = vmul.f32 %v6303_v52, %v6295_v8  ;;  %v6238_v59 = vsel %vm4755_vm10, %v13327_v9, %v13350_v27 }
 0xcab   : > { %v6234_v23 = vpop.permute.xlu0 %6233  ;;  %6781 = vmatprep.subr.bf16.mxu1 %v6696_v42  ;;  %v6289_v55 = vpop.permute.xlu1 %6288  ;;  %v6241_v8 = vsel %vm4755_vm10, %v13348_v7, %v13323_v43 }
 0xcac   : > { %v6294_v63 = vsel %vm6290_vm12, %v13364_v47, %v6289_v55  ;;  %v6298_v36 = vsel %vm6290_vm12, %v6289_v55, %v13364_v47  ;;  %v9048_v47 = vld [vmem:[%s14459_s1 + $0x23] ss:$8 sm:$0x3]  ;;  %v6692_v15 = vpack.c.bf16 %v6313_v19, %v6311_v24  ;;  %v6243_v28 = vsel %vm4755_vm10, %v6234_v23, %v13366_v1 }
 0xcad   : > { %v6316_v20 = vmul.f32 %v6303_v52, %v6298_v36  ;;  %v6317_v58 = vmul.f32 %v6307_v51, %v6294_v63  ;;  %6984 = vadd.xlane.f32.xlu1 %v6983_v0  ;;  %v6253_v51 = vrot.slane %v9048_v47, %v9767_v13  ;;  %v6691_v52 = vpack.c.bf16 %v6312_v39, %v6310_v50 }
 0xcae   : > { %6782 = vmatpush1.bf16.msra.mxu1 %v6695_v35  ;;  %v6239_v35 = vsel %vm4755_vm10, %v13366_v1, %v6234_v23  ;;  %v6249_v55 = vrot.slane %v9048_v47, %v9769_v14  ;;  %v6237_v0 = vsel %vm4755_vm10, %v13323_v43, %v13348_v7  ;;  %v6242_v63 = vsel %vm4755_vm10, %v13350_v27, %v13327_v9 }
 0xcaf   : > { %v6693_v56 = vpack.c.bf16 %v6316_v20, %v6314_v4  ;;  %v6180_v17 = vpop.permute.xlu0 %6179  ;;  %v13467_v42 = vpop.permute.xlu1 %6446  ;;  %v6694_v31 = vpack.c.bf16 %v6317_v58, %v6315_v60  ;;  %v6259_v36 = vmul.f32 %v6253_v51, %v6238_v59  ;;  %v6261_v60 = vmul.f32 %v6253_v51, %v6239_v35 }
 0xcb0   : > { %v6260_v4 = vmul.f32 %v6249_v55, %v6243_v28  ;;  %v6257_v9 = vmul.f32 %v6253_v51, %v6237_v0  ;;  %v6258_v27 = vmul.f32 %v6249_v55, %v6242_v63  ;;  %v6185_v43 = vsel %vm6183_vm13, %v13333_v21, %v13354_v26 }
 0xcb1   : > { %7056 = vadd.xlane.f32.xlu1 %v7055_v44  ;;  %6783 = vmatprep.subr.bf16.mxu1 %v6694_v31  ;;  %v9047_v44 = vld [vmem:[%s14459_s1 + $0x22] ss:$8 sm:$0x3]  ;;  %v6186_v50 = vsel %vm6183_vm13, %v13372_v54, %v6180_v17  ;;  %v6190_v59 = vsel %vm6183_vm13, %v6180_v17, %v13372_v54  ;;  %v6184_v35 = vsel %vm6183_vm13, %v13329_v2, %v13352_v12 }
 0xcb2   : > { %6784 = vmatpush1.bf16.msra.mxu1 %v6693_v56  ;;  %v6256_v56 = vmul.f32 %v6249_v55, %v6241_v8  ;;  %v6688_v7 = vpack.c.bf16 %v6259_v36, %v6257_v9  ;;  %v6200_v31 = vrot.slane %v9047_v44, %v9767_v13  ;;  %v6519_v9 = vsel %vm4477_vm14, %v13358_v32, %v13339_v38 }
 0xcb3   : > { %v6511_v18 = vpop.permute.xlu0 %6510  ;;  %6785 = vmatprep.subr.bf16.mxu1 %v6692_v15  ;;  %v6236_v19 = vpop.permute.xlu1 %6235 }
 0xcb4   : > { %v6240_v1 = vsel %vm4755_vm10, %v13370_v30, %v6236_v19  ;;  %v6244_v23 = vsel %vm4755_vm10, %v6236_v19, %v13370_v30  ;;  %v6687_v15 = vpack.c.bf16 %v6258_v27, %v6256_v56  ;;  %v6206_v0 = vmul.f32 %v6200_v31, %v6185_v43 }
 0xcb5   : > { %v6262_v20 = vmul.f32 %v6249_v55, %v6244_v23  ;;  %v6263_v58 = vmul.f32 %v6253_v51, %v6240_v1  ;;  %v6196_v51 = vrot.slane %v9047_v44, %v9769_v14  ;;  %v6189_v55 = vsel %vm6183_vm13, %v13354_v26, %v13333_v21 }
 0xcb6   : > { %6786 = vmatpush1.bf16.msra.mxu1 %v6691_v52  ;;  %v6208_v63 = vmul.f32 %v6200_v31, %v6186_v50  ;;  %v6188_v23 = vsel %vm6183_vm13, %v13352_v12, %v13329_v2  ;;  %v6204_v21 = vmul.f32 %v6200_v31, %v6184_v35  ;;  %v6516_v27 = vsel %vm4477_vm14, %v13378_v46, %v6511_v18 }
 0xcb7   : > { %v6689_v24 = vpack.c.bf16 %v6262_v20, %v6260_v4  ;;  %v13502_v39 = vpop.permute.xlu0 %6456  ;;  %v13504_v30 = vpop.permute.xlu1 %6454  ;;  %v6690_v47 = vpack.c.bf16 %v6263_v58, %v6261_v60  ;;  %v6207_v19 = vmul.f32 %v6196_v51, %v6190_v59  ;;  %v6205_v26 = vmul.f32 %v6196_v51, %v6189_v55  ;;  %v9053_v4 = vld [vmem:[%s14459_s1 + $0x31] ss:$8 sm:$0x3] }
 0xcb8   : > { %v6203_v8 = vmul.f32 %v6196_v51, %v6188_v23  ;;  %v6684_v2 = vpack.c.bf16 %v6206_v0, %v6204_v21  ;;  %v6530_v12 = vrot.slane %v9053_v4, %v9767_v13  ;;  %v6520_v44 = vsel %vm4477_vm14, %v6511_v18, %v13378_v46 }
 0xcb9   : > { %6787 = vmatprep.subr.bf16.mxu1 %v6690_v47  ;;  %v6526_v47 = vrot.slane %v9053_v4, %v9769_v14  ;;  %v6518_v56 = vsel %vm4477_vm14, %v13356_v49, %v13335_v5  ;;  %vm6460_vm10 = vcmp.lt.s32.totalorder %v9754_v10, 53  ;;  %v9051_v4 = vld [vmem:[%s14459_s1 + $0x27] ss:$8 sm:$0x3] }
 0xcba   : > { %6788 = vmatpush1.bf16.msra.mxu1 %v6689_v24  ;;  %v6683_v24 = vpack.c.bf16 %v6205_v26, %v6203_v8  ;;  %v6536_v50 = vmul.f32 %v6530_v12, %v6519_v9  ;;  %v6466_v26 = vsel %vm6460_vm10, %v13504_v30, %v13467_v42 }
 0xcbb   : > { %v13523_v28 = vpop.permute.xlu0 %6444  ;;  %6789 = vmatprep.subr.bf16.mxu1 %v6688_v7  ;;  %v6182_v52 = vpop.permute.xlu1 %6181  ;;  %v6537_v59 = vmul.f32 %v6526_v47, %v6516_v27 }
 0xcbc   : > { %v6187_v54 = vsel %vm6183_vm13, %v13376_v29, %v6182_v52  ;;  %v6191_v17 = vsel %vm6183_vm13, %v6182_v52, %v13376_v29 }
 0xcbd   : > { %v6209_v36 = vmul.f32 %v6196_v51, %v6191_v17  ;;  %v6210_v1 = vmul.f32 %v6200_v31, %v6187_v54  ;;  %v6515_v31 = vsel %vm4477_vm14, %v13339_v38, %v13358_v32  ;;  %v9052_v51 = vld [vmem:[%s14459_s1 + $0x30] ss:$8 sm:$0x3]  ;;  %v6514_v38 = vsel %vm4477_vm14, %v13335_v5, %v13356_v49 }
 0xcbe   : > { %6790 = vmatpush1.bf16.msra.mxu1 %v6687_v15  ;;  %v6538_v15 = vmul.f32 %v6530_v12, %v6520_v44  ;;  %v6534_v32 = vmul.f32 %v6530_v12, %v6518_v56  ;;  %v6535_v55 = vmul.f32 %v6526_v47, %v6515_v31  ;;  %v6467_v49 = vsel %vm6460_vm10, %v13502_v39, %v13406_v16 }
 0xcbf   : > { %v6685_v60 = vpack.c.bf16 %v6209_v36, %v6207_v19  ;;  %v6453_v20 = vpop.permute.xlu0 %6452  ;;  %v13542_v58 = vpop.permute.xlu1 %6396  ;;  %v6686_v29 = vpack.c.bf16 %v6210_v1, %v6208_v63  ;;  %v6473_v19 = vrot.slane %v9052_v51, %v9769_v14  ;;  %v6533_v63 = vmul.f32 %v6526_v47, %v6514_v38 }
 0xcc0   : > { %v6477_v36 = vrot.slane %v9052_v51, %v9767_v13  ;;  %v6463_v1 = vsel %vm6460_vm10, %v13406_v16, %v13502_v39  ;;  %v6712_v5 = vpack.c.bf16 %v6536_v50, %v6534_v32  ;;  %v6465_v23 = vsel %vm6460_vm10, %v6453_v20, %v13523_v28 }
 0xcc1   : > { %6791 = vmatprep.subr.bf16.mxu1 %v6686_v29  ;;  %v6711_v21 = vpack.c.bf16 %v6535_v55, %v6533_v63  ;;  %v6484_v39 = vmul.f32 %v6473_v19, %v6463_v1  ;;  %v6461_v29 = vsel %vm6460_vm10, %v13523_v28, %v6453_v20  ;;  %v6423_v28 = vrot.slane %v9051_v4, %v9767_v13 }
 0xcc2   : > { %6792 = vmatpush1.bf16.msra.mxu1 %v6685_v60  ;;  %v6483_v20 = vmul.f32 %v6477_v36, %v6466_v26  ;;  %v6480_v56 = vmul.f32 %v6473_v19, %v6461_v29 }
 0xcc3   : > { %v6395_v43 = vpop.permute.xlu0 %6394  ;;  %6793 = vmatprep.subr.bf16.mxu1 %v6684_v2  ;;  %v6513_v7 = vpop.permute.xlu1 %6512  ;;  %v6485_v2 = vmul.f32 %v6477_v36, %v6467_v49 }
 0xcc4   : > { %v6517_v46 = vsel %vm4477_vm14, %v13387_v40, %v6513_v7  ;;  %v6521_v18 = vsel %vm4477_vm14, %v6513_v7, %v13387_v40  ;;  %vm6406_vm14 = vcmp.lt.s32.totalorder %v9754_v10, 123 }
 0xcc5   : > { %v6539_v35 = vmul.f32 %v6526_v47, %v6517_v46  ;;  %v6540_v52 = vmul.f32 %v6530_v12, %v6521_v18  ;;  %v6481_v12 = vmul.f32 %v6477_v36, %v6465_v23  ;;  %v6419_v47 = vrot.slane %v9051_v4, %v9769_v14  ;;  %v9054_v4 = vld [vmem:[%s14459_s1 + $0x32] ss:$8 sm:$0x3] }
 0xcc6   : > { %6794 = vmatpush1.bf16.msra.mxu1 %v6683_v24  ;;  %v6462_v24 = vsel %vm6460_vm10, %v13467_v42, %v13504_v30  ;;  %v6584_v29 = vrot.slane %v9054_v4, %v9767_v13 }
 0xcc7   : > { %v6713_v0 = vpack.c.bf16 %v6539_v35, %v6537_v59  ;;  %v6403_v40 = vpop.permute.xlu0 %6402  ;;  %v6393_v54 = vpop.permute.xlu1 %6392  ;;  %v6714_v17 = vpack.c.bf16 %v6540_v52, %v6538_v15  ;;  %v6482_v59 = vmul.f32 %v6473_v19, %v6462_v24  ;;  %v6708_v42 = vpack.c.bf16 %v6483_v20, %v6481_v12 }
 0xcc8   : > { %v6409_v46 = vsel %vm6406_vm14, %v6395_v43, %v6403_v40  ;;  %v6413_v18 = vsel %vm6406_vm14, %v6403_v40, %v6395_v43 }
 0xcc9   : > { %6795 = vmatprep.subr.bf16.mxu1 %v6714_v17  ;;  %v6707_v51 = vpack.c.bf16 %v6482_v59, %v6480_v56  ;;  %v6430_v35 = vmul.f32 %v6419_v47, %v6409_v46  ;;  %v6431_v52 = vmul.f32 %v6423_v28, %v6413_v18 }
 0xcca   : > { %6796 = vmatpush2.bf16.msra.mxu1 %v6713_v0 }
 0xccb   : > { %v6391_v60 = vpop.permute.xlu0 %6390  ;;  %6797 = vmatprep.subr.bf16.mxu1 %v6712_v5  ;;  %v6459_v16 = vpop.permute.xlu1 %6458 }
 0xccc   : > { %v6464_v8 = vsel %vm6460_vm10, %v13427_v41, %v6459_v16  ;;  %v6468_v9 = vsel %vm6460_vm10, %v6459_v16, %v13427_v41 }
 0xccd   : > { %v6486_v27 = vmul.f32 %v6473_v19, %v6464_v8  ;;  %v6487_v44 = vmul.f32 %v6477_v36, %v6468_v9  ;;  %v6702_v8 = vpack.c.bf16 %v13271_v53, %v13265_v62  ;;  %v6700_v62 = vpack.c.bf16 %v13215_v25, %v13208_v11  ;;  %v14977_v25 = vld [vmem:[#allocation13_spill] sm:$0xff] }
 0xcce   : > { %6798 = vmatpush2.bf16.msra.mxu1 %v6711_v21 }
 0xccf   : > { %v6709_v7 = vpack.c.bf16 %v6486_v27, %v6484_v39  ;;  %v6399_v31 = vpop.permute.xlu0 %6398  ;;  %v6401_v50 = vpop.permute.xlu1 %6400  ;;  %v6710_v41 = vpack.c.bf16 %v6487_v44, %v6485_v2  ;;  %v6580_v39 = vrot.slane %v9054_v4, %v9769_v14 }
 0xcd0   : > { %v6411_v30 = vsel %vm6406_vm14, %v6399_v31, %v6391_v60  ;;  %v6412_v15 = vsel %vm6406_vm14, %v6401_v50, %v6393_v54  ;;  %v6407_v55 = vsel %vm6406_vm14, %v6391_v60, %v6399_v31  ;;  %v6408_v43 = vsel %vm6406_vm14, %v6393_v54, %v6401_v50 }
 0xcd1   : > { %6799 = vmatprep.subr.bf16.mxu1 %v6710_v41  ;;  %v6427_v17 = vmul.f32 %v6423_v28, %v6411_v30  ;;  %v6429_v19 = vmul.f32 %v6423_v28, %v6412_v15  ;;  %v6426_v21 = vmul.f32 %v6419_v47, %v6407_v55  ;;  %v6428_v26 = vmul.f32 %v6419_v47, %v6408_v43  ;;  %v9283_v55 = vld [vmem:[%s14741_s7 + $0x108] ss:$12 sps:$4 sm:$0xff]  }
 0xcd2   : > { %6800 = vmatpush2.bf16.msra.mxu1 %v6709_v7  ;;  %v14979_v43 = vmov 0  }
 0xcd3   : > { %v6556_v38 = vpop.permute.xlu0 %6555  ;;  %6801 = vmatprep.subr.bf16.mxu1 %v6708_v42  ;;  %v6405_v32 = vpop.permute.xlu1 %6404  ;;  %v6704_v54 = vpack.c.bf16 %v6429_v19, %v6427_v17  ;;  %v6703_v16 = vpack.c.bf16 %v6428_v26, %v6426_v21 }
 0xcd4   : > { %v6410_v0 = vsel %vm6406_vm14, %v13542_v58, %v6405_v32  ;;  %v6414_v40 = vsel %vm6406_vm14, %v6405_v32, %v13542_v58  ;;  %v9280_v32 = vld [vmem:[%s14741_s7 + $0xf8] ss:$12 sps:$4 sm:$0xff]  }
 0xcd5   : > { %v6432_v63 = vmul.f32 %v6419_v47, %v6410_v0  ;;  %v6433_v36 = vmul.f32 %v6423_v28, %v6414_v40  ;;  %v6701_v47 = vpack.c.bf16 %v13244_v37, %v13236_v61  ;;  %v14978_v37 = vld [vmem:[#allocation12_spill] sm:$0xff]  ;;  %v9284_v0 = vld [vmem:[%s14741_s7 + $0x110] ss:$12 sps:$4 sm:$0xff]  }
 0xcd6   : > { %6802 = vmatpush2.bf16.msra.mxu1 %v6707_v51  ;;  %v6699_v18 = vpack.c.bf16 %v14978_v37, %v14977_v25  ;;  %v9277_v51 = vld [vmem:[%s14741_s7 + $0xf0] ss:$12 sps:$4 sm:$0xff]  }
 0xcd7   : > { %v6705_v1 = vpack.c.bf16 %v6432_v63, %v6430_v35  ;;  %v6564_v5 = vpop.permute.xlu0 %6563  ;;  %v6558_v49 = vpop.permute.xlu1 %6557  ;;  %v6706_v23 = vpack.c.bf16 %v6433_v36, %v6431_v52  ;;  %v9281_v35 = vld [vmem:[%s14741_s7 + $0x10c] ss:$12 sps:$4 sm:$0xff]   ;;  %s9513_s7 = smov 119  }
 0xcd8   : > { %v6570_v9 = vsel %vm6567_vm15, %v6556_v38, %v6564_v5  ;;  %v6574_v2 = vsel %vm6567_vm15, %v6564_v5, %v6556_v38 }
 0xcd9   : > { %6803 = vmatprep.subr.bf16.mxu1 %v6706_v23  ;;  %v6591_v53 = vmul.f32 %v6580_v39, %v6570_v9  ;;  %v6592_v28 = vmul.f32 %v6584_v29, %v6574_v2 }
 0xcda   : > { %6804 = vmatpush2.bf16.msra.mxu1 %v6705_v1 }
 0xcdb   : > { %v6552_v58 = vpop.permute.xlu0 %6551  ;;  %6805 = vmatprep.subr.bf16.mxu1 %v6704_v54  ;;  %v6554_v60 = vpop.permute.xlu1 %6553 }
 0xcde   : > { %6806 = vmatpush2.bf16.msra.mxu1 %v6703_v16 }
 0xcdf   : > { %v6560_v12 = vpop.permute.xlu0 %6559  ;;  %v6566_v27 = vpop.permute.xlu1 %6565  ;;  %6807 = vmatprep.subr.bf16.mxu1 %v6702_v8 }
 0xce0   : > { %v6571_v44 = vsel %vm6567_vm15, %v6558_v49, %v6566_v27  ;;  %v6575_v24 = vsel %vm6567_vm15, %v6566_v27, %v6558_v49  ;;  %v6568_v7 = vsel %vm6567_vm15, %v6552_v58, %v6560_v12  ;;  %v6572_v31 = vsel %vm6567_vm15, %v6560_v12, %v6552_v58 }
 0xce1   : > { %v6593_v20 = vmul.f32 %v6580_v39, %v6571_v44  ;;  %v6594_v56 = vmul.f32 %v6584_v29, %v6575_v24  ;;  %v6587_v59 = vmul.f32 %v6580_v39, %v6568_v7  ;;  %v6588_v42 = vmul.f32 %v6584_v29, %v6572_v31 }
 0xce2   : > { %6808 = vmatpush2.bf16.msra.mxu1 %v6701_v47 }
 0xce3   : > { %v6717_v50 = vpack.c.bf16 %v6593_v20, %v6591_v53  ;;  %v6562_v41 = vpop.permute.xlu1 %6561  ;;  %6809 = vmatprep.subr.bf16.mxu1 %v6700_v62  ;;  %v6718_v46 = vpack.c.bf16 %v6594_v56, %v6592_v28 }
 0xce4   : > { %v6569_v61 = vsel %vm6567_vm15, %v6554_v60, %v6562_v41  ;;  %v6573_v11 = vsel %vm6567_vm15, %v6562_v41, %v6554_v60 }
 0xce5   : > { %v6589_v30 = vmul.f32 %v6580_v39, %v6569_v61  ;;  %v6590_v15 = vmul.f32 %v6584_v29, %v6573_v11  ;;  %6844 = vmatprep.subr.bf16.mxu0 %v6718_v46 }
 0xce6   : > { %6810 = vmatpush2.bf16.msra.mxu1 %v6699_v18  ;;  %6845 = vmatpush1.bf16.msra.mxu0 %v6717_v50 }
 0xce7   : > { %v6715_v52 = vpack.c.bf16 %v6589_v30, %v6587_v59  ;;  %v6716_v38 = vpack.c.bf16 %v6590_v15, %v6588_v42 }
 0xce9   : > { %6812 = vmatmul.mubr.bf16.vlgmr.msra.gmra.mxu1 %v9277_v51  ;;  %6846 = vmatprep.subr.bf16.mxu0 %v6716_v38 }
 0xcea   : > { %6847 = vmatpush1.bf16.msra.mxu0 %v6715_v52  ;;  %6821 = vmatprep.mubr.bf16.mxu1 %v9281_v35 }
 0xcec   : > { %v6726_v40 = vpop.permute.xlu0 %6725 }
 0xced   : > { %9061 = vmatmul.mubr.msk.bf16.vlgmr.msra.gmra.mxu0 %vm1111_vm8, %v9280_v32 }
 0xcee   : > { %6874 = vmatprep.mubr.bf16.mxu0 %v14979_v43 }
 0xcf0   : > { %v6731_v19 = vpop.permute.xlu1 %6730  ;;  %v6741_v20 = vpop.permute.xlu0 %6740 }
 0xcf1   : > { %6822 = vmatmul.mubr.bf16.gmra.mxu1 %v9283_v55 }
 0xcf2   : > { %7566 = vmatprep.mubr.bf16.mxu1 %v14979_v43 }
 0xcf4   : > { %v6736_v54 = vpop.permute.xlu1 %6735 }
 0xcf5   : > { %9062 = vmatmul.mubr.msk.bf16.gmra.mxu0 %vm1111_vm8, %v9284_v0 }
 0xcf6   : > { %7380 = vmatprep.mubr.bf16.mxu0 %v14979_v43 }
 0xda9   : > { %v6813_v17 = vpop.f32.mrf.mxu1 }
 0xdaa   : > { %v6814_v63 = vadd.f32 %v6813_v17, %v6726_v40 }
 0xdab   : > { %v6815_v36 = vpop.f32.mrf.mxu1 }
 0xdac   : > { %v6816_v49 = vadd.f32 %v6815_v36, %v6726_v40  ;;  %v6906_v36 = vpop.xlane.xlu0 %6905 }
 0xdad   : > { %v6817_v1 = vpop.f32.mrf.mxu1  ;;  %v6866_v5 = vpop.f32.mrf.mxu0 }
 0xdae   : > { %v6867_v23 = vadd.f32 %v6866_v5, %v6814_v63  ;;  %v6818_v4 = vadd.f32 %v6817_v1, %v6731_v19  ;;  %v6903_v1 = vpop.xlane.xlu1 %6902 }
 0xdaf   : > { %v6819_v21 = vpop.f32.mrf.mxu1  ;;  %v6868_v26 = vpop.f32.mrf.mxu0 }
 0xdb0   : > { %v6869_v58 = vadd.f32 %v6868_v26, %v6816_v49  ;;  %v6885_v60 = vmul.f32 0.2, %v6867_v23  ;;  %v6820_v29 = vadd.f32 %v6819_v21, %v6731_v19  ;;  %v6976_v5 = vpop.xlane.xlu0 %6975 }
 0xdb1   : > { %v6823_v16 = vpop.f32.mrf.mxu1  ;;  %v6870_v39 = vpop.f32.mrf.mxu0 }
 0xdb2   : > { %v6886_v8 = vmul.f32 0.2, %v6869_v58  ;;  %v6824_v9 = vadd.f32 %v6823_v16, %v6736_v54  ;;  %v6871_v2 = vadd.f32 %v6870_v39, %v6818_v4  ;;  %v13684_v62 = vmax.f32 %v6867_v23, %v6885_v60  ;;  %v6979_v49 = vpop.xlane.xlu1 %6978 }
 0xdb3   : > { %v6825_v12 = vpop.f32.mrf.mxu1  ;;  %v6872_v27 = vpop.f32.mrf.mxu0  ;;  %v9064_v4 = vmul.f32 -0.00390625, %v6906_v36  ;;  %v9063_v16 = vmul.f32 -0.00390625, %v6903_v1 }
 0xdb4   : > { %v13682_v44 = vmax.f32 %v6869_v58, %v6886_v8  ;;  %v6887_v24 = vmul.f32 0.2, %v6871_v2  ;;  %v6873_v47 = vadd.f32 %v6872_v27, %v6820_v29  ;;  %v6826_v56 = vadd.f32 %v6825_v12, %v6736_v54  ;;  %v6909_v23 = vpop.xlane.xlu0 %6908 }
 0xdb5   : > { %v6827_v53 = vpop.f32.mrf.mxu1  ;;  %v6876_v28 = vpop.f32.mrf.mxu0  ;;  %v9067_v58 = vmul.f32 -0.00390625, %v6976_v5  ;;  %v9065_v39 = vmul.f32 -0.00390625, %v6909_v23  ;;  %v6924_v29 = vmul.f32 1.442695, %v9064_v4  ;;  %v9068_v12 = vmul.f32 -0.00390625, %v6979_v49 }
 0xdb6   : > { %v6888_v7 = vmul.f32 0.2, %v6873_v47  ;;  %v6877_v31 = vadd.f32 %v6876_v28, %v6824_v9  ;;  %v13686_v50 = vmax.f32 %v6871_v2, %v6887_v24  ;;  %v7118_v61 = vadd.f32 %v13682_v44, %v13684_v62  ;;  %v6982_v21 = vpop.xlane.xlu1 %6981 }
 0xdb7   : > { %v6829_v41 = vpop.f32.mrf.mxu1  ;;  %v6878_v46 = vpop.f32.mrf.mxu0  ;;  %v6828_v25 = vadd.f32 %v6827_v53, %v6741_v20  ;;  %v6994_v2 = vmul.f32 1.442695, %v9067_v58  ;;  %v6922_v27 = vmul.f32 1.442695, %v9063_v16  ;;  %9297 = vpow2.f32 %v6924_v29 }
 0xdb8   : > { %v13690_v11 = vmax.f32 %v6873_v47, %v6888_v7  ;;  %v6889_v37 = vmul.f32 0.2, %v6877_v31  ;;  %v6879_v18 = vadd.f32 %v6878_v46, %v6826_v56  ;;  %7119 = vadd.xlane.f32.xlu1 %v7118_v61  ;;  %v6830_v42 = vadd.f32 %v6829_v41, %v6741_v20  ;;  %v7048_v26 = vpop.xlane.xlu0 %7047 }
 0xdb9   : > { %v6880_v59 = vpop.f32.mrf.mxu0  ;;  %v9071_v8 = vmul.f32 -0.00390625, %v7048_v26  ;;  %v6926_v47 = vmul.f32 1.442695, %v9065_v39  ;;  %v9069_v56 = vmul.f32 -0.00390625, %v6982_v21  ;;  %9299 = vpow2.f32 %v6994_v2 }
 0xdba   : > { %v6890_v30 = vmul.f32 0.2, %v6879_v18  ;;  %v6881_v15 = vadd.f32 %v6880_v59, %v6828_v25  ;;  %v7121_v51 = vadd.f32 %v13690_v11, %v13686_v50  ;;  %v13694_v52 = vmax.f32 %v6877_v31, %v6889_v37  ;;  %v7051_v54 = vpop.xlane.xlu1 %7050 }
 0xdbb   : > { %v6882_v35 = vpop.f32.mrf.mxu0  ;;  %v9072_v28 = vmul.f32 -0.00390625, %v7051_v54  ;;  %v7066_v20 = vmul.f32 1.442695, %v9071_v8  ;;  %v6996_v7 = vmul.f32 1.442695, %v9068_v12  ;;  %9301 = vpow2.f32 %v6922_v27 }
 0xdbc   : > { %v13696_v38 = vmax.f32 %v6879_v18, %v6890_v30  ;;  %v6891_v32 = vmul.f32 0.2, %v6881_v15  ;;  %v6883_v55 = vadd.f32 %v6882_v35, %v6830_v42  ;;  %7122 = vadd.xlane.f32.xlu0 %v7121_v51  ;;  %v6912_v60 = vpop.xlane.xlu0 %6911  ;;  %9303 = vpow2.f32 %v6926_v47 }
 0xdbd   : > { %v9066_v24 = vmul.f32 -0.00390625, %v6912_v60  ;;  %v7068_v61 = vmul.f32 1.442695, %v9072_v28  ;;  %9305 = vpow2.f32 %v7066_v20  ;;  %v6998_v37 = vmul.f32 1.442695, %v9069_v56 }
 0xdbe   : > { %v6892_v0 = vmul.f32 0.2, %v6883_v55  ;;  %v7124_v40 = vadd.f32 %v13696_v38, %v13694_v52  ;;  %v13700_v17 = vmax.f32 %v6881_v15, %v6891_v32  ;;  %v6985_v9 = vpop.xlane.xlu1 %6984  ;;  %9307 = vpow2.f32 %v6996_v7 }
 0xdbf   : > { %v6928_v31 = vmul.f32 1.442695, %v9066_v24  ;;  %v9070_v25 = vmul.f32 -0.00390625, %v6985_v9 }
 0xdc0   : > { %v13702_v19 = vmax.f32 %v6883_v55, %v6892_v0  ;;  %7125 = vadd.xlane.f32.xlu0 %v7124_v40  ;;  %v7054_v53 = vpop.xlane.xlu0 %7053 }
 0xdc1   : > { %v9073_v41 = vmul.f32 -0.00390625, %v7054_v53  ;;  %9309 = vpow2.f32 %v6928_v31  ;;  %v7000_v42 = vmul.f32 1.442695, %v9070_v25 }
 0xdc2   : > { %v7127_v63 = vadd.f32 %v13702_v19, %v13700_v17  ;;  %v7057_v46 = vpop.xlane.xlu1 %7056  ;;  %9311 = vpow2.f32 %v7068_v61 }
 0xdc3   : > { %v9074_v18 = vmul.f32 -0.00390625, %v7057_v46  ;;  %v7070_v59 = vmul.f32 1.442695, %v9073_v41  ;;  %9313 = vpow2.f32 %v6998_v37 }
 0xdc4   : > { %7128 = vadd.xlane.f32.xlu1 %v7127_v63  ;;  %v9298_v15 = vpop.eup %9297 }
 0xdc5   : > { %v7072_v30 = vmul.f32 1.442695, %v9074_v18  ;;  %9315 = vpow2.f32 %v7070_v59  ;;  %v6931_v55 = vadd.f32 1.0, %v9298_v15 }
 0xdc6   : > { %9317 = vpow2.f32 %v7000_v42  ;;  %v9300_v51 = vpop.eup %9299 }
 0xdc7   : > { %9319 = vpow2.f32 %v7072_v30  ;;  %v7002_v40 = vadd.f32 1.0, %v9300_v51 }
 0xdc8   : > { %v9302_v35 = vpop.eup %9301  ;;  %9321 = vrcp.f32 %v6931_v55 }
 0xdc9   : > { %v9304_v32 = vpop.eup %9303  ;;  %v6930_v36 = vadd.f32 1.0, %v9302_v35  ;;  %9323 = vrcp.f32 %v7002_v40  ;;  %v14980_v40 = vld [vmem:[#allocation62_spill] sm:$0xff] }
 0xdca   : > { %v9306_v0 = vpop.eup %9305  ;;  %v6932_v5 = vadd.f32 1.0, %v9304_v32 }
 0xdcb   : > { %v9308_v63 = vpop.eup %9307  ;;  %v7074_v23 = vadd.f32 1.0, %v9306_v0  ;;  %9325 = vrcp.f32 %v6930_v36 }
 0xdcc   : > { %v7003_v26 = vadd.f32 1.0, %v9308_v63  ;;  %9327 = vrcp.f32 %v6932_v5 }
 0xdcd   : > { %9329 = vrcp.f32 %v7074_v23 }
 0xdce   : > { %v9310_v1 = vpop.eup %9309  ;;  %9331 = vrcp.f32 %v7003_v26 }
 0xdcf   : > { %v9312_v49 = vpop.eup %9311  ;;  %v6933_v54 = vadd.f32 1.0, %v9310_v1 }
 0xdd0   : > { %v9314_v21 = vpop.eup %9313  ;;  %v7075_v58 = vadd.f32 1.0, %v9312_v49 }
 0xdd1   : > { %v7004_v16 = vadd.f32 1.0, %v9314_v21  ;;  %9333 = vrcp.f32 %v6933_v54  ;;  %v14981_v21 = vld [vmem:[#allocation63_spill] sm:$0xff]  ;;  %v14982_v54 = vld [vmem:[#allocation65_spill] sm:$0xff] }
 0xdd2   : > { %v9316_v4 = vpop.eup %9315  ;;  %9335 = vrcp.f32 %v7075_v58  ;;  %v14983_v58 = vld [vmem:[#allocation42_spill] sm:$0xff] }
 0xdd3   : > { %v9318_v60 = vpop.eup %9317  ;;  %v7076_v9 = vadd.f32 1.0, %v9316_v4  ;;  %9337 = vrcp.f32 %v7004_v16 }
 0xdd4   : > { %v9320_v8 = vpop.eup %9319  ;;  %v7005_v2 = vadd.f32 1.0, %v9318_v60 }
 0xdd5   : > { %v7077_v47 = vadd.f32 1.0, %v9320_v8  ;;  %v9322_v56 = vpop.eup %9321 }
 0xdd6   : > { %v9324_v7 = vpop.eup %9323  ;;  %v6943_v51 = vmul.f32 2.0, %v9322_v56  ;;  %v14988_v56 = vld [vmem:[#allocation47_spill] sm:$0xff] }
 0xdd7   : > { %v7014_v35 = vmul.f32 2.0, %v9324_v7 }
 0xdd8   : > { %v9326_v41 = vpop.eup %9325  ;;  %v13710_v26 = vmul.f32 %v6943_v51, %v14981_v21  ;;  %v13713_v4 = vmul.f32 %v6943_v51, %v14982_v54  ;;  %v14991_v51 = vld [vmem:[#allocation60_spill] sm:$0xff]  ;;  %v14994_v54 = vld [vmem:[#allocation67_spill] sm:$0xff] }
 0xdd9   : > { %v9328_v61 = vpop.eup %9327  ;;  %v6942_v59 = vmul.f32 2.0, %v9326_v41  ;;  %v13716_v60 = vmul.f32 %v7014_v35, %v14983_v58  ;;  %v14989_v41 = vld [vmem:[#allocation46_spill] sm:$0xff] }
 0xdda   : > { %v9330_v37 = vpop.eup %9329  ;;  %v6944_v55 = vmul.f32 2.0, %v9328_v61 }
 0xddb   : > { %v9332_v18 = vpop.eup %9331  ;;  %v13707_v63 = vmul.f32 %v6942_v59, %v14980_v40  ;;  %v7086_v16 = vmul.f32 2.0, %v9330_v37  ;;  %v14990_v37 = vld [vmem:[#allocation8_spill] sm:$0xff] }
 0xddc   : > { %v7015_v36 = vmul.f32 2.0, %v9332_v18 }
 0xddd   : > { %v13742_v18 = vmul.f32 %v7086_v16, %v14990_v37 }
 0xdde   : > { %v9334_v30 = vpop.eup %9333  ;;  %v13733_v7 = vmul.f32 %v7015_v36, %v14988_v56 }
 0xddf   : > { %v9336_v15 = vpop.eup %9335 }
 0xde0   : > { %v9338_v32 = vpop.eup %9337  ;;  %v7087_v5 = vmul.f32 2.0, %v9336_v15 }
 0xde2   : > { %v13739_v61 = vmul.f32 %v7087_v5, %v14926_v57 }
 0xe41   : > { %v7120_v39 = vpop.xlane.xlu1 %7119 }
 0xe42   : > { %v9075_v29 = vmul.f32 -0.00390625, %v7120_v39 }
 0xe44   : > { %v7138_v12 = vmul.f32 1.442695, %v9075_v29  ;;  %v14984_v29 = vld [vmem:[#allocation61_spill] sm:$0xff] }
 0xe45   : > { %v7123_v27 = vpop.xlane.xlu0 %7122  ;;  %v13719_v8 = vmul.f32 %v7014_v35, %v14984_v29 }
 0xe46   : > { %v9076_v24 = vmul.f32 -0.00390625, %v7123_v27  ;;  %9339 = vpow2.f32 %v7138_v12  ;;  %v14986_v12 = vld [vmem:[#allocation68_spill] sm:$0xff] }
 0xe47   : > { %9341 = vrcp.f32 %v7076_v9  ;;  %v14985_v9 = vld [vmem:[#allocation66_spill] sm:$0xff]  ;;  %v13725_v27 = vmul.f32 %v6944_v55, %v14986_v12 }
 0xe48   : > { %v7140_v53 = vmul.f32 1.442695, %v9076_v24  ;;  %9343 = vrcp.f32 %v7005_v2  ;;  %v13722_v2 = vmul.f32 %v6944_v55, %v14985_v9  ;;  %v7016_v24 = vmul.f32 2.0, %v9338_v32  ;;  %v14992_v32 = vld [vmem:[#allocation29_spill] sm:$0xff] }
 0xe49   : > { %v7126_v28 = vpop.xlane.xlu0 %7125 }
 0xe4a   : > { %9345 = vpow2.f32 %v7140_v53  ;;  %v9077_v20 = vmul.f32 -0.00390625, %v7126_v28  ;;  %v14987_v53 = vld [vmem:[#allocation64_spill] sm:$0xff]  ;;  %v13748_v35 = vmul.f32 %v7016_v24, %v14991_v51  ;;  %v13751_v55 = vmul.f32 %v7016_v24, %v14992_v32 }
 0xe4b   : > { %9347 = vrcp.f32 %v7077_v47  ;;  %v13728_v28 = vmul.f32 %v6942_v59, %v14987_v53  ;;  %v6945_v59 = vmul.f32 2.0, %v9334_v30 }
 0xe4c   : > { %v7142_v31 = vmul.f32 1.442695, %v9077_v20  ;;  %v6954_v20 = vadd.f32 %v13710_v26, %v13707_v63 }
 0xe4d   : > { %v7129_v46 = vpop.xlane.xlu1 %7128  ;;  %v6963_v40 = vadd.f32 %v13713_v4, %v13728_v28  ;;  %v13771_v58 = vmul.f32 %v6945_v59, %v14994_v54 }
 0xe4e   : > { %9349 = vpow2.f32 %v7142_v31  ;;  %v9078_v25 = vmul.f32 -0.00390625, %v7129_v46  ;;  %v13736_v46 = vmul.f32 %v7015_v36, %v14989_v41  ;;  %v14993_v36 = vld [vmem:[#allocation37_spill] sm:$0xff] }
 0xe4f   : > { %v6964_v41 = vadd.f32 %v6963_v40, %v13725_v27 }
 0xe50   : > { %v7144_v42 = vmul.f32 1.442695, %v9078_v25 }
 0xe52   : > { %9351 = vpow2.f32 %v7144_v42  ;;  %v13745_v42 = vmul.f32 %v7087_v5, %v14922_v45  ;;  %v7026_v45 = vadd.f32 %v13733_v7, %v13716_v60  ;;  %v7035_v5 = vadd.f32 %v13736_v46, %v13719_v8 }
 0xe53   : > { %v9340_v0 = vpop.eup %9339 }
 0xe54   : > { %v9342_v1 = vpop.eup %9341  ;;  %v7146_v49 = vadd.f32 1.0, %v9340_v0  ;;  %v7027_v12 = vadd.f32 %v7026_v45, %v13748_v35  ;;  %v7036_v24 = vadd.f32 %v7035_v5, %v13751_v55 }
 0xe55   : > { %v9344_v23 = vpop.eup %9343  ;;  %v7088_v0 = vmul.f32 2.0, %v9342_v1 }
 0xe56   : > { %v7017_v25 = vmul.f32 2.0, %v9344_v23  ;;  %9353 = vrcp.f32 %v7146_v49  ;;  %v13756_v49 = vmul.f32 %v7086_v16, %v14993_v36  ;;  %v7098_v23 = vadd.f32 %v13739_v61, %v13742_v18  ;;  %v14995_v16 = vld [vmem:[#allocation69_spill] sm:$0xff] }
 0xe57   : > { %v9346_v39 = vpop.eup %9345  ;;  %v13788_v53 = vmul.f32 %v7088_v0, %v12660_v33 }
 0xe58   : > { %v9348_v47 = vpop.eup %9347  ;;  %v7147_v31 = vadd.f32 1.0, %v9346_v39  ;;  %v13765_v21 = vmul.f32 %v7017_v25, %v14975_v34  ;;  %v13768_v1 = vmul.f32 %v7017_v25, %v14976_v48  ;;  %v13774_v39 = vmul.f32 %v6945_v59, %v14995_v16 }
 0xe59   : > { %v7089_v57 = vmul.f32 2.0, %v9348_v47  ;;  %v7107_v29 = vadd.f32 %v13745_v42, %v13756_v49  ;;  %v13781_v34 = vmul.f32 %v7088_v0, %v12630_v6  ;;  %v6955_v47 = vadd.f32 %v6954_v20, %v13722_v2 }
 0xe5a   : > { %9355 = vrcp.f32 %v7147_v31  ;;  %v7028_v25 = vadd.f32 %v7027_v12, %v13765_v21  ;;  %v7037_v37 = vadd.f32 %v7036_v24, %v13768_v1  ;;  %v6965_v33 = vadd.f32 %v6964_v41, %v13774_v39 }
 0xe5b   : > { %v9350_v15 = vpop.eup %9349  ;;  %v13784_v48 = vmul.f32 %v7089_v57, %v14920_v22  ;;  %v13791_v56 = vmul.f32 %v7089_v57, %v12666_v3  ;;  %v7099_v6 = vadd.f32 %v7098_v23, %v13781_v34  ;;  %v7108_v22 = vadd.f32 %v7107_v29, %v13788_v53 }
 0xe5c   : > { %v7148_v30 = vadd.f32 1.0, %v9350_v15  ;;  %v6956_v20 = vadd.f32 %v6955_v47, %v13771_v58  ;;  %v7029_v15 = vrot.slane %v7028_v25, 4  ;;  %v7038_v51 = vrot.slane %v7037_v37, 4 }
 0xe5d   : > { %v7100_v59 = vadd.f32 %v7099_v6, %v13784_v48  ;;  %v7109_v3 = vadd.f32 %v7108_v22, %v13791_v56  ;;  %v6966_v40 = vrot.slane %v6965_v33, 4 }
 0xe5e   : > { %9357 = vrcp.f32 %v7148_v30  ;;  %v6957_v57 = vrot.slane %v6956_v20, 4  ;;  %v7030_v5 = vadd.f32 %v7029_v15, %v7028_v25  ;;  %v7039_v23 = vadd.f32 %v7038_v51, %v7037_v37 }
 0xe5f   : > { %v9352_v9 = vpop.eup %9351  ;;  %v7101_v36 = vrot.slane %v7100_v59, 4  ;;  %v7110_v45 = vrot.slane %v7109_v3, 4 }
 0xe60   : > { %v7149_v31 = vadd.f32 1.0, %v9352_v9  ;;  %v6958_v29 = vadd.f32 %v6957_v57, %v6956_v20  ;;  %v6967_v9 = vadd.f32 %v6966_v40, %v6965_v33  ;;  %v7031_v6 = vrot.slane %v7030_v5, 2 }
 0xe61   : > { %v7102_v12 = vadd.f32 %v7101_v36, %v7100_v59  ;;  %v7111_v24 = vadd.f32 %v7110_v45, %v7109_v3  ;;  %v7040_v22 = vrot.slane %v7039_v23, 2 }
 0xe62   : > { %9359 = vrcp.f32 %v7149_v31  ;;  %v6959_v33 = vrot.slane %v6958_v29, 2  ;;  %v6968_v59 = vrot.slane %v6967_v9, 2 }
 0xe63   : > { %v9354_v32 = vpop.eup %9353  ;;  %v7112_v3 = vrot.slane %v7111_v24, 2 }
 0xe64   : > { %v7158_v54 = vmul.f32 2.0, %v9354_v32  ;;  %v7041_v32 = vadd.f32 %v7040_v22, %v7039_v23  ;;  %v6960_v40 = vadd.f32 %v6959_v33, %v6958_v29  ;;  %v6969_v36 = vadd.f32 %v6968_v59, %v6967_v9 }
 0xe66   : > { %v13809_v10 = vmul.f32 %v7158_v54, %v13684_v62  ;;  %v13812_v25 = vmul.f32 %v7158_v54, %v13682_v44  ;;  %v7032_v44 = vadd.f32 %v7031_v6, %v7030_v5  ;;  %v7042_v23 = vrot.slane %v7041_v32, 1 }
 0xe67   : > { %v9356_v0 = vpop.eup %9355  ;;  %v6961_v22 = vrot.slane %v6960_v40, 1 }
 0xe68   : > { %v7159_v30 = vmul.f32 2.0, %v9356_v0  ;;  %14998 = vst [vmem:[#allocation70_spill] sm:$0xff] %v13809_v10  ;;  %14999 = vst [vmem:[#allocation71_spill] sm:$0xff] %v13812_v25  ;;  %v7033_v5 = vrot.slane %v7032_v44, 1 }
 0xe6a   : > { %v13803_v47 = vmul.f32 %v7159_v30, %v13686_v50  ;;  %v13806_v31 = vmul.f32 %v7159_v30, %v13690_v11  ;;  %v7103_v11 = vrot.slane %v7102_v12, 2  ;;  %v7113_v30 = vadd.f32 %v7112_v3, %v7111_v24 }
 0xe6b   : > { %v9358_v16 = vpop.eup %9357 }
 0xe6c   : > { %14996 = vst [vmem:[#allocation15_spill] sm:$0xff] %v13803_v47  ;;  %14997 = vst [vmem:[#allocation14_spill] sm:$0xff] %v13806_v31  ;;  %v7160_v41 = vmul.f32 2.0, %v9358_v16  ;;  %v7170_v15 = vadd.f32 %v13803_v47, %v13809_v10  ;;  %v7179_v62 = vadd.f32 %v13806_v31, %v13812_v25  ;;  %v7104_v45 = vadd.f32 %v7103_v11, %v7102_v12 }
 0xe6d   : > { %v6962_v12 = vadd.f32 %v6961_v22, %v6960_v40  ;;  %v13872_v40 = vld [vmem:[%s14461_s3 + $0x8] sm:$0xff] }
 0xe6e   : > { %v13815_v37 = vmul.f32 %v7160_v41, %v13694_v52  ;;  %v13818_v20 = vmul.f32 %v7160_v41, %v13696_v38 }
 0xe6f   : > { %v9360_v50 = vpop.eup %9359 }
 0xe70   : > { %v7161_v51 = vmul.f32 2.0, %v9360_v50  ;;  %v7171_v52 = vadd.f32 %v7170_v15, %v13815_v37  ;;  %v7180_v0 = vadd.f32 %v7179_v62, %v13818_v20  ;;  %v6970_v50 = vrot.slane %v6969_v36, 1 }
 0xe71   : > { %v7105_v15 = vrot.slane %v7104_v45, 1 }
 0xe72   : > { %v13827_v38 = vmul.f32 %v7161_v51, %v13700_v17  ;;  %v13830_v57 = vmul.f32 %v7161_v51, %v13702_v19  ;;  %v7114_v17 = vrot.slane %v7113_v30, 1  ;;  %v7034_v19 = vadd.f32 %v7033_v5, %v7032_v44  ;;  %v13837_v44 = vld [vmem:[%s14460_s2 + $0x10] sm:$0xff] }
 0xe73   : > { %v7043_v51 = vadd.f32 %v7042_v23, %v7041_v32  ;;  %v6971_v24 = vadd.f32 %v6970_v50, %v6969_v36  ;;  %v7106_v11 = vadd.f32 %v7105_v15, %v7104_v45  ;;  %v13847_v32 = vld [vmem:[%s14460_s2] sm:$0xff] }
 0xe74   : > { %15000 = vst [vmem:[#allocation21_spill] sm:$0xff] %v13827_v38  ;;  %v7172_v54 = vadd.f32 %v7171_v52, %v13827_v38  ;;  %v7181_v16 = vadd.f32 %v7180_v0, %v13830_v57  ;;  %v7115_v3 = vadd.f32 %v7114_v17, %v7113_v30  ;;  %v7044_v52 = vadd.f32 %v7034_v19, %v6962_v12  ;;  %v13903_v12 = vld [vmem:[%s14463_s5] sm:$0xff] }
 0xe75   : > { %v7045_v0 = vadd.f32 %v7043_v51, %v6971_v24  ;;  %v9511_v19 = vmov 7   ;;  %v13885_v51 = vld [vmem:[%s14463_s5 + $0x10] sm:$0xff] }
 0xe76   : > { %v7173_v41 = vrot.slane %v7172_v54, 4  ;;  %v7182_v6 = vrot.slane %v7181_v16, 4  ;;  %v7116_v10 = vadd.f32 %v7106_v11, %v7044_v52  ;;  %9201 = vset.pattern.permute.xlu1 %v9511_v19  ;;  %9200 = vset.pattern.permute.xlu0 %v9511_v19 }
 0xe77   : > { %v7117_v31 = vadd.f32 %v7115_v3, %v7045_v0 }
 0xe78   : > { %v7174_v62 = vadd.f32 %v7173_v41, %v7172_v54  ;;  %v7183_v13 = vadd.f32 %v7182_v6, %v7181_v16 }
 0xe7a   : > { %v7175_v29 = vrot.slane %v7174_v62, 2  ;;  %v7184_v9 = vrot.slane %v7183_v13, 2 }
 0xe7c   : > { %v7176_v33 = vadd.f32 %v7175_v29, %v7174_v62  ;;  %v7185_v59 = vadd.f32 %v7184_v9, %v7183_v13  ;;  %v13842_v13 = vld [vmem:[%s14460_s2 + $0x18] sm:$0xff]  ;;  %v13897_v9 = vld [vmem:[%s14463_s5 + $0x8] sm:$0xff] }
 0xe7d   : > { %v13891_v29 = vld [vmem:[%s14463_s5 + $0x18] sm:$0xff] }
 0xe7e   : > { %v7177_v14 = vrot.slane %v7176_v33, 1  ;;  %v7186_v47 = vrot.slane %v7185_v59, 1 }
 0xe80   : > { %v7178_v25 = vadd.f32 %v7177_v14, %v7176_v33  ;;  %v7187_v38 = vadd.f32 %v7186_v47, %v7185_v59 }
 0xe82   : > { %v7188_v54 = vadd.f32 %v7178_v25, %v7116_v10  ;;  %v7189_v16 = vadd.f32 %v7187_v38, %v7117_v31  ;;  %v13852_v10 = vld [vmem:[%s14460_s2 + $0x8] sm:$0xff]  ;;  %v13857_v31 = vld [vmem:[%s14461_s3 + $0x10] sm:$0xff]  ;;  %v13862_v25 = vld [vmem:[%s14461_s3 + $0x18] sm:$0xff] }
 0xe83   : > { %v13867_v38 = vld [vmem:[%s14461_s3] sm:$0xff] }
 0xe84   : > { %v7190_v14 = vmul.f32 0.0078125, %v7188_v54  ;;  %v7191_v47 = vmul.f32 0.0078125, %v7189_v16 }
 0xe86   : > { %v7202_v36 = vmul.f32 %v13837_v44, %v7190_v14  ;;  %v7203_v45 = vmul.f32 %v13842_v13, %v7191_v47  ;;  %v7200_v30 = vmul.f32 %v13847_v32, %v7190_v14  ;;  %v7201_v5 = vmul.f32 %v13852_v10, %v7191_v47 }
 0xe87   : > { %v7214_v23 = vmul.f32 %v13857_v31, %v7190_v14  ;;  %v7215_v41 = vmul.f32 %v13862_v25, %v7191_v47  ;;  %v7212_v50 = vmul.f32 %v13867_v38, %v7190_v14  ;;  %v7213_v15 = vmul.f32 %v13872_v40, %v7191_v47 }
 0xe88   : > { %v7207_v6 = vadd.f32 %v7203_v45, %v7202_v36  ;;  %v7204_v22 = vadd.f32 %v7201_v5, %v7200_v30 }
 0xe89   : > { %v7219_v17 = vadd.f32 %v7215_v41, %v7214_v23  ;;  %v7216_v62 = vadd.f32 %v7213_v15, %v7212_v50 }
 0xe8a   : > { %7208 = vadd.xlane.f32.xlu1 %v7207_v6  ;;  %7205 = vadd.xlane.f32.xlu0 %v7204_v22 }
 0xe8e   : > { %7220 = vadd.xlane.f32.xlu1 %v7219_v17  ;;  %7217 = vadd.xlane.f32.xlu0 %v7216_v62 }
 0xe9f   : > { %7301 = vperm.xlu1 %9201, %v13885_v51  }
 0xea3   : > { %7297 = vperm.xlu1 %9201, %v13897_v9  }
 0xea4   : > { %7305 = vperm.xlu0 %9200, %v13891_v29  }
 0xea7   : > { %7293 = vperm.xlu1 %9201, %v13903_v12  }
 0xf13   : > { %v7209_v24 = vpop.xlane.xlu1 %7208  ;;  %v7206_v33 = vpop.xlane.xlu0 %7205 }
 0xf14   : > { %v9080_v59 = vmul.f32 -0.0625, %v7209_v24  ;;  %v9079_v11 = vmul.f32 -0.0625, %v7206_v33 }
 0xf16   : > { %v7228_v3 = vmul.f32 1.442695, %v9080_v59  ;;  %v7226_v52 = vmul.f32 1.442695, %v9079_v11 }
 0xf17   : > { %v7221_v0 = vpop.xlane.xlu1 %7220  ;;  %v7218_v54 = vpop.xlane.xlu0 %7217 }
 0xf18   : > { %9361 = vpow2.f32 %v7228_v3  ;;  %v9082_v16 = vmul.f32 -0.0625, %v7221_v0  ;;  %v9081_v14 = vmul.f32 -0.0625, %v7218_v54 }
 0xf19   : > { %9363 = vpow2.f32 %v7226_v52 }
 0xf1a   : > { %v7260_v47 = vmul.f32 1.442695, %v9082_v16  ;;  %v7258_v36 = vmul.f32 1.442695, %v9081_v14 }
 0xf1c   : > { %9365 = vpow2.f32 %v7260_v47 }
 0xf1d   : > { %9367 = vpow2.f32 %v7258_v36 }
 0xf25   : > { %v9362_v45 = vpop.eup %9361 }
 0xf26   : > { %v9364_v30 = vpop.eup %9363  ;;  %v7231_v5 = vadd.f32 1.0, %v9362_v45 }
 0xf27   : > { %v7230_v23 = vadd.f32 1.0, %v9364_v30 }
 0xf28   : > { %9369 = vrcp.f32 %v7231_v5 }
 0xf29   : > { %v9366_v41 = vpop.eup %9365  ;;  %9371 = vrcp.f32 %v7230_v23 }
 0xf2a   : > { %v9368_v6 = vpop.eup %9367  ;;  %v7263_v22 = vadd.f32 1.0, %v9366_v41 }
 0xf2b   : > { %v7262_v50 = vadd.f32 1.0, %v9368_v6 }
 0xf2c   : > { %9373 = vrcp.f32 %v7263_v22 }
 0xf2d   : > { %9375 = vrcp.f32 %v7262_v50 }
 0xf35   : > { %v9370_v15 = vpop.eup %9369 }
 0xf36   : > { %v9372_v17 = vpop.eup %9371  ;;  %v7237_v62 = vmul.f32 2.0, %v9370_v15 }
 0xf37   : > { %v7236_v19 = vmul.f32 2.0, %v9372_v17 }
 0xf38   : > { %v7240_v24 = vmul.f32 %v7237_v62, %v13837_v44  ;;  %v7241_v33 = vmul.f32 %v7237_v62, %v13842_v13 }
 0xf39   : > { %v9374_v59 = vpop.eup %9373  ;;  %v7238_v11 = vmul.f32 %v7236_v19, %v13847_v32  ;;  %v7239_v3 = vmul.f32 %v7236_v19, %v13852_v10 }
 0xf3a   : > { %v9376_v52 = vpop.eup %9375  ;;  %v7269_v0 = vmul.f32 2.0, %v9374_v59 }
 0xf3b   : > { %v7242_v54 = vadd.f32 %v7240_v24, %v7238_v11  ;;  %v7249_v16 = vadd.f32 %v7241_v33, %v7239_v3  ;;  %v7268_v14 = vmul.f32 2.0, %v9376_v52 }
 0xf3c   : > { %v7272_v47 = vmul.f32 %v7269_v0, %v13857_v31  ;;  %v7273_v36 = vmul.f32 %v7269_v0, %v13862_v25 }
 0xf3d   : > { %v7243_v45 = vrot.slane %v7242_v54, 4  ;;  %v7250_v30 = vrot.slane %v7249_v16, 4  ;;  %v7270_v44 = vmul.f32 %v7268_v14, %v13867_v38  ;;  %v7271_v13 = vmul.f32 %v7268_v14, %v13872_v40 }
 0xf3f   : > { %v7244_v5 = vadd.f32 %v7243_v45, %v7242_v54  ;;  %v7251_v23 = vadd.f32 %v7250_v30, %v7249_v16  ;;  %v7274_v32 = vadd.f32 %v7272_v47, %v7270_v44  ;;  %v7281_v41 = vadd.f32 %v7273_v36, %v7271_v13 }
 0xf41   : > { %v7245_v10 = vrot.slane %v7244_v5, 2  ;;  %v7252_v6 = vrot.slane %v7251_v23, 2  ;;  %v7275_v22 = vrot.slane %v7274_v32, 4  ;;  %v7282_v50 = vrot.slane %v7281_v41, 4 }
 0xf43   : > { %v7246_v15 = vadd.f32 %v7245_v10, %v7244_v5  ;;  %v7253_v17 = vadd.f32 %v7252_v6, %v7251_v23  ;;  %v7276_v62 = vadd.f32 %v7275_v22, %v7274_v32  ;;  %v7283_v31 = vadd.f32 %v7282_v50, %v7281_v41 }
 0xf45   : > { %v7247_v19 = vrot.slane %v7246_v15, 1  ;;  %v7254_v25 = vrot.slane %v7253_v17, 1  ;;  %v7277_v24 = vrot.slane %v7276_v62, 2  ;;  %v7284_v33 = vrot.slane %v7283_v31, 2 }
 0xf47   : > { %v7248_v59 = vadd.f32 %v7247_v19, %v7246_v15  ;;  %v7255_v38 = vadd.f32 %v7254_v25, %v7253_v17  ;;  %v7278_v11 = vadd.f32 %v7277_v24, %v7276_v62  ;;  %v7285_v40 = vadd.f32 %v7284_v33, %v7283_v31  ;;  %v9288_v62 = vld [vmem:[%s14468_s10 + $0x20] sm:$0xff]   ;;  %v15001_v24 = vld [vmem:[#allocation21_spill] sm:$0xff] }
 0xf49   : > { %v7279_v3 = vrot.slane %v7278_v11, 1  ;;  %v7286_v52 = vrot.slane %v7285_v40, 1  ;;  %v7288_v0 = vadd.f32 1.0, %v7248_v59  ;;  %v7289_v54 = vadd.f32 1.0, %v7255_v38  ;;  %v9287_v59 = vld [vmem:[%s14468_s10 + $0x10] sm:$0xff]   ;;  %v15002_v38 = vld [vmem:[#allocation71_spill] sm:$0xff] }
 0xf4b   : > { %v7280_v16 = vadd.f32 %v7279_v3, %v7278_v11  ;;  %v7287_v14 = vadd.f32 %v7286_v52, %v7285_v40  ;;  %v15003_v40 = vld [vmem:[#allocation14_spill] sm:$0xff] }
 0xf4d   : > { %v13914_v47 = vadd.f32 %v7288_v0, %v7280_v16  ;;  %v13916_v36 = vadd.f32 %v7289_v54, %v7287_v14  ;;  %v15004_v0 = vld [vmem:[#allocation70_spill] sm:$0xff]  ;;  %v15005_v16 = vld [vmem:[#allocation15_spill] sm:$0xff] }
 0xf4f   : > { %v7321_v45 = vmul.f32 %v13916_v36, %v13725_v27  ;;  %v7323_v30 = vmul.f32 %v13916_v36, %v13774_v39  ;;  %v7507_v44 = vmul.f32 %v13916_v36, %v13788_v53  ;;  %v7509_v13 = vmul.f32 %v13916_v36, %v13791_v56 }
 0xf50   : > { %v7320_v5 = vmul.f32 %v13914_v47, %v13722_v2  ;;  %v7322_v23 = vmul.f32 %v13914_v47, %v13771_v58  ;;  %v7506_v32 = vmul.f32 %v13914_v47, %v13781_v34  ;;  %v7508_v27 = vmul.f32 %v13914_v47, %v13784_v48 }
 0xf51   : > { %v7331_v41 = vpack.c.bf16 %v7323_v30, %v7321_v45  ;;  %v7517_v39 = vpack.c.bf16 %v7509_v13, %v7507_v44  ;;  %v7317_v53 = vmul.f32 %v13916_v36, %v13728_v28  ;;  %v7319_v56 = vmul.f32 %v13916_v36, %v13713_v4  ;;  %v9289_v30 = vld [vmem:[%s14468_s10 + $0x18] sm:$0xff]  }
 0xf52   : > { %v7330_v10 = vpack.c.bf16 %v7322_v23, %v7320_v5  ;;  %v7516_v6 = vpack.c.bf16 %v7508_v27, %v7506_v32  ;;  %v7503_v2 = vmul.f32 %v13916_v36, %v13756_v49  ;;  %v7505_v58 = vmul.f32 %v13916_v36, %v13745_v42 }
 0xf53   : > { %7360 = vmatprep.subr.bf16.mxu0 %v7331_v41  ;;  %7546 = vmatprep.subr.bf16.mxu1 %v7517_v39  ;;  %v7329_v34 = vpack.c.bf16 %v7319_v56, %v7317_v53  ;;  %v7316_v48 = vmul.f32 %v13914_v47, %v13707_v63  ;;  %v7318_v28 = vmul.f32 %v13914_v47, %v13710_v26  ;;  %v9512_v44 = vmov 0.0  }
 0xf54   : > { %7361 = vmatpush1.bf16.msra.mxu0 %v7330_v10  ;;  %7547 = vmatpush1.bf16.msra.mxu1 %v7516_v6  ;;  %v7515_v4 = vpack.c.bf16 %v7505_v58, %v7503_v2  ;;  %v7502_v22 = vmul.f32 %v13914_v47, %v13742_v18  ;;  %v7504_v49 = vmul.f32 %v13914_v47, %v13739_v61  ;;  %v9285_v61 = vld [vmem:[%s14468_s10] sm:$0xff]  }
 0xf55   : > { %7362 = vmatprep.subr.bf16.mxu0 %v7329_v34  ;;  %v7414_v42 = vmul.f32 %v13916_v36, %v13751_v55  ;;  %v7416_v50 = vmul.f32 %v13916_v36, %v13768_v1  ;;  %v7328_v63 = vpack.c.bf16 %v7318_v28, %v7316_v48  ;;  %v7413_v26 = vmul.f32 %v13914_v47, %v13748_v35 }
 0xf56   : > { %7548 = vmatprep.subr.bf16.mxu1 %v7515_v4  ;;  %v7514_v15 = vpack.c.bf16 %v7504_v49, %v7502_v22  ;;  %v7415_v17 = vmul.f32 %v13914_v47, %v13765_v21  ;;  %v7410_v55 = vmul.f32 %v13916_v36, %v13719_v8  ;;  %v7412_v1 = vmul.f32 %v13916_v36, %v13736_v46  ;;  %v7302_v49 = vpop.permute.xlu1 %7301 }
 0xf57   : > { %v7424_v18 = vpack.c.bf16 %v7416_v50, %v7414_v42  ;;  %v7409_v21 = vmul.f32 %v13914_v47, %v13716_v60  ;;  %v7411_v31 = vmul.f32 %v13914_v47, %v13733_v7  ;;  %v7600_v46 = vmul.f32 %v13916_v36, %v13818_v20  ;;  %v9286_v7 = vld [vmem:[%s14468_s10 + $0x8] sm:$0xff]  }
 0xf58   : > { %7363 = vmatpush1.bf16.msra.mxu0 %v7328_v63  ;;  %7549 = vmatpush1.bf16.msra.mxu1 %v7514_v15  ;;  %v7423_v35 = vpack.c.bf16 %v7415_v17, %v7413_v26  ;;  %v7422_v8 = vpack.c.bf16 %v7412_v1, %v7410_v55  ;;  %v7602_v19 = vmul.f32 %v13916_v36, %v13830_v57  ;;  %v9290_v20 = vld [vmem:[%s14468_s10 + $0x28] sm:$0xff]   ;;  %v7306_v17 = vpop.permute.xlu0 %7305  ;;  %v9465_v55 = vld [vmem:[%s9616_s27 + $0x38] sm:$0xff] }
 0xf59   : > { %7453 = vmatprep.subr.bf16.mxu0 %v7424_v18  ;;  %v7421_v60 = vpack.c.bf16 %v7411_v31, %v7409_v21  ;;  %v7599_v57 = vmul.f32 %v13914_v47, %v13815_v37  ;;  %v7601_v33 = vmul.f32 %v13914_v47, %v15001_v24  ;;  %v7596_v11 = vmul.f32 %v13916_v36, %v15002_v38  ;;  %v9467_v31 = vld [vmem:[%s9616_s27 + $0x28] sm:$0xff] }
 0xf5a   : > { %v7610_v25 = vpack.c.bf16 %v7602_v19, %v7600_v46  ;;  %v7598_v3 = vmul.f32 %v13916_v36, %v15003_v40  ;;  %v7595_v54 = vmul.f32 %v13914_v47, %v15004_v0  ;;  %v7597_v37 = vmul.f32 %v13914_v47, %v15005_v16  ;;  %v9291_v47 = vld [vmem:[%s14468_s10 + $0x30] sm:$0xff]   ;;  %v9292_v36 = vld [vmem:[%s14468_s10 + $0x38] sm:$0xff]   ;;  %v7298_v26 = vpop.permute.xlu1 %7297  ;;  %v9468_v46 = vld [vmem:[%s9616_s27 + $0x20] sm:$0xff] }
 0xf5b   : > { %9085 = vmatmul.mubr.msk.bf16.vlgmr.msra.gmra.mxu0 %vm1111_vm8, %v9285_v61  ;;  %9093 = vmatmul.mubr.msk.bf16.vlgmr.msra.gmra.mxu1 %vm1111_vm8, %v9288_v62  ;;  %v7609_v52 = vpack.c.bf16 %v7601_v33, %v7599_v57  ;;  %v7315_v1 = vadd.f32 %v9465_v55, %v7306_v17  ;;  %v9466_v62 = vld [vmem:[%s9616_s27 + $0x30] sm:$0xff]  ;;  %v7312_v19 = vadd.f32 %v9468_v46, %v7302_v49  ;;  %v9471_v40 = vld [vmem:[%s9616_s27 + $0x8] sm:$0xff] }
 0xf5c   : > { %7454 = vmatpush1.bf16.msra.mxu0 %v7423_v35  ;;  %7390 = vmatprep.mubr.bf16.mxu0 %v14979_v43  ;;  %v7608_v14 = vpack.c.bf16 %v7598_v3, %v7596_v11  ;;  %v7607_v45 = vpack.c.bf16 %v7597_v37, %v7595_v54  ;;  %v7314_v35 = vadd.f32 %v9466_v62, %v7306_v17  ;;  %v9470_v33 = vld [vmem:[%s9616_s27 + $0x10] sm:$0xff]  ;;  %v9472_v54 = vld [vmem:[%s9616_s27] sm:$0xff] }
 0xf5d   : > { %7455 = vmatprep.subr.bf16.mxu0 %v7422_v8  ;;  %7576 = vmatprep.mubr.bf16.mxu1 %v14979_v43  ;;  %v7313_v8 = vadd.f32 %v9467_v31, %v7302_v49 }
 0xf5e   : > { %v7294_v57 = vpop.permute.xlu1 %7293 }
 0xf5f   : > { %v7309_v3 = vadd.f32 %v9471_v40, %v7294_v57  ;;  %v7308_v16 = vadd.f32 %v9472_v54, %v7294_v57 }
 0xf60   : > { %7456 = vmatpush1.bf16.msra.mxu0 %v7421_v60 }
 0xf61   : > { %7639 = vmatprep.subr.bf16.mxu0 %v7610_v25 }
 0xf63   : > { %9086 = vmatmul.mubr.msk.bf16.gmra.mxu0 %vm1111_vm8, %v9286_v7  ;;  %9094 = vmatmul.mubr.msk.bf16.gmra.mxu1 %vm1111_vm8, %v9290_v20  ;;  %v9469_v7 = vld [vmem:[%s9616_s27 + $0x18] sm:$0xff] }
 0xf64   : > { %7473 = vmatprep.mubr.bf16.mxu0 %v14979_v43  ;;  %7768 = vmatprep.mubr.f32.mxu1 %v9512_v44  ;;  %v7311_v20 = vadd.f32 %v9469_v7, %v7298_v26 }
 0xf6b   : > { %9089 = vmatmul.mubr.msk.bf16.vlgmr.msra.gmra.mxu0 %vm1111_vm8, %v9287_v59  ;;  %v7310_v59 = vadd.f32 %v9470_v33, %v7298_v26 }
 0xf6c   : > { %7640 = vmatpush1.bf16.msra.mxu0 %v7609_v52  ;;  %7483 = vmatprep.mubr.bf16.mxu0 %v14979_v43 }
 0xf6d   : > { %7641 = vmatprep.subr.bf16.mxu0 %v7608_v14 }
 0xf70   : > { %7642 = vmatpush1.bf16.msra.mxu0 %v7607_v45 }
 0xf73   : > { %9090 = vmatmul.mubr.msk.bf16.gmra.mxu0 %vm1111_vm8, %v9289_v30 }
 0xf74   : > { %7659 = vmatprep.mubr.bf16.mxu0 %v14979_v43 }
 0xf7b   : > { %9097 = vmatmul.mubr.msk.bf16.vlgmr.msra.gmra.mxu0 %vm1111_vm8, %v9291_v47 }
 0xf7c   : > { %7669 = vmatprep.mubr.bf16.mxu0 %v14979_v43 }
 0xf83   : > { %9098 = vmatmul.mubr.msk.bf16.gmra.mxu0 %vm1111_vm8, %v9292_v36 }
 0xf84   : > { %7889 = vmatprep.mubr.f32.mxu0 %v9512_v44 }
0x101b   : > { %v14022_v13 = vpop.f32.mrf.mxu0  ;;  %v14024_v56 = vpop.f32.mrf.mxu1 }
0x101d   : > { %v7384_v5 = vpop.f32.mrf.mxu0  ;;  %v14026_v2 = vpop.f32.mrf.mxu1 }
0x101f   : > { %v7386_v23 = vpop.f32.mrf.mxu0  ;;  %v14028_v48 = vpop.f32.mrf.mxu1 }
0x1020   : > { %v7403_v49 = vadd.f32 %v7386_v23, %v7310_v59 }
0x1021   : > { %v7388_v32 = vpop.f32.mrf.mxu0  ;;  %v7574_v4 = vpop.f32.mrf.mxu1 }
0x1022   : > { %v7404_v47 = vadd.f32 %v7388_v32, %v7311_v20 }
0x1023   : > { %v7392_v27 = vpop.f32.mrf.mxu0  ;;  %v7578_v50 = vpop.f32.mrf.mxu1 }
0x1024   : > { %v7405_v37 = vadd.f32 %v7392_v27, %v7312_v19 }
0x1025   : > { %v7394_v41 = vpop.f32.mrf.mxu0  ;;  %v7580_v18 = vpop.f32.mrf.mxu1 }
0x1026   : > { %v7406_v52 = vadd.f32 %v7394_v41, %v7313_v8 }
0x1027   : > { %v7396_v39 = vpop.f32.mrf.mxu0  ;;  %v7582_v60 = vpop.f32.mrf.mxu1 }
0x1028   : > { %v7407_v38 = vadd.f32 %v7396_v39, %v7314_v35  ;;  %v7401_v39 = vadd.f32 %v14022_v13, %v7308_v16 }
0x1029   : > { %v7398_v53 = vpop.f32.mrf.mxu0  ;;  %v7584_v45 = vpop.f32.mrf.mxu1 }
0x102a   : > { %v7408_v24 = vadd.f32 %v7398_v53, %v7315_v1  ;;  %v7402_v53 = vadd.f32 %v7384_v5, %v7309_v3 }
0x102b   : > { %v7475_v10 = vpop.f32.mrf.mxu0 }
0x102c   : > { %v7494_v27 = vadd.f32 %v7475_v10, %v7401_v39 }
0x102d   : > { %v7477_v6 = vpop.f32.mrf.mxu0 }
0x102e   : > { %v7587_v10 = vadd.f32 %v14024_v56, %v7494_v27  ;;  %v14080_v56 = vld [vmem:[%s14462_s4 + $0x8] sm:$0xff] }
0x102f   : > { %v7479_v58 = vpop.f32.mrf.mxu0 }
0x1030   : > { %v7496_v62 = vadd.f32 %v7479_v58, %v7403_v49 }
0x1031   : > { %v7481_v34 = vpop.f32.mrf.mxu0 }
0x1032   : > { %v7497_v1 = vadd.f32 %v7481_v34, %v7404_v47  ;;  %v7589_v5 = vadd.f32 %v14028_v48, %v7496_v62 }
0x1033   : > { %v7485_v28 = vpop.f32.mrf.mxu0 }
0x1034   : > { %v7498_v17 = vadd.f32 %v7485_v28, %v7405_v37  ;;  %v7590_v32 = vadd.f32 %v7574_v4, %v7497_v1  ;;  %v14088_v4 = vld [vmem:[%s14462_s4 + $0x10] sm:$0xff] }
0x1035   : > { %v7487_v22 = vpop.f32.mrf.mxu0 }
0x1036   : > { %v7499_v36 = vadd.f32 %v7487_v22, %v7406_v52  ;;  %v14096_v22 = vld [vmem:[%s14462_s4 + $0x18] sm:$0xff] }
0x1037   : > { %v7489_v42 = vpop.f32.mrf.mxu0 }
0x1038   : > { %v7500_v14 = vadd.f32 %v7489_v42, %v7407_v38  ;;  %v7592_v31 = vadd.f32 %v7580_v18, %v7499_v36  ;;  %v7591_v42 = vadd.f32 %v7578_v50, %v7498_v17 }
0x1039   : > { %v7491_v63 = vpop.f32.mrf.mxu0 }
0x103a   : > { %v7501_v0 = vadd.f32 %v7491_v63, %v7408_v24  ;;  %v7593_v35 = vadd.f32 %v7582_v60, %v7500_v14  ;;  %v7495_v63 = vadd.f32 %v7477_v6, %v7402_v53 }
0x103b   : > { %v14030_v15 = vpop.f32.mrf.mxu0 }
0x103c   : > { %v7594_v26 = vadd.f32 %v7584_v45, %v7501_v0  ;;  %v7588_v13 = vadd.f32 %v14026_v2, %v7495_v63  ;;  %v14064_v48 = vadd.f32 %v14030_v15, %v7587_v10  ;;  %v14070_v2 = vld [vmem:[%s14462_s4] sm:$0xff] }
0x103d   : > { %v7663_v61 = vpop.f32.mrf.mxu0 }
0x103e   : > { %v14060_v28 = vadd.f32 %v7663_v61, %v7588_v13 }
0x103f   : > { %v7665_v21 = vpop.f32.mrf.mxu0 }
0x1040   : > { %v14057_v58 = vadd.f32 %v7665_v21, %v7589_v5 }
0x1041   : > { %v7667_v25 = vpop.f32.mrf.mxu0 }
0x1042   : > { %v14053_v6 = vadd.f32 %v7667_v25, %v7590_v32 }
0x1043   : > { %v7671_v11 = vpop.f32.mrf.mxu0 }
0x1044   : > { %v14049_v34 = vadd.f32 %v7671_v11, %v7591_v42 }
0x1045   : > { %v7673_v30 = vpop.f32.mrf.mxu0 }
0x1046   : > { %v14045_v23 = vadd.f32 %v7673_v30, %v7592_v31 }
0x1047   : > { %v7675_v55 = vpop.f32.mrf.mxu0 }
0x1048   : > { %v14043_v46 = vadd.f32 %v7675_v55, %v7593_v35 }
0x1049   : > { %v7677_v41 = vpop.f32.mrf.mxu0 }
0x104a   : > { %v14041_v8 = vadd.f32 %v7677_v41, %v7594_v26 }
0x104c   : > { %7728 = vmatprep.subr.mxu1 %v14041_v8 }
0x104d   : > { %7729 = vmatpush1.msra.mxu1 %v14043_v46 }
0x104e   : > { %7730 = vmatprep.subr.mxu1 %v14045_v23 }
0x104f   : > { %7731 = vmatpush1.msra.mxu1 %v14049_v34 }
0x1050   : > { %7732 = vmatprep.subr.mxu1 %v14053_v6 }
0x1051   : > { %7733 = vmatpush1.msra.mxu1 %v14057_v58 }
0x1052   : > { %7734 = vmatprep.subr.mxu1 %v14060_v28 }
0x1053   : > { %7735 = vmatpush1.msra.mxu1 %v14064_v48 }
0x1054   : > { %9099 = vmatmul.mubr.msk.f32.vlgmr.msra.gmra.mxu1 %vm1111_vm8, %v14070_v2 }
0x1055   : > { %7774 = vmatprep.mubr.f32.mxu1 %v9512_v44 }
0x1058   : > { %9100 = vmatmul.mubr.msk.f32.gmra.mxu1 %vm1111_vm8, %v14080_v56 }
0x1059   : > { %7780 = vmatprep.mubr.f32.mxu1 %v9512_v44 }
0x105c   : > { %9101 = vmatmul.mubr.msk.f32.gmra.mxu1 %vm1111_vm8, %v14088_v4 }
0x105d   : > { %7786 = vmatprep.mubr.f32.mxu1 %v9512_v44 }
0x1060   : > { %9102 = vmatmul.mubr.msk.f32.gmra.mxu1 %vm1111_vm8, %v14096_v22 }
0x1061   : > { %8204 = vmatprep.mubr.bf16.mxu1 %v14979_v43 }
0x1114   : > { %v7770_v50 = vpop.f32.mrf.mxu1 }
0x1116   : > { %v7772_v15 = vpop.f32.mrf.mxu1 }
0x1117   : > { %v7793_v24 = vadd.f32 %v7772_v15, %v7770_v50 }
0x1118   : > { %v7776_v18 = vpop.f32.mrf.mxu1 }
0x111a   : > { %v7778_v61 = vpop.f32.mrf.mxu1 }
0x111b   : > { %v7796_v57 = vadd.f32 %v7778_v61, %v7776_v18 }
0x111c   : > { %v7782_v21 = vpop.f32.mrf.mxu1 }
0x111e   : > { %v7784_v19 = vpop.f32.mrf.mxu1 }
0x111f   : > { %v7799_v60 = vadd.f32 %v7784_v19, %v7782_v21 }
0x1120   : > { %v7788_v25 = vpop.f32.mrf.mxu1 }
0x1121   : > { %7800 = vadd.xlane.f32.xlu0 %v7799_v60 }
0x1122   : > { %v7790_v7 = vpop.f32.mrf.mxu1 }
0x1123   : > { %v7802_v20 = vadd.f32 %v7790_v7, %v7788_v25 }
0x1125   : > { %7803 = vadd.xlane.f32.xlu1 %v7802_v20 }
0x1129   : > { %7797 = vadd.xlane.f32.xlu1 %v7796_v57 }
0x112d   : > { %7794 = vadd.xlane.f32.xlu1 %v7793_v24 }
0x1137   : > { %8024 = vrot.lane.b32.xlu0 %v13897_v9, %s9513_s7 }
0x113e   : > { %8022 = vrot.lane.b32.xlu1 %v13903_v12, %s9513_s7 }
0x1142   : > { %8026 = vrot.lane.b32.xlu1 %v13885_v51, %s9513_s7 }
0x1146   : > { %8028 = vrot.lane.b32.xlu1 %v13891_v29, %s9513_s7 }
0x11aa   : > { %v7801_v33 = vpop.xlane.xlu0 %7800 }
0x11ab   : > { %v7807_v59 = vmul.f32 0.001953125, %v7801_v33 }
0x11ad   : > { %v14106_v40 = vsub.f32 %v14045_v23, %v7807_v59  ;;  %v14115_v0 = vsub.f32 %v14049_v34, %v7807_v59 }
0x11ae   : > { %v7804_v38 = vpop.xlane.xlu1 %7803  ;;  %v8025_v17 = vpop.permute.xlu0 %8024 }
0x11af   : > { %v7808_v11 = vmul.f32 0.001953125, %v7804_v38  ;;  %v7822_v47 = vmul.f32 %v14106_v40, %v14106_v40  ;;  %v7821_v36 = vmul.f32 %v14115_v0, %v14115_v0  ;;  %v8036_v62 = vsel %vm14662_vm11, %v8025_v17, 0.0 }
0x11b1   : > { %v14109_v3 = vsub.f32 %v14043_v46, %v7808_v11  ;;  %v14112_v52 = vsub.f32 %v14041_v8, %v7808_v11 }
0x11b2   : > { %v7798_v54 = vpop.xlane.xlu1 %7797 }
0x11b3   : > { %v7823_v16 = vmul.f32 %v14109_v3, %v14109_v3  ;;  %v7806_v37 = vmul.f32 0.001953125, %v7798_v54  ;;  %v7824_v14 = vmul.f32 %v14112_v52, %v14112_v52 }
0x11b5   : > { %v14122_v45 = vsub.f32 %v14057_v58, %v7806_v37  ;;  %v14125_v30 = vsub.f32 %v14053_v6, %v7806_v37  ;;  %7849 = vmatprep.subr.mxu0 %v7824_v14 }
0x11b6   : > { %7850 = vmatpush1.msra.mxu0 %v7823_v16  ;;  %v7795_v49 = vpop.xlane.xlu1 %7794  ;;  %v9515_v16 = vmov 10  }
0x11b7   : > { %v7819_v55 = vmul.f32 %v14122_v45, %v14122_v45  ;;  %v7805_v53 = vmul.f32 0.001953125, %v7795_v49  ;;  %7851 = vmatprep.subr.mxu0 %v7822_v47  ;;  %v7820_v1 = vmul.f32 %v14125_v30, %v14125_v30 }
0x11b8   : > { %7852 = vmatpush1.msra.mxu0 %v7821_v36 }
0x11b9   : > { %v14136_v26 = vsub.f32 %v14064_v48, %v7805_v53  ;;  %v14139_v39 = vsub.f32 %v14060_v28, %v7805_v53  ;;  %7853 = vmatprep.subr.mxu0 %v7820_v1 }
0x11ba   : > { %7854 = vmatpush1.msra.mxu0 %v7819_v55  ;;  %v8023_v35 = vpop.permute.xlu1 %8022 }
0x11bb   : > { %v7817_v41 = vmul.f32 %v14136_v26, %v14136_v26  ;;  %v7818_v63 = vmul.f32 %v14139_v39, %v14139_v39  ;;  %v8035_v31 = vsel %vm14662_vm11, %v8023_v35, 0.0 }
0x11bc   : > { %v8037_v27 = vadd.f32 %v8036_v62, %v8035_v31 }
0x11bd   : > { %7855 = vmatprep.subr.mxu0 %v7818_v63 }
0x11be   : > { %7856 = vmatpush1.msra.mxu0 %v7817_v41  ;;  %v8027_v42 = vpop.permute.xlu1 %8026 }
0x11bf   : > { %9103 = vmatmul.mubr.msk.f32.vlgmr.msra.gmra.mxu0 %vm1111_vm8, %v14070_v2  ;;  %v8038_v32 = vsel %vm14662_vm11, %v8027_v42, 0.0  ;;  %v9514_v2 = vmov 9  }
0x11c0   : > { %7895 = vmatprep.mubr.f32.mxu0 %v9512_v44  ;;  %v8039_v5 = vadd.f32 %v8038_v32, %v8037_v27  ;;  %9202 = vset.pattern.permute.xlu1 %v9514_v2 }
0x11c1   : > { %9203 = vset.pattern.permute.xlu0 %v9514_v2 }
0x11c2   : > { %v8029_v13 = vpop.permute.xlu1 %8028 }
0x11c3   : > { %9104 = vmatmul.mubr.msk.f32.gmra.mxu0 %vm1111_vm8, %v14080_v56  ;;  %v8040_v10 = vsel %vm14662_vm11, %v8029_v13, 0.0 }
0x11c4   : > { %7901 = vmatprep.mubr.f32.mxu0 %v9512_v44  ;;  %v8041_v50 = vadd.f32 %v8040_v10, %v8039_v5 }
0x11c6   : > { %8042 = vadd.xlane.f32.xlu1 %v8041_v50 }
0x11c7   : > { %9105 = vmatmul.mubr.msk.f32.gmra.mxu0 %vm1111_vm8, %v14088_v4 }
0x11c8   : > { %7907 = vmatprep.mubr.f32.mxu0 %v9512_v44 }
0x11cb   : > { %9106 = vmatmul.mubr.msk.f32.gmra.mxu0 %vm1111_vm8, %v14096_v22 }
0x11cc   : > { %8251 = vmatprep.mubr.bf16.mxu0 %v14979_v43 }
0x124f   : > { %v8043_v56 = vpop.xlane.xlu1 %8042 }
0x1250   : > { %v8044_v15 = vrot.slane %v8043_v56, 4 }
0x1252   : > { %v8045_v18 = vadd.f32 %v8044_v15, %v8043_v56 }
0x1254   : > { %v8046_v61 = vrot.slane %v8045_v18, 2 }
0x1256   : > { %v8047_v21 = vadd.f32 %v8046_v61, %v8045_v18 }
0x1258   : > { %v8048_v19 = vrot.slane %v8047_v21, 1 }
0x125a   : > { %v8049_v60 = vadd.f32 %v8048_v19, %v8047_v21 }
0x125c   : > { %9139 = vpush %v8049_v60 }
0x127f   : > { %v7891_v25 = vpop.f32.mrf.mxu0 }
0x1281   : > { %v7893_v4 = vpop.f32.mrf.mxu0 }
0x1282   : > { %v7914_v7 = vadd.f32 %v7893_v4, %v7891_v25 }
0x1283   : > { %v7897_v44 = vpop.f32.mrf.mxu0 }
0x1284   : > { %7915 = vadd.xlane.f32.xlu1 %v7914_v7 }
0x1285   : > { %v7899_v20 = vpop.f32.mrf.mxu0 }
0x1286   : > { %v7917_v11 = vadd.f32 %v7899_v20, %v7897_v44 }
0x1287   : > { %v7903_v22 = vpop.f32.mrf.mxu0 }
0x1289   : > { %v7905_v57 = vpop.f32.mrf.mxu0 }
0x128a   : > { %v7920_v24 = vadd.f32 %v7905_v57, %v7903_v22 }
0x128b   : > { %v7909_v33 = vpop.f32.mrf.mxu0 }
0x128c   : > { %7921 = vadd.xlane.f32.xlu0 %v7920_v24 }
0x128d   : > { %v7911_v59 = vpop.f32.mrf.mxu0  ;;  %s9140_s27 = spop %9139 }
0x128e   : > { %v7923_v38 = vadd.f32 %v7911_v59, %v7909_v33  ;;  %v8051_v54 = vstv %s9140_s27 }
0x128f   : > { %9377 = vrcp.f32 %v8051_v54 }
0x1290   : > { %7924 = vadd.xlane.f32.xlu0 %v7923_v38 }
0x1294   : > { %7918 = vadd.xlane.f32.xlu0 %v7917_v11 }
0x1295   : > { %7983 = vperm.xlu1 %9202, %v13885_v51  }
0x1299   : > { %7975 = vperm.xlu1 %9202, %v13903_v12  }
0x129c   : > { %v9378_v37 = vpop.eup %9377 }
0x129d   : > { %7979 = vperm.xlu1 %9202, %v13897_v9   ;;  %v8056_v14 = vmul.f32 %v13891_v29, %v9378_v37  ;;  %v8054_v47 = vmul.f32 %v13897_v9, %v9378_v37  ;;  %v8055_v36 = vmul.f32 %v13885_v51, %v9378_v37  ;;  %v8053_v49 = vmul.f32 %v13903_v12, %v9378_v37 }
0x12a1   : > { %9204 = vset.pattern.permute.xlu1 %v9515_v16 }
0x12a2   : > { %8007 = vperm.xlu1 %9204, %v13885_v51  }
0x12a6   : > { %8011 = vperm.xlu1 %9204, %v13891_v29  }
0x12aa   : > { %7999 = vperm.xlu1 %9204, %v13903_v12   ;;  %7987 = vperm.xlu0 %9203, %v13891_v29  }
0x12ae   : > { %8003 = vperm.xlu1 %9204, %v13897_v9   ;;  %8074 = vperm.xlu0 %9203, %v8056_v14  }
0x12b2   : > { %9205 = vset.pattern.permute.xlu1 %v9514_v2  ;;  %8064 = vperm.xlu0 %9203, %v8054_v47  }
0x12b3   : > { %8069 = vperm.xlu1 %9205, %v8055_v36  }
0x12b7   : > { %8059 = vperm.xlu1 %9205, %v8053_v49  }
0x130d   : > { %v7916_v17 = vpop.xlane.xlu1 %7915 }
0x130e   : > { %v7926_v55 = vmul.f32 0.0019569471, %v7916_v17 }
0x1310   : > { %9379 = vrsqrt.f32 %v7926_v55  ;;  %vm7932_vm8 = vcmp.eq.f32.partialorder %v7926_v55, inf  ;;  %v7935_v42 = vand.u32 2147483648, %v7926_v55  ;;  %vm7934_vm12 = vcmp.eq.f32.partialorder %v7926_v55, 0.0 }
0x1311   : > { %v14173_v53 = vpop.permute.xlu1 %7983 }
0x1315   : > { %v7922_v1 = vpop.xlane.xlu0 %7921  ;;  %v7976_v29 = vpop.permute.xlu1 %7975 }
0x1316   : > { %v7928_v62 = vmul.f32 0.0019569471, %v7922_v1 }
0x1318   : > { %9381 = vrsqrt.f32 %v7928_v62  ;;  %vm7946_vm13 = vcmp.eq.f32.partialorder %v7928_v62, inf  ;;  %v7949_v15 = vand.u32 2147483648, %v7928_v62  ;;  %vm7948_vm10 = vcmp.eq.f32.partialorder %v7928_v62, 0.0 }
0x1319   : > { %v7925_v35 = vpop.xlane.xlu0 %7924  ;;  %v14175_v41 = vpop.permute.xlu1 %7979 }
0x131a   : > { %v7929_v9 = vmul.f32 0.0019569471, %v7925_v35 }
0x131c   : > { %9383 = vrsqrt.f32 %v7929_v9  ;;  %vm7953_vm14 = vcmp.eq.f32.partialorder %v7929_v9, inf  ;;  %v7956_v4 = vand.u32 2147483648, %v7929_v9  ;;  %vm7955_vm15 = vcmp.eq.f32.partialorder %v7929_v9, 0.0 }
0x131d   : > { %v9380_v51 = vpop.eup %9379  ;;  %v7919_v63 = vpop.xlane.xlu0 %7918 }
0x131e   : > { %v8008_v31 = vpop.permute.xlu1 %8007  ;;  %v7931_v27 = vmul.f32 %v9380_v51, %v7926_v55  ;;  %v7927_v12 = vmul.f32 0.0019569471, %v7919_v63 }
0x1320   : > { %v7933_v32 = vsel %vm7932_vm8, %v7926_v55, %v7931_v27  ;;  %9385 = vrsqrt.f32 %v7927_v12  ;;  %vm7939_vm8 = vcmp.eq.f32.partialorder %v7927_v12, inf  ;;  %v7942_v24 = vand.u32 2147483648, %v7927_v12 }
0x1321   : > { %v7936_v5 = vsel %vm7934_vm12, %v7935_v42, %v7933_v32  ;;  %vm7941_vm12 = vcmp.eq.f32.partialorder %v7927_v12, 0.0 }
0x1322   : > { %v14177_v13 = vpop.permute.xlu1 %8011  ;;  %v7958_v10 = vadd.f32 1e-10, %v7936_v5 }
0x1324   : > { %9387 = vrcp.f32 %v7958_v10 }
0x1325   : > { %v9382_v50 = vpop.eup %9381 }
0x1326   : > { %v8000_v2 = vpop.permute.xlu1 %7999  ;;  %v7945_v56 = vmul.f32 %v9382_v50, %v7928_v62 }
0x1328   : > { %v7947_v18 = vsel %vm7946_vm13, %v7928_v62, %v7945_v56 }
0x1329   : > { %v9384_v61 = vpop.eup %9383  ;;  %v7950_v21 = vsel %vm7948_vm10, %v7949_v15, %v7947_v18 }
0x132a   : > { %v7960_v19 = vadd.f32 1e-10, %v7950_v21  ;;  %v7952_v60 = vmul.f32 %v9384_v61, %v7929_v9  ;;  %v14179_v25 = vpop.permute.xlu1 %8003 }
0x132c   : > { %9389 = vrcp.f32 %v7960_v19  ;;  %v7954_v7 = vsel %vm7953_vm14, %v7929_v9, %v7952_v60  ;;  %v7988_v9 = vpop.permute.xlu0 %7987 }
0x132d   : > { %v9386_v44 = vpop.eup %9385  ;;  %v7957_v20 = vsel %vm7955_vm15, %v7956_v4, %v7954_v7 }
0x132e   : > { %v7938_v22 = vmul.f32 %v9386_v44, %v7927_v12  ;;  %v7961_v57 = vadd.f32 1e-10, %v7957_v20  ;;  %v8070_v59 = vpop.permute.xlu1 %8069 }
0x1330   : > { %v7940_v33 = vsel %vm7939_vm8, %v7927_v12, %v7938_v22  ;;  %9391 = vrcp.f32 %v7961_v57  ;;  %v8075_v56 = vpop.permute.xlu0 %8074 }
0x1331   : > { %v9388_v38 = vpop.eup %9387  ;;  %v7943_v11 = vsel %vm7941_vm12, %v7942_v24, %v7940_v33 }
0x1332   : > { %v7966_v54 = vmul.f32 %v9388_v38, %v14136_v26  ;;  %v7967_v16 = vmul.f32 %v9388_v38, %v14139_v39  ;;  %v7959_v37 = vadd.f32 1e-10, %v7943_v11  ;;  %v8060_v49 = vpop.permute.xlu1 %8059 }
0x1334   : > { %v7990_v14 = vmul.f32 %v7976_v29, %v7966_v54  ;;  %v7991_v47 = vmul.f32 %v7976_v29, %v7967_v16  ;;  %9393 = vrcp.f32 %v7959_v37  ;;  %v8065_v44 = vpop.permute.xlu0 %8064 }
0x1336   : > { %v8014_v36 = vadd.f32 %v8000_v2, %v7990_v14  ;;  %v8015_v17 = vadd.f32 %v8000_v2, %v7991_v47 }
0x1338   : > { %v8077_v1 = vmul.f32 %v8060_v49, %v8014_v36  ;;  %v8078_v51 = vmul.f32 %v8060_v49, %v8015_v17 }
0x1339   : > { %v9390_v55 = vpop.eup %9389 }
0x133a   : > { %v7970_v62 = vmul.f32 %v9390_v55, %v14115_v0  ;;  %v7971_v35 = vmul.f32 %v9390_v55, %v14106_v40  ;;  %v9107_v27 = vmul.f32 -1.442695, %v8077_v1  ;;  %v9108_v5 = vmul.f32 -1.442695, %v8078_v51 }
0x133c   : > { %v7994_v63 = vmul.f32 %v14173_v53, %v7970_v62  ;;  %v7995_v26 = vmul.f32 %v14173_v53, %v7971_v35  ;;  %9395 = vpow2.f32 %v9107_v27 }
0x133d   : > { %v9392_v39 = vpop.eup %9391  ;;  %9397 = vpow2.f32 %v9108_v5 }
0x133e   : > { %v8018_v12 = vadd.f32 %v8008_v31, %v7994_v63  ;;  %v8019_v29 = vadd.f32 %v8008_v31, %v7995_v26  ;;  %v7972_v42 = vmul.f32 %v9392_v39, %v14109_v3  ;;  %v7973_v32 = vmul.f32 %v9392_v39, %v14112_v52 }
0x1340   : > { %v7996_v10 = vmul.f32 %v7988_v9, %v7972_v42  ;;  %v7997_v50 = vmul.f32 %v7988_v9, %v7973_v32  ;;  %v8081_v0 = vmul.f32 %v8070_v59, %v8018_v12  ;;  %v8082_v2 = vmul.f32 %v8070_v59, %v8019_v29 }
0x1341   : > { %v9394_v40 = vpop.eup %9393 }
0x1342   : > { %v7968_v15 = vmul.f32 %v9394_v40, %v14122_v45  ;;  %v7969_v53 = vmul.f32 %v9394_v40, %v14125_v30  ;;  %v9111_v18 = vmul.f32 -1.442695, %v8081_v0  ;;  %v9112_v61 = vmul.f32 -1.442695, %v8082_v2 }
0x1343   : > { %v8020_v31 = vadd.f32 %v14177_v13, %v7996_v10  ;;  %v8021_v3 = vadd.f32 %v14177_v13, %v7997_v50 }
0x1344   : > { %v7992_v52 = vmul.f32 %v14175_v41, %v7968_v15  ;;  %v7993_v21 = vmul.f32 %v14175_v41, %v7969_v53  ;;  %9399 = vpow2.f32 %v9111_v18 }
0x1345   : > { %9401 = vpow2.f32 %v9112_v61  ;;  %v8083_v19 = vmul.f32 %v8075_v56, %v8020_v31  ;;  %v8084_v60 = vmul.f32 %v8075_v56, %v8021_v3 }
0x1346   : > { %v8016_v4 = vadd.f32 %v14179_v25, %v7992_v52  ;;  %v8017_v45 = vadd.f32 %v14179_v25, %v7993_v21 }
0x1347   : > { %v9113_v30 = vmul.f32 -1.442695, %v8083_v19  ;;  %v9114_v7 = vmul.f32 -1.442695, %v8084_v60 }
0x1348   : > { %v8079_v20 = vmul.f32 %v8065_v44, %v8016_v4  ;;  %v8080_v22 = vmul.f32 %v8065_v44, %v8017_v45 }
0x1349   : > { %9403 = vpow2.f32 %v9113_v30  ;;  %v9396_v24 = vpop.eup %9395 }
0x134a   : > { %9405 = vpow2.f32 %v9114_v7  ;;  %v9109_v13 = vmul.f32 -1.442695, %v8079_v20  ;;  %v9110_v57 = vmul.f32 -1.442695, %v8080_v22  ;;  %v9398_v41 = vpop.eup %9397  ;;  %v8109_v54 = vadd.f32 1.0, %v9396_v24 }
0x134b   : > { %v8110_v25 = vadd.f32 1.0, %v9398_v41 }
0x134c   : > { %9407 = vpow2.f32 %v9109_v13 }
0x134d   : > { %9409 = vpow2.f32 %v9110_v57 }
0x1351   : > { %v9400_v33 = vpop.eup %9399 }
0x1352   : > { %v9402_v59 = vpop.eup %9401  ;;  %v8113_v38 = vadd.f32 1.0, %v9400_v33  ;;  %v9293_v33 = vld [vmem:[%s14472_s14] sm:$0xff]  }
0x1353   : > { %v8114_v11 = vadd.f32 1.0, %v9402_v59  ;;  %v9296_v59 = vld [vmem:[%s14472_s14 + $0x8] ss:$0 sps:$4 sm:$0xff]  }
0x1354   : > { %9411 = vrcp.f32 %v8113_v38  ;;  %v8470_v38 = vld [vmem:[%s14463_s5] sm:$0xff] }
0x1355   : > { %9413 = vrcp.f32 %v8114_v11  ;;  %v9516_v11 = vmov 8  }
0x1356   : > { %v9404_v16 = vpop.eup %9403  ;;  %9415 = vrcp.f32 %v8109_v54  ;;  %9206 = vset.pattern.permute.xlu1 %v9516_v11  ;;  %9207 = vset.pattern.permute.xlu0 %v9516_v11  ;;  %v8471_v54 = vld [vmem:[%s14463_s5 + $0x8] sm:$0xff] }
0x1357   : > { %v9406_v37 = vpop.eup %9405  ;;  %v8115_v14 = vadd.f32 1.0, %v9404_v16  ;;  %9417 = vrcp.f32 %v8110_v25  ;;  %v8472_v25 = vld [vmem:[%s14463_s5 + $0x10] sm:$0xff]  ;;  %v8473_v16 = vld [vmem:[%s14463_s5 + $0x18] sm:$0xff] }
0x1358   : > { %v8116_v47 = vadd.f32 1.0, %v9406_v37  ;;  %v9123_v37 = vld [vmem:[%s14459_s1 + $0x10] ss:$8 sm:$0x3] }
0x1359   : > { %9419 = vrcp.f32 %v8115_v14  ;;  %v9408_v36 = vpop.eup %9407 }
0x135a   : > { %9421 = vrcp.f32 %v8116_v47  ;;  %v9410_v49 = vpop.eup %9409  ;;  %v8111_v17 = vadd.f32 1.0, %v9408_v36  ;;  %v15006_v47 = vld [vmem:[#allocation6_spill] sm:$0xff] }
0x135b   : > { %v8112_v55 = vadd.f32 1.0, %v9410_v49  ;;  %v8427_v36 = vrot.slane %v9123_v37, %v15006_v47  ;;  %v15007_v49 = vld [vmem:[#allocation5_spill] sm:$0xff] }
0x135c   : > { %9423 = vrcp.f32 %v8111_v17  ;;  %v8431_v17 = vrot.slane %v9123_v37, %v15007_v49 }
0x135d   : > { %9425 = vrcp.f32 %v8112_v55 }
0x1361   : > { %v9412_v1 = vpop.eup %9411 }
0x1362   : > { %v9414_v62 = vpop.eup %9413  ;;  %vm8137_vm13 = vcmp.ge.f32.partialorder %v9412_v1, 0.5  ;;  %v9295_v1 = vld [vmem:[%s14469_s11 + $0x8] sm:$0xff]  }
0x1363   : > { %v9416_v35 = vpop.eup %9415  ;;  %vm8138_vm10 = vcmp.ge.f32.partialorder %v9414_v62, 0.5  ;;  %v8145_v26 = vsel %vm8137_vm13, %v14049_v34, 0.0 }
0x1364   : > { %v9418_v9 = vpop.eup %9417  ;;  %vm8133_vm15 = vcmp.ge.f32.partialorder %v9416_v35, 0.5  ;;  %v8146_v39 = vsel %vm8138_vm10, %v14045_v23, 0.0  ;;  %v8153_v42 = vsub.f32 %v14049_v34, %v8145_v26  ;;  %vm8583_vm10 = vcmask 64512  }
0x1365   : > { %vm8134_vm12 = vcmp.ge.f32.partialorder %v9418_v9, 0.5  ;;  %v8141_v29 = vsel %vm8133_vm15, %v14064_v48, 0.0  ;;  %v8154_v5 = vsub.f32 %v14045_v23, %v8146_v39 }
0x1366   : > { %v9420_v51 = vpop.eup %9419  ;;  %v8142_v50 = vsel %vm8134_vm12, %v14060_v28, 0.0  ;;  %v8149_v56 = vsub.f32 %v14064_v48, %v8141_v29  ;;  %v8157_v53 = vadd.f32 %v8153_v42, %v8141_v29 }
0x1367   : > { %v9422_v63 = vpop.eup %9421  ;;  %vm8139_vm14 = vcmp.ge.f32.partialorder %v9420_v51, 0.5  ;;  %v8158_v23 = vadd.f32 %v8154_v5, %v8142_v50  ;;  %v8150_v31 = vsub.f32 %v14060_v28, %v8142_v50 }
0x1368   : > { %vm8140_vm8 = vcmp.ge.f32.partialorder %v9422_v63, 0.5  ;;  %v8147_v27 = vsel %vm8139_vm14, %v14043_v46, 0.0  ;;  %v8161_v52 = vadd.f32 %v8149_v56, %v8145_v26  ;;  %v9121_v26 = vld [vmem:[%s14459_s1 + $0x6] ss:$8 sm:$0x3] }
0x1369   : > { %v8148_v12 = vsel %vm8140_vm8, %v14041_v8, 0.0  ;;  %v9424_v32 = vpop.eup %9423  ;;  %v8155_v0 = vsub.f32 %v14043_v46, %v8147_v27  ;;  %v8162_v19 = vadd.f32 %v8150_v31, %v8146_v39  ;;  %v9122_v39 = vld [vmem:[%s14459_s1 + $0x7] ss:$8 sm:$0x3]  ;;  %v8383_v42 = vrot.slane %v9121_v26, %v15006_v47 }
0x136a   : > { %v9426_v10 = vpop.eup %9425  ;;  %vm8135_vm11 = vcmp.ge.f32.partialorder %v9424_v32, 0.5  ;;  %v8156_v2 = vsub.f32 %v14041_v8, %v8148_v12  ;;  %v8387_v32 = vrot.slane %v9121_v26, %v15007_v49  ;;  %v8409_v50 = vrot.slane %v9122_v39, %v15007_v49 }
0x136b   : > { %vm8136_vm13 = vcmp.ge.f32.partialorder %v9426_v10, 0.5  ;;  %v8143_v40 = vsel %vm8135_vm11, %v14057_v58, 0.0  ;;  %vm8168_vm11 = vcmask 130048   ;;  %v8405_v10 = vrot.slane %v9122_v39, %v15006_v47 }
0x136c   : > { %v8144_v15 = vsel %vm8136_vm13, %v14053_v6, 0.0  ;;  %v8159_v34 = vadd.f32 %v8155_v0, %v8143_v40  ;;  %v8151_v18 = vsub.f32 %v14057_v58, %v8143_v40  ;;  %v8165_v58 = vld [vmem:[%s14470_s12] sm:$0xf] }
0x136d   : > { %v8160_v61 = vadd.f32 %v8156_v2, %v8144_v15  ;;  %v8152_v3 = vsub.f32 %v14053_v6, %v8144_v15  ;;  %v8213_v6 = vld [vmem:[%s14471_s13] sm:$0xf]  ;;  %v9120_v2 = vld [vmem:[%s14459_s1 + $0x5] ss:$8 sm:$0x3] }
0x136e   : > { %v8166_v46 = vpack.c.bf16 %v8159_v34, %v8157_v53  ;;  %v8163_v21 = vadd.f32 %v8151_v18, %v8147_v27  ;;  %v8361_v18 = vrot.slane %v9120_v2, %v15006_v47 }
0x136f   : > { %v8167_v8 = vpack.c.bf16 %v8160_v61, %v8158_v23  ;;  %v8164_v60 = vadd.f32 %v8152_v3, %v8148_v12  ;;  %v8365_v23 = vrot.slane %v9120_v2, %v15007_v49 }
0x1370   : > { %v8214_v4 = vpack.c.bf16 %v8163_v21, %v8161_v52 }
0x1371   : > { %8186 = vmatprep.subr.bf16.mxu1 %v8167_v8  ;;  %v8215_v48 = vpack.c.bf16 %v8164_v60, %v8162_v19 }
0x1372   : > { %8187 = vmatpush1.bf16.msra.mxu1 %v8166_v46 }
0x1373   : > { %8233 = vmatprep.subr.bf16.mxu0 %v8215_v48 }
0x1374   : > { %8234 = vmatpush1.bf16.msra.mxu0 %v8214_v4 }
0x1375   : > { %9115 = vmatmul.mubr.msk.bf16.vlgmr.msra.gmra.mxu1 %vm8168_vm11, %v8165_v58 }
0x1376   : > { %8549 = vmatprep.mubr.bf16.mxu1 %v14979_v43 }
0x1377   : > { %9116 = vmatmul.mubr.msk.bf16.vlgmr.msra.gmra.mxu0 %vm8168_vm11, %v8213_v6 }
0x1378   : > { %8628 = vmatprep.mubr.bf16.mxu0 %v14979_v43 }
0x1435   : > { %v14221_v28 = vpop.f32.mrf.mxu1 }
0x1436   : > { %8417 = vrot.lane.b32.xlu1 %v14221_v28, %s14833_s22 }
0x1437   : > { %v14225_v45 = vpop.f32.mrf.mxu1  ;;  %v14241_v44 = vpop.f32.mrf.mxu0 }
0x1438   : > { %8419 = vrot.lane.b32.xlu0 %v14225_v45, %s14833_s22  ;;  %v8573_v20 = vpack.c.bf16 %v14241_v44, %v14241_v44  ;;  %s534_s22 = scalar_lea.vmem %s14474_s16, %s9610_s23 }
0x1439   : > { %v8210_v30 = vpop.f32.mrf.mxu1  ;;  %v14249_v22 = vpop.f32.mrf.mxu0 }
0x143a   : > { %8373 = vrot.lane.b32.xlu1 %v14221_v28, %s14736_s25  ;;  %v8574_v13 = vpack.c.bf16 %v14249_v22, %v14249_v22  ;;  %v8591_v57 = vsel %vm1248_vm9, %v8573_v20, 0  ;;  %v9118_v30 = vld [vmem:[%s14459_s1 + $0x2] ss:$8 sm:$0x3] }
0x143b   : > { %v8211_v7 = vpop.f32.mrf.mxu1  ;;  %v8257_v24 = vpop.f32.mrf.mxu0 }
0x143c   : > { %8375 = vrot.lane.b32.xlu0 %v14225_v45, %s14736_s25  ;;  %9131 = vmatprep.subr.msk.bf16.mxu0 %vm1248_vm9, %v8574_v13  ;;  %v9119_v7 = vld [vmem:[%s14459_s1 + $0x3] ss:$8 sm:$0x3]  ;;  %v8315_v24 = vrot.slane %v9118_v30, %v15006_v47  ;;  %s14421_s25 = scalar_lea.vmem %s14473_s15, %s9610_s23 }
0x143d   : > { %8611 = vmatpush1.bf16.msra.mxu0 %v8591_v57  ;;  %v8258_v41 = vpop.f32.mrf.mxu0 }
0x143e   : > { %8395 = vrot.lane.b32.xlu1 %v14221_v28, %s14832_s20  ;;  %v8319_v41 = vrot.slane %v9118_v30, %v15007_v49 }
0x1440   : > { %8397 = vrot.lane.b32.xlu0 %v14225_v45, %s14832_s20  ;;  %9132 = vmatmul.mubr.msk.bf16.vlgmr.msra.gmra.mxu0 %vm8583_vm10, %v9293_v33 }
0x1441   : > { %8638 = vmatprep.mubr.bf16.mxu0 %v14979_v43 }
0x1442   : > { %8351 = vrot.lane.b32.xlu1 %v14221_v28, %s14739_s26 }
0x1444   : > { %8353 = vrot.lane.b32.xlu0 %v14225_v45, %s14739_s26 }
0x1446   : > { %8305 = vrot.lane.b32.xlu1 %v14221_v28, %s14837_s0 }
0x1448   : > { %8307 = vrot.lane.b32.xlu0 %v14225_v45, %s14837_s0  ;;  %9133 = vmatmul.mubr.msk.bf16.gmra.mxu0 %vm8583_vm10, %v9296_v59  ;;  %v8337_v59 = vrot.slane %v9119_v7, %v15006_v47 }
0x144a   : > { %8327 = vrot.lane.b32.xlu1 %v14221_v28, %s14835_s30 }
0x144c   : > { %8329 = vrot.lane.b32.xlu0 %v14225_v45, %s14835_s30 }
0x144e   : > { %8261 = vrot.lane.b32.xlu1 %v14221_v28, %s14839_s24 }
0x1450   : > { %8263 = vrot.lane.b32.xlu0 %v14225_v45, %s14839_s24 }
0x1452   : > { %8283 = vrot.lane.b32.xlu1 %v14221_v28, %s14838_s17 }
0x1454   : > { %8285 = vrot.lane.b32.xlu0 %v14225_v45, %s14838_s17 }
0x1456   : > { %8476 = vperm.xlu1 %9206, %v8470_v38   ;;  %v8341_v38 = vrot.slane %v9119_v7, %v15007_v49 }
0x1458   : > { %8481 = vperm.xlu0 %9207, %v8471_v54  }
0x145a   : > { %8486 = vperm.xlu1 %9206, %v8472_v25  }
0x145e   : > { %8491 = vperm.xlu1 %9206, %v8473_v16  }
0x14a8   : > { %v8418_v14 = vpop.permute.xlu1 %8417 }
0x14aa   : > { %v8420_v55 = vpop.permute.xlu0 %8419 }
0x14ab   : > { %v8421_v62 = vsel %vm949_vm7, %v8418_v14, %v8420_v55  ;;  %v8422_v35 = vsel %vm949_vm7, %v8420_v55, %v8418_v14  ;;  %v8260_v55 = vld [vmem:[%s14459_s1] ss:$8 sm:$0x3] }
0x14ac   : > { %v8434_v9 = vmul.f32 %v8427_v36, %v8421_v62  ;;  %v8435_v51 = vmul.f32 %v8431_v17, %v8422_v35  ;;  %v8374_v63 = vpop.permute.xlu1 %8373  ;;  %v9117_v62 = vld [vmem:[%s14459_s1 + $0x1] ss:$8 sm:$0x3]  ;;  %v8275_v26 = vrot.slane %v8260_v55, %v15007_v49 }
0x14ad   : > { %v8293_v39 = vrot.slane %v9117_v62, %v15006_v47 }
0x14ae   : > { %v8468_v27 = vpack.c.bf16 %v8434_v9, %v8434_v9  ;;  %v8469_v12 = vpack.c.bf16 %v8435_v51, %v8435_v51  ;;  %v8376_v29 = vpop.permute.xlu0 %8375 }
0x14af   : > { %v8377_v40 = vsel %vm841_vm5, %v8374_v63, %v8376_v29  ;;  %v8378_v56 = vsel %vm841_vm5, %v8376_v29, %v8374_v63  ;;  %v8271_v63 = vrot.slane %v8260_v55, %v15006_v47 }
0x14b0   : > { %v8396_v5 = vpop.permute.xlu1 %8395  ;;  %9126 = vmatprep.subr.msk.bf16.mxu1 %vm1248_vm9, %v8469_v12  ;;  %v8512_v0 = vsel %vm1248_vm9, %v8468_v27, 0  ;;  %v8390_v61 = vmul.f32 %v8383_v42, %v8377_v40  ;;  %v8391_v31 = vmul.f32 %v8387_v32, %v8378_v56  ;;  %v8297_v27 = vrot.slane %v9117_v62, %v15007_v49  ;;  %v9294_v56 = vld [vmem:[%s14469_s11] sm:$0xff]  }
0x14b1   : > { %8524 = vmatpush1.bf16.msra.mxu1 %v8512_v0 }
0x14b2   : > { %v8398_v15 = vpop.permute.xlu0 %8397 }
0x14b3   : > { %v8399_v53 = vsel %vm895_vm4, %v8396_v5, %v8398_v15  ;;  %v8400_v34 = vsel %vm895_vm4, %v8398_v15, %v8396_v5 }
0x14b4   : > { %v8412_v3 = vmul.f32 %v8405_v10, %v8399_v53  ;;  %v8413_v46 = vmul.f32 %v8409_v50, %v8400_v34  ;;  %v8352_v52 = vpop.permute.xlu1 %8351 }
0x14b6   : > { %v8466_v21 = vpack.c.bf16 %v8412_v3, %v8390_v61  ;;  %v8354_v8 = vpop.permute.xlu0 %8353  ;;  %v8467_v19 = vpack.c.bf16 %v8413_v46, %v8391_v31 }
0x14b7   : > { %v8355_v60 = vsel %vm787_vm6, %v8352_v52, %v8354_v8  ;;  %v8356_v4 = vsel %vm787_vm6, %v8354_v8, %v8352_v52 }
0x14b8   : > { %v8368_v48 = vmul.f32 %v8361_v18, %v8355_v60  ;;  %v8369_v58 = vmul.f32 %v8365_v23, %v8356_v4  ;;  %v8306_v6 = vpop.permute.xlu1 %8305  ;;  %8525 = vmatprep.subr.bf16.mxu1 %v8467_v19 }
0x14b9   : > { %8526 = vmatpush1.bf16.msra.mxu1 %v8466_v21 }
0x14ba   : > { %v8464_v20 = vpack.c.bf16 %v8368_v48, %v14221_v28  ;;  %v8308_v13 = vpop.permute.xlu0 %8307  ;;  %v8465_v57 = vpack.c.bf16 %v8369_v58, %v14225_v45 }
0x14bb   : > { %v8309_v11 = vsel %vm671_vm1, %v8306_v6, %v8308_v13  ;;  %v8310_v54 = vsel %vm671_vm1, %v8308_v13, %v8306_v6  ;;  %vm15009_vm1 = vcmask 7168  }
0x14bc   : > { %v8328_v33 = vpop.permute.xlu1 %8327  ;;  %8527 = vmatprep.subr.bf16.mxu1 %v8465_v57  ;;  %v8322_v16 = vmul.f32 %v8315_v24, %v8310_v54  ;;  %v8323_v37 = vmul.f32 %v8319_v41, %v8309_v11  ;;  %vm15012_vm4 = vmmov %vm15009_vm1 }
0x14bd   : > { %8528 = vmatpush1.bf16.msra.mxu1 %v8464_v20  ;;  %vm15013_vm5 = vmmov %vm15009_vm1 }
0x14be   : > { %v8330_v28 = vpop.permute.xlu0 %8329  ;;  %vm15014_vm6 = vmmov %vm15009_vm1 }
0x14bf   : > { %v8331_v45 = vsel %vm725_vm0, %v8328_v33, %v8330_v28  ;;  %v8332_v25 = vsel %vm725_vm0, %v8330_v28, %v8328_v33  ;;  %vm8504_vm0 = vcmask 588800   ;;  %vm15015_vm7 = vmmov %vm15009_vm1 }
0x14c0   : > { %v8344_v14 = vmul.f32 %v8337_v59, %v8332_v25  ;;  %v8345_v36 = vmul.f32 %v8341_v38, %v8331_v45  ;;  %v8262_v17 = vpop.permute.xlu1 %8261  ;;  %vm15016_vm9 = vmmov %vm15009_vm1 }
0x14c2   : > { %v8462_v35 = vpack.c.bf16 %v8344_v14, %v8322_v16  ;;  %v8264_v9 = vpop.permute.xlu0 %8263  ;;  %v8463_v51 = vpack.c.bf16 %v8345_v36, %v8323_v37  ;;  %v8672_v37 = vadd.f32 %v14249_v22, %v14241_v44 }
0x14c3   : > { %v8265_v12 = vsel %vm563_vm3, %v8262_v17, %v8264_v9  ;;  %v8266_v29 = vsel %vm563_vm3, %v8264_v9, %v8262_v17  ;;  %vm15011_vm3 = vmmov %vm15009_vm1 }
0x14c4   : > { %8529 = vmatprep.subr.bf16.mxu1 %v8463_v51  ;;  %v8284_v42 = vpop.permute.xlu1 %8283  ;;  %v8278_v50 = vmul.f32 %v8271_v63, %v8266_v29  ;;  %v8279_v0 = vmul.f32 %v8275_v26, %v8265_v12 }
0x14c5   : > { %8530 = vmatpush1.bf16.msra.mxu1 %v8462_v35 }
0x14c6   : > { %v8286_v32 = vpop.permute.xlu0 %8285 }
0x14c7   : > { %v8287_v5 = vsel %vm617_vm2, %v8284_v42, %v8286_v32  ;;  %v8288_v10 = vsel %vm617_vm2, %v8286_v32, %v8284_v42  ;;  %vm15010_vm2 = vmmov %vm15009_vm1 }
0x14c8   : > { %v8300_v47 = vmul.f32 %v8293_v39, %v8288_v10  ;;  %v8301_v2 = vmul.f32 %v8297_v27, %v8287_v5 }
0x14ca   : > { %v8460_v49 = vpack.c.bf16 %v8300_v47, %v8278_v50  ;;  %v8461_v40 = vpack.c.bf16 %v8301_v2, %v8279_v0 }
0x14cc   : > { %8531 = vmatprep.subr.bf16.mxu1 %v8461_v40 }
0x14cd   : > { %8532 = vmatpush1.bf16.msra.mxu1 %v8460_v49 }
0x14d0   : > { %9127 = vmatmul.mubr.msk.bf16.vlgmr.msra.gmra.mxu1 %vm8504_vm0, %v9294_v56 }
0x14d1   : > { %8559 = vmatprep.mubr.bf16.mxu1 %v14979_v43  ;;  %v8477_v8 = vpop.permute.xlu1 %8476 }
0x14d3   : > { %v8482_v48 = vpop.permute.xlu0 %8481 }
0x14d5   : > { %v8487_v13 = vpop.permute.xlu1 %8486 }
0x14d8   : > { %9128 = vmatmul.mubr.msk.bf16.gmra.mxu1 %vm8504_vm0, %v9295_v1 }
0x14d9   : > { %v8492_v54 = vpop.permute.xlu1 %8491 }
0x1500   : > { %v14369_v15 = vpop.f32.mrf.mxu0 }
0x1502   : > { %v14371_v53 = vpop.f32.mrf.mxu0 }
0x1503   : > { %v8663_v34 = vadd.f32 %v14371_v53, %v14369_v15 }
0x1504   : > { %v14375_v18 = vpop.f32.mrf.mxu0 }
0x1505   : > { %8664 = vadd.xlane.f32.xlu1 %v8663_v34 }
0x1506   : > { %v14377_v23 = vpop.f32.mrf.mxu0 }
0x1507   : > { %v8666_v43 = vadd.f32 %v14377_v23, %v14375_v18 }
0x1508   : > { %v14381_v61 = vpop.f32.mrf.mxu0 }
0x1509   : > { %8667 = vadd.xlane.f32.xlu0 %v8666_v43 }
0x150a   : > { %v14383_v31 = vpop.f32.mrf.mxu0 }
0x150b   : > { %v8669_v59 = vadd.f32 %v14383_v31, %v14381_v61 }
0x150c   : > { %v8644_v3 = vpop.f32.mrf.mxu0 }
0x150e   : > { %v8645_v46 = vpop.f32.mrf.mxu0 }
0x158e   : > { %v8665_v17 = vpop.xlane.xlu1 %8664 }
0x158f   : > { %v8675_v12 = vmul.f32 0.00390625, %v8665_v17 }
0x1590   : > { %v8551_v52 = vpop.f32.mrf.mxu1 }
0x1591   : > { %v14385_v19 = vadd.f32 %v8551_v52, %v8477_v8 }
0x1592   : > { %v8553_v21 = vpop.f32.mrf.mxu1  ;;  %v8668_v14 = vpop.xlane.xlu0 %8667 }
0x1593   : > { %v14387_v60 = vadd.f32 %v8553_v21, %v8477_v8  ;;  %v8676_v27 = vmul.f32 0.00390625, %v8668_v14 }
0x1594   : > { %v8555_v4 = vpop.f32.mrf.mxu1 }
0x1595   : > { %v8647_v58 = vadd.f32 %v14387_v60, %v14385_v19  ;;  %v14391_v30 = vadd.f32 %v8555_v4, %v8482_v48  ;;  %v8688_v0 = vmax.f32 %v8675_v12, %v8676_v27 }
0x1596   : > { %v8557_v6 = vpop.f32.mrf.mxu1 }
0x1597   : > { %8648 = vadd.xlane.f32.xlu0 %v8647_v58  ;;  %v14393_v7 = vadd.f32 %v8557_v6, %v8482_v48 }
0x1598   : > { %v8561_v20 = vpop.f32.mrf.mxu1 }
0x1599   : > { %v8650_v57 = vadd.f32 %v14393_v7, %v14391_v30  ;;  %v14397_v41 = vadd.f32 %v8561_v20, %v8487_v13 }
0x159a   : > { %v8563_v24 = vpop.f32.mrf.mxu1 }
0x159b   : > { %v14399_v33 = vadd.f32 %v8563_v24, %v8487_v13  ;;  %8651 = vadd.xlane.f32.xlu1 %v8650_v57 }
0x159c   : > { %v8565_v38 = vpop.f32.mrf.mxu1 }
0x159d   : > { %v8653_v11 = vadd.f32 %v14399_v33, %v14397_v41  ;;  %v14405_v45 = vadd.f32 %v8565_v38, %v8492_v54 }
0x159e   : > { %v8567_v28 = vpop.f32.mrf.mxu1 }
0x159f   : > { %v14407_v25 = vadd.f32 %v8567_v28, %v8492_v54  ;;  %8654 = vadd.xlane.f32.xlu0 %v8653_v11  ;;  %8670 = vadd.xlane.f32.xlu1 %v8669_v59 }
0x15a1   : > { %v8656_v16 = vadd.f32 %v14407_v25, %v14405_v45 }
0x15a3   : > { %8657 = vadd.xlane.f32.xlu0 %v8656_v16 }
0x15a7   : > { %8673 = vadd.xlane.f32.xlu0 %v8672_v37 }
0x1620   : > { %v8649_v36 = vpop.xlane.xlu0 %8648 }
0x1621   : > { %v8659_v51 = vmul.f32 0.00390625, %v8649_v36 }
0x1624   : > { %v8652_v62 = vpop.xlane.xlu1 %8651 }
0x1625   : > { %v8660_v35 = vmul.f32 0.00390625, %v8652_v62 }
0x1627   : > { %v8679_v29 = vmax.f32 %v8659_v51, %v8660_v35 }
0x1628   : > { %v8655_v55 = vpop.xlane.xlu0 %8654  ;;  %v8671_v39 = vpop.xlane.xlu1 %8670 }
0x1629   : > { %v8661_v63 = vmul.f32 0.00390625, %v8655_v55  ;;  %v8677_v50 = vmul.f32 0.00390625, %v8671_v39 }
0x162c   : > { %v8658_v9 = vpop.xlane.xlu0 %8657 }
0x162d   : > { %v8662_v26 = vmul.f32 0.00390625, %v8658_v9 }
0x162f   : > { %v8680_v42 = vmax.f32 %v8661_v63, %v8662_v26 }
0x1630   : > { %v8674_v32 = vpop.xlane.xlu0 %8673 }
0x1631   : > { %v8681_v5 = vmax.f32 %v8679_v29, %v8680_v42  ;;  %v8678_v10 = vmul.f32 0.00390625, %v8674_v32 }
0x1633   : > { %v8682_v47 = vrot.slane %v8681_v5, 4  ;;  %v8689_v2 = vmax.f32 %v8677_v50, %v8678_v10 }
0x1635   : > { %v8683_v49 = vmax.f32 %v8681_v5, %v8682_v47  ;;  %v8690_v40 = vmax.f32 %v8688_v0, %v8689_v2 }
0x1637   : > { %v8684_v56 = vrot.slane %v8683_v49, 2  ;;  %v8691_v1 = vrot.slane %v8690_v40, 4 }
0x1639   : > { %v8685_v34 = vmax.f32 %v8683_v49, %v8684_v56  ;;  %v8692_v43 = vmax.f32 %v8690_v40, %v8691_v1 }
0x163b   : > { %v8693_v3 = vrot.slane %v8692_v43, 2  ;;  %v8686_v46 = vrot.slane %v8685_v34, 1 }
0x163d   : > { %v8694_v52 = vmax.f32 %v8692_v43, %v8693_v3  ;;  %v8687_v8 = vmax.f32 %v8685_v34, %v8686_v46 }
0x163f   : > { %v8695_v21 = vrot.slane %v8694_v52, 1 }
0x1641   : > { %v8696_v4 = vmax.f32 %v8694_v52, %v8695_v21 }
0x1643   : > { %v8697_v48 = vmax.f32 %v8687_v8, %v8696_v4 }
0x1645   : > { %v8710_v58 = vsub.f32 %v8675_v12, %v8697_v48  ;;  %v8698_v6 = vsub.f32 %v8659_v51, %v8697_v48  ;;  %v8711_v20 = vsub.f32 %v8676_v27, %v8697_v48  ;;  %v8712_v13 = vsub.f32 %v8677_v50, %v8697_v48 }
0x1646   : > { %v8699_v24 = vsub.f32 %v8660_v35, %v8697_v48  ;;  %v8713_v59 = vsub.f32 %v8678_v10, %v8697_v48  ;;  %v8700_v11 = vsub.f32 %v8661_v63, %v8697_v48  ;;  %v8701_v16 = vsub.f32 %v8662_v26, %v8697_v48 }
0x1647   : > { %v8714_v57 = vmul.f32 1.442695, %v8710_v58  ;;  %v8716_v38 = vmul.f32 1.442695, %v8711_v20  ;;  %v8702_v54 = vmul.f32 1.442695, %v8698_v6 }
0x1648   : > { %v8718_v28 = vmul.f32 1.442695, %v8712_v13  ;;  %v8704_v37 = vmul.f32 1.442695, %v8699_v24  ;;  %v8720_v14 = vmul.f32 1.442695, %v8713_v59 }
0x1649   : > { %9427 = vpow2.f32 %v8714_v57  ;;  %v8706_v36 = vmul.f32 1.442695, %v8700_v11  ;;  %v8708_v17 = vmul.f32 1.442695, %v8701_v16 }
0x164a   : > { %9429 = vpow2.f32 %v8716_v38 }
0x164b   : > { %9431 = vpow2.f32 %v8702_v54 }
0x164c   : > { %9433 = vpow2.f32 %v8718_v28 }
0x164d   : > { %9435 = vpow2.f32 %v8704_v37 }
0x164e   : > { %9437 = vpow2.f32 %v8720_v14 }
0x164f   : > { %9439 = vpow2.f32 %v8706_v36 }
0x1650   : > { %9441 = vpow2.f32 %v8708_v17 }
0x1656   : > { %v9428_v55 = vpop.eup %9427 }
0x1657   : > { %v9430_v62 = vpop.eup %9429 }
0x1658   : > { %v9432_v35 = vpop.eup %9431  ;;  %v8731_v9 = vadd.f32 %v9430_v62, %v9428_v55 }
0x1659   : > { %v9434_v51 = vpop.eup %9433 }
0x165a   : > { %v9436_v63 = vpop.eup %9435  ;;  %v8732_v39 = vadd.f32 %v9434_v51, %v8731_v9 }
0x165b   : > { %v9438_v26 = vpop.eup %9437  ;;  %v8722_v27 = vadd.f32 %v9436_v63, %v9432_v35 }
0x165c   : > { %v9440_v12 = vpop.eup %9439  ;;  %v8733_v29 = vadd.f32 %v9438_v26, %v8732_v39 }
0x165d   : > { %v8723_v42 = vadd.f32 %v9440_v12, %v8722_v27  ;;  %v9442_v32 = vpop.eup %9441 }
0x165e   : > { %v8734_v5 = vrot.slane %v8733_v29, 4 }
0x165f   : > { %v8724_v10 = vadd.f32 %v9442_v32, %v8723_v42 }
0x1660   : > { %v8735_v50 = vadd.f32 %v8734_v5, %v8733_v29 }
0x1661   : > { %v8725_v0 = vrot.slane %v8724_v10, 4 }
0x1662   : > { %v8736_v47 = vrot.slane %v8735_v50, 2 }
0x1663   : > { %v8726_v2 = vadd.f32 %v8725_v0, %v8724_v10 }
0x1664   : > { %v8737_v49 = vadd.f32 %v8736_v47, %v8735_v50 }
0x1665   : > { %v8727_v40 = vrot.slane %v8726_v2, 2 }
0x1666   : > { %v8738_v56 = vrot.slane %v8737_v49, 1 }
0x1667   : > { %v8728_v1 = vadd.f32 %v8727_v40, %v8726_v2 }
0x1668   : > { %v8739_v34 = vadd.f32 %v8738_v56, %v8737_v49 }
0x1669   : > { %v8729_v43 = vrot.slane %v8728_v1, 1 }
0x166b   : > { %v8730_v3 = vadd.f32 %v8729_v43, %v8728_v1 }
0x166d   : > { %v8740_v46 = vadd.f32 %v8739_v34, %v8730_v3 }
0x166f   : > { %9443 = vrcp.f32 %v8740_v46 }
0x167c   : > { %v9444_v52 = vpop.eup %9443 }
0x167d   : > { %v8743_v21 = vmul.f32 %v9444_v52, %v9436_v63  ;;  %v8755_v8 = vmul.f32 %v9444_v52, %v9430_v62  ;;  %v8742_v4 = vmul.f32 %v9444_v52, %v9432_v35  ;;  %v8754_v48 = vmul.f32 %v9444_v52, %v9428_v55 }
0x167e   : > { %v8745_v58 = vmul.f32 %v9444_v52, %v9442_v32  ;;  %v8757_v6 = vmul.f32 %v9444_v52, %v9438_v26  ;;  %v8744_v20 = vmul.f32 %v9444_v52, %v9440_v12  ;;  %v8756_v13 = vmul.f32 %v9444_v52, %v9434_v51 }
0x167f   : > { %v8748_v57 = vmul.f32 %v8743_v21, %v14391_v30  ;;  %v8749_v24 = vmul.f32 %v8743_v21, %v14393_v7  ;;  %v8760_v59 = vmul.f32 %v8755_v8, %v14375_v18  ;;  %v8761_v38 = vmul.f32 %v8755_v8, %v14377_v23 }
0x1680   : > { %v8746_v11 = vmul.f32 %v8742_v4, %v14385_v19  ;;  %v8747_v54 = vmul.f32 %v8742_v4, %v14387_v60  ;;  %v8758_v28 = vmul.f32 %v8754_v48, %v14369_v15  ;;  %v8759_v30 = vmul.f32 %v8754_v48, %v14371_v53 }
0x1681   : > { %v8768_v7 = vadd.f32 %v8760_v59, %v8748_v57  ;;  %v8769_v18 = vadd.f32 %v8761_v38, %v8749_v24  ;;  %v8752_v23 = vmul.f32 %v8745_v58, %v14405_v45  ;;  %v8753_v16 = vmul.f32 %v8745_v58, %v14407_v25 }
0x1682   : > { %v8766_v37 = vadd.f32 %v8758_v28, %v8746_v11  ;;  %v8767_v14 = vadd.f32 %v8759_v30, %v8747_v54  ;;  %v8764_v36 = vmul.f32 %v8757_v6, %v14241_v44  ;;  %v8765_v19 = vmul.f32 %v8757_v6, %v14249_v22 }
0x1683   : > { %8777 = vst [vmem:[%s14421_s25 + $0x18] sm:$0xff] %v8769_v18  ;;  %v8785_v15 = vadd.f32 %v8769_v18, %v8768_v7  ;;  %8776 = vst [vmem:[%s14421_s25 + $0x10] sm:$0xff] %v8768_v7  ;;  %v8750_v53 = vmul.f32 %v8744_v20, %v14397_v41  ;;  %v8751_v60 = vmul.f32 %v8744_v20, %v14399_v33 }
0x1684   : > { %v8762_v45 = vmul.f32 %v8756_v13, %v14381_v61  ;;  %8775 = vst [vmem:[%s14421_s25 + $0x8] sm:$0xff] %v8767_v14  ;;  %v8782_v25 = vadd.f32 %v8767_v14, %v8766_v37  ;;  %8774 = vst [vmem:[%s14421_s25] sm:$0xff] %v8766_v37  ;;  %v8772_v17 = vadd.f32 %v8764_v36, %v8752_v23 }
0x1685   : > { %v8773_v44 = vadd.f32 %v8765_v19, %v8753_v16  ;;  %v8763_v22 = vmul.f32 %v8756_v13, %v14383_v31  ;;  %8786 = vadd.xlane.f32.xlu0 %v8785_v15  ;;  %v8796_v35 = vmul.f32 %v8768_v7, %v8768_v7  ;;  %v8797_v33 = vmul.f32 %v8769_v18, %v8769_v18 }
0x1686   : > { %v8770_v55 = vadd.f32 %v8762_v45, %v8750_v53  ;;  %8783 = vadd.xlane.f32.xlu1 %v8782_v25  ;;  %8780 = vst [vmem:[%s14421_s25 + $0x30] sm:$0xff] %v8772_v17  ;;  %v8794_v9 = vmul.f32 %v8766_v37, %v8766_v37  ;;  %v8795_v51 = vmul.f32 %v8767_v14, %v8767_v14 }
0x1687   : > { %8781 = vst [vmem:[%s14421_s25 + $0x38] sm:$0xff] %v8773_v44  ;;  %v8771_v62 = vadd.f32 %v8763_v22, %v8751_v60  ;;  %v8791_v41 = vadd.f32 %v8773_v44, %v8772_v17  ;;  %v8805_v63 = vadd.f32 %v8797_v33, %v8796_v35  ;;  %v8800_v39 = vmul.f32 %v8772_v17, %v8772_v17 }
0x1688   : > { %8778 = vst [vmem:[%s14421_s25 + $0x20] sm:$0xff] %v8770_v55  ;;  %v8801_v31 = vmul.f32 %v8773_v44, %v8773_v44  ;;  %v8802_v26 = vadd.f32 %v8795_v51, %v8794_v9  ;;  %v8798_v27 = vmul.f32 %v8770_v55, %v8770_v55 }
0x1689   : > { %8779 = vst [vmem:[%s14421_s25 + $0x28] sm:$0xff] %v8771_v62  ;;  %v8788_v61 = vadd.f32 %v8771_v62, %v8770_v55  ;;  %8792 = vadd.xlane.f32.xlu0 %v8791_v41  ;;  %v8799_v12 = vmul.f32 %v8771_v62, %v8771_v62 }
0x168a   : > { %v8811_v29 = vadd.f32 %v8801_v31, %v8800_v39 }
0x168b   : > { %8789 = vadd.xlane.f32.xlu1 %v8788_v61  ;;  %v8808_v42 = vadd.f32 %v8799_v12, %v8798_v27 }
0x168d   : > { %8806 = vadd.xlane.f32.xlu0 %v8805_v63 }
0x168f   : > { %8803 = vadd.xlane.f32.xlu1 %v8802_v26 }
0x1691   : > { %8812 = vadd.xlane.f32.xlu0 %v8811_v29 }
0x1693   : > { %8809 = vadd.xlane.f32.xlu1 %v8808_v42 }
0x170e   : > { %v8787_v32 = vpop.xlane.xlu0 %8786 }
0x170f   : > { %8815 = vst.msk [vmem:[%s534_s22 + $0x8] sm:$0xff] %vm15009_vm1, %v8787_v32  ;;  %v8784_v5 = vpop.xlane.xlu1 %8783 }
0x1710   : > { %8814 = vst.msk [vmem:[%s534_s22] sm:$0xff] %vm15010_vm2, %v8784_v5 }
0x1712   : > { %v8793_v10 = vpop.xlane.xlu0 %8792 }
0x1713   : > { %8817 = vst.msk [vmem:[%s534_s22 + $0x18] sm:$0xff] %vm15011_vm3, %v8793_v10 }
0x1714   : > { %v8790_v50 = vpop.xlane.xlu1 %8789 }
0x1715   : > { %8816 = vst.msk [vmem:[%s534_s22 + $0x10] sm:$0xff] %vm15012_vm4, %v8790_v50 }
0x1716   : > { %v8807_v0 = vpop.xlane.xlu0 %8806 }
0x1717   : > { %8819 = vst.msk [vmem:[%s534_s22 + $0x28] sm:$0xff] %vm15013_vm5, %v8807_v0 }
0x1718   : > { %v8804_v47 = vpop.xlane.xlu1 %8803 }
0x1719   : > { %8818 = vst.msk [vmem:[%s534_s22 + $0x20] sm:$0xff] %vm15014_vm6, %v8804_v47 }
0x171a   : > { %v8813_v2 = vpop.xlane.xlu0 %8812 }
0x171b   : > { %8821 = vst.msk [vmem:[%s534_s22 + $0x38] sm:$0xff] %vm15015_vm7, %v8813_v2 }
0x171c   : > { %v8810_v49 = vpop.xlane.xlu1 %8809 }
0x171d   : > { %8820 = vst.msk [vmem:[%s534_s22 + $0x30] sm:$0xff] %vm15016_vm9, %v8810_v49 }
0x171e PF: > { %s27_s21 = sadd.s32 1, %s9479_s21  }
0x171f   : > { %p24_p4 = scmp.ge.s32.totalorder %s27_s21, 4  }
0x1721   :  { %26 = sbr.rel (!%p24_p4) target bundleno = 6 (0x6), region = 145 }

</bundles_post_ra>
